<compile_context>
chip_gen: v5e
topology: v5e:2x2
jax: 0.10.0
libtpu: 0.0.40
codegen_flags: <defaults>
</compile_context>

<pallas_src>
import functools
import numpy as np
import jax
import jax.numpy as jnp
from jax.experimental import pallas as pl
from jax.experimental.pallas import tpu as pltpu

EPS = 1e-7            # self.eps
MID_WEIGHT = 0.5      # self.mid_weight (hard-coded in the module)
LOGMAG_WEIGHT = 0.1   # self.logmag_weight


@functools.lru_cache(maxsize=1)
def _vmem_constants():
    """Returns (tile VMEM budget, vmem_limit_bytes), gated on physical VMEM."""
    try:
        cap = int(pltpu.get_tpu_info().vmem_capacity_bytes)
    except Exception:
        cap = 64 * 1024 * 1024                    # assume smallest (v7x per-TC)
    if cap >= 96 * 1024 * 1024:                   # v5e / v6e: 128 MiB per core
        return 90 * 1024 * 1024, 104 * 1024 * 1024
    # v7x: 64 MiB per core; leave headroom for Mosaic internal scratch/semaphores.
    return 44 * 1024 * 1024, 54 * 1024 * 1024


def _invariant_basis_spec(w, two_fp):
    """BlockSpec for the grid-invariant DFT basis; single-buffered when supported."""
    idx_map = lambda c, i: (0, 0)
    try:
        return pl.BlockSpec((w, two_fp), idx_map, pipeline_mode=pl.Buffered(1))
    except Exception:       # older API without pipeline_mode / Buffered
        return pl.BlockSpec((w, two_fp), idx_map)


# ----------------------------------------------------------------------------
# Pallas kernel: two MXU matmuls per frame-tile step against the resident basis.
#   e_ref, t_ref : (tile_m, W)  bf16 est / tgt frame tiles
#   basis        : (W, 2*Fp)    bf16, cols [0:Fp] = hann*cos, [Fp:] = -hann*sin
#   outputs      : (8, 128) per chunk, filled with the chunk's scalar sum
#   scratch      : two (tile_m, Fp) f32 elementwise accumulators
# ----------------------------------------------------------------------------
def _scale_loss_kernel(e_ref, t_ref, basis_ref, abs_out_ref, sq_out_ref,
                       acc_abs_ref, acc_sq_ref, *, fp):
    i = pl.program_id(1)   # reduction axis (last); axis 0 is the parallel chunk axis

    @pl.when(i == 0)
    def _():
        acc_abs_ref[...] = jnp.zeros_like(acc_abs_ref)
        acc_sq_ref[...] = jnp.zeros_like(acc_sq_ref)

    # bf16 x bf16 -> f32 accumulation on the MXU (cos|sin fused along the lane axis).
    basis = basis_ref[...]
    e_spec = jnp.dot(e_ref[...], basis, preferred_element_type=jnp.float32)
    t_spec = jnp.dot(t_ref[...], basis, preferred_element_type=jnp.float32)

    e_re, e_im = e_spec[:, :fp], e_spec[:, fp:]
    t_re, t_im = t_spec[:, :fp], t_spec[:, fp:]
    e_mag = jnp.sqrt(e_re * e_re + e_im * e_im)              # (tile_m, Fp) f32
    t_mag = jnp.sqrt(t_re * t_re + t_im * t_im)

    # Elementwise accumulation only (VPU); no cross-lane reduce in the inner loop.
    acc_abs_ref[...] += jnp.abs(e_mag - t_mag)
    dlog = jnp.log10((e_mag + EPS) / (t_mag + EPS))          # one EUP log10
    acc_sq_ref[...] += dlog * dlog

    @pl.when(i == pl.num_programs(1) - 1)
    def _():
        # Single full cross-lane reduce + lane-dense (8,128) store per chunk.
        abs_out_ref[...] = jnp.full(abs_out_ref.shape, jnp.sum(acc_abs_ref[...]),
                                    dtype=abs_out_ref.dtype)
        sq_out_ref[...] = jnp.full(sq_out_ref.shape, jnp.sum(acc_sq_ref[...]),
                                   dtype=sq_out_ref.dtype)


def _spectral_sums(est_frames, tgt_frames, basis, fp, tile_m=256, max_chunks=2):
    """Returns (sum |Δmag|, sum Δlog10^2) over all frames × (true) freq bins."""
    N, W = est_frames.shape
    two_fp = basis.shape[1]
    assert two_fp == 2 * fp

    budget, vmem_limit = _vmem_constants()

    # Honest VMEM accounting: bf16 frame tiles (double-buffered) + single-buffered
    # bf16 basis + f32 accumulators + post-matmul f32 temporaries + outputs.
    def vmem_bytes(tm):
        frame_blocks = 2 * 2 * tm * W * 2            # est+tgt, 2x buffered, bf16
        basis_bytes = W * two_fp * 2                 # bf16, single-buffered
        acc_bytes = 2 * tm * fp * 4                  # f32 accumulators
        tmp_bytes = 3 * 2 * tm * two_fp * 4          # e/t spec + mag/diff temps, f32
        out_bytes = 2 * 2 * 8 * 128 * 4
        return frame_blocks + basis_bytes + acc_bytes + tmp_bytes + out_bytes

    while tile_m > 8 and vmem_bytes(tile_m) > budget:
        tile_m //= 2

    # Don't pad far beyond the real frame count for short inputs (wasted MXU work).
    per_chunk = -(-N // max_chunks)
    tile_m = max(8, min(tile_m, ((per_chunk + 7) // 8) * 8))

    n_blocks = -(-N // tile_m)
    n_chunks = max(1, min(max_chunks, n_blocks))     # parallel axis (2 TCs on v7x)
    bpc = -(-n_blocks // n_chunks)                   # blocks per chunk (reduction)
    n_pad = n_chunks * bpc * tile_m - N

    # bf16 matmul inputs; zero frames give identical zero spectra -> contribute 0.
    est_frames = est_frames.astype(jnp.bfloat16)
    tgt_frames = tgt_frames.astype(jnp.bfloat16)
    if n_pad:
        z = jnp.zeros((n_pad, W), jnp.bfloat16)
        est_frames = jnp.concatenate([est_frames, z], axis=0)
        tgt_frames = jnp.concatenate([tgt_frames, z], axis=0)

    kernel = functools.partial(_scale_loss_kernel, fp=fp)

    out_abs, out_sq = pl.pallas_call(
        kernel,
        out_shape=(jax.ShapeDtypeStruct((n_chunks * 8, 128), jnp.float32),
                   jax.ShapeDtypeStruct((n_chunks * 8, 128), jnp.float32)),
        grid_spec=pltpu.PrefetchScalarGridSpec(
            num_scalar_prefetch=0,
            grid=(n_chunks, bpc),
            in_specs=[
                pl.BlockSpec((tile_m, W), lambda c, i: (c * bpc + i, 0)),
                pl.BlockSpec((tile_m, W), lambda c, i: (c * bpc + i, 0)),
                _invariant_basis_spec(W, two_fp),
            ],
            out_specs=(pl.BlockSpec((8, 128), lambda c, i: (c, 0)),
                       pl.BlockSpec((8, 128), lambda c, i: (c, 0))),
            scratch_shapes=[pltpu.VMEM((tile_m, fp), jnp.float32),
                            pltpu.VMEM((tile_m, fp), jnp.float32)]),
        compiler_params=pltpu.CompilerParams(
            dimension_semantics=("parallel", "arbitrary"),
            vmem_limit_bytes=vmem_limit),
    )(est_frames, tgt_frames, basis)

    abs_sum = jnp.sum(out_abs.reshape(n_chunks, 8, 128)[:, 0, 0])
    sq_sum = jnp.sum(out_sq.reshape(n_chunks, 8, 128)[:, 0, 0])
    return abs_sum, sq_sum


# ----------------------------------------------------------------------------
# Glue: framing, deterministic (window, DFT basis) "parameters"
# ----------------------------------------------------------------------------
def _frame(x, win, hop):
    """x: (B, T) -> (B*n_frames, win), center=False framing."""
    B, T = x.shape
    n_frames = 1 + (T - win) // hop
    idx = jnp.arange(n_frames)[:, None] * hop + jnp.arange(win)[None, :]
    return x[:, idx].reshape(B * n_frames, win)


def _fused_rdft_basis(win, n_fft):
    """Hann-windowed real-DFT basis (bf16): cols [0:Fp]=hann*cos, [Fp:2Fp]=-hann*sin.

    Fp is F rounded up to a multiple of 128 (lane-dense matmul output); padded
    columns are zero so they contribute exactly 0 to both loss sums.
    """
    F = n_fft // 2 + 1
    Fp = ((F + 127) // 128) * 128
    n = np.arange(win)
    hann = 0.5 - 0.5 * np.cos(2.0 * np.pi * n / win)       # periodic hann
    freqs = np.arange(F)
    ang = 2.0 * np.pi * np.outer(n, freqs) / n_fft          # (win, F)
    basis = np.zeros((win, 2 * Fp), np.float32)
    basis[:, :F] = hann[:, None] * np.cos(ang)
    basis[:, Fp:Fp + F] = -hann[:, None] * np.sin(ang)
    return jnp.asarray(basis, dtype=jnp.bfloat16), F, Fp


def multiscale_spectral_loss_midside(est, tgt, n_filters, windows_size, hops_size):
    """est, tgt: (B, 2, T) float32 stereo waveforms. Returns scalar loss."""
    est_mid, est_side = est[:, 0] + est[:, 1], est[:, 0] - est[:, 1]
    tgt_mid, tgt_side = tgt[:, 0] + tgt[:, 1], tgt[:, 0] - tgt[:, 1]

    # The mid/side fusion below is exact only because mid_weight == 0.5 and the
    # mid/side magnitude spectra have identical element counts.
    assert MID_WEIGHT == 0.5

    total_mag = 0.0
    total_logmag = 0.0
    for n_fft, win, hop in zip(n_filters, windows_size, hops_size):
        basis, F_true, Fp = _fused_rdft_basis(win, n_fft)

        # Stack mid and side along the frame axis (same ordering for est & tgt).
        e_fr = jnp.concatenate([_frame(est_mid, win, hop),
                                _frame(est_side, win, hop)], axis=0)
        t_fr = jnp.concatenate([_frame(tgt_mid, win, hop),
                                _frame(tgt_side, win, hop)], axis=0)

        count = e_fr.shape[0] * F_true        # true (unpadded) elements, mid+side
        abs_sum, sq_sum = _spectral_sums(e_fr, t_fr, basis, Fp)

        # 0.5*mean(mid) + 0.5*mean(side) == combined mean; torch.norm(scalar>=0)
        # is abs (no-op), kept for literal fidelity.
        total_mag = total_mag + jnp.abs(abs_sum / count)
        total_logmag = total_logmag + sq_sum / count

    return (1.0 - LOGMAG_WEIGHT) * total_mag + LOGMAG_WEIGHT * total_logmag


# ----------------------------------------------------------------------------
# Pure numpy reference (same synthetic front-end) for correctness check
# ----------------------------------------------------------------------------
def _reference_loss(est, tgt, n_filters, windows_size, hops_size):
    est = np.asarray(est, np.float64)
    tgt = np.asarray(tgt, np.float64)

    def mid_side(x):
        return x[:, 0] + x[:, 1], x[:, 0] - x[:, 1]

    def frame_np(x, win, hop):
        B, T = x.shape
        nf = 1 + (T - win) // hop
        idx = np.arange(nf)[:, None] * hop + np.arange(win)[None, :]
        return x[:, idx].reshape(B * nf, win)

    def mag_spec(x, win, hop, n_fft):
        fr = frame_np(x, win, hop)
        n = np.arange(win)
        hann = 0.5 - 0.5 * np.cos(2.0 * np.pi * n / win)
        freqs = np.arange(n_fft // 2 + 1)
        ang = 2.0 * np.pi * np.outer(n, freqs) / n_fft
        re = fr @ (hann[:, None] * np.cos(ang))
        im = fr @ (-hann[:, None] * np.sin(ang))
        return np.sqrt(re * re + im * im)

    em, es = mid_side(est)
    tm, ts = mid_side(tgt)
    total_mag = 0.0
    total_log = 0.0
    for n_fft, win, hop in zip(n_filters, windows_size, hops_size):
        def losses(a, b):
            ma, mb = mag_spec(a, win, hop, n_fft), mag_spec(b, win, hop, n_fft)
            l1 = np.mean(np.abs(ma - mb))
            mse = np.mean((np.log10(ma + EPS) - np.log10(mb + EPS)) ** 2)
            return l1, mse
        l1m, msem = losses(em, tm)
        l1s, mses = losses(es, ts)
        total_mag += MID_WEIGHT * abs(l1m) + (1 - MID_WEIGHT) * abs(l1s)
        total_log += MID_WEIGHT * msem + (1 - MID_WEIGHT) * mses
    return (1 - LOGMAG_WEIGHT) * total_mag + LOGMAG_WEIGHT * total_log


if __name__ == "__main__":
    # Scaled-down versions of the module defaults; T chosen so both the
    # multi-block reduction axis and the 2-chunk parallel axis are exercised.
    n_filters = [128, 64]
    windows_size = [128, 64]
    hops_size = [32, 16]

    B, T = 2, 4096
    key = jax.random.PRNGKey(0)
    k1, k2 = jax.random.split(key)
    est = jax.random.normal(k1, (B, 2, T), dtype=jnp.float32)
    tgt = jax.random.normal(k2, (B, 2, T), dtype=jnp.float32)

    loss_fn = jax.jit(lambda e, t: multiscale_spectral_loss_midside(
        e, t, n_filters, windows_size, hops_size))
    loss = jax.block_until_ready(loss_fn(est, tgt))

    ref = _reference_loss(np.asarray(est), np.asarray(tgt),
                          n_filters, windows_size, hops_size)
    # bf16 matmul inputs introduce ~0.1-1% drift; fine for a training loss.
    np.testing.assert_allclose(np.asarray(loss), ref, rtol=2e-2, atol=1e-3)

    print("KERNEL_OK")
</pallas_src>

<mosaic_0001>
module attributes {stable_mosaic.version = 11 : i64} {
  func.func @_scale_loss_kernel(%arg0: i32, %arg1: i32, %arg2: memref<256x128xbf16, #tpu.memory_space<vmem>>, %arg3: memref<256x128xbf16, #tpu.memory_space<vmem>>, %arg4: memref<128x256xbf16, #tpu.memory_space<vmem>>, %arg5: memref<8x128xf32, #tpu.memory_space<vmem>>, %arg6: memref<8x128xf32, #tpu.memory_space<vmem>>, %arg7: memref<256x128xf32, #tpu.memory_space<vmem>>, %arg8: memref<256x128xf32, #tpu.memory_space<vmem>>) attributes {dimension_semantics = [#tpu.dimension_semantics<parallel>, #tpu.dimension_semantics<arbitrary>], iteration_bounds = array<i64: 2, 1>, scalar_prefetch = 0 : i64, scratch_operands = 2 : i64, tpu.core_type = #tpu.core_type<tc>, window_params = [{transform_indices = @transform_0, window_bounds = array<i64: 256, 128>}, {transform_indices = @transform_1, window_bounds = array<i64: 256, 128>}, {pipeline_mode = #tpu.pipeline_mode<synchronous>, transform_indices = @transform_2, window_bounds = array<i64: 128, 256>}, {transform_indices = @transform_3, window_bounds = array<i64: 8, 128>}, {transform_indices = @transform_4, window_bounds = array<i64: 8, 128>}]} {
    %c0_i32 = arith.constant 0 : i32
    %0 = arith.cmpi eq, %arg1, %c0_i32 : i32
    %1 = arith.extui %0 : i1 to i32
    %c0_i32_0 = arith.constant 0 : i32
    %2 = arith.cmpi ne, %1, %c0_i32_0 : i32
    scf.if %2 {
      %cst_20 = arith.constant 0.000000e+00 : f32
      %40 = vector.broadcast %cst_20 : f32 to vector<256x128xf32>
      %c0_21 = arith.constant 0 : index
      %c0_22 = arith.constant 0 : index
      %41 = vector.load %arg7[%c0_21, %c0_22] : memref<256x128xf32, #tpu.memory_space<vmem>>, vector<256x128xf32>
      tpu.vector_store %arg7[%c0_21, %c0_22], %40 {strides = array<i32>} : memref<256x128xf32, #tpu.memory_space<vmem>>, vector<256x128xf32>,
      %cst_23 = arith.constant 0.000000e+00 : f32
      %42 = vector.broadcast %cst_23 : f32 to vector<256x128xf32>
      %c0_24 = arith.constant 0 : index
      %c0_25 = arith.constant 0 : index
      %43 = vector.load %arg8[%c0_24, %c0_25] : memref<256x128xf32, #tpu.memory_space<vmem>>, vector<256x128xf32>
      tpu.vector_store %arg8[%c0_24, %c0_25], %42 {strides = array<i32>} : memref<256x128xf32, #tpu.memory_space<vmem>>, vector<256x128xf32>,
    } else {
    }
    %c0 = arith.constant 0 : index
    %c0_1 = arith.constant 0 : index
    %3 = vector.load %arg4[%c0, %c0_1] : memref<128x256xbf16, #tpu.memory_space<vmem>>, vector<128x256xbf16>
    %c0_2 = arith.constant 0 : index
    %c0_3 = arith.constant 0 : index
    %4 = vector.load %arg2[%c0_2, %c0_3] : memref<256x128xbf16, #tpu.memory_space<vmem>>, vector<256x128xbf16>
    %cst = arith.constant dense<0.000000e+00> : vector<256x256xf32>
    %5 = tpu.matmul %4, %3, %cst {dimension_numbers = #tpu.dot_dimension_numbers<[1], [0], [0], [1], [0, 0, 1, 1], [], []>} : vector<256x128xbf16>, vector<128x256xbf16>, vector<256x256xf32> -> vector<256x256xf32>
    %c0_4 = arith.constant 0 : index
    %c0_5 = arith.constant 0 : index
    %6 = vector.load %arg3[%c0_4, %c0_5] : memref<256x128xbf16, #tpu.memory_space<vmem>>, vector<256x128xbf16>
    %cst_6 = arith.constant dense<0.000000e+00> : vector<256x256xf32>
    %7 = tpu.matmul %6, %3, %cst_6 {dimension_numbers = #tpu.dot_dimension_numbers<[1], [0], [0], [1], [0, 0, 1, 1], [], []>} : vector<256x128xbf16>, vector<128x256xbf16>, vector<256x256xf32> -> vector<256x256xf32>
    %8 = vector.extract_strided_slice %5 {offsets = [0, 0], sizes = [256, 128], strides = [1, 1]} : vector<256x256xf32> to vector<256x128xf32>
    %9 = vector.extract_strided_slice %5 {offsets = [0, 128], sizes = [256, 128], strides = [1, 1]} : vector<256x256xf32> to vector<256x128xf32>
    %10 = vector.extract_strided_slice %7 {offsets = [0, 0], sizes = [256, 128], strides = [1, 1]} : vector<256x256xf32> to vector<256x128xf32>
    %11 = vector.extract_strided_slice %7 {offsets = [0, 128], sizes = [256, 128], strides = [1, 1]} : vector<256x256xf32> to vector<256x128xf32>
    %12 = arith.mulf %8, %8 : vector<256x128xf32>
    %13 = arith.mulf %9, %9 : vector<256x128xf32>
    %14 = arith.addf %12, %13 : vector<256x128xf32>
    %15 = math.sqrt %14 : vector<256x128xf32>
    %16 = arith.mulf %10, %10 : vector<256x128xf32>
    %17 = arith.mulf %11, %11 : vector<256x128xf32>
    %18 = arith.addf %16, %17 : vector<256x128xf32>
    %19 = math.sqrt %18 : vector<256x128xf32>
    %c0_7 = arith.constant 0 : index
    %c0_8 = arith.constant 0 : index
    %20 = vector.load %arg7[%c0_7, %c0_8] : memref<256x128xf32, #tpu.memory_space<vmem>>, vector<256x128xf32>
    %21 = arith.subf %15, %19 : vector<256x128xf32>
    %22 = math.absf %21 : vector<256x128xf32>
    %23 = arith.addf %20, %22 : vector<256x128xf32>
    %c0_9 = arith.constant 0 : index
    %c0_10 = arith.constant 0 : index
    %24 = vector.load %arg7[%c0_9, %c0_10] : memref<256x128xf32, #tpu.memory_space<vmem>>, vector<256x128xf32>
    tpu.vector_store %arg7[%c0_9, %c0_10], %23 {strides = array<i32>} : memref<256x128xf32, #tpu.memory_space<vmem>>, vector<256x128xf32>,
    %cst_11 = arith.constant 1.000000e-07 : f32
    %25 = vector.broadcast %cst_11 : f32 to vector<256x128xf32>
    %26 = arith.addf %15, %25 : vector<256x128xf32>
    %cst_12 = arith.constant 1.000000e-07 : f32
    %27 = vector.broadcast %cst_12 : f32 to vector<256x128xf32>
    %28 = arith.addf %19, %27 : vector<256x128xf32>
    %29 = arith.divf %26, %28 : vector<256x128xf32>
    %30 = math.log %29 : vector<256x128xf32>
    %cst_13 = arith.constant 0.434294492 : f32
    %31 = vector.broadcast %cst_13 : f32 to vector<256x128xf32>
    %32 = arith.mulf %30, %31 : vector<256x128xf32>
    %c0_14 = arith.constant 0 : index
    %c0_15 = arith.constant 0 : index
    %33 = vector.load %arg8[%c0_14, %c0_15] : memref<256x128xf32, #tpu.memory_space<vmem>>, vector<256x128xf32>
    %34 = arith.mulf %32, %32 : vector<256x128xf32>
    %35 = arith.addf %33, %34 : vector<256x128xf32>
    %c0_16 = arith.constant 0 : index
    %c0_17 = arith.constant 0 : index
    %36 = vector.load %arg8[%c0_16, %c0_17] : memref<256x128xf32, #tpu.memory_space<vmem>>, vector<256x128xf32>
    tpu.vector_store %arg8[%c0_16, %c0_17], %35 {strides = array<i32>} : memref<256x128xf32, #tpu.memory_space<vmem>>, vector<256x128xf32>,
    %c0_i32_18 = arith.constant 0 : i32
    %37 = arith.cmpi eq, %arg1, %c0_i32_18 : i32
    %38 = arith.extui %37 : i1 to i32
    %c0_i32_19 = arith.constant 0 : i32
    %39 = arith.cmpi ne, %38, %c0_i32_19 : i32
    scf.if %39 {
      %c0_20 = arith.constant 0 : index
      %c0_21 = arith.constant 0 : index
      %40 = vector.load %arg7[%c0_20, %c0_21] : memref<256x128xf32, #tpu.memory_space<vmem>>, vector<256x128xf32>
      %41 = vector.shape_cast %40 : vector<256x128xf32> to vector<1x256x128xf32>
      %cst_22 = arith.constant dense<0.000000e+00> : vector<1xf32>
      %42 = vector.multi_reduction <add>, %41, %cst_22 [1, 2] : vector<1x256x128xf32> to vector<1xf32>
      %43 = vector.shape_cast %42 : vector<1xf32> to vector<1x1x1xf32>
      %44 = vector.extract %43[0, 0, 0] : f32 from vector<1x1x1xf32>
      %45 = vector.broadcast %44 : f32 to vector<8x128xf32>
      %c0_23 = arith.constant 0 : index
      %c0_24 = arith.constant 0 : index
      %46 = vector.load %arg5[%c0_23, %c0_24] : memref<8x128xf32, #tpu.memory_space<vmem>>, vector<8x128xf32>
      tpu.vector_store %arg5[%c0_23, %c0_24], %45 {strides = array<i32>} : memref<8x128xf32, #tpu.memory_space<vmem>>, vector<8x128xf32>,
      %c0_25 = arith.constant 0 : index
      %c0_26 = arith.constant 0 : index
      %47 = vector.load %arg8[%c0_25, %c0_26] : memref<256x128xf32, #tpu.memory_space<vmem>>, vector<256x128xf32>
      %48 = vector.shape_cast %47 : vector<256x128xf32> to vector<1x256x128xf32>
      %cst_27 = arith.constant dense<0.000000e+00> : vector<1xf32>
      %49 = vector.multi_reduction <add>, %48, %cst_27 [1, 2] : vector<1x256x128xf32> to vector<1xf32>
      %50 = vector.shape_cast %49 : vector<1xf32> to vector<1x1x1xf32>
      %51 = vector.extract %50[0, 0, 0] : f32 from vector<1x1x1xf32>
      %52 = vector.broadcast %51 : f32 to vector<8x128xf32>
      %c0_28 = arith.constant 0 : index
      %c0_29 = arith.constant 0 : index
      %53 = vector.load %arg6[%c0_28, %c0_29] : memref<8x128xf32, #tpu.memory_space<vmem>>, vector<8x128xf32>
      tpu.vector_store %arg6[%c0_28, %c0_29], %52 {strides = array<i32>} : memref<8x128xf32, #tpu.memory_space<vmem>>, vector<8x128xf32>,
    } else {
    }
    return
  }
  func.func @transform_0(%arg0: i32, %arg1: i32) -> (i32, i32) {
    %c1_i32 = arith.constant 1 : i32
    %0 = arith.muli %arg0, %c1_i32 : i32
    %1 = arith.addi %0, %arg1 : i32
    %c0_i32 = arith.constant 0 : i32
    %c0_i32_0 = arith.constant 0 : i32
    return %1, %c0_i32 : i32, i32
  }
  func.func @transform_1(%arg0: i32, %arg1: i32) -> (i32, i32) {
    %c1_i32 = arith.constant 1 : i32
    %0 = arith.muli %arg0, %c1_i32 : i32
    %1 = arith.addi %0, %arg1 : i32
    %c0_i32 = arith.constant 0 : i32
    %c0_i32_0 = arith.constant 0 : i32
    return %1, %c0_i32 : i32, i32
  }
  func.func @transform_2(%arg0: i32, %arg1: i32) -> (i32, i32) {
    %c0_i32 = arith.constant 0 : i32
    %c0_i32_0 = arith.constant 0 : i32
    %c0_i32_1 = arith.constant 0 : i32
    return %c0_i32, %c0_i32_0 : i32, i32
  }
  func.func @transform_3(%arg0: i32, %arg1: i32) -> (i32, i32) {
    %c0_i32 = arith.constant 0 : i32
    %c0_i32_0 = arith.constant 0 : i32
    return %arg0, %c0_i32 : i32, i32
  }
  func.func @transform_4(%arg0: i32, %arg1: i32) -> (i32, i32) {
    %c0_i32 = arith.constant 0 : i32
    %c0_i32_0 = arith.constant 0 : i32
    return %arg0, %c0_i32 : i32, i32
  }
}

module attributes {stable_mosaic.version = 11 : i64} {
  func.func @_scale_loss_kernel(%arg0: i32, %arg1: i32, %arg2: memref<256x64xbf16, #tpu.memory_space<vmem>>, %arg3: memref<256x64xbf16, #tpu.memory_space<vmem>>, %arg4: memref<64x256xbf16, #tpu.memory_space<vmem>>, %arg5: memref<8x128xf32, #tpu.memory_space<vmem>>, %arg6: memref<8x128xf32, #tpu.memory_space<vmem>>, %arg7: memref<256x128xf32, #tpu.memory_space<vmem>>, %arg8: memref<256x128xf32, #tpu.memory_space<vmem>>) attributes {dimension_semantics = [#tpu.dimension_semantics<parallel>, #tpu.dimension_semantics<arbitrary>], iteration_bounds = array<i64: 2, 2>, scalar_prefetch = 0 : i64, scratch_operands = 2 : i64, tpu.core_type = #tpu.core_type<tc>, window_params = [{transform_indices = @transform_0, window_bounds = array<i64: 256, 64>}, {transform_indices = @transform_1, window_bounds = array<i64: 256, 64>}, {pipeline_mode = #tpu.pipeline_mode<synchronous>, transform_indices = @transform_2, window_bounds = array<i64: 64, 256>}, {transform_indices = @transform_3, window_bounds = array<i64: 8, 128>}, {transform_indices = @transform_4, window_bounds = array<i64: 8, 128>}]} {
    %c0_i32 = arith.constant 0 : i32
    %0 = arith.cmpi eq, %arg1, %c0_i32 : i32
    %1 = arith.extui %0 : i1 to i32
    %c0_i32_0 = arith.constant 0 : i32
    %2 = arith.cmpi ne, %1, %c0_i32_0 : i32
    scf.if %2 {
      %cst_19 = arith.constant 0.000000e+00 : f32
      %40 = vector.broadcast %cst_19 : f32 to vector<256x128xf32>
      %c0_20 = arith.constant 0 : index
      %c0_21 = arith.constant 0 : index
      %41 = vector.load %arg7[%c0_20, %c0_21] : memref<256x128xf32, #tpu.memory_space<vmem>>, vector<256x128xf32>
      tpu.vector_store %arg7[%c0_20, %c0_21], %40 {strides = array<i32>} : memref<256x128xf32, #tpu.memory_space<vmem>>, vector<256x128xf32>,
      %cst_22 = arith.constant 0.000000e+00 : f32
      %42 = vector.broadcast %cst_22 : f32 to vector<256x128xf32>
      %c0_23 = arith.constant 0 : index
      %c0_24 = arith.constant 0 : index
      %43 = vector.load %arg8[%c0_23, %c0_24] : memref<256x128xf32, #tpu.memory_space<vmem>>, vector<256x128xf32>
      tpu.vector_store %arg8[%c0_23, %c0_24], %42 {strides = array<i32>} : memref<256x128xf32, #tpu.memory_space<vmem>>, vector<256x128xf32>,
    } else {
    }
    %c0 = arith.constant 0 : index
    %c0_1 = arith.constant 0 : index
    %3 = vector.load %arg4[%c0, %c0_1] : memref<64x256xbf16, #tpu.memory_space<vmem>>, vector<64x256xbf16>
    %c0_2 = arith.constant 0 : index
    %c0_3 = arith.constant 0 : index
    %4 = vector.load %arg2[%c0_2, %c0_3] : memref<256x64xbf16, #tpu.memory_space<vmem>>, vector<256x64xbf16>
    %cst = arith.constant dense<0.000000e+00> : vector<256x256xf32>
    %5 = tpu.matmul %4, %3, %cst {dimension_numbers = #tpu.dot_dimension_numbers<[1], [0], [0], [1], [0, 0, 1, 1], [], []>} : vector<256x64xbf16>, vector<64x256xbf16>, vector<256x256xf32> -> vector<256x256xf32>
    %c0_4 = arith.constant 0 : index
    %c0_5 = arith.constant 0 : index
    %6 = vector.load %arg3[%c0_4, %c0_5] : memref<256x64xbf16, #tpu.memory_space<vmem>>, vector<256x64xbf16>
    %cst_6 = arith.constant dense<0.000000e+00> : vector<256x256xf32>
    %7 = tpu.matmul %6, %3, %cst_6 {dimension_numbers = #tpu.dot_dimension_numbers<[1], [0], [0], [1], [0, 0, 1, 1], [], []>} : vector<256x64xbf16>, vector<64x256xbf16>, vector<256x256xf32> -> vector<256x256xf32>
    %8 = vector.extract_strided_slice %5 {offsets = [0, 0], sizes = [256, 128], strides = [1, 1]} : vector<256x256xf32> to vector<256x128xf32>
    %9 = vector.extract_strided_slice %5 {offsets = [0, 128], sizes = [256, 128], strides = [1, 1]} : vector<256x256xf32> to vector<256x128xf32>
    %10 = vector.extract_strided_slice %7 {offsets = [0, 0], sizes = [256, 128], strides = [1, 1]} : vector<256x256xf32> to vector<256x128xf32>
    %11 = vector.extract_strided_slice %7 {offsets = [0, 128], sizes = [256, 128], strides = [1, 1]} : vector<256x256xf32> to vector<256x128xf32>
    %12 = arith.mulf %8, %8 : vector<256x128xf32>
    %13 = arith.mulf %9, %9 : vector<256x128xf32>
    %14 = arith.addf %12, %13 : vector<256x128xf32>
    %15 = math.sqrt %14 : vector<256x128xf32>
    %16 = arith.mulf %10, %10 : vector<256x128xf32>
    %17 = arith.mulf %11, %11 : vector<256x128xf32>
    %18 = arith.addf %16, %17 : vector<256x128xf32>
    %19 = math.sqrt %18 : vector<256x128xf32>
    %c0_7 = arith.constant 0 : index
    %c0_8 = arith.constant 0 : index
    %20 = vector.load %arg7[%c0_7, %c0_8] : memref<256x128xf32, #tpu.memory_space<vmem>>, vector<256x128xf32>
    %21 = arith.subf %15, %19 : vector<256x128xf32>
    %22 = math.absf %21 : vector<256x128xf32>
    %23 = arith.addf %20, %22 : vector<256x128xf32>
    %c0_9 = arith.constant 0 : index
    %c0_10 = arith.constant 0 : index
    %24 = vector.load %arg7[%c0_9, %c0_10] : memref<256x128xf32, #tpu.memory_space<vmem>>, vector<256x128xf32>
    tpu.vector_store %arg7[%c0_9, %c0_10], %23 {strides = array<i32>} : memref<256x128xf32, #tpu.memory_space<vmem>>, vector<256x128xf32>,
    %cst_11 = arith.constant 1.000000e-07 : f32
    %25 = vector.broadcast %cst_11 : f32 to vector<256x128xf32>
    %26 = arith.addf %15, %25 : vector<256x128xf32>
    %cst_12 = arith.constant 1.000000e-07 : f32
    %27 = vector.broadcast %cst_12 : f32 to vector<256x128xf32>
    %28 = arith.addf %19, %27 : vector<256x128xf32>
    %29 = arith.divf %26, %28 : vector<256x128xf32>
    %30 = math.log %29 : vector<256x128xf32>
    %cst_13 = arith.constant 0.434294492 : f32
    %31 = vector.broadcast %cst_13 : f32 to vector<256x128xf32>
    %32 = arith.mulf %30, %31 : vector<256x128xf32>
    %c0_14 = arith.constant 0 : index
    %c0_15 = arith.constant 0 : index
    %33 = vector.load %arg8[%c0_14, %c0_15] : memref<256x128xf32, #tpu.memory_space<vmem>>, vector<256x128xf32>
    %34 = arith.mulf %32, %32 : vector<256x128xf32>
    %35 = arith.addf %33, %34 : vector<256x128xf32>
    %c0_16 = arith.constant 0 : index
    %c0_17 = arith.constant 0 : index
    %36 = vector.load %arg8[%c0_16, %c0_17] : memref<256x128xf32, #tpu.memory_space<vmem>>, vector<256x128xf32>
    tpu.vector_store %arg8[%c0_16, %c0_17], %35 {strides = array<i32>} : memref<256x128xf32, #tpu.memory_space<vmem>>, vector<256x128xf32>,
    %c1_i32 = arith.constant 1 : i32
    %37 = arith.cmpi eq, %arg1, %c1_i32 : i32
    %38 = arith.extui %37 : i1 to i32
    %c0_i32_18 = arith.constant 0 : i32
    %39 = arith.cmpi ne, %38, %c0_i32_18 : i32
    scf.if %39 {
      %c0_19 = arith.constant 0 : index
      %c0_20 = arith.constant 0 : index
      %40 = vector.load %arg7[%c0_19, %c0_20] : memref<256x128xf32, #tpu.memory_space<vmem>>, vector<256x128xf32>
      %41 = vector.shape_cast %40 : vector<256x128xf32> to vector<1x256x128xf32>
      %cst_21 = arith.constant dense<0.000000e+00> : vector<1xf32>
      %42 = vector.multi_reduction <add>, %41, %cst_21 [1, 2] : vector<1x256x128xf32> to vector<1xf32>
      %43 = vector.shape_cast %42 : vector<1xf32> to vector<1x1x1xf32>
      %44 = vector.extract %43[0, 0, 0] : f32 from vector<1x1x1xf32>
      %45 = vector.broadcast %44 : f32 to vector<8x128xf32>
      %c0_22 = arith.constant 0 : index
      %c0_23 = arith.constant 0 : index
      %46 = vector.load %arg5[%c0_22, %c0_23] : memref<8x128xf32, #tpu.memory_space<vmem>>, vector<8x128xf32>
      tpu.vector_store %arg5[%c0_22, %c0_23], %45 {strides = array<i32>} : memref<8x128xf32, #tpu.memory_space<vmem>>, vector<8x128xf32>,
      %c0_24 = arith.constant 0 : index
      %c0_25 = arith.constant 0 : index
      %47 = vector.load %arg8[%c0_24, %c0_25] : memref<256x128xf32, #tpu.memory_space<vmem>>, vector<256x128xf32>
      %48 = vector.shape_cast %47 : vector<256x128xf32> to vector<1x256x128xf32>
      %cst_26 = arith.constant dense<0.000000e+00> : vector<1xf32>
      %49 = vector.multi_reduction <add>, %48, %cst_26 [1, 2] : vector<1x256x128xf32> to vector<1xf32>
      %50 = vector.shape_cast %49 : vector<1xf32> to vector<1x1x1xf32>
      %51 = vector.extract %50[0, 0, 0] : f32 from vector<1x1x1xf32>
      %52 = vector.broadcast %51 : f32 to vector<8x128xf32>
      %c0_27 = arith.constant 0 : index
      %c0_28 = arith.constant 0 : index
      %53 = vector.load %arg6[%c0_27, %c0_28] : memref<8x128xf32, #tpu.memory_space<vmem>>, vector<8x128xf32>
      tpu.vector_store %arg6[%c0_27, %c0_28], %52 {strides = array<i32>} : memref<8x128xf32, #tpu.memory_space<vmem>>, vector<8x128xf32>,
    } else {
    }
    return
  }
  func.func @transform_0(%arg0: i32, %arg1: i32) -> (i32, i32) {
    %c2_i32 = arith.constant 2 : i32
    %0 = arith.muli %arg0, %c2_i32 : i32
    %1 = arith.addi %0, %arg1 : i32
    %c0_i32 = arith.constant 0 : i32
    %c0_i32_0 = arith.constant 0 : i32
    return %1, %c0_i32 : i32, i32
  }
  func.func @transform_1(%arg0: i32, %arg1: i32) -> (i32, i32) {
    %c2_i32 = arith.constant 2 : i32
    %0 = arith.muli %arg0, %c2_i32 : i32
    %1 = arith.addi %0, %arg1 : i32
    %c0_i32 = arith.constant 0 : i32
    %c0_i32_0 = arith.constant 0 : i32
    return %1, %c0_i32 : i32, i32
  }
  func.func @transform_2(%arg0: i32, %arg1: i32) -> (i32, i32) {
    %c0_i32 = arith.constant 0 : i32
    %c0_i32_0 = arith.constant 0 : i32
    %c0_i32_1 = arith.constant 0 : i32
    return %c0_i32, %c0_i32_0 : i32, i32
  }
  func.func @transform_3(%arg0: i32, %arg1: i32) -> (i32, i32) {
    %c0_i32 = arith.constant 0 : i32
    %c0_i32_0 = arith.constant 0 : i32
    return %arg0, %c0_i32 : i32, i32
  }
  func.func @transform_4(%arg0: i32, %arg1: i32) -> (i32, i32) {
    %c0_i32 = arith.constant 0 : i32
    %c0_i32_0 = arith.constant 0 : i32
    return %arg0, %c0_i32 : i32, i32
  }
}

</mosaic_0001>

<bundles_post_ra>
// kernel: _lambda_.3
= control target key start
LH: loop header
LB: loop body
LE: loop exit
PB: predicated region body
PF: predicated region fallthrough
CT: control target
= control target key end

     0   :  { %s3864_s15 = smov 0   ;;  %s3866_s16 = smov 0   ;;  %s5392_s0 = inlined_call_operand.vmem [shape: bf16[1024,64], index: 0, kind: input, shape index: {}]   ;;  %s5393_s1 = inlined_call_operand.vmem [shape: bf16[1024,64], index: 1, kind: input, shape index: {}]   ;;  %s5394_s2 = inlined_call_operand.vmem [shape: bf16[64,256], index: 2, kind: input, shape index: {}]   ;;  %s5395_s3 = inlined_call_operand.vmem [shape: f32[16,128], index: 3, kind: output, shape index: {0}]   ;;  %s5396_s4 = inlined_call_operand.vmem [shape: f32[16,128], index: 4, kind: output, shape index: {1}]  }
   0x1   :  { %s3868_s17 = smov 0   ;;  %s3870_s18 = smov 0  }
   0x2   :  { %s3872_s19 = smov 0  }
   0x3 LB: > { %s24_s20 = sadd.s32 1, %s3828_s17  ;;  %s27_s21 = sadd.s32 1, %s3832_s18  ;;  %s3836_s19 = sphi %s3872_s19, %s15_s19   ;;  %s3832_s18 = sphi %s3870_s18, %s5426_s18   ;;  %s3828_s17 = sphi %s3868_s17, %s5425_s17   ;;  %s3824_s16 = sphi %s3866_s16, %s5424_s16   ;;  %s3820_s15 = sphi %s3864_s15, %s5423_s15  }
   0x4   : > { %p25_p0 = scmp.ge.s32.totalorder %s24_s20, 2  ;;  %p3220_p1 = scmp.ge.s32.totalorder %s3836_s19, 1 }
   0x5   : > { %p205_p2 = scmp.lt.s32.totalorder %s3836_s19, 5 }
   0x6   : > { %s5428_s20 = smov (%p25_p0, %s24_s20), 0  ;;  %s5430_s21 = smov (!%p25_p0, %s27_s21), %s3832_s18 }
   0x7   : > { %p206_p3 = pnand %p3220_p1, %p205_p2  ;;  %p29_p4 = scmp.ge.s32.totalorder %s5430_s21, 2 }
   0x8   : > { %s3221_s22 = sshll.u32 (!%p206_p3), %s3824_s16, 1  ;;  %p263_p5 = scmp.lt.s32.totalorder (!%p206_p3), %s3824_s16, 1 }
   0x9   : > { %s5432_s21 = smov (%p29_p4, %s5430_s21), 0  ;;  %209 = sbr.rel (%p206_p3) target bundleno = 957 (0x3bd), region = 32 }
   0xa   : > { %s244_s23 = sadd.s32 (!%p206_p3), %s3820_s15, %s3221_s22  ;;  %p3229_p7 = scmp.ne.s32.totalorder (!%p206_p3), %s3820_s15, 0 }
   0xb   : > { %s3222_s24 = sshll.u32 (!%p206_p3), %s244_s23, 5 }
   0xc   : > { %p246_p6 = scmp.lt.s32.totalorder (!%p206_p3), %s3222_s24, 127 }
   0xe   : > { %s5434_s16 = smov (!%p263_p5, %s3824_s16), 1  ;;  %s5436_s24 = smov (!%p246_p6, %s3222_s24), 127 }
   0xf   : > { %s3227_s25 = sshll.u32 %s5434_s16, 3  ;;  %s3223_s26 = sshll.u32 %s5436_s24, 2 }
  0x10   : > { %s3900_s29 = scalar_lea.vmem %s5395_s3, %s3227_s25  ;;  %s3905_s6 = scalar_lea.vmem %s5392_s0, %s3223_s26 }
  0x11   : > { %s3910_s9 = scalar_lea.vmem %s5393_s1, %s3223_s26  ;;  %s3915_s12 = scalar_lea.vmem %s5396_s4, %s3227_s25 }
  0x12   : > { %275 = sbr.rel (%p3229_p7) target bundleno = 88 (0x58), region = 36 }
  0x17   : > { %v3838_v0 = vmov 0.0  }
  0x18   : > { %276 = vst [vmem:[#allocation2 + $0xb0] sm:$0xff] %v3838_v0 }
  0x19   : > { %277 = vst [vmem:[#allocation2] sm:$0xff] %v3838_v0 }
  0x1a   : > { %278 = vst [vmem:[#allocation2 + $0xd8] sm:$0xff] %v3838_v0 }
  0x1b   : > { %279 = vst [vmem:[#allocation2 + $0x18] sm:$0xff] %v3838_v0 }
  0x1c   : > { %280 = vst [vmem:[#allocation2 + $0x50] sm:$0xff] %v3838_v0 }
  0x1d   : > { %281 = vst [vmem:[#allocation2 + $0x68] sm:$0xff] %v3838_v0 }
  0x1e   : > { %282 = vst [vmem:[#allocation2 + $0x30] sm:$0xff] %v3838_v0 }
  0x1f   : > { %283 = vst [vmem:[#allocation2 + $0x48] sm:$0xff] %v3838_v0 }
  0x20   : > { %284 = vst [vmem:[#allocation2 + $0x80] sm:$0xff] %v3838_v0 }
  0x21   : > { %285 = vst [vmem:[#allocation2 + $0x88] sm:$0xff] %v3838_v0 }
  0x22   : > { %286 = vst [vmem:[#allocation2 + $0xe8] sm:$0xff] %v3838_v0 }
  0x23   : > { %287 = vst [vmem:[#allocation2 + $0xb8] sm:$0xff] %v3838_v0 }
  0x24   : > { %288 = vst [vmem:[#allocation2 + $0x60] sm:$0xff] %v3838_v0 }
  0x25   : > { %289 = vst [vmem:[#allocation2 + $0xf0] sm:$0xff] %v3838_v0 }
  0x26   : > { %290 = vst [vmem:[#allocation2 + $0x8] sm:$0xff] %v3838_v0 }
  0x27   : > { %291 = vst [vmem:[#allocation2 + $0x78] sm:$0xff] %v3838_v0 }
  0x28   : > { %292 = vst [vmem:[#allocation2 + $0x38] sm:$0xff] %v3838_v0 }
  0x29   : > { %293 = vst [vmem:[#allocation2 + $0x58] sm:$0xff] %v3838_v0 }
  0x2a   : > { %294 = vst [vmem:[#allocation2 + $0x40] sm:$0xff] %v3838_v0 }
  0x2b   : > { %295 = vst [vmem:[#allocation2 + $0xc8] sm:$0xff] %v3838_v0 }
  0x2c   : > { %296 = vst [vmem:[#allocation2 + $0xe0] sm:$0xff] %v3838_v0 }
  0x2d   : > { %297 = vst [vmem:[#allocation2 + $0x90] sm:$0xff] %v3838_v0 }
  0x2e   : > { %298 = vst [vmem:[#allocation2 + $0x70] sm:$0xff] %v3838_v0 }
  0x2f   : > { %299 = vst [vmem:[#allocation2 + $0xc0] sm:$0xff] %v3838_v0 }
  0x30   : > { %300 = vst [vmem:[#allocation2 + $0xa8] sm:$0xff] %v3838_v0 }
  0x31   : > { %301 = vst [vmem:[#allocation2 + $0xd0] sm:$0xff] %v3838_v0 }
  0x32   : > { %302 = vst [vmem:[#allocation2 + $0x10] sm:$0xff] %v3838_v0 }
  0x33   : > { %303 = vst [vmem:[#allocation2 + $0x28] sm:$0xff] %v3838_v0 }
  0x34   : > { %304 = vst [vmem:[#allocation2 + $0xa0] sm:$0xff] %v3838_v0 }
  0x35   : > { %305 = vst [vmem:[#allocation2 + $0xf8] sm:$0xff] %v3838_v0 }
  0x36   : > { %306 = vst [vmem:[#allocation2 + $0x20] sm:$0xff] %v3838_v0 }
  0x37   : > { %307 = vst [vmem:[#allocation2 + $0x98] sm:$0xff] %v3838_v0 }
  0x38   : > { %308 = vst [vmem:[#allocation3 + $0x80] sm:$0xff] %v3838_v0 }
  0x39   : > { %309 = vst [vmem:[#allocation3 + $0xc8] sm:$0xff] %v3838_v0 }
  0x3a   : > { %310 = vst [vmem:[#allocation3 + $0xe8] sm:$0xff] %v3838_v0 }
  0x3b   : > { %311 = vst [vmem:[#allocation3 + $0x78] sm:$0xff] %v3838_v0 }
  0x3c   : > { %312 = vst [vmem:[#allocation3 + $0x8] sm:$0xff] %v3838_v0 }
  0x3d   : > { %313 = vst [vmem:[#allocation3 + $0x90] sm:$0xff] %v3838_v0 }
  0x3e   : > { %314 = vst [vmem:[#allocation3 + $0x58] sm:$0xff] %v3838_v0 }
  0x3f   : > { %315 = vst [vmem:[#allocation3 + $0xa8] sm:$0xff] %v3838_v0 }
  0x40   : > { %316 = vst [vmem:[#allocation3 + $0xd0] sm:$0xff] %v3838_v0 }
  0x41   : > { %317 = vst [vmem:[#allocation3 + $0xb0] sm:$0xff] %v3838_v0 }
  0x42   : > { %318 = vst [vmem:[#allocation3 + $0x38] sm:$0xff] %v3838_v0 }
  0x43   : > { %319 = vst [vmem:[#allocation3 + $0x40] sm:$0xff] %v3838_v0 }
  0x44   : > { %320 = vst [vmem:[#allocation3 + $0xe0] sm:$0xff] %v3838_v0 }
  0x45   : > { %321 = vst [vmem:[#allocation3 + $0x60] sm:$0xff] %v3838_v0 }
  0x46   : > { %322 = vst [vmem:[#allocation3 + $0x18] sm:$0xff] %v3838_v0 }
  0x47   : > { %323 = vst [vmem:[#allocation3 + $0x68] sm:$0xff] %v3838_v0 }
  0x48   : > { %324 = vst [vmem:[#allocation3 + $0x10] sm:$0xff] %v3838_v0 }
  0x49   : > { %325 = vst [vmem:[#allocation3 + $0x70] sm:$0xff] %v3838_v0 }
  0x4a   : > { %326 = vst [vmem:[#allocation3 + $0x50] sm:$0xff] %v3838_v0 }
  0x4b   : > { %327 = vst [vmem:[#allocation3 + $0xa0] sm:$0xff] %v3838_v0 }
  0x4c   : > { %328 = vst [vmem:[#allocation3 + $0xd8] sm:$0xff] %v3838_v0 }
  0x4d   : > { %329 = vst [vmem:[#allocation3 + $0x30] sm:$0xff] %v3838_v0 }
  0x4e   : > { %330 = vst [vmem:[#allocation3 + $0x20] sm:$0xff] %v3838_v0 }
  0x4f   : > { %331 = vst [vmem:[#allocation3 + $0xf0] sm:$0xff] %v3838_v0 }
  0x50   : > { %332 = vst [vmem:[#allocation3 + $0x88] sm:$0xff] %v3838_v0 }
  0x51   : > { %333 = vst [vmem:[#allocation3 + $0x48] sm:$0xff] %v3838_v0 }
  0x52   : > { %334 = vst [vmem:[#allocation3 + $0xf8] sm:$0xff] %v3838_v0 }
  0x53   : > { %335 = vst [vmem:[#allocation3 + $0xc0] sm:$0xff] %v3838_v0 }
  0x54   : > { %336 = vst [vmem:[#allocation3 + $0xb8] sm:$0xff] %v3838_v0 }
  0x55   : > { %337 = vst [vmem:[#allocation3] sm:$0xff] %v3838_v0 }
  0x56   : > { %338 = vst [vmem:[#allocation3 + $0x28] sm:$0xff] %v3838_v0 }
  0x57   : > { %339 = vst [vmem:[#allocation3 + $0x98] sm:$0xff] %v3838_v0 }
  0x58 PF: > { %v3320_v1 = vld [vmem:[%s5394_s2 + $0x30] sm:$0xf]  ;;  %v3464_v2 = vld [vmem:[%s5394_s2 + $0x34] sm:$0xf0]  ;;  %v3463_v3 = vld [vmem:[%s5394_s2 + $0x34] sm:$0xf] }
  0x59   : > { %v3321_v4 = vor.u32 %v3464_v2, %v3320_v1  ;;  %v3322_v5 = vld [vmem:[%s5394_s2 + $0x38] sm:$0xf0]  ;;  %v3312_v6 = vld [vmem:[%s5394_s2 + $0x20] sm:$0xf]  ;;  %v3462_v7 = vld [vmem:[%s5394_s2 + $0x24] sm:$0xf0] }
  0x5a   : > { %v3325_v8 = vor.u32 %v3463_v3, %v3322_v5  ;;  %v3461_v9 = vld [vmem:[%s5394_s2 + $0x24] sm:$0xf]  ;;  %v3314_v10 = vld [vmem:[%s5394_s2 + $0x28] sm:$0xf0]  ;;  %v3313_v11 = vor.u32 %v3462_v7, %v3312_v6  ;;  %v3304_v13 = vld [vmem:[%s5394_s2 + $0x10] sm:$0xf] }
  0x5b   : > { %553 = vmatpush.bf16.msra.mxu0 %v3321_v4  ;;  %891 = vmatpush.bf16.msra.mxu2 %v3321_v4  ;;  %v3317_v12 = vor.u32 %v3461_v9, %v3314_v10  ;;  %v3460_v14 = vld [vmem:[%s5394_s2 + $0x14] sm:$0xf0]  ;;  %v3459_v15 = vld [vmem:[%s5394_s2 + $0x14] sm:$0xf]  ;;  %v3306_v16 = vld [vmem:[%s5394_s2 + $0x18] sm:$0xf0] }
  0x5c   : > { %642 = vmatpush.bf16.msra.mxu1 %v3325_v8  ;;  %980 = vmatpush.bf16.msra.mxu3 %v3325_v8  ;;  %v3305_v17 = vor.u32 %v3460_v14, %v3304_v13  ;;  %v3309_v18 = vor.u32 %v3459_v15, %v3306_v16  ;;  %v3296_v19 = vld [vmem:[%s5394_s2] sm:$0xf]  ;;  %v3458_v20 = vld [vmem:[%s5394_s2 + $0x4] sm:$0xf0]  ;;  %v3457_v21 = vld [vmem:[%s5394_s2 + $0x4] sm:$0xf] }
  0x5d   : > { %v3298_v22 = vld [vmem:[%s5394_s2 + $0x8] sm:$0xf0]  ;;  %v3297_v23 = vor.u32 %v3458_v20, %v3296_v19  ;;  %v3465_v25 = vld [vmem:[%s3905_s6] sm:$0xff]  ;;  %vm500_vm0 = vcmask 523264   ;;  %v3467_v29 = vld [vmem:[%s3905_s6 + $0x10] sm:$0xff]  ;;  %p3454_p8 = scmp.ne.s32.totalorder %s3820_s15, 1 }
  0x5e   : > { %v3301_v24 = vor.u32 %v3457_v21, %v3298_v22  ;;  %v3481_v26 = vld [vmem:[%s3910_s9] sm:$0xff]  ;;  %v3466_v27 = vld [vmem:[%s3905_s6 + $0x8] sm:$0xff]  ;;  %v3483_v30 = vld [vmem:[%s3910_s9 + $0x10] sm:$0xff] }
  0x5f   : > { %554 = vmatpush.bf16.msra.mxu0 %v3313_v11  ;;  %892 = vmatpush.bf16.msra.mxu2 %v3313_v11  ;;  %v3482_v28 = vld [vmem:[%s3910_s9 + $0x8] sm:$0xff]  ;;  %v3468_v31 = vld [vmem:[%s3905_s6 + $0x18] sm:$0xff]  ;;  %v3469_v33 = vld [vmem:[%s3905_s6 + $0x20] sm:$0xff] }
  0x60   : > { %643 = vmatpush.bf16.msra.mxu1 %v3317_v12  ;;  %981 = vmatpush.bf16.msra.mxu3 %v3317_v12  ;;  %v3484_v32 = vld [vmem:[%s3910_s9 + $0x18] sm:$0xff]  ;;  %v3485_v34 = vld [vmem:[%s3910_s9 + $0x20] sm:$0xff]  ;;  %v3470_v35 = vld [vmem:[%s3905_s6 + $0x28] sm:$0xff] }
  0x61   : > { %v3486_v36 = vld [vmem:[%s3910_s9 + $0x28] sm:$0xff]  ;;  %v3471_v37 = vld [vmem:[%s3905_s6 + $0x30] sm:$0xff]  ;;  %v3472_v39 = vld [vmem:[%s3905_s6 + $0x38] sm:$0xff] }
  0x62   : > { %v3487_v38 = vld [vmem:[%s3910_s9 + $0x30] sm:$0xff]  ;;  %v3488_v40 = vld [vmem:[%s3910_s9 + $0x38] sm:$0xff]  ;;  %v3473_v41 = vld [vmem:[%s3905_s6 + $0x40] sm:$0xff] }
  0x63   : > { %555 = vmatpush.bf16.msra.mxu0 %v3305_v17  ;;  %893 = vmatpush.bf16.msra.mxu2 %v3305_v17  ;;  %v3489_v42 = vld [vmem:[%s3910_s9 + $0x40] sm:$0xff]  ;;  %v3474_v63 = vld [vmem:[%s3905_s6 + $0x48] sm:$0xff] }
  0x64   : > { %644 = vmatpush.bf16.msra.mxu1 %v3309_v18  ;;  %982 = vmatpush.bf16.msra.mxu3 %v3309_v18  ;;  %v3490_v0 = vld [vmem:[%s3910_s9 + $0x48] sm:$0xff] }
  0x67   : > { %556 = vmatpush.bf16.msra.mxu0 %v3297_v23  ;;  %894 = vmatpush.bf16.msra.mxu2 %v3297_v23 }
  0x68   : > { %645 = vmatpush.bf16.msra.mxu1 %v3301_v24  ;;  %983 = vmatpush.bf16.msra.mxu3 %v3301_v24 }
  0x6a   : > { %3326 = vmatmul.msk.bf16.vlgmr.msra.gmra.mxu0 %vm500_vm0, %v3465_v25  ;;  %3422 = vmatmul.msk.bf16.vlgmr.msra.gmra.mxu2 %vm500_vm0, %v3481_v26 }
  0x6b   : > { %3342 = vmatmul.msk.bf16.vlgmr.msra.gmra.mxu1 %vm500_vm0, %v3465_v25  ;;  %3438 = vmatmul.msk.bf16.vlgmr.msra.gmra.mxu3 %vm500_vm0, %v3481_v26 }
  0x7a   : > { %3327 = vmatmul.msk.bf16.gmra.mxu0 %vm500_vm0, %v3466_v27  ;;  %3423 = vmatmul.msk.bf16.gmra.mxu2 %vm500_vm0, %v3482_v28 }
  0x7b   : > { %3343 = vmatmul.msk.bf16.gmra.mxu1 %vm500_vm0, %v3466_v27  ;;  %3439 = vmatmul.msk.bf16.gmra.mxu3 %vm500_vm0, %v3482_v28 }
  0x8a   : > { %3328 = vmatmul.msk.bf16.gmra.mxu0 %vm500_vm0, %v3467_v29  ;;  %3424 = vmatmul.msk.bf16.gmra.mxu2 %vm500_vm0, %v3483_v30 }
  0x8b   : > { %3344 = vmatmul.msk.bf16.gmra.mxu1 %vm500_vm0, %v3467_v29  ;;  %3440 = vmatmul.msk.bf16.gmra.mxu3 %vm500_vm0, %v3483_v30 }
  0x9a   : > { %3329 = vmatmul.msk.bf16.gmra.mxu0 %vm500_vm0, %v3468_v31  ;;  %3425 = vmatmul.msk.bf16.gmra.mxu2 %vm500_vm0, %v3484_v32 }
  0x9b   : > { %3345 = vmatmul.msk.bf16.gmra.mxu1 %vm500_vm0, %v3468_v31  ;;  %3441 = vmatmul.msk.bf16.gmra.mxu3 %vm500_vm0, %v3484_v32 }
  0xaa   : > { %3330 = vmatmul.msk.bf16.gmra.mxu0 %vm500_vm0, %v3469_v33  ;;  %3426 = vmatmul.msk.bf16.gmra.mxu2 %vm500_vm0, %v3485_v34 }
  0xab   : > { %3346 = vmatmul.msk.bf16.gmra.mxu1 %vm500_vm0, %v3469_v33  ;;  %3442 = vmatmul.msk.bf16.gmra.mxu3 %vm500_vm0, %v3485_v34 }
  0xba   : > { %3331 = vmatmul.msk.bf16.gmra.mxu0 %vm500_vm0, %v3470_v35  ;;  %3427 = vmatmul.msk.bf16.gmra.mxu2 %vm500_vm0, %v3486_v36 }
  0xbb   : > { %3347 = vmatmul.msk.bf16.gmra.mxu1 %vm500_vm0, %v3470_v35  ;;  %3443 = vmatmul.msk.bf16.gmra.mxu3 %vm500_vm0, %v3486_v36 }
  0xca   : > { %3332 = vmatmul.msk.bf16.gmra.mxu0 %vm500_vm0, %v3471_v37  ;;  %3428 = vmatmul.msk.bf16.gmra.mxu2 %vm500_vm0, %v3487_v38 }
  0xcb   : > { %3348 = vmatmul.msk.bf16.gmra.mxu1 %vm500_vm0, %v3471_v37  ;;  %3444 = vmatmul.msk.bf16.gmra.mxu3 %vm500_vm0, %v3487_v38 }
  0xda   : > { %3333 = vmatmul.msk.bf16.gmra.mxu0 %vm500_vm0, %v3472_v39  ;;  %3429 = vmatmul.msk.bf16.gmra.mxu2 %vm500_vm0, %v3488_v40 }
  0xdb   : > { %3349 = vmatmul.msk.bf16.gmra.mxu1 %vm500_vm0, %v3472_v39  ;;  %3445 = vmatmul.msk.bf16.gmra.mxu3 %vm500_vm0, %v3488_v40 }
  0xe7   : > { %v558_v43 = vpop.f32.mrf.mxu0 }
  0xe8   : > { %v1065_v44 = vmul.f32 %v558_v43, %v558_v43  ;;  %v647_v45 = vpop.f32.mrf.mxu1 }
  0xe9   : > { %v1097_v46 = vmul.f32 %v647_v45, %v647_v45 }
  0xea   : > { %3334 = vmatmul.msk.bf16.gmra.mxu0 %vm500_vm0, %v3473_v41  ;;  %3430 = vmatmul.msk.bf16.gmra.mxu2 %vm500_vm0, %v3489_v42 }
  0xeb   : > { %v4082_v47 = vadd.f32 %v1097_v46, %v1065_v44  ;;  %3350 = vmatmul.msk.bf16.gmra.mxu1 %vm500_vm0, %v3473_v41  ;;  %3446 = vmatmul.msk.bf16.gmra.mxu3 %vm500_vm0, %v3489_v42  ;;  %v3475_v46 = vld [vmem:[%s3905_s6 + $0x50] sm:$0xff] }
  0xed   : > { %3542 = vrsqrt.f32 %v4082_v47  ;;  %v896_v48 = vpop.f32.mrf.mxu2  ;;  %vm1168_vm1 = vcmp.eq.f32.partialorder %v4082_v47, inf  ;;  %vm1170_vm2 = vcmp.eq.f32.partialorder %v4082_v47, 0.0  ;;  %v1171_v34 = vand.u32 2147483648, %v4082_v47 }
  0xee   : > { %v1545_v49 = vmul.f32 %v896_v48, %v896_v48  ;;  %v985_v50 = vpop.f32.mrf.mxu3  ;;  %v3491_v48 = vld [vmem:[%s3910_s9 + $0x50] sm:$0xff] }
  0xef   : > { %v1577_v51 = vmul.f32 %v985_v50, %v985_v50  ;;  %v560_v52 = vpop.f32.mrf.mxu0 }
  0xf0   : > { %v1066_v53 = vmul.f32 %v560_v52, %v560_v52  ;;  %v649_v54 = vpop.f32.mrf.mxu1 }
  0xf1   : > { %v4087_v55 = vadd.f32 %v1577_v51, %v1545_v49  ;;  %v1098_v56 = vmul.f32 %v649_v54, %v649_v54 }
  0xf3   : > { %v3543_v57 = vpop.eup %3542  ;;  %3544 = vrsqrt.f32 %v4087_v55  ;;  %v4091_v59 = vadd.f32 %v1098_v56, %v1066_v53  ;;  %vm1648_vm3 = vcmp.eq.f32.partialorder %v4087_v55, inf  ;;  %v1651_v41 = vand.u32 2147483648, %v4087_v55 }
  0xf4   : > { %v1162_v58 = vmul.f32 %v3543_v57, %v4082_v47  ;;  %vm1650_vm4 = vcmp.eq.f32.partialorder %v4087_v55, 0.0 }
  0xf5   : > { %v898_v60 = vpop.f32.mrf.mxu2  ;;  %3546 = vrsqrt.f32 %v4091_v59  ;;  %vm1180_vm5 = vcmp.eq.f32.partialorder %v4091_v59, inf  ;;  %vm1182_vm6 = vcmp.eq.f32.partialorder %v4091_v59, 0.0 }
  0xf6   : > { %v1163_v61 = vmul.f32 %v3543_v57, %v1162_v58  ;;  %v987_v62 = vpop.f32.mrf.mxu3  ;;  %v1546_v1 = vmul.f32 %v898_v60, %v898_v60  ;;  %v2025_v58 = vld [vmem:[#allocation2 + $0xb0] sm:$0xff] }
  0xf7   : > { %v1578_v2 = vmul.f32 %v987_v62, %v987_v62  ;;  %v563_v3 = vpop.f32.mrf.mxu0 }
  0xf8   : > { %v1164_v4 = vmul.f32 0.5, %v1163_v61  ;;  %v1067_v5 = vmul.f32 %v563_v3, %v563_v3  ;;  %v652_v6 = vpop.f32.mrf.mxu1 }
  0xf9   : > { %v3545_v7 = vpop.eup %3544  ;;  %v4096_v8 = vadd.f32 %v1578_v2, %v1546_v1  ;;  %v1099_v9 = vmul.f32 %v652_v6, %v652_v6 }
  0xfa   : > { %v1165_v10 = vsub.f32 1.5, %v1164_v4  ;;  %v1642_v11 = vmul.f32 %v3545_v7, %v4087_v55  ;;  %3335 = vmatmul.msk.bf16.gmra.mxu0 %vm500_vm0, %v3474_v63  ;;  %3431 = vmatmul.msk.bf16.gmra.mxu2 %vm500_vm0, %v3490_v0 }
  0xfb   : > { %3548 = vrsqrt.f32 %v4096_v8  ;;  %3351 = vmatmul.msk.bf16.gmra.mxu1 %vm500_vm0, %v3474_v63  ;;  %3447 = vmatmul.msk.bf16.gmra.mxu3 %vm500_vm0, %v3490_v0  ;;  %v3547_v12 = vpop.eup %3546  ;;  %v4104_v15 = vadd.f32 %v1099_v9, %v1067_v5  ;;  %v1183_v0 = vand.u32 2147483648, %v4091_v59  ;;  %vm1660_vm7 = vcmp.eq.f32.partialorder %v4096_v8, inf }
  0xfc   : > { %v1166_v13 = vmul.f32 %v3543_v57, %v1165_v10  ;;  %v1643_v14 = vmul.f32 %v3545_v7, %v1642_v11  ;;  %v1174_v16 = vmul.f32 %v3547_v12, %v4091_v59  ;;  %vm1662_vm8 = vcmp.eq.f32.partialorder %v4096_v8, 0.0 }
  0xfd   : > { %v901_v17 = vpop.f32.mrf.mxu2  ;;  %3550 = vrsqrt.f32 %v4104_v15  ;;  %v1663_v5 = vand.u32 2147483648, %v4096_v8  ;;  %vm1192_vm9 = vcmp.eq.f32.partialorder %v4104_v15, inf  ;;  %vm1194_vm10 = vcmp.eq.f32.partialorder %v4104_v15, 0.0 }
  0xfe   : > { %v1644_v18 = vmul.f32 0.5, %v1643_v14  ;;  %v990_v19 = vpop.f32.mrf.mxu3  ;;  %v1175_v20 = vmul.f32 %v3547_v12, %v1174_v16  ;;  %v1547_v21 = vmul.f32 %v901_v17, %v901_v17  ;;  %v1167_v23 = vmul.f32 %v1166_v13, %v4082_v47 }
  0xff   : > { %v565_v22 = vpop.f32.mrf.mxu0  ;;  %v1579_v25 = vmul.f32 %v990_v19, %v990_v19 }
 0x100   : > { %v1645_v24 = vsub.f32 1.5, %v1644_v18  ;;  %v1068_v26 = vmul.f32 %v565_v22, %v565_v22  ;;  %v654_v27 = vpop.f32.mrf.mxu1  ;;  %v1176_v29 = vmul.f32 0.5, %v1175_v20  ;;  %v1169_v38 = vsel %vm1168_vm1, %v4082_v47, %v1167_v23 }
 0x101   : > { %v3549_v28 = vpop.eup %3548  ;;  %v1100_v30 = vmul.f32 %v654_v27, %v654_v27  ;;  %v4111_v33 = vadd.f32 %v1579_v25, %v1547_v21  ;;  %v1172_v49 = vsel %vm1170_vm2, %v1171_v34, %v1169_v38 }
 0x102   : > { %v1646_v31 = vmul.f32 %v3545_v7, %v1645_v24  ;;  %v1654_v32 = vmul.f32 %v3549_v28, %v4096_v8  ;;  %v1177_v35 = vsub.f32 1.5, %v1176_v29  ;;  %v4155_v16 = vadd.f32 1e-07, %v1172_v49  ;;  %v2026_v29 = vld [vmem:[#allocation2] sm:$0xff] }
 0x103   : > { %v4115_v36 = vadd.f32 %v1100_v30, %v1068_v26  ;;  %v3551_v37 = vpop.eup %3550  ;;  %3552 = vrsqrt.f32 %v4111_v33  ;;  %vm1672_vm11 = vcmp.eq.f32.partialorder %v4111_v33, inf  ;;  %vm1674_vm12 = vcmp.eq.f32.partialorder %v4111_v33, 0.0 }
 0x104   : > { %v1647_v39 = vmul.f32 %v1646_v31, %v4087_v55  ;;  %v1655_v40 = vmul.f32 %v3549_v28, %v1654_v32  ;;  %v1178_v42 = vmul.f32 %v3547_v12, %v1177_v35  ;;  %v1186_v43 = vmul.f32 %v3551_v37, %v4104_v15 }
 0x105   : > { %3554 = vrsqrt.f32 %v4115_v36  ;;  %v903_v52 = vpop.f32.mrf.mxu2  ;;  %v1195_v12 = vand.u32 2147483648, %v4104_v15  ;;  %v1207_v35 = vand.u32 2147483648, %v4115_v36  ;;  %vm1204_vm1 = vcmp.eq.f32.partialorder %v4115_v36, inf }
 0x106   : > { %v1649_v44 = vsel %vm1648_vm3, %v4087_v55, %v1647_v39  ;;  %v1656_v45 = vmul.f32 0.5, %v1655_v40  ;;  %v1187_v51 = vmul.f32 %v3551_v37, %v1186_v43  ;;  %v992_v53 = vpop.f32.mrf.mxu3  ;;  %v1179_v60 = vmul.f32 %v1178_v42, %v4091_v59 }
 0x107   : > { %v1652_v50 = vsel %vm1650_vm4, %v1651_v41, %v1649_v44  ;;  %v1548_v47 = vmul.f32 %v903_v52, %v903_v52  ;;  %v1580_v63 = vmul.f32 %v992_v53, %v992_v53  ;;  %v568_v23 = vpop.f32.mrf.mxu0  ;;  %vm1206_vm3 = vcmp.eq.f32.partialorder %v4115_v36, 0.0 }
 0x108   : > { %v2057_v54 = vsub.f32 %v1172_v49, %v1652_v50  ;;  %v4130_v56 = vadd.f32 1e-07, %v1652_v50  ;;  %v1657_v57 = vsub.f32 1.5, %v1656_v45  ;;  %v1188_v55 = vmul.f32 0.5, %v1187_v51  ;;  %v657_v24 = vpop.f32.mrf.mxu1  ;;  %v3476_v50 = vld [vmem:[%s3905_s6 + $0x58] sm:$0xff] }
 0x109   : > { %v3553_v61 = vpop.eup %3552  ;;  %v1181_v7 = vsel %vm1180_vm5, %v4091_v59, %v1179_v60  ;;  %v4153_v14 = vadd.f32 %v1580_v63, %v1548_v47  ;;  %v1069_v39 = vmul.f32 %v568_v23, %v568_v23  ;;  %v1101_v40 = vmul.f32 %v657_v24, %v657_v24  ;;  %v3492_v51 = vld [vmem:[%s3910_s9 + $0x58] sm:$0xff] }
 0x10a   : > { %v2089_v62 = vand.u32 2147483647, %v2057_v54  ;;  %3556 = vrcp.f32 %v4130_v56  ;;  %3336 = vmatmul.msk.bf16.gmra.mxu0 %vm500_vm0, %v3475_v46  ;;  %3432 = vmatmul.msk.bf16.gmra.mxu2 %vm500_vm0, %v3491_v48  ;;  %v1658_v1 = vmul.f32 %v3549_v28, %v1657_v57  ;;  %v1189_v2 = vsub.f32 1.5, %v1188_v55 }
 0x10b   : > { %3352 = vmatmul.msk.bf16.gmra.mxu1 %vm500_vm0, %v3475_v46  ;;  %3448 = vmatmul.msk.bf16.gmra.mxu3 %vm500_vm0, %v3491_v48  ;;  %v3555_v3 = vpop.eup %3554  ;;  %v1666_v6 = vmul.f32 %v3553_v61, %v4111_v33  ;;  %v1184_v20 = vsel %vm1182_vm6, %v1183_v0, %v1181_v7  ;;  %3558 = vrsqrt.f32 %v4153_v14  ;;  %v1675_v28 = vand.u32 2147483648, %v4111_v33 }
 0x10c   : > { %v2121_v4 = vadd.f32 %v2089_v62, %v2025_v58  ;;  %v1659_v9 = vmul.f32 %v1658_v1, %v4096_v8  ;;  %v1198_v10 = vmul.f32 %v3555_v3, %v4115_v36  ;;  %v1190_v11 = vmul.f32 %v3551_v37, %v1189_v2 }
 0x10d   : > { %v1667_v13 = vmul.f32 %v3553_v61, %v1666_v6  ;;  %v2258_v59 = vand.u32 2147483647, %v4130_v56  ;;  %v2260_v37 = vand.u32 2147483648, %v4130_v56  ;;  %v906_v44 = vpop.f32.mrf.mxu2  ;;  %vm2254_vm14 = vweird.f32 %v4130_v56 }
 0x10e   : > { %2153 = vst [vmem:[#allocation2 + $0xb0] sm:$0xff] %v2121_v4  ;;  %v1661_v17 = vsel %vm1660_vm7, %v4096_v8, %v1659_v9  ;;  %v1199_v18 = vmul.f32 %v3555_v3, %v1198_v10  ;;  %v1191_v8 = vmul.f32 %v1190_v11, %v4104_v15  ;;  %v4190_v53 = vadd.f32 1e-07, %v1184_v20  ;;  %v995_v57 = vpop.f32.mrf.mxu3 }
 0x10f   : > { %v1664_v21 = vsel %vm1662_vm8, %v1663_v5, %v1661_v17  ;;  %v1668_v22 = vmul.f32 0.5, %v1667_v13  ;;  %vm4179_vm15 = vcmp.eq.f32.partialorder %v2258_v59, 8.507059e+37  ;;  %v2261_v58 = vor.u32 1.1754944e-38, %v2260_v37  ;;  %v570_v6 = vpop.f32.mrf.mxu0 }
 0x110   : > { %v3557_v19 = vpop.eup %3556  ;;  %v2058_v26 = vsub.f32 %v1184_v20, %v1664_v21  ;;  %v4168_v27 = vadd.f32 1e-07, %v1664_v21  ;;  %v1200_v31 = vmul.f32 0.5, %v1199_v18  ;;  %v1193_v48 = vsel %vm1192_vm9, %v4104_v15, %v1191_v8  ;;  %v659_v7 = vpop.f32.mrf.mxu1 }
 0x111   : > { %v2250_v25 = vmul.f32 %v3557_v19, %v4130_v56  ;;  %v1669_v30 = vsub.f32 1.5, %v1668_v22  ;;  %vm2255_vm13 = vweird.f32 %v3557_v19  ;;  %v4176_v45 = vpop.eup %3558  ;;  %v4198_v55 = vadd.f32 %v1101_v40, %v1069_v39 }
 0x112   : > { %v2090_v34 = vand.u32 2147483647, %v2058_v26  ;;  %3560 = vrcp.f32 %v4168_v27  ;;  %v1201_v43 = vsub.f32 1.5, %v1200_v31  ;;  %v1678_v56 = vmul.f32 %v4176_v45, %v4153_v14  ;;  %vm2256_vm2 = vmor %vm2254_vm14, %vm2255_vm13 }
 0x113   : > { %v2251_v32 = vsub.f32 1.0, %v2250_v25  ;;  %v1670_v38 = vmul.f32 %v3553_v61, %v1669_v30  ;;  %v1549_v61 = vmul.f32 %v906_v44, %v906_v44  ;;  %v1196_v63 = vsel %vm1194_vm10, %v1195_v12, %v1193_v48 }
 0x114   : > { %v2122_v42 = vadd.f32 %v2090_v34, %v2026_v29  ;;  %v1202_v54 = vmul.f32 %v3555_v3, %v1201_v43  ;;  %v1679_v1 = vmul.f32 %v4176_v45, %v1678_v56  ;;  %v2273_v4 = vand.u32 2147483647, %v4168_v27 }
 0x115   : > { %v2252_v41 = vmul.f32 %v3557_v19, %v2251_v32  ;;  %v1671_v49 = vmul.f32 %v1670_v38, %v4111_v33  ;;  %3562 = vrsqrt.f32 %v4198_v55  ;;  %v1581_v17 = vmul.f32 %v995_v57, %v995_v57 }
 0x116   : > { %2154 = vst [vmem:[#allocation2] sm:$0xff] %v2122_v42  ;;  %v1203_v10 = vmul.f32 %v1202_v54, %v4115_v36  ;;  %v1680_v11 = vmul.f32 0.5, %v1679_v1  ;;  %v2275_v18 = vand.u32 2147483648, %v4168_v27  ;;  %vm1684_vm5 = vcmp.eq.f32.partialorder %v4153_v14, inf  ;;  %v997_v30 = vpop.f32.mrf.mxu3 }
 0x117   : > { %v2253_v52 = vadd.f32 %v3557_v19, %v2252_v41  ;;  %v1673_v60 = vsel %vm1672_vm11, %v4111_v33, %v1671_v49  ;;  %v2027_v33 = vld [vmem:[#allocation2 + $0xd8] sm:$0xff]  ;;  %vm1686_vm6 = vcmp.eq.f32.partialorder %v4153_v14, 0.0  ;;  %vm2269_vm7 = vweird.f32 %v4168_v27 }
 0x118   : > { %v3561_v62 = vpop.eup %3560  ;;  %v1676_v0 = vsel %vm1674_vm12, %v1675_v28, %v1673_v60  ;;  %v1205_v22 = vsel %vm1204_vm1, %v4115_v36, %v1203_v10  ;;  %v1681_v23 = vsub.f32 1.5, %v1680_v11  ;;  %v4227_v25 = vadd.f32 1e-07, %v1196_v63  ;;  %v908_v28 = vpop.f32.mrf.mxu2 }
 0x119   : > { %v2257_v47 = vsel %vm2256_vm2, %v3557_v19, %v2253_v52  ;;  %v2265_v3 = vmul.f32 %v3561_v62, %v4168_v27  ;;  %v2059_v5 = vsub.f32 %v1196_v63, %v1676_v0  ;;  %v4213_v9 = vadd.f32 1e-07, %v1676_v0  ;;  %v2825_v52 = vld [vmem:[#allocation3 + $0x80] sm:$0xff]  ;;  %v573_v11 = vpop.f32.mrf.mxu0 }
 0x11a   : > { %v2262_v2 = vsel %vm4179_vm15, %v2261_v58, %v2257_v47  ;;  %3337 = vmatmul.msk.bf16.gmra.mxu0 %vm500_vm0, %v3476_v50  ;;  %3433 = vmatmul.msk.bf16.gmra.mxu2 %vm500_vm0, %v3492_v51  ;;  %v1070_v19 = vmul.f32 %v570_v6, %v570_v6  ;;  %vm2270_vm4 = vweird.f32 %v3561_v62  ;;  %v4229_v26 = vadd.f32 %v1581_v17, %v1549_v61  ;;  %v3493_v6 = vld [vmem:[%s3910_s9 + $0x60] sm:$0xff]  ;;  %v662_v17 = vpop.f32.mrf.mxu1 }
 0x11b   : > { %v2263_v15 = vmul.f32 %v2262_v2, %v4155_v16  ;;  %3353 = vmatmul.msk.bf16.gmra.mxu1 %vm500_vm0, %v3476_v50  ;;  %3449 = vmatmul.msk.bf16.gmra.mxu3 %vm500_vm0, %v3492_v51  ;;  %v2266_v12 = vsub.f32 1.0, %v2265_v3  ;;  %v2091_v13 = vand.u32 2147483647, %v2059_v5  ;;  %v1102_v16 = vmul.f32 %v659_v7, %v659_v7  ;;  %vm2271_vm8 = vmor %vm2269_vm7, %vm2270_vm4  ;;  %v3563_v31 = vpop.eup %3562  ;;  %v3477_v5 = vld [vmem:[%s3905_s6 + $0x60] sm:$0xff] }
 0x11c   : > { %vm2274_vm9 = vcmp.eq.f32.partialorder %v2273_v4, 8.507059e+37  ;;  %v2276_v59 = vor.u32 1.1754944e-38, %v2275_v18  ;;  %v1682_v29 = vmul.f32 %v4176_v45, %v1681_v23  ;;  %v1208_v27 = vsel %vm1206_vm3, %v1207_v35, %v1205_v22 }
 0x11d   : > { %3564 = vlog2.f32 %v2263_v15  ;;  %v2267_v20 = vmul.f32 %v3561_v62, %v2266_v12  ;;  %v2123_v21 = vadd.f32 %v2091_v13, %v2027_v33  ;;  %v4232_v8 = vadd.f32 %v1102_v16, %v1070_v19 }
 0x11e   : > { %3566 = vrcp.f32 %v4213_v9  ;;  %v1687_v34 = vand.u32 2147483648, %v4153_v14  ;;  %v1683_v39 = vmul.f32 %v1682_v29, %v4153_v14  ;;  %v1210_v40 = vmul.f32 %v3563_v31, %v4198_v55 }
 0x11f   : > { %v2268_v24 = vadd.f32 %v3561_v62, %v2267_v20  ;;  %2155 = vst [vmem:[#allocation2 + $0xd8] sm:$0xff] %v2123_v21  ;;  %3568 = vrsqrt.f32 %v4229_v26  ;;  %v1550_v41 = vmul.f32 %v908_v28, %v908_v28  ;;  %v1582_v45 = vmul.f32 %v997_v30, %v997_v30  ;;  %v2826_v30 = vld [vmem:[#allocation3 + $0xc8] sm:$0xff] }
 0x120   : > { %3570 = vrsqrt.f32 %v4232_v8  ;;  %v2288_v35 = vand.u32 2147483647, %v4213_v9  ;;  %v1685_v46 = vsel %vm1684_vm5, %v4153_v14, %v1683_v39  ;;  %v1211_v48 = vmul.f32 %v3563_v31, %v1210_v40 }
 0x121   : > { %v2272_v32 = vsel %vm2271_vm8, %v3561_v62, %v2268_v24  ;;  %v2290_v50 = vand.u32 2147483648, %v4213_v9  ;;  %v1688_v51 = vsel %vm1686_vm6, %v1687_v34, %v1685_v46  ;;  %vm2284_vm10 = vweird.f32 %v4213_v9  ;;  %v2028_v62 = vld [vmem:[#allocation2 + $0x18] sm:$0xff] }
 0x122   : > { %v2277_v38 = vsel %vm2274_vm9, %v2276_v59, %v2272_v32  ;;  %v2060_v54 = vsub.f32 %v1208_v27, %v1688_v51  ;;  %v4252_v56 = vadd.f32 1e-07, %v1688_v51  ;;  %v1212_v57 = vmul.f32 0.5, %v1211_v48  ;;  %v911_v48 = vpop.f32.mrf.mxu2 }
 0x123   : > { %v3565_v37 = vpop.eup %3564  ;;  %v2278_v44 = vmul.f32 %v2277_v38, %v4190_v53  ;;  %v4257_v61 = vadd.f32 1e-07, %v1208_v27  ;;  %v4259_v47 = vadd.f32 %v1582_v45, %v1550_v41  ;;  %vm4264_vm12 = vcmp.eq.f32.partialorder %v2288_v35, 8.507059e+37 }
 0x124   : > { %v3567_v42 = vpop.eup %3566  ;;  %v2730_v43 = vmul.f32 0.6931472, %v3565_v37  ;;  %v2092_v63 = vand.u32 2147483647, %v2060_v54  ;;  %v2291_v3 = vor.u32 1.1754944e-38, %v2290_v50  ;;  %v1213_v4 = vsub.f32 1.5, %v1212_v57  ;;  %v575_v54 = vpop.f32.mrf.mxu0 }
 0x125   : > { %v2280_v36 = vmul.f32 %v3567_v42, %v4213_v9  ;;  %3572 = vlog2.f32 %v2278_v44  ;;  %v4254_v58 = vpop.eup %3568  ;;  %vm2285_vm11 = vweird.f32 %v3567_v42  ;;  %vm1216_vm14 = vcmp.eq.f32.partialorder %v4198_v55, inf }
 0x126   : > { %v2793_v49 = vmul.f32 0.4342945, %v2730_v43  ;;  %3574 = vrcp.f32 %v4252_v56  ;;  %v4262_v0 = vpop.eup %3570  ;;  %v2124_v15 = vadd.f32 %v2092_v63, %v2028_v62  ;;  %v1690_v33 = vmul.f32 %v4254_v58, %v4229_v26  ;;  %vm2286_vm13 = vmor %vm2284_vm10, %vm2285_vm11  ;;  %v664_v62 = vpop.f32.mrf.mxu1 }
 0x127   : > { %v2281_v53 = vsub.f32 1.0, %v2280_v36  ;;  %v1222_v10 = vmul.f32 %v4262_v0, %v4232_v8  ;;  %v1214_v13 = vmul.f32 %v3563_v31, %v1213_v4  ;;  %vm1218_vm15 = vcmp.eq.f32.partialorder %v4198_v55, 0.0 }
 0x128   : > { %v2857_v60 = vmul.f32 %v2793_v49, %v2793_v49  ;;  %3576 = vrsqrt.f32 %v4259_v47  ;;  %2156 = vst [vmem:[#allocation2 + $0x18] sm:$0xff] %v2124_v15  ;;  %v1691_v16 = vmul.f32 %v4254_v58, %v1690_v33  ;;  %v1219_v22 = vand.u32 2147483648, %v4198_v55  ;;  %v1000_v49 = vpop.f32.mrf.mxu3 }
 0x129   : > { %v2282_v14 = vmul.f32 %v3567_v42, %v2281_v53  ;;  %v1223_v9 = vmul.f32 %v4262_v0, %v1222_v10  ;;  %v1215_v21 = vmul.f32 %v1214_v13, %v4198_v55  ;;  %vm1696_vm1 = vcmp.eq.f32.partialorder %v4229_v26, inf }
 0x12a   : > { %v2889_v1 = vadd.f32 %v2857_v60, %v2825_v52  ;;  %3338 = vmatmul.msk.bf16.gmra.mxu0 %vm500_vm0, %v3477_v5  ;;  %3434 = vmatmul.msk.bf16.gmra.mxu2 %vm500_vm0, %v3493_v6  ;;  %v1692_v59 = vmul.f32 0.5, %v1691_v16  ;;  %v2303_v32 = vand.u32 2147483647, %v4252_v56  ;;  %vm1698_vm2 = vcmp.eq.f32.partialorder %v4229_v26, 0.0 }
 0x12b   : > { %v2283_v7 = vadd.f32 %v3567_v42, %v2282_v14  ;;  %v3573_v12 = vpop.eup %3572  ;;  %3354 = vmatmul.msk.bf16.gmra.mxu1 %vm500_vm0, %v3477_v5  ;;  %3450 = vmatmul.msk.bf16.gmra.mxu3 %vm500_vm0, %v3493_v6  ;;  %v1224_v29 = vmul.f32 0.5, %v1223_v9  ;;  %v1071_v27 = vmul.f32 %v573_v11, %v573_v11  ;;  %v2305_v37 = vand.u32 2147483648, %v4252_v56  ;;  %v2029_v11 = vld [vmem:[#allocation2 + $0x50] sm:$0xff] }
 0x12c   : > { %2921 = vst [vmem:[#allocation3 + $0x80] sm:$0xff] %v2889_v1  ;;  %v2732_v18 = vmul.f32 0.6931472, %v3573_v12  ;;  %v3575_v23 = vpop.eup %3574  ;;  %v1693_v38 = vsub.f32 1.5, %v1692_v59  ;;  %v1699_v41 = vand.u32 2147483648, %v4229_v26  ;;  %v1217_v44 = vsel %vm1216_vm14, %v4198_v55, %v1215_v21 }
 0x12d   : > { %v2287_v19 = vsel %vm2286_vm13, %v3567_v42, %v2283_v7  ;;  %v2295_v31 = vmul.f32 %v3575_v23, %v4252_v56  ;;  %v1103_v42 = vmul.f32 %v662_v17, %v662_v17  ;;  %vm2299_vm3 = vweird.f32 %v4252_v56  ;;  %v2827_v17 = vld [vmem:[#allocation3 + $0xe8] sm:$0xff] }
 0x12e   : > { %v2292_v20 = vsel %vm4264_vm12, %v2291_v3, %v2287_v19  ;;  %v2794_v24 = vmul.f32 0.4342945, %v2732_v18  ;;  %v3577_v39 = vpop.eup %3576  ;;  %v1694_v45 = vmul.f32 %v4254_v58, %v1693_v38  ;;  %vm2300_vm4 = vweird.f32 %v3575_v23 }
 0x12f   : > { %v2293_v28 = vmul.f32 %v2292_v20, %v4227_v25  ;;  %v2296_v40 = vsub.f32 1.0, %v2295_v31  ;;  %v1225_v25 = vsub.f32 1.5, %v1224_v29  ;;  %v1702_v36 = vmul.f32 %v3577_v39, %v4259_v47  ;;  %vm2301_vm6 = vmor %vm2299_vm3, %vm2300_vm4 }
 0x130   : > { %v2858_v34 = vmul.f32 %v2794_v24, %v2794_v24  ;;  %v4303_v46 = vadd.f32 %v1103_v42, %v1071_v27  ;;  %vm4305_vm5 = vcmp.eq.f32.partialorder %v2303_v32, 8.507059e+37  ;;  %v2306_v51 = vor.u32 1.1754944e-38, %v2305_v37  ;;  %v913_v32 = vpop.f32.mrf.mxu2  ;;  %v1002_v27 = vpop.f32.mrf.mxu3 }
 0x131   : > { %3578 = vlog2.f32 %v2293_v28  ;;  %v2297_v35 = vmul.f32 %v3575_v23, %v2296_v40  ;;  %v1695_v52 = vmul.f32 %v1694_v45, %v4229_v26  ;;  %v1703_v53 = vmul.f32 %v3577_v39, %v1702_v36 }
 0x132   : > { %v2890_v43 = vadd.f32 %v2858_v34, %v2826_v30  ;;  %v1220_v58 = vsel %vm1218_vm15, %v1219_v22, %v1217_v44  ;;  %v1226_v60 = vmul.f32 %v4262_v0, %v1225_v25  ;;  %3580 = vrsqrt.f32 %v4303_v46  ;;  %v2030_v44 = vld [vmem:[#allocation2 + $0x68] sm:$0xff] }
 0x133   : > { %v2298_v57 = vadd.f32 %v3575_v23, %v2297_v35  ;;  %v1697_v63 = vsel %vm1696_vm1, %v4229_v26, %v1695_v52  ;;  %v1704_v1 = vmul.f32 0.5, %v1703_v53  ;;  %v1551_v2 = vmul.f32 %v911_v48, %v911_v48 }
 0x134   : > { %2922 = vst [vmem:[#allocation3 + $0xc8] sm:$0xff] %v2890_v43  ;;  %v1583_v3 = vmul.f32 %v1000_v49, %v1000_v49  ;;  %v1700_v0 = vsel %vm1698_vm2, %v1699_v41, %v1697_v63  ;;  %v1072_v5 = vmul.f32 %v575_v54, %v575_v54  ;;  %v1104_v56 = vmul.f32 %v664_v62, %v664_v62 }
 0x135   : > { %v2302_v55 = vsel %vm2301_vm6, %v3575_v23, %v2298_v57  ;;  %v2061_v7 = vsub.f32 %v1220_v58, %v1700_v0  ;;  %v4324_v15 = vadd.f32 1e-07, %v1700_v0  ;;  %v1227_v12 = vmul.f32 %v1226_v60, %v4232_v8  ;;  %v2828_v57 = vld [vmem:[#allocation3 + $0x78] sm:$0xff]  ;;  %v3478_v0 = vld [vmem:[%s3905_s6 + $0x68] sm:$0xff] }
 0x136   : > { %v2307_v6 = vsel %vm4305_vm5, %v2306_v51, %v2302_v55  ;;  %v1705_v13 = vsub.f32 1.5, %v1704_v1  ;;  %vm1228_vm7 = vcmp.eq.f32.partialorder %v4232_v8, inf  ;;  %vm1230_vm8 = vcmp.eq.f32.partialorder %v4232_v8, 0.0 }
 0x137   : > { %v3579_v14 = vpop.eup %3578  ;;  %v2308_v10 = vmul.f32 %v2307_v6, %v4257_v61  ;;  %v2093_v18 = vand.u32 2147483647, %v2061_v7  ;;  %3582 = vrcp.f32 %v4324_v15  ;;  %v1231_v20 = vand.u32 2147483648, %v4232_v8 }
 0x138   : > { %v2734_v4 = vmul.f32 0.6931472, %v3579_v14  ;;  %v3581_v26 = vpop.eup %3580  ;;  %v1706_v16 = vmul.f32 %v3577_v39, %v1705_v13  ;;  %v4333_v21 = vadd.f32 %v1583_v3, %v1551_v2  ;;  %v1229_v23 = vsel %vm1228_vm7, %v4232_v8, %v1227_v12  ;;  %v667_v13 = vpop.f32.mrf.mxu1 }
 0x139   : > { %3584 = vlog2.f32 %v2308_v10  ;;  %v2125_v9 = vadd.f32 %v2093_v18, %v2029_v11  ;;  %v1234_v61 = vmul.f32 %v3581_v26, %v4303_v46  ;;  %v4337_v28 = vadd.f32 %v1104_v56, %v1072_v5  ;;  %v3494_v5 = vld [vmem:[%s3910_s9 + $0x68] sm:$0xff]  ;;  %v578_v56 = vpop.f32.mrf.mxu0 }
 0x13a   : > { %v2795_v33 = vmul.f32 0.4342945, %v2734_v4  ;;  %v1707_v24 = vmul.f32 %v1706_v16, %v4259_v47  ;;  %vm1708_vm9 = vcmp.eq.f32.partialorder %v4259_v47, inf  ;;  %v1711_v59 = vand.u32 2147483648, %v4259_v47  ;;  %3339 = vmatmul.msk.bf16.gmra.mxu0 %vm500_vm0, %v3478_v0  ;;  %3435 = vmatmul.msk.bf16.gmra.mxu2 %vm500_vm0, %v3494_v5 }
 0x13b   : > { %2157 = vst [vmem:[#allocation2 + $0x50] sm:$0xff] %v2125_v9  ;;  %v1235_v29 = vmul.f32 %v3581_v26, %v1234_v61  ;;  %3586 = vrsqrt.f32 %v4333_v21  ;;  %v4342_v30 = vadd.f32 1e-07, %v1220_v58  ;;  %vm1710_vm10 = vcmp.eq.f32.partialorder %v4259_v47, 0.0  ;;  %3355 = vmatmul.msk.bf16.gmra.mxu1 %vm500_vm0, %v3478_v0  ;;  %v1005_v9 = vpop.f32.mrf.mxu3  ;;  %3451 = vmatmul.msk.bf16.gmra.mxu3 %vm500_vm0, %v3494_v5 }
 0x13c   : > { %v2859_v19 = vmul.f32 %v2795_v33, %v2795_v33  ;;  %v1709_v31 = vsel %vm1708_vm9, %v4259_v47, %v1707_v24  ;;  %3588 = vrsqrt.f32 %v4337_v28  ;;  %v1232_v37 = vsel %vm1230_vm8, %v1231_v20, %v1229_v23 }
 0x13d   : > { %v3583_v34 = vpop.eup %3582  ;;  %v1712_v38 = vsel %vm1710_vm10, %v1711_v59, %v1709_v31  ;;  %v1236_v39 = vmul.f32 0.5, %v1235_v29  ;;  %vm1240_vm11 = vcmp.eq.f32.partialorder %v4303_v46, inf  ;;  %v1243_v47 = vand.u32 2147483648, %v4303_v46 }
 0x13e   : > { %v2891_v22 = vadd.f32 %v2859_v19, %v2827_v17  ;;  %v2310_v41 = vmul.f32 %v3583_v34, %v4324_v15  ;;  %v2062_v25 = vsub.f32 %v1232_v37, %v1712_v38  ;;  %v4351_v42 = vadd.f32 1e-07, %v1712_v38  ;;  %v916_v17 = vpop.f32.mrf.mxu2 }
 0x13f   : > { %v3585_v40 = vpop.eup %3584  ;;  %v1237_v45 = vsub.f32 1.5, %v1236_v39  ;;  %v1552_v36 = vmul.f32 %v913_v32, %v913_v32  ;;  %v1584_v35 = vmul.f32 %v1002_v27, %v1002_v27  ;;  %v2318_v8 = vand.u32 2147483647, %v4324_v15 }
 0x140   : > { %2923 = vst [vmem:[#allocation3 + $0xe8] sm:$0xff] %v2891_v22  ;;  %v2736_v43 = vmul.f32 0.6931472, %v3585_v40  ;;  %v2311_v48 = vsub.f32 1.0, %v2310_v41  ;;  %v2094_v49 = vand.u32 2147483647, %v2062_v25  ;;  %3590 = vrcp.f32 %v4351_v42 }
 0x141   : > { %v3587_v50 = vpop.eup %3586  ;;  %vm2315_vm12 = vweird.f32 %v3583_v34  ;;  %v2320_v52 = vand.u32 2147483648, %v4324_v15  ;;  %v1238_v53 = vmul.f32 %v3581_v26, %v1237_v45  ;;  %v4360_v14 = vadd.f32 %v1584_v35, %v1552_v36 }
 0x142   : > { %v2796_v51 = vmul.f32 0.4342945, %v2736_v43  ;;  %v4357_v54 = vpop.eup %3588  ;;  %v2312_v58 = vmul.f32 %v3583_v34, %v2311_v48  ;;  %v2126_v60 = vadd.f32 %v2094_v49, %v2030_v44  ;;  %v1714_v62 = vmul.f32 %v3587_v50, %v4333_v21 }
 0x143   : > { %vm2314_vm13 = vweird.f32 %v4324_v15  ;;  %v4363_v1 = vadd.f32 1e-07, %v1232_v37  ;;  %v1239_v2 = vmul.f32 %v1238_v53, %v4303_v46  ;;  %vm1242_vm14 = vcmp.eq.f32.partialorder %v4303_v46, 0.0 }
 0x144   : > { %v2860_v63 = vmul.f32 %v2796_v51, %v2796_v51  ;;  %v2313_v3 = vadd.f32 %v3583_v34, %v2312_v58  ;;  %2158 = vst [vmem:[#allocation2 + $0x68] sm:$0xff] %v2126_v60  ;;  %v1715_v4 = vmul.f32 %v3587_v50, %v1714_v62  ;;  %v1246_v55 = vmul.f32 %v4357_v54, %v4337_v28  ;;  %vm4373_vm15 = vmor %vm2314_vm13, %vm2315_vm12  ;;  %v2031_v60 = vld [vmem:[#allocation2 + $0x30] sm:$0xff] }
 0x145   : > { %3592 = vrsqrt.f32 %v4360_v14  ;;  %vm2319_vm1 = vcmp.eq.f32.partialorder %v2318_v8, 8.507059e+37  ;;  %v2321_v15 = vor.u32 1.1754944e-38, %v2320_v52  ;;  %vm1720_vm2 = vcmp.eq.f32.partialorder %v4333_v21, inf }
 0x146   : > { %v2892_v6 = vadd.f32 %v2860_v63, %v2828_v57  ;;  %v3591_v33 = vpop.eup %3590  ;;  %v2317_v10 = vsel %vm4373_vm15, %v3583_v34, %v2313_v3  ;;  %v1716_v11 = vmul.f32 0.5, %v1715_v4  ;;  %vm1722_vm3 = vcmp.eq.f32.partialorder %v4333_v21, 0.0 }
 0x147   : > { %v1247_v12 = vmul.f32 %v4357_v54, %v1246_v55  ;;  %v2322_v18 = vsel %vm2319_vm1, %v2321_v15, %v2317_v10  ;;  %v2325_v26 = vmul.f32 %v3591_v33, %v4351_v42  ;;  %v2333_v19 = vand.u32 2147483647, %v4351_v42  ;;  %v2829_v55 = vld [vmem:[#allocation3 + $0x8] sm:$0xff] }
 0x148   : > { %2924 = vst [vmem:[#allocation3 + $0x78] sm:$0xff] %v2892_v6  ;;  %v2335_v16 = vand.u32 2147483648, %v4351_v42  ;;  %v2323_v20 = vmul.f32 %v2322_v18, %v4342_v30  ;;  %v1241_v61 = vsel %vm1240_vm11, %v4303_v46, %v1239_v2  ;;  %v1717_v22 = vsub.f32 1.5, %v1716_v11  ;;  %v580_v46 = vpop.f32.mrf.mxu0 }
 0x149   : > { %v1248_v23 = vmul.f32 0.5, %v1247_v12  ;;  %v2326_v24 = vsub.f32 1.0, %v2325_v26  ;;  %v1073_v59 = vmul.f32 %v578_v56, %v578_v56  ;;  %v1105_v29 = vmul.f32 %v667_v13, %v667_v13 }
 0x14a   : > { %v1553_v31 = vmul.f32 %v916_v17, %v916_v17  ;;  %3594 = vlog2.f32 %v2323_v20  ;;  %v1718_v27 = vmul.f32 %v3587_v50, %v1717_v22  ;;  %v1585_v37 = vmul.f32 %v1005_v9, %v1005_v9  ;;  %v918_v20 = vpop.f32.mrf.mxu2 }
 0x14b   : > { %v3593_v32 = vpop.eup %3592  ;;  %v1249_v34 = vsub.f32 1.5, %v1248_v23  ;;  %v2327_v38 = vmul.f32 %v3591_v33, %v2326_v24  ;;  %vm2330_vm4 = vweird.f32 %v3591_v33  ;;  %v4394_v30 = vadd.f32 %v1105_v29, %v1073_v59  ;;  %v1007_v59 = vpop.f32.mrf.mxu3  ;;  %v3479_v29 = vld [vmem:[%s3905_s6 + $0x70] sm:$0xff] }
 0x14c   : > { %v1726_v39 = vmul.f32 %v3593_v32, %v4360_v14  ;;  %vm2329_vm5 = vweird.f32 %v4351_v42  ;;  %v1719_v40 = vmul.f32 %v1718_v27, %v4333_v21  ;;  %v1723_v41 = vand.u32 2147483648, %v4333_v21  ;;  %3340 = vmatmul.msk.bf16.gmra.mxu0 %vm500_vm0, %v3479_v29  ;;  %3356 = vmatmul.msk.bf16.gmra.mxu1 %vm500_vm0, %v3479_v29 }
 0x14d   : > { %v4399_v25 = vadd.f32 %v1585_v37, %v1553_v31  ;;  %v2328_v43 = vadd.f32 %v3591_v33, %v2327_v38  ;;  %vm2334_vm6 = vcmp.eq.f32.partialorder %v2333_v19, 8.507059e+37  ;;  %3596 = vrsqrt.f32 %v4394_v30  ;;  %vm2331_vm7 = vmor %vm2329_vm5, %vm2330_vm4  ;;  %v3495_v31 = vld [vmem:[%s3910_s9 + $0x70] sm:$0xff] }
 0x14e   : > { %v1727_v44 = vmul.f32 %v3593_v32, %v1726_v39  ;;  %v2336_v45 = vor.u32 1.1754944e-38, %v2335_v16  ;;  %v1244_v36 = vsel %vm1242_vm14, %v1243_v47, %v1241_v61  ;;  %v1721_v42 = vsel %vm1720_vm2, %v4333_v21, %v1719_v40  ;;  %v669_v47 = vpop.f32.mrf.mxu1  ;;  %v2032_v39 = vld [vmem:[#allocation2 + $0x48] sm:$0xff]  ;;  %3436 = vmatmul.msk.bf16.gmra.mxu2 %vm500_vm0, %v3495_v31  ;;  %3452 = vmatmul.msk.bf16.gmra.mxu3 %vm500_vm0, %v3495_v31 }
 0x14f   : > { %v1250_v35 = vmul.f32 %v4357_v54, %v1249_v34  ;;  %v2332_v48 = vsel %vm2331_vm7, %v3591_v33, %v2328_v43  ;;  %v1724_v8 = vsel %vm1722_vm3, %v1723_v41, %v1721_v42  ;;  %3598 = vrsqrt.f32 %v4399_v25 }
 0x150   : > { %v1728_v49 = vmul.f32 0.5, %v1727_v44  ;;  %v3595_v50 = vpop.eup %3594  ;;  %v2337_v51 = vsel %vm2334_vm6, %v2336_v45, %v2332_v48  ;;  %v2063_v52 = vsub.f32 %v1244_v36, %v1724_v8  ;;  %v4413_v53 = vadd.f32 1e-07, %v1724_v8  ;;  %v2830_v45 = vld [vmem:[#allocation3 + $0x90] sm:$0xff] }
 0x151   : > { %v2738_v57 = vmul.f32 0.6931472, %v3595_v50  ;;  %v2338_v58 = vmul.f32 %v2337_v51, %v4363_v1  ;;  %v1251_v21 = vmul.f32 %v1250_v35, %v4337_v28  ;;  %vm1252_vm8 = vcmp.eq.f32.partialorder %v4337_v28, inf }
 0x152   : > { %v1729_v62 = vsub.f32 1.5, %v1728_v49  ;;  %v2095_v54 = vand.u32 2147483647, %v2063_v52  ;;  %3600 = vrcp.f32 %v4413_v53  ;;  %v1074_v3 = vmul.f32 %v580_v46, %v580_v46 }
 0x153   : > { %v3597_v63 = vpop.eup %3596  ;;  %v2797_v2 = vmul.f32 0.4342945, %v2738_v57  ;;  %3602 = vlog2.f32 %v2338_v58  ;;  %v1106_v4 = vmul.f32 %v669_v47, %v669_v47  ;;  %vm1254_vm9 = vcmp.eq.f32.partialorder %v4337_v28, 0.0  ;;  %v583_v57 = vpop.f32.mrf.mxu0 }
 0x154   : > { %v2127_v0 = vadd.f32 %v2095_v54, %v2031_v60  ;;  %v1730_v5 = vmul.f32 %v3593_v32, %v1729_v62  ;;  %v1258_v1 = vmul.f32 %v3597_v63, %v4394_v30  ;;  %v1255_v15 = vand.u32 2147483648, %v4337_v28 }
 0x155   : > { %v4421_v6 = vpop.eup %3598  ;;  %v2861_v7 = vmul.f32 %v2797_v2, %v2797_v2  ;;  %vm1732_vm10 = vcmp.eq.f32.partialorder %v4360_v14, inf  ;;  %vm1734_vm11 = vcmp.eq.f32.partialorder %v4360_v14, 0.0  ;;  %v1253_v56 = vsel %vm1252_vm8, %v4337_v28, %v1251_v21 }
 0x156   : > { %2159 = vst [vmem:[#allocation2 + $0x30] sm:$0xff] %v2127_v0  ;;  %v1731_v33 = vmul.f32 %v1730_v5, %v4360_v14  ;;  %v1259_v10 = vmul.f32 %v3597_v63, %v1258_v1  ;;  %v1738_v11 = vmul.f32 %v4421_v6, %v4399_v25  ;;  %v4432_v13 = vadd.f32 1e-07, %v1244_v36  ;;  %v672_v21 = vpop.f32.mrf.mxu1 }
 0x157   : > { %v2893_v12 = vadd.f32 %v2861_v7, %v2829_v55  ;;  %v1735_v17 = vand.u32 2147483648, %v4360_v14  ;;  %v4435_v18 = vadd.f32 %v1106_v4, %v1074_v3  ;;  %vm1264_vm12 = vcmp.eq.f32.partialorder %v4394_v30, inf }
 0x158   : > { %v4437_v26 = vpop.eup %3600  ;;  %v1733_v19 = vsel %vm1732_vm10, %v4360_v14, %v1731_v33  ;;  %v1260_v16 = vmul.f32 0.5, %v1259_v10  ;;  %v1739_v9 = vmul.f32 %v4421_v6, %v1738_v11  ;;  %v4446_v23 = vsel %vm1254_vm9, %v1255_v15, %v1253_v56  ;;  %v921_v33 = vpop.f32.mrf.mxu2 }
 0x159   : > { %v3603_v61 = vpop.eup %3602  ;;  %2925 = vst [vmem:[#allocation3 + $0x8] sm:$0xff] %v2893_v12  ;;  %v2340_v22 = vmul.f32 %v4437_v26, %v4413_v53  ;;  %v1736_v24 = vsel %vm1734_vm11, %v1735_v17, %v1733_v19  ;;  %vm1266_vm13 = vcmp.eq.f32.partialorder %v4394_v30, 0.0  ;;  %3604 = vrsqrt.f32 %v4435_v18  ;;  %v1010_v17 = vpop.f32.mrf.mxu3 }
 0x15a   : > { %v2740_v32 = vmul.f32 0.6931472, %v3603_v61  ;;  %v2064_v27 = vsub.f32 %v4446_v23, %v1736_v24  ;;  %v4455_v34 = vadd.f32 1e-07, %v1736_v24  ;;  %v1261_v37 = vsub.f32 1.5, %v1260_v16 }
 0x15b   : > { %v2341_v38 = vsub.f32 1.0, %v2340_v22  ;;  %v2350_v28 = vand.u32 2147483648, %v4413_v53  ;;  %v1740_v40 = vmul.f32 0.5, %v1739_v9  ;;  %v1554_v14 = vmul.f32 %v918_v20, %v918_v20  ;;  %v2033_v9 = vld [vmem:[#allocation2 + $0x80] sm:$0xff]  ;;  %v585_v29 = vpop.f32.mrf.mxu0 }
 0x15c   : > { %v2798_v41 = vmul.f32 0.4342945, %v2740_v32  ;;  %v2096_v43 = vand.u32 2147483647, %v2064_v27  ;;  %3606 = vrcp.f32 %v4455_v34  ;;  %v1586_v44 = vmul.f32 %v1007_v59, %v1007_v59 }
 0x15d   : > { %v2342_v36 = vmul.f32 %v4437_v26, %v2341_v38  ;;  %vm2345_vm14 = vweird.f32 %v4437_v26  ;;  %v2348_v42 = vand.u32 2147483647, %v4413_v53  ;;  %v1262_v35 = vmul.f32 %v3597_v63, %v1261_v37 }
 0x15e   : > { %v2862_v48 = vmul.f32 %v2798_v41, %v2798_v41  ;;  %v2128_v8 = vadd.f32 %v2096_v43, %v2032_v39  ;;  %v1267_v49 = vand.u32 2147483648, %v4394_v30  ;;  %v1741_v50 = vsub.f32 1.5, %v1740_v40  ;;  %v674_v37 = vpop.f32.mrf.mxu1 }
 0x15f   : > { %v4467_v51 = vpop.eup %3604  ;;  %v2343_v52 = vadd.f32 %v4437_v26, %v2342_v36  ;;  %vm2344_vm15 = vweird.f32 %v4413_v53  ;;  %v2351_v46 = vor.u32 1.1754944e-38, %v2350_v28  ;;  %v1263_v47 = vmul.f32 %v1262_v35, %v4394_v30 }
 0x160   : > { %v2894_v58 = vadd.f32 %v2862_v48, %v2830_v45  ;;  %vm2346_vm1 = vmor %vm2344_vm15, %vm2345_vm14  ;;  %2160 = vst [vmem:[#allocation2 + $0x48] sm:$0xff] %v2128_v8  ;;  %v1742_v60 = vmul.f32 %v4421_v6, %v1741_v50  ;;  %v1270_v62 = vmul.f32 %v4467_v51, %v4435_v18  ;;  %v4475_v54 = vadd.f32 %v1586_v44, %v1554_v14 }
 0x161   : > { %v2347_v63 = vsel %vm2346_vm1, %v4437_v26, %v2343_v52  ;;  %vm2349_vm2 = vcmp.eq.f32.partialorder %v2348_v42, 8.507059e+37  ;;  %v1265_v53 = vsel %vm1264_vm12, %v4394_v30, %v1263_v47  ;;  %vm1744_vm3 = vcmp.eq.f32.partialorder %v4399_v25, inf  ;;  %v2831_v52 = vld [vmem:[#allocation3 + $0x58] sm:$0xff] }
 0x162   : > { %v3607_v2 = vpop.eup %3606  ;;  %2926 = vst [vmem:[#allocation3 + $0x90] sm:$0xff] %v2894_v58  ;;  %v2352_v3 = vsel %vm2349_vm2, %v2351_v46, %v2347_v63  ;;  %v1743_v4 = vmul.f32 %v1742_v60, %v4399_v25  ;;  %v1747_v55 = vand.u32 2147483648, %v4399_v25  ;;  %v1271_v0 = vmul.f32 %v4467_v51, %v1270_v62 }
 0x163   : > { %v2353_v5 = vmul.f32 %v2352_v3, %v4432_v13  ;;  %v2355_v1 = vmul.f32 %v3607_v2, %v4455_v34  ;;  %v1075_v6 = vmul.f32 %v583_v57, %v583_v57  ;;  %v1107_v7 = vmul.f32 %v672_v21, %v672_v21  ;;  %v1012_v57 = vpop.f32.mrf.mxu3 }
 0x164   : > { %v1268_v15 = vsel %vm1266_vm13, %v1267_v49, %v1265_v53  ;;  %v1745_v56 = vsel %vm1744_vm3, %v4399_v25, %v1743_v4  ;;  %vm1746_vm4 = vcmp.eq.f32.partialorder %v4399_v25, 0.0  ;;  %3608 = vrsqrt.f32 %v4475_v54  ;;  %v923_v49 = vpop.f32.mrf.mxu2 }
 0x165   : > { %3610 = vlog2.f32 %v2353_v5  ;;  %v2356_v10 = vsub.f32 1.0, %v2355_v1  ;;  %v1748_v11 = vsel %vm1746_vm4, %v1747_v55, %v1745_v56  ;;  %v1272_v12 = vmul.f32 0.5, %v1271_v0 }
 0x166   : > { %v2365_v13 = vand.u32 2147483648, %v4455_v34  ;;  %v2065_v26 = vsub.f32 %v1268_v15, %v1748_v11  ;;  %v4493_v19 = vadd.f32 1e-07, %v1748_v11  ;;  %vm2360_vm5 = vweird.f32 %v3607_v2 }
 0x167   : > { %v2357_v16 = vmul.f32 %v3607_v2, %v2356_v10  ;;  %v2363_v30 = vand.u32 2147483647, %v4455_v34  ;;  %v4496_v20 = vadd.f32 %v1107_v7, %v1075_v6  ;;  %v1555_v61 = vmul.f32 %v921_v33, %v921_v33 }
 0x168   : > { %v2097_v25 = vand.u32 2147483647, %v2065_v26  ;;  %3612 = vrcp.f32 %v4493_v19  ;;  %v1587_v22 = vmul.f32 %v1010_v17, %v1010_v17  ;;  %vm2359_vm6 = vweird.f32 %v4455_v34 }
 0x169   : > { %v2358_v24 = vadd.f32 %v3607_v2, %v2357_v16  ;;  %v1273_v59 = vsub.f32 1.5, %v1272_v12  ;;  %3614 = vrsqrt.f32 %v4496_v20  ;;  %vm2361_vm7 = vmor %vm2359_vm6, %vm2360_vm5  ;;  %v2366_v32 = vor.u32 1.1754944e-38, %v2365_v13 }
 0x16a   : > { %v3609_v31 = vpop.eup %3608  ;;  %v2129_v27 = vadd.f32 %v2097_v25, %v2033_v9  ;;  %v2192_v28 = vadd.f32 1e-07, %v4446_v23  ;;  %vm2364_vm8 = vcmp.eq.f32.partialorder %v2363_v30, 8.507059e+37  ;;  %vm1276_vm9 = vcmp.eq.f32.partialorder %v4435_v18, inf  ;;  %v588_v9 = vpop.f32.mrf.mxu0 }
 0x16b   : > { %v3611_v38 = vpop.eup %3610  ;;  %v2362_v39 = vsel %vm2361_vm7, %v3607_v2, %v2358_v24  ;;  %v1750_v40 = vmul.f32 %v3609_v31, %v4475_v54  ;;  %v4504_v34 = vadd.f32 %v1587_v22, %v1555_v61  ;;  %v1076_v43 = vmul.f32 %v585_v29, %v585_v29  ;;  %v677_v25 = vpop.f32.mrf.mxu1  ;;  %v3480_v29 = vld [vmem:[%s3905_s6 + $0x78] sm:$0xff] }
 0x16c   : > { %v2742_v14 = vmul.f32 0.6931472, %v3611_v38  ;;  %v2367_v41 = vsel %vm2364_vm8, %v2366_v32, %v2362_v39  ;;  %2161 = vst [vmem:[#allocation2 + $0x80] sm:$0xff] %v2129_v27  ;;  %v1274_v45 = vmul.f32 %v4467_v51, %v1273_v59  ;;  %v1108_v42 = vmul.f32 %v674_v37, %v674_v37  ;;  %3341 = vmatmul.msk.bf16.gmra.mxu0 %vm500_vm0, %v3480_v29 }
 0x16d   : > { %v2368_v44 = vmul.f32 %v2367_v41, %v2192_v28  ;;  %v1751_v36 = vmul.f32 %v3609_v31, %v1750_v40  ;;  %v2193_v23 = vadd.f32 1e-07, %v1268_v15  ;;  %v1279_v8 = vand.u32 2147483648, %v4435_v18  ;;  %v2832_v28 = vld [vmem:[#allocation3 + $0xa8] sm:$0xff]  ;;  %3357 = vmatmul.msk.bf16.gmra.mxu1 %vm500_vm0, %v3480_v29 }
 0x16e   : > { %v3613_v35 = vpop.eup %3612  ;;  %v2799_v48 = vmul.f32 0.4342945, %v2742_v14  ;;  %3616 = vrsqrt.f32 %v4504_v34  ;;  %v2378_v47 = vand.u32 2147483647, %v4493_v19  ;;  %vm1756_vm10 = vcmp.eq.f32.partialorder %v4475_v54, inf }
 0x16f   : > { %v3615_v50 = vpop.eup %3614  ;;  %3618 = vlog2.f32 %v2368_v44  ;;  %v2370_v46 = vmul.f32 %v3613_v35, %v4493_v19  ;;  %v1759_v51 = vand.u32 2147483648, %v4475_v54  ;;  %v2380_v60 = vand.u32 2147483648, %v4493_v19 }
 0x170   : > { %v2863_v58 = vmul.f32 %v2799_v48, %v2799_v48  ;;  %vm1278_vm11 = vcmp.eq.f32.partialorder %v4435_v18, 0.0  ;;  %v1752_v62 = vmul.f32 0.5, %v1751_v36  ;;  %vm1758_vm12 = vcmp.eq.f32.partialorder %v4475_v54, 0.0 }
 0x171   : > { %v1282_v21 = vmul.f32 %v3615_v50, %v4496_v20  ;;  %v2371_v63 = vsub.f32 1.0, %v2370_v46  ;;  %v1275_v53 = vmul.f32 %v1274_v45, %v4435_v18  ;;  %v4518_v2 = vadd.f32 %v1108_v42, %v1076_v43 }
 0x172   : > { %v1556_v3 = vmul.f32 %v923_v49, %v923_v49  ;;  %v2895_v4 = vadd.f32 %v2863_v58, %v2831_v52  ;;  %v1753_v55 = vsub.f32 1.5, %v1752_v62  ;;  %v1588_v5 = vmul.f32 %v1012_v57, %v1012_v57 }
 0x173   : > { %v1283_v0 = vmul.f32 %v3615_v50, %v1282_v21  ;;  %v2372_v1 = vmul.f32 %v3613_v35, %v2371_v63  ;;  %vm2374_vm13 = vweird.f32 %v4493_v19  ;;  %vm2375_vm14 = vweird.f32 %v3613_v35 }
 0x174   : > { %3620 = vrsqrt.f32 %v4518_v2  ;;  %v3617_v6 = vpop.eup %3616  ;;  %2927 = vst [vmem:[#allocation3 + $0x58] sm:$0xff] %v2895_v4  ;;  %vm4522_vm15 = vcmp.eq.f32.partialorder %v2378_v47, 8.507059e+37  ;;  %v1754_v15 = vmul.f32 %v3609_v31, %v1753_v55  ;;  %v4526_v33 = vadd.f32 %v1588_v5, %v1556_v3  ;;  %vm2376_vm1 = vmor %vm2374_vm13, %vm2375_vm14  ;;  %v3496_v31 = vld [vmem:[%s3910_s9 + $0x78] sm:$0xff] }
 0x175   : > { %v1284_v56 = vmul.f32 0.5, %v1283_v0  ;;  %v3619_v10 = vpop.eup %3618  ;;  %v2373_v11 = vadd.f32 %v3613_v35, %v2372_v1  ;;  %v2381_v12 = vor.u32 1.1754944e-38, %v2380_v60  ;;  %v1277_v17 = vsel %vm1276_vm9, %v4435_v18, %v1275_v53  ;;  %3437 = vmatmul.msk.bf16.gmra.mxu2 %vm500_vm0, %v3496_v31  ;;  %3453 = vmatmul.msk.bf16.gmra.mxu3 %vm500_vm0, %v3496_v31  ;;  %v2034_v18 = vld [vmem:[#allocation2 + $0x88] sm:$0xff] }
 0x176   : > { %v1762_v13 = vmul.f32 %v3617_v6, %v4504_v34  ;;  %v2744_v26 = vmul.f32 0.6931472, %v3619_v10  ;;  %v1755_v16 = vmul.f32 %v1754_v15, %v4475_v54  ;;  %3622 = vrsqrt.f32 %v4526_v33  ;;  %v1015_v10 = vpop.f32.mrf.mxu3 }
 0x177   : > { %v1285_v30 = vsub.f32 1.5, %v1284_v56  ;;  %v2377_v61 = vsel %vm2376_vm1, %v3613_v35, %v2373_v11  ;;  %v1077_v24 = vmul.f32 %v588_v9, %v588_v9  ;;  %v1109_v59 = vmul.f32 %v677_v25, %v677_v25 }
 0x178   : > { %v1763_v22 = vmul.f32 %v3617_v6, %v1762_v13  ;;  %v2800_v32 = vmul.f32 0.4342945, %v2744_v26  ;;  %v2382_v27 = vsel %vm4522_vm15, %v2381_v12, %v2377_v61  ;;  %v1757_v19 = vsel %vm1756_vm10, %v4475_v54, %v1755_v16  ;;  %v2035_v12 = vld [vmem:[#allocation2 + $0xe8] sm:$0xff]  ;;  %v2833_v26 = vld [vmem:[#allocation3 + $0xd0] sm:$0xff] }
 0x179   : > { %v1286_v37 = vmul.f32 %v3615_v50, %v1285_v30  ;;  %v2383_v39 = vmul.f32 %v2382_v27, %v2193_v23  ;;  %v1280_v40 = vsel %vm1278_vm11, %v1279_v8, %v1277_v17  ;;  %v1760_v14 = vsel %vm1758_vm12, %v1759_v51, %v1757_v19 }
 0x17a   : > { %v3621_v38 = vpop.eup %3620  ;;  %v1764_v41 = vmul.f32 0.5, %v1763_v22  ;;  %v2864_v43 = vmul.f32 %v2800_v32, %v2800_v32  ;;  %v2066_v44 = vsub.f32 %v1280_v40, %v1760_v14  ;;  %v4549_v45 = vadd.f32 1e-07, %v1760_v14 }
 0x17b   : > { %v1287_v36 = vmul.f32 %v1286_v37, %v4496_v20  ;;  %3624 = vlog2.f32 %v2383_v39  ;;  %vm1288_vm2 = vcmp.eq.f32.partialorder %v4496_v20, inf  ;;  %v1294_v42 = vmul.f32 %v3621_v38, %v4518_v2  ;;  %v590_v39 = vpop.f32.mrf.mxu0 }
 0x17c   : > { %v1765_v54 = vsub.f32 1.5, %v1764_v41  ;;  %v3623_v35 = vpop.eup %3622  ;;  %v2896_v48 = vadd.f32 %v2864_v43, %v2832_v28  ;;  %v2098_v23 = vand.u32 2147483647, %v2066_v44  ;;  %3626 = vrcp.f32 %v4549_v45  ;;  %v679_v44 = vpop.f32.mrf.mxu1 }
 0x17d   : > { %v4557_v8 = vadd.f32 %v1109_v59, %v1077_v24  ;;  %vm1290_vm3 = vcmp.eq.f32.partialorder %v4496_v20, 0.0  ;;  %v1291_v49 = vand.u32 2147483648, %v4496_v20  ;;  %v1289_v46 = vsel %vm1288_vm2, %v4496_v20, %v1287_v36 }
 0x17e   : > { %v1766_v50 = vmul.f32 %v3617_v6, %v1765_v54  ;;  %2928 = vst [vmem:[#allocation3 + $0xa8] sm:$0xff] %v2896_v48  ;;  %v2130_v52 = vadd.f32 %v2098_v23, %v2034_v18  ;;  %v1295_v47 = vmul.f32 %v3621_v38, %v1294_v42  ;;  %v1774_v51 = vmul.f32 %v3623_v35, %v4526_v33  ;;  %v926_v6 = vpop.f32.mrf.mxu2 }
 0x17f   : > { %v4563_v57 = vadd.f32 1e-07, %v1280_v40  ;;  %vm1768_vm0 = vcmp.eq.f32.partialorder %v4504_v34, inf  ;;  %v1771_v60 = vand.u32 2147483648, %v4504_v34  ;;  %3628 = vrsqrt.f32 %v4557_v8 }
 0x180   : > { %v1767_v58 = vmul.f32 %v1766_v50, %v4504_v34  ;;  %2162 = vst [vmem:[#allocation2 + $0x88] sm:$0xff] %v2130_v52  ;;  %v1296_v62 = vmul.f32 0.5, %v1295_v47  ;;  %v1775_v21 = vmul.f32 %v3623_v35, %v1774_v51  ;;  %v4571_v53 = vsel %vm1290_vm3, %v1291_v49, %v1289_v46 }
 0x181   : > { %v3625_v63 = vpop.eup %3624  ;;  %vm1770_vm4 = vcmp.eq.f32.partialorder %v4504_v34, 0.0  ;;  %vm1300_vm5 = vcmp.eq.f32.partialorder %v4518_v2, inf  ;;  %vm1302_vm6 = vcmp.eq.f32.partialorder %v4518_v2, 0.0  ;;  %v2393_v20 = vand.u32 2147483647, %v4549_v45 }
 0x182   : > { %v1769_v3 = vsel %vm1768_vm0, %v4504_v34, %v1767_v58  ;;  %v3627_v4 = vpop.eup %3626  ;;  %v2746_v55 = vmul.f32 0.6931472, %v3625_v63  ;;  %v1297_v5 = vsub.f32 1.5, %v1296_v62  ;;  %v1776_v1 = vmul.f32 0.5, %v1775_v21  ;;  %v2036_v58 = vld [vmem:[#allocation2 + $0xb8] sm:$0xff] }
 0x183   : > { %v1772_v0 = vsel %vm1770_vm4, %v1771_v60, %v1769_v3  ;;  %v2385_v7 = vmul.f32 %v3627_v4, %v4549_v45  ;;  %v2395_v11 = vand.u32 2147483648, %v4549_v45  ;;  %v1557_v9 = vmul.f32 %v926_v6, %v926_v6 }
 0x184   : > { %v2067_v15 = vsub.f32 %v4571_v53, %v1772_v0  ;;  %v4580_v56 = vadd.f32 1e-07, %v1772_v0  ;;  %v2801_v34 = vmul.f32 0.4342945, %v2746_v55  ;;  %v1298_v17 = vmul.f32 %v3621_v38, %v1297_v5 }
 0x185   : > { %v1777_v13 = vsub.f32 1.5, %v1776_v1  ;;  %v2386_v16 = vsub.f32 1.0, %v2385_v7  ;;  %v4584_v25 = vpop.eup %3628  ;;  %vm2390_vm7 = vweird.f32 %v3627_v4  ;;  %v1589_v24 = vmul.f32 %v1015_v10, %v1015_v10  ;;  %v593_v10 = vpop.f32.mrf.mxu0 }
 0x186   : > { %v2099_v30 = vand.u32 2147483647, %v2067_v15  ;;  %3630 = vrcp.f32 %v4580_v56  ;;  %v2865_v61 = vmul.f32 %v2801_v34, %v2801_v34  ;;  %v1299_v22 = vmul.f32 %v1298_v17, %v4518_v2  ;;  %v928_v49 = vpop.f32.mrf.mxu2  ;;  %v682_v34 = vpop.f32.mrf.mxu1 }
 0x187   : > { %v2387_v59 = vmul.f32 %v3627_v4, %v2386_v16  ;;  %v1778_v31 = vmul.f32 %v3623_v35, %v1777_v13  ;;  %v1306_v32 = vmul.f32 %v4584_v25, %v4557_v8  ;;  %v1303_v37 = vand.u32 2147483648, %v4518_v2 }
 0x188   : > { %v2131_v29 = vadd.f32 %v2099_v30, %v2035_v12  ;;  %v2897_v27 = vadd.f32 %v2865_v61, %v2833_v26  ;;  %v1301_v19 = vsel %vm1300_vm5, %v4518_v2, %v1299_v22  ;;  %vm1780_vm8 = vcmp.eq.f32.partialorder %v4526_v33, inf  ;;  %v1017_v2 = vpop.f32.mrf.mxu3 }
 0x189   : > { %v2388_v38 = vadd.f32 %v3627_v4, %v2387_v59  ;;  %vm2389_vm9 = vweird.f32 %v4549_v45  ;;  %v1779_v28 = vmul.f32 %v1778_v31, %v4526_v33  ;;  %vm1782_vm10 = vcmp.eq.f32.partialorder %v4526_v33, 0.0 }
 0x18a   : > { %2163 = vst [vmem:[#allocation2 + $0xe8] sm:$0xff] %v2131_v29  ;;  %vm2391_vm11 = vmor %vm2389_vm9, %vm2390_vm7  ;;  %v2396_v40 = vor.u32 1.1754944e-38, %v2395_v11  ;;  %v1783_v14 = vand.u32 2147483648, %v4526_v33  ;;  %v1307_v41 = vmul.f32 %v4584_v25, %v1306_v32  ;;  %v4600_v43 = vadd.f32 %v1589_v24, %v1557_v9 }
 0x18b   : > { %2929 = vst [vmem:[#allocation3 + $0xd0] sm:$0xff] %v2897_v27  ;;  %v2392_v18 = vsel %vm2391_vm11, %v3627_v4, %v2388_v38  ;;  %vm2394_vm12 = vcmp.eq.f32.partialorder %v2393_v20, 8.507059e+37  ;;  %v1304_v45 = vsel %vm1302_vm6, %v1303_v37, %v1301_v19  ;;  %v1781_v54 = vsel %vm1780_vm8, %v4526_v33, %v1779_v28  ;;  %v2834_v19 = vld [vmem:[#allocation3 + $0xb0] sm:$0xff] }
 0x18c   : > { %v3631_v36 = vpop.eup %3630  ;;  %v2397_v42 = vsel %vm2394_vm12, %v2396_v40, %v2392_v18  ;;  %v1784_v48 = vsel %vm1782_vm10, %v1783_v14, %v1781_v54  ;;  %v1078_v23 = vmul.f32 %v590_v39, %v590_v39  ;;  %v1110_v47 = vmul.f32 %v679_v44, %v679_v44 }
 0x18d   : > { %v2400_v35 = vmul.f32 %v3631_v36, %v4580_v56  ;;  %v2398_v50 = vmul.f32 %v2397_v42, %v4563_v57  ;;  %v2068_v52 = vsub.f32 %v1304_v45, %v1784_v48  ;;  %v4611_v46 = vadd.f32 1e-07, %v1784_v48 }
 0x18e   : > { %v1308_v60 = vmul.f32 0.5, %v1307_v41  ;;  %3632 = vrsqrt.f32 %v4600_v43  ;;  %v2408_v62 = vand.u32 2147483647, %v4580_v56  ;;  %v2410_v33 = vand.u32 2147483648, %v4580_v56  ;;  %v931_v9 = vpop.f32.mrf.mxu2 }
 0x18f   : > { %v2401_v51 = vsub.f32 1.0, %v2400_v35  ;;  %3634 = vlog2.f32 %v2398_v50  ;;  %v2100_v21 = vand.u32 2147483647, %v2068_v52  ;;  %vm2405_vm13 = vweird.f32 %v3631_v36 }
 0x190   : > { %3636 = vrcp.f32 %v4611_v46  ;;  %v1558_v57 = vmul.f32 %v928_v49, %v928_v49  ;;  %v4617_v4 = vadd.f32 %v1110_v47, %v1078_v23  ;;  %vm2404_vm14 = vweird.f32 %v4580_v56  ;;  %v1020_v29 = vpop.f32.mrf.mxu3 }
 0x191   : > { %v2402_v63 = vmul.f32 %v3631_v36, %v2401_v51  ;;  %v2132_v3 = vadd.f32 %v2100_v21, %v2036_v58  ;;  %v1309_v0 = vsub.f32 1.5, %v1308_v60  ;;  %v1590_v5 = vmul.f32 %v1017_v2, %v1017_v2  ;;  %vm2406_vm15 = vmor %vm2404_vm14, %vm2405_vm13 }
 0x192   : > { %v2195_v1 = vadd.f32 1e-07, %v4571_v53  ;;  %v2411_v6 = vor.u32 1.1754944e-38, %v2410_v33  ;;  %3638 = vrsqrt.f32 %v4617_v4  ;;  %vm2409_vm1 = vcmp.eq.f32.partialorder %v2408_v62, 8.507059e+37 }
 0x193   : > { %v2403_v55 = vadd.f32 %v3631_v36, %v2402_v63  ;;  %2164 = vst [vmem:[#allocation2 + $0xb8] sm:$0xff] %v2132_v3  ;;  %vm1312_vm2 = vcmp.eq.f32.partialorder %v4557_v8, inf  ;;  %v4623_v15 = vadd.f32 %v1590_v5, %v1558_v57  ;;  %v1079_v17 = vmul.f32 %v593_v10, %v593_v10 }
 0x194   : > { %v3633_v7 = vpop.eup %3632  ;;  %v1111_v53 = vmul.f32 %v682_v34, %v682_v34  ;;  %v1310_v30 = vmul.f32 %v4584_v25, %v1309_v0  ;;  %v2196_v61 = vadd.f32 1e-07, %v1304_v45  ;;  %vm1314_vm3 = vcmp.eq.f32.partialorder %v4557_v8, 0.0 }
 0x195   : > { %v2407_v20 = vsel %vm2406_vm15, %v3631_v36, %v2403_v55  ;;  %v3635_v11 = vpop.eup %3634  ;;  %v1786_v12 = vmul.f32 %v3633_v7, %v4600_v43  ;;  %3640 = vrsqrt.f32 %v4623_v15  ;;  %v1315_v24 = vand.u32 2147483648, %v4557_v8 }
 0x196   : > { %v2412_v56 = vsel %vm2409_vm1, %v2411_v6, %v2407_v20  ;;  %v3637_v13 = vpop.eup %3636  ;;  %v2748_v26 = vmul.f32 0.6931472, %v3635_v11  ;;  %v2423_v32 = vand.u32 2147483647, %v4611_v46  ;;  %v2425_v27 = vand.u32 2147483648, %v4611_v46  ;;  %v2835_v6 = vld [vmem:[#allocation3 + $0x38] sm:$0xff]  ;;  %v684_v11 = vpop.f32.mrf.mxu1 }
 0x197   : > { %v2413_v16 = vmul.f32 %v2412_v56, %v2195_v1  ;;  %v2415_v22 = vmul.f32 %v3637_v13, %v4611_v46  ;;  %v1787_v59 = vmul.f32 %v3633_v7, %v1786_v12  ;;  %vm1792_vm0 = vcmp.eq.f32.partialorder %v4600_v43, inf  ;;  %v595_v1 = vpop.f32.mrf.mxu0 }
 0x198   : > { %v2802_v31 = vmul.f32 0.4342945, %v2748_v26  ;;  %v3639_v25 = vpop.eup %3638  ;;  %vm1794_vm4 = vcmp.eq.f32.partialorder %v4600_v43, 0.0  ;;  %v4635_v28 = vadd.f32 %v1111_v53, %v1079_v17  ;;  %v1559_v39 = vmul.f32 %v931_v9, %v931_v9  ;;  %v2037_v53 = vld [vmem:[#allocation2 + $0x60] sm:$0xff] }
 0x199   : > { %3642 = vlog2.f32 %v2413_v16  ;;  %v2416_v37 = vsub.f32 1.0, %v2415_v22  ;;  %v1788_v38 = vmul.f32 0.5, %v1787_v59  ;;  %v1311_v14 = vmul.f32 %v1310_v30, %v4557_v8 }
 0x19a   : > { %v2866_v40 = vmul.f32 %v2802_v31, %v2802_v31  ;;  %v1318_v41 = vmul.f32 %v3639_v25, %v4617_v4  ;;  %v1591_v44 = vmul.f32 %v1020_v29, %v1020_v29  ;;  %vm2420_vm5 = vweird.f32 %v3637_v13  ;;  %v933_v29 = vpop.f32.mrf.mxu2 }
 0x19b   : > { %v2417_v36 = vmul.f32 %v3637_v13, %v2416_v37  ;;  %v1789_v18 = vsub.f32 1.5, %v1788_v38  ;;  %3644 = vrsqrt.f32 %v4635_v28  ;;  %v3641_v45 = vpop.eup %3640  ;;  %vm2419_vm6 = vweird.f32 %v4611_v46 }
 0x19c   : > { %v2898_v54 = vadd.f32 %v2866_v40, %v2834_v19  ;;  %vm4641_vm7 = vcmp.eq.f32.partialorder %v2423_v32, 8.507059e+37  ;;  %v1319_v35 = vmul.f32 %v3639_v25, %v1318_v41  ;;  %v1798_v49 = vmul.f32 %v3641_v45, %v4623_v15  ;;  %vm2421_vm8 = vmor %vm2419_vm6, %vm2420_vm5  ;;  %v1022_v19 = vpop.f32.mrf.mxu3 }
 0x19d   : > { %v2418_v48 = vadd.f32 %v3637_v13, %v2417_v36  ;;  %v1790_v23 = vmul.f32 %v3633_v7, %v1789_v18  ;;  %v4646_v50 = vadd.f32 %v1591_v44, %v1559_v39  ;;  %v2426_v47 = vor.u32 1.1754944e-38, %v2425_v27 }
 0x19e   : > { %2930 = vst [vmem:[#allocation3 + $0xb0] sm:$0xff] %v2898_v54  ;;  %v1313_v2 = vsel %vm1312_vm2, %v4557_v8, %v1311_v14  ;;  %v1795_v46 = vand.u32 2147483648, %v4600_v43  ;;  %v1320_v51 = vmul.f32 0.5, %v1319_v35  ;;  %v1799_v33 = vmul.f32 %v3641_v45, %v1798_v49 }
 0x19f   : > { %v3643_v52 = vpop.eup %3642  ;;  %v2422_v60 = vsel %vm2421_vm8, %v3637_v13, %v2418_v48  ;;  %v1791_v62 = vmul.f32 %v1790_v23, %v4600_v43  ;;  %vm1324_vm9 = vcmp.eq.f32.partialorder %v4617_v4, inf  ;;  %3646 = vrsqrt.f32 %v4646_v50 }
 0x1a0   : > { %v2750_v58 = vmul.f32 0.6931472, %v3643_v52  ;;  %v2427_v21 = vsel %vm4641_vm7, %v2426_v47, %v2422_v60  ;;  %v1321_v63 = vsub.f32 1.5, %v1320_v51  ;;  %vm1326_vm10 = vcmp.eq.f32.partialorder %v4617_v4, 0.0  ;;  %v2836_v52 = vld [vmem:[#allocation3 + $0x40] sm:$0xff] }
 0x1a1   : > { %v3645_v57 = vpop.eup %3644  ;;  %v2428_v55 = vmul.f32 %v2427_v21, %v2196_v61  ;;  %v1793_v0 = vsel %vm1792_vm0, %v4600_v43, %v1791_v62  ;;  %v1800_v5 = vmul.f32 0.5, %v1799_v33  ;;  %v1316_v7 = vsel %vm1314_vm3, %v1315_v24, %v1313_v2  ;;  %v2038_v2 = vld [vmem:[#allocation2 + $0xf0] sm:$0xff] }
 0x1a2   : > { %v2803_v3 = vmul.f32 0.4342945, %v2750_v58  ;;  %v1796_v20 = vsel %vm1794_vm4, %v1795_v46, %v1793_v0  ;;  %v1322_v10 = vmul.f32 %v3639_v25, %v1321_v63  ;;  %v1330_v34 = vmul.f32 %v3645_v57, %v4635_v28  ;;  %v598_v63 = vpop.f32.mrf.mxu0 }
 0x1a3   : > { %3648 = vlog2.f32 %v2428_v55  ;;  %v2069_v12 = vsub.f32 %v1316_v7, %v1796_v20  ;;  %v4666_v17 = vadd.f32 1e-07, %v1796_v20  ;;  %v1801_v26 = vsub.f32 1.5, %v1800_v5 }
 0x1a4   : > { %v2867_v56 = vmul.f32 %v2803_v3, %v2803_v3  ;;  %v1323_v13 = vmul.f32 %v1322_v10, %v4617_v4  ;;  %v1331_v16 = vmul.f32 %v3645_v57, %v1330_v34  ;;  %v1080_v30 = vmul.f32 %v595_v1, %v595_v1 }
 0x1a5   : > { %v2101_v9 = vand.u32 2147483647, %v2069_v12  ;;  %3650 = vrcp.f32 %v4666_v17  ;;  %v1112_v43 = vmul.f32 %v684_v11, %v684_v11  ;;  %v3647_v61 = vpop.eup %3646  ;;  %v4670_v22 = vadd.f32 1e-07, %v1316_v7  ;;  %v936_v12 = vpop.f32.mrf.mxu2 }
 0x1a6   : > { %v2899_v8 = vadd.f32 %v2867_v56, %v2835_v6  ;;  %v1327_v24 = vand.u32 2147483648, %v4617_v4  ;;  %v1802_v59 = vmul.f32 %v3641_v45, %v1801_v26  ;;  %vm1804_vm11 = vcmp.eq.f32.partialorder %v4623_v15, inf }
 0x1a7   : > { %v2133_v31 = vadd.f32 %v2101_v9, %v2037_v53  ;;  %v1325_v32 = vsel %vm1324_vm9, %v4617_v4, %v1323_v13  ;;  %v1332_v27 = vmul.f32 0.5, %v1331_v16  ;;  %v1810_v25 = vmul.f32 %v3647_v61, %v4646_v50  ;;  %v1025_v16 = vpop.f32.mrf.mxu3 }
 0x1a8   : > { %2931 = vst [vmem:[#allocation3 + $0x38] sm:$0xff] %v2899_v8  ;;  %v1803_v37 = vmul.f32 %v1802_v59, %v4623_v15  ;;  %vm1806_vm12 = vcmp.eq.f32.partialorder %v4623_v15, 0.0  ;;  %v1807_v38 = vand.u32 2147483648, %v4623_v15  ;;  %vm1336_vm13 = vcmp.eq.f32.partialorder %v4635_v28, inf }
 0x1a9   : > { %v3649_v39 = vpop.eup %3648  ;;  %2165 = vst [vmem:[#allocation2 + $0x60] sm:$0xff] %v2133_v31  ;;  %v1333_v40 = vsub.f32 1.5, %v1332_v27  ;;  %v1811_v14 = vmul.f32 %v3647_v61, %v1810_v25  ;;  %v4682_v41 = vadd.f32 %v1112_v43, %v1080_v30  ;;  %v1560_v44 = vmul.f32 %v933_v29, %v933_v29 }
 0x1aa   : > { %v2752_v36 = vmul.f32 0.6931472, %v3649_v39  ;;  %v4686_v18 = vsel %vm1326_vm10, %v1327_v24, %v1325_v32  ;;  %v1805_v45 = vsel %vm1804_vm11, %v4623_v15, %v1803_v37  ;;  %v1592_v54 = vmul.f32 %v1022_v19, %v1022_v19  ;;  %v2039_v39 = vld [vmem:[#allocation2 + $0x8] sm:$0xff] }
 0x1ab   : > { %v3651_v42 = vpop.eup %3650  ;;  %v1808_v35 = vsel %vm1806_vm12, %v1807_v38, %v1805_v45  ;;  %v1334_v48 = vmul.f32 %v3645_v57, %v1333_v40  ;;  %v1812_v23 = vmul.f32 0.5, %v1811_v14  ;;  %3652 = vrsqrt.f32 %v4682_v41  ;;  %v687_v57 = vpop.f32.mrf.mxu1 }
 0x1ac   : > { %v2804_v49 = vmul.f32 0.4342945, %v2752_v36  ;;  %v2430_v47 = vmul.f32 %v3651_v42, %v4666_v17  ;;  %v2070_v4 = vsub.f32 %v4686_v18, %v1808_v35  ;;  %vm1338_vm14 = vcmp.eq.f32.partialorder %v4635_v28, 0.0 }
 0x1ad   : > { %v2438_v46 = vand.u32 2147483647, %v4666_v17  ;;  %v2440_v15 = vand.u32 2147483648, %v4666_v17  ;;  %v4697_v51 = vadd.f32 1e-07, %v1808_v35  ;;  %v1813_v58 = vsub.f32 1.5, %v1812_v23 }
 0x1ae   : > { %v2868_v60 = vmul.f32 %v2804_v49, %v2804_v49  ;;  %v2431_v62 = vsub.f32 1.0, %v2430_v47  ;;  %v2102_v33 = vand.u32 2147483647, %v2070_v4  ;;  %v1335_v21 = vmul.f32 %v1334_v48, %v4635_v28  ;;  %v600_v49 = vpop.f32.mrf.mxu0 }
 0x1af   : > { %3654 = vrcp.f32 %v4697_v51  ;;  %v4701_v3 = vadd.f32 %v1592_v54, %v1560_v44  ;;  %v1081_v55 = vmul.f32 %v598_v63, %v598_v63  ;;  %v1113_v0 = vmul.f32 %v687_v57, %v687_v57 }
 0x1b0   : > { %v2900_v5 = vadd.f32 %v2868_v60, %v2836_v52  ;;  %v2432_v1 = vmul.f32 %v3651_v42, %v2431_v62  ;;  %vm2435_vm15 = vweird.f32 %v3651_v42  ;;  %v2134_v6 = vadd.f32 %v2102_v33, %v2038_v2 }
 0x1b1   : > { %v3653_v7 = vpop.eup %3652  ;;  %v1339_v20 = vand.u32 2147483648, %v4635_v28  ;;  %v1814_v10 = vmul.f32 %v3647_v61, %v1813_v58  ;;  %vm1816_vm1 = vcmp.eq.f32.partialorder %v4646_v50, inf  ;;  %vm1818_vm2 = vcmp.eq.f32.partialorder %v4646_v50, 0.0 }
 0x1b2   : > { %2932 = vst [vmem:[#allocation3 + $0x40] sm:$0xff] %v2900_v5  ;;  %v2433_v34 = vadd.f32 %v3651_v42, %v2432_v1  ;;  %vm2434_vm3 = vweird.f32 %v4666_v17  ;;  %v1337_v11 = vsel %vm1336_vm13, %v4635_v28, %v1335_v21  ;;  %v1342_v56 = vmul.f32 %v3653_v7, %v4682_v41 }
 0x1b3   : > { %vm2436_vm0 = vmor %vm2434_vm3, %vm2435_vm15  ;;  %v2441_v53 = vor.u32 1.1754944e-38, %v2440_v15  ;;  %2166 = vst [vmem:[#allocation2 + $0xf0] sm:$0xff] %v2134_v6  ;;  %v1815_v13 = vmul.f32 %v1814_v10, %v4646_v50  ;;  %v1819_v26 = vand.u32 2147483648, %v4646_v50  ;;  %3656 = vrsqrt.f32 %v4701_v3  ;;  %v689_v52 = vpop.f32.mrf.mxu1 }
 0x1b4   : > { %v2437_v30 = vsel %vm2436_vm0, %v3651_v42, %v2433_v34  ;;  %vm2439_vm4 = vcmp.eq.f32.partialorder %v2438_v46, 8.507059e+37  ;;  %v1343_v17 = vmul.f32 %v3653_v7, %v1342_v56  ;;  %v4714_v8 = vadd.f32 %v1113_v0, %v1081_v55  ;;  %v2837_v56 = vld [vmem:[#allocation3 + $0xe0] sm:$0xff] }
 0x1b5   : > { %v3655_v9 = vpop.eup %3654  ;;  %v2442_v43 = vsel %vm2439_vm4, %v2441_v53, %v2437_v30  ;;  %v1340_v61 = vsel %vm1338_vm14, %v1339_v20, %v1337_v11  ;;  %v1817_v24 = vsel %vm1816_vm1, %v4646_v50, %v1815_v13  ;;  %v1561_v59 = vmul.f32 %v936_v12, %v936_v12  ;;  %v938_v11 = vpop.f32.mrf.mxu2 }
 0x1b6   : > { %v2443_v29 = vmul.f32 %v2442_v43, %v4670_v22  ;;  %v2445_v31 = vmul.f32 %v3655_v9, %v4697_v51  ;;  %v1820_v32 = vsel %vm1818_vm2, %v1819_v26, %v1817_v24  ;;  %v1593_v27 = vmul.f32 %v1025_v16, %v1025_v16 }
 0x1b7   : > { %v2071_v25 = vsub.f32 %v1340_v61, %v1820_v32  ;;  %v4725_v19 = vadd.f32 1e-07, %v1820_v32  ;;  %v1344_v37 = vmul.f32 0.5, %v1343_v17  ;;  %3658 = vrsqrt.f32 %v4714_v8 }
 0x1b8   : > { %3660 = vlog2.f32 %v2443_v29  ;;  %v2446_v28 = vsub.f32 1.0, %v2445_v31  ;;  %v2453_v38 = vand.u32 2147483647, %v4697_v51  ;;  %v2198_v22 = vadd.f32 1e-07, %v4686_v18  ;;  %v2040_v18 = vld [vmem:[#allocation2 + $0x78] sm:$0xff] }
 0x1b9   : > { %v3657_v40 = vpop.eup %3656  ;;  %v2455_v14 = vand.u32 2147483648, %v4697_v51  ;;  %v2103_v44 = vand.u32 2147483647, %v2071_v25  ;;  %3662 = vrcp.f32 %v4725_v19  ;;  %vm2450_vm5 = vweird.f32 %v3655_v9 }
 0x1ba   : > { %v2447_v50 = vmul.f32 %v3655_v9, %v2446_v28  ;;  %v1345_v36 = vsub.f32 1.5, %v1344_v37  ;;  %v1822_v45 = vmul.f32 %v3657_v40, %v4701_v3  ;;  %vm2449_vm6 = vweird.f32 %v4697_v51 }
 0x1bb   : > { %v2135_v54 = vadd.f32 %v2103_v44, %v2039_v39  ;;  %vm1348_vm7 = vcmp.eq.f32.partialorder %v4682_v41, inf  ;;  %v4735_v42 = vadd.f32 %v1593_v27, %v1561_v59  ;;  %vm4737_vm8 = vcmp.eq.f32.partialorder %v2453_v38, 8.507059e+37  ;;  %vm4741_vm9 = vmor %vm2449_vm6, %vm2450_vm5  ;;  %v692_v2 = vpop.f32.mrf.mxu1 }
 0x1bc   : > { %v2448_v35 = vadd.f32 %v3655_v9, %v2447_v50  ;;  %v1346_v48 = vmul.f32 %v3653_v7, %v1345_v36  ;;  %v1823_v23 = vmul.f32 %v3657_v40, %v1822_v45  ;;  %v2456_v4 = vor.u32 1.1754944e-38, %v2455_v14 }
 0x1bd   : > { %v3659_v47 = vpop.eup %3658  ;;  %v4745_v46 = vadd.f32 1e-07, %v1340_v61  ;;  %2167 = vst [vmem:[#allocation2 + $0x8] sm:$0xff] %v2135_v54  ;;  %v1351_v15 = vand.u32 2147483648, %v4682_v41  ;;  %3664 = vrsqrt.f32 %v4735_v42  ;;  %vm1350_vm10 = vcmp.eq.f32.partialorder %v4682_v41, 0.0 }
 0x1be   : > { %v3661_v51 = vpop.eup %3660  ;;  %v2452_v58 = vsel %vm4741_vm9, %v3655_v9, %v2448_v35  ;;  %v1824_v60 = vmul.f32 0.5, %v1823_v23  ;;  %vm1828_vm11 = vcmp.eq.f32.partialorder %v4701_v3, inf  ;;  %v1831_v62 = vand.u32 2147483648, %v4701_v3  ;;  %v1027_v9 = vpop.f32.mrf.mxu3 }
 0x1bf   : > { %v1354_v33 = vmul.f32 %v3659_v47, %v4714_v8  ;;  %v3663_v21 = vpop.eup %3662  ;;  %v2754_v63 = vmul.f32 0.6931472, %v3661_v51  ;;  %v2457_v57 = vsel %vm4737_vm8, %v2456_v4, %v2452_v58  ;;  %vm1830_vm12 = vcmp.eq.f32.partialorder %v4701_v3, 0.0  ;;  %v2838_v4 = vld [vmem:[#allocation3 + $0x60] sm:$0xff] }
 0x1c0   : > { %v1082_v55 = vmul.f32 %v600_v49, %v600_v49  ;;  %v1114_v0 = vmul.f32 %v689_v52, %v689_v52  ;;  %v2458_v5 = vmul.f32 %v2457_v57, %v2198_v22  ;;  %v2460_v1 = vmul.f32 %v3663_v21, %v4725_v19 }
 0x1c1   : > { %vm2464_vm13 = vweird.f32 %v4725_v19  ;;  %v1347_v6 = vmul.f32 %v1346_v48, %v4682_v41  ;;  %v2805_v7 = vmul.f32 0.4342945, %v2754_v63  ;;  %v2468_v20 = vand.u32 2147483647, %v4725_v19 }
 0x1c2   : > { %v1825_v10 = vsub.f32 1.5, %v1824_v60  ;;  %v1355_v34 = vmul.f32 %v3659_v47, %v1354_v33  ;;  %3666 = vlog2.f32 %v2458_v5  ;;  %v2461_v12 = vsub.f32 1.0, %v2460_v1 }
 0x1c3   : > { %v2470_v53 = vand.u32 2147483648, %v4725_v19  ;;  %v4763_v13 = vadd.f32 %v1114_v0, %v1082_v55  ;;  %v3665_v26 = vpop.eup %3664  ;;  %v2869_v16 = vmul.f32 %v2805_v7, %v2805_v7  ;;  %vm2465_vm14 = vweird.f32 %v3663_v21 }
 0x1c4   : > { %v1826_v30 = vmul.f32 %v3657_v40, %v1825_v10  ;;  %v1356_v17 = vmul.f32 0.5, %v1355_v34  ;;  %v2462_v43 = vmul.f32 %v3663_v21, %v2461_v12  ;;  %v1349_v61 = vsel %vm1348_vm7, %v4682_v41, %v1347_v6  ;;  %vm2466_vm1 = vmor %vm2464_vm13, %vm2465_vm14 }
 0x1c5   : > { %v1834_v24 = vmul.f32 %v3665_v26, %v4735_v42  ;;  %v1562_v59 = vmul.f32 %v938_v11, %v938_v11  ;;  %v2901_v29 = vadd.f32 %v2869_v16, %v2837_v56  ;;  %3668 = vrsqrt.f32 %v4763_v13  ;;  %v941_v56 = vpop.f32.mrf.mxu2 }
 0x1c6   : > { %v1827_v31 = vmul.f32 %v1826_v30, %v4701_v3  ;;  %v1357_v32 = vsub.f32 1.5, %v1356_v17  ;;  %v2463_v27 = vadd.f32 %v3663_v21, %v2462_v43  ;;  %vm2469_vm15 = vcmp.eq.f32.partialorder %v2468_v20, 8.507059e+37  ;;  %v1030_v17 = vpop.f32.mrf.mxu3 }
 0x1c7   : > { %v1835_v25 = vmul.f32 %v3665_v26, %v1834_v24  ;;  %v1594_v37 = vmul.f32 %v1027_v9, %v1027_v9  ;;  %2933 = vst [vmem:[#allocation3 + $0xe0] sm:$0xff] %v2901_v29  ;;  %v2471_v28 = vor.u32 1.1754944e-38, %v2470_v53  ;;  %v1352_v38 = vsel %vm1350_vm10, %v1351_v15, %v1349_v61  ;;  %v2041_v29 = vld [vmem:[#allocation2 + $0x38] sm:$0xff] }
 0x1c8   : > { %v1829_v39 = vsel %vm1828_vm11, %v4701_v3, %v1827_v31  ;;  %v1358_v40 = vmul.f32 %v3659_v47, %v1357_v32  ;;  %v3667_v22 = vpop.eup %3666  ;;  %v2467_v14 = vsel %vm2466_vm1, %v3663_v21, %v2463_v27  ;;  %v603_v47 = vpop.f32.mrf.mxu0  ;;  %vm1360_vm2 = vcmp.eq.f32.partialorder %v4714_v8, inf }
 0x1c9   : > { %v1832_v44 = vsel %vm1830_vm12, %v1831_v62, %v1829_v39  ;;  %v1836_v50 = vmul.f32 0.5, %v1835_v25  ;;  %v4781_v36 = vadd.f32 %v1594_v37, %v1562_v59  ;;  %v2756_v45 = vmul.f32 0.6931472, %v3667_v22 }
 0x1ca   : > { %v2472_v19 = vsel %vm2469_vm15, %v2471_v28, %v2467_v14  ;;  %v2072_v54 = vsub.f32 %v1352_v38, %v1832_v44  ;;  %v4783_v35 = vadd.f32 1e-07, %v1832_v44  ;;  %v1359_v3 = vmul.f32 %v1358_v40, %v4714_v8 }
 0x1cb   : > { %v2473_v41 = vmul.f32 %v2472_v19, %v4745_v46  ;;  %v1837_v48 = vsub.f32 1.5, %v1836_v50  ;;  %3670 = vrsqrt.f32 %v4781_v36  ;;  %v3669_v23 = vpop.eup %3668  ;;  %v2806_v49 = vmul.f32 0.4342945, %v2756_v45  ;;  %v694_v19 = vpop.f32.mrf.mxu1  ;;  %v2840_v50 = vld [vmem:[#allocation3 + $0x68] sm:$0xff] }
 0x1cc   : > { %v2104_v52 = vand.u32 2147483647, %v2072_v54  ;;  %3672 = vrcp.f32 %v4783_v35  ;;  %v1083_v15 = vmul.f32 %v603_v47, %v603_v47  ;;  %v1115_v51 = vmul.f32 %v692_v2, %v692_v2 }
 0x1cd   : > { %3674 = vlog2.f32 %v2473_v41  ;;  %v2870_v46 = vmul.f32 %v2806_v49, %v2806_v49  ;;  %v1838_v60 = vmul.f32 %v3665_v26, %v1837_v48  ;;  %vm1362_vm3 = vcmp.eq.f32.partialorder %v4714_v8, 0.0 }
 0x1ce   : > { %v2136_v58 = vadd.f32 %v2104_v52, %v2040_v18  ;;  %v1363_v62 = vand.u32 2147483648, %v4714_v8  ;;  %vm1840_vm0 = vcmp.eq.f32.partialorder %v4735_v42, inf  ;;  %v1366_v33 = vmul.f32 %v3669_v23, %v4763_v13 }
 0x1cf   : > { %v2902_v21 = vadd.f32 %v2870_v46, %v2838_v4  ;;  %v1361_v63 = vsel %vm1360_vm2, %v4714_v8, %v1359_v3  ;;  %v1839_v57 = vmul.f32 %v1838_v60, %v4735_v42  ;;  %vm1842_vm4 = vcmp.eq.f32.partialorder %v4735_v42, 0.0 }
 0x1d0   : > { %2168 = vst [vmem:[#allocation2 + $0x78] sm:$0xff] %v2136_v58  ;;  %v4797_v0 = vadd.f32 1e-07, %v1352_v38  ;;  %v1843_v5 = vand.u32 2147483648, %v4735_v42  ;;  %v1367_v1 = vmul.f32 %v3669_v23, %v1366_v33  ;;  %v4800_v6 = vadd.f32 %v1115_v51, %v1083_v15  ;;  %v605_v14 = vpop.f32.mrf.mxu0 }
 0x1d1   : > { %v3671_v55 = vpop.eup %3670  ;;  %2934 = vst [vmem:[#allocation3 + $0x60] sm:$0xff] %v2902_v21  ;;  %v2483_v20 = vand.u32 2147483647, %v4783_v35  ;;  %v2485_v10 = vand.u32 2147483648, %v4783_v35  ;;  %v1841_v34 = vsel %vm1840_vm0, %v4735_v42, %v1839_v57  ;;  %v1364_v26 = vsel %vm1362_vm3, %v1363_v62, %v1361_v63  ;;  %v2839_v42 = vld [vmem:[#allocation3 + $0x18] sm:$0xff] }
 0x1d2   : > { %v3673_v7 = vpop.eup %3672  ;;  %v1846_v11 = vmul.f32 %v3671_v55, %v4781_v36  ;;  %v1844_v16 = vsel %vm1842_vm4, %v1843_v5, %v1841_v34  ;;  %v1368_v30 = vmul.f32 0.5, %v1367_v1  ;;  %3676 = vrsqrt.f32 %v4800_v6  ;;  %v1032_v34 = vpop.f32.mrf.mxu3 }
 0x1d3   : > { %v3675_v12 = vpop.eup %3674  ;;  %v2475_v53 = vmul.f32 %v3673_v7, %v4783_v35  ;;  %v2073_v43 = vsub.f32 %v1364_v26, %v1844_v16  ;;  %v4813_v61 = vadd.f32 1e-07, %v1844_v16  ;;  %v1563_v32 = vmul.f32 %v941_v56, %v941_v56 }
 0x1d4   : > { %v2758_v9 = vmul.f32 0.6931472, %v3675_v12  ;;  %v1847_v24 = vmul.f32 %v3671_v55, %v1846_v11  ;;  %v1369_v31 = vsub.f32 1.5, %v1368_v30  ;;  %v1595_v8 = vmul.f32 %v1030_v17, %v1030_v17 }
 0x1d5   : > { %v2476_v59 = vsub.f32 1.0, %v2475_v53  ;;  %v2105_v25 = vand.u32 2147483647, %v2073_v43  ;;  %3678 = vrcp.f32 %v4813_v61  ;;  %vm2480_vm5 = vweird.f32 %v3673_v7 }
 0x1d6   : > { %v2807_v27 = vmul.f32 0.4342945, %v2758_v9  ;;  %v1370_v28 = vmul.f32 %v3669_v23, %v1369_v31  ;;  %vm1372_vm6 = vcmp.eq.f32.partialorder %v4763_v13, inf  ;;  %vm1374_vm7 = vcmp.eq.f32.partialorder %v4763_v13, 0.0 }
 0x1d7   : > { %v2477_v37 = vmul.f32 %v3673_v7, %v2476_v59  ;;  %v2137_v39 = vadd.f32 %v2105_v25, %v2041_v29  ;;  %v1375_v40 = vand.u32 2147483648, %v4763_v13  ;;  %v1848_v22 = vmul.f32 0.5, %v1847_v24  ;;  %v697_v59 = vpop.f32.mrf.mxu1 }
 0x1d8   : > { %v2871_v38 = vmul.f32 %v2807_v27, %v2807_v27  ;;  %vm2479_vm8 = vweird.f32 %v4783_v35  ;;  %vm4821_vm9 = vcmp.eq.f32.partialorder %v2483_v20, 8.507059e+37  ;;  %v2486_v45 = vor.u32 1.1754944e-38, %v2485_v10  ;;  %v3677_v23 = vpop.eup %3676  ;;  %v608_v17 = vpop.f32.mrf.mxu0 }
 0x1d9   : > { %v2478_v44 = vadd.f32 %v3673_v7, %v2477_v37  ;;  %vm2481_vm10 = vmor %vm2479_vm8, %vm2480_vm5  ;;  %2169 = vst [vmem:[#allocation2 + $0x38] sm:$0xff] %v2137_v39  ;;  %v1371_v41 = vmul.f32 %v1370_v28, %v4763_v13  ;;  %v1849_v18 = vsub.f32 1.5, %v1848_v22  ;;  %v4827_v48 = vadd.f32 %v1595_v8, %v1563_v32 }
 0x1da   : > { %v2903_v54 = vadd.f32 %v2871_v38, %v2839_v42  ;;  %v2201_v52 = vadd.f32 1e-07, %v1364_v26  ;;  %vm1852_vm11 = vcmp.eq.f32.partialorder %v4781_v36, inf  ;;  %v1084_v35 = vmul.f32 %v605_v14, %v605_v14 }
 0x1db   : > { %v2482_v49 = vsel %vm2481_vm10, %v3673_v7, %v2478_v44  ;;  %v3679_v3 = vpop.eup %3678  ;;  %v1850_v2 = vmul.f32 %v3671_v55, %v1849_v18  ;;  %v1378_v4 = vmul.f32 %v3677_v23, %v4800_v6  ;;  %v1116_v15 = vmul.f32 %v694_v19, %v694_v19  ;;  %v943_v55 = vpop.f32.mrf.mxu2 }
 0x1dc   : > { %2935 = vst [vmem:[#allocation3 + $0x18] sm:$0xff] %v2903_v54  ;;  %v2487_v47 = vsel %vm4821_vm9, %v2486_v45, %v2482_v49  ;;  %v2490_v46 = vmul.f32 %v3679_v3, %v4813_v61  ;;  %vm1854_vm12 = vcmp.eq.f32.partialorder %v4781_v36, 0.0  ;;  %v1855_v58 = vand.u32 2147483648, %v4781_v36 }
 0x1dd   : > { %v2488_v51 = vmul.f32 %v2487_v47, %v4797_v0  ;;  %v1373_v60 = vsel %vm1372_vm6, %v4763_v13, %v1371_v41  ;;  %v1851_v62 = vmul.f32 %v1850_v2, %v4781_v36  ;;  %v1379_v33 = vmul.f32 %v3677_v23, %v1378_v4  ;;  %v2042_v13 = vld [vmem:[#allocation2 + $0x58] sm:$0xff]  ;;  %v1035_v2 = vpop.f32.mrf.mxu3 }
 0x1de   : > { %3680 = vrsqrt.f32 %v4827_v48  ;;  %v2491_v21 = vsub.f32 1.0, %v2490_v46  ;;  %v2498_v63 = vand.u32 2147483647, %v4813_v61  ;;  %v2500_v57 = vand.u32 2147483648, %v4813_v61 }
 0x1df   : > { %3682 = vlog2.f32 %v2488_v51  ;;  %vm2494_vm13 = vweird.f32 %v4813_v61  ;;  %v1853_v0 = vsel %vm1852_vm11, %v4781_v36, %v1851_v62  ;;  %v1380_v5 = vmul.f32 0.5, %v1379_v33 }
 0x1e0   : > { %v4848_v1 = vadd.f32 %v1116_v15, %v1084_v35  ;;  %v2492_v7 = vmul.f32 %v3679_v3, %v2491_v21  ;;  %vm2495_vm14 = vweird.f32 %v3679_v3  ;;  %v1376_v20 = vsel %vm1374_vm7, %v1375_v40, %v1373_v60  ;;  %v610_v62 = vpop.f32.mrf.mxu0 }
 0x1e1   : > { %v1856_v10 = vsel %vm1854_vm12, %v1855_v58, %v1853_v0  ;;  %vm1384_vm15 = vcmp.eq.f32.partialorder %v4800_v6, inf  ;;  %v1381_v12 = vsub.f32 1.5, %v1380_v5  ;;  %vm4858_vm1 = vcmp.eq.f32.partialorder %v2498_v63, 8.507059e+37  ;;  %vm2496_vm2 = vmor %vm2494_vm13, %vm2495_vm14 }
 0x1e2   : > { %v2074_v11 = vsub.f32 %v1376_v20, %v1856_v10  ;;  %v4855_v56 = vadd.f32 1e-07, %v1856_v10  ;;  %3684 = vrsqrt.f32 %v4848_v1  ;;  %v2493_v53 = vadd.f32 %v3679_v3, %v2492_v7 }
 0x1e3   : > { %v2501_v16 = vor.u32 1.1754944e-38, %v2500_v57  ;;  %v1564_v30 = vmul.f32 %v943_v55, %v943_v55  ;;  %v1596_v43 = vmul.f32 %v1032_v34, %v1032_v34  ;;  %v1085_v24 = vmul.f32 %v608_v17, %v608_v17  ;;  %v946_v41 = vpop.f32.mrf.mxu2  ;;  %v699_v55 = vpop.f32.mrf.mxu1 }
 0x1e4   : > { %v3681_v36 = vpop.eup %3680  ;;  %v2106_v9 = vand.u32 2147483647, %v2074_v11  ;;  %3686 = vrcp.f32 %v4855_v56  ;;  %v2497_v31 = vsel %vm2496_vm2, %v3679_v3, %v2493_v53  ;;  %v1382_v32 = vmul.f32 %v3677_v23, %v1381_v12 }
 0x1e5   : > { %v3683_v29 = vpop.eup %3682  ;;  %v1858_v27 = vmul.f32 %v3681_v36, %v4827_v48  ;;  %v1117_v25 = vmul.f32 %v697_v59, %v697_v59  ;;  %v2502_v42 = vsel %vm4858_vm1, %v2501_v16, %v2497_v31  ;;  %vm1386_vm3 = vcmp.eq.f32.partialorder %v4800_v6, 0.0 }
 0x1e6   : > { %v2760_v8 = vmul.f32 0.6931472, %v3683_v29  ;;  %v2138_v37 = vadd.f32 %v2106_v9, %v2042_v13  ;;  %v2503_v61 = vmul.f32 %v2502_v42, %v2201_v52  ;;  %v4870_v28 = vadd.f32 1e-07, %v1376_v20 }
 0x1e7   : > { %v1387_v38 = vand.u32 2147483648, %v4800_v6  ;;  %v1859_v39 = vmul.f32 %v3681_v36, %v1858_v27  ;;  %v1383_v14 = vmul.f32 %v1382_v32, %v4800_v6  ;;  %vm1864_vm0 = vcmp.eq.f32.partialorder %v4827_v48, inf }
 0x1e8   : > { %v3685_v40 = vpop.eup %3684  ;;  %v2808_v22 = vmul.f32 0.4342945, %v2760_v8  ;;  %2170 = vst [vmem:[#allocation2 + $0x58] sm:$0xff] %v2138_v37  ;;  %v4875_v44 = vadd.f32 %v1596_v43, %v1564_v30  ;;  %3688 = vlog2.f32 %v2503_v61  ;;  %v4878_v54 = vadd.f32 %v1117_v25, %v1085_v24  ;;  %v2841_v43 = vld [vmem:[#allocation3 + $0x10] sm:$0xff] }
 0x1e9   : > { %v1860_v45 = vmul.f32 0.5, %v1859_v39  ;;  %v1390_v19 = vmul.f32 %v3685_v40, %v4848_v1  ;;  %v2513_v49 = vand.u32 2147483647, %v4855_v56  ;;  %v2515_v52 = vand.u32 2147483648, %v4855_v56 }
 0x1ea   : > { %v3687_v18 = vpop.eup %3686  ;;  %v2872_v23 = vmul.f32 %v2808_v22, %v2808_v22  ;;  %3690 = vrsqrt.f32 %v4875_v44  ;;  %vm1866_vm4 = vcmp.eq.f32.partialorder %v4827_v48, 0.0  ;;  %v1867_v47 = vand.u32 2147483648, %v4827_v48 }
 0x1eb   : > { %v2505_v35 = vmul.f32 %v3687_v18, %v4855_v56  ;;  %v1861_v3 = vsub.f32 1.5, %v1860_v45  ;;  %v1385_v15 = vsel %vm1384_vm15, %v4800_v6, %v1383_v14  ;;  %v1391_v51 = vmul.f32 %v3685_v40, %v1390_v19 }
 0x1ec   : > { %v2904_v4 = vadd.f32 %v2872_v23, %v2840_v50  ;;  %v1565_v46 = vmul.f32 %v946_v41, %v946_v41  ;;  %vm2509_vm5 = vweird.f32 %v4855_v56  ;;  %3692 = vrsqrt.f32 %v4878_v54  ;;  %v2043_v56 = vld [vmem:[#allocation2 + $0x40] sm:$0xff]  ;;  %v1037_v41 = vpop.f32.mrf.mxu3 }
 0x1ed   : > { %v2506_v58 = vsub.f32 1.0, %v2505_v35  ;;  %v1862_v60 = vmul.f32 %v3681_v36, %v1861_v3  ;;  %vm4891_vm6 = vcmp.eq.f32.partialorder %v2513_v49, 8.507059e+37  ;;  %v2516_v21 = vor.u32 1.1754944e-38, %v2515_v52 }
 0x1ee   : > { %2936 = vst [vmem:[#allocation3 + $0x68] sm:$0xff] %v2904_v4  ;;  %v1392_v63 = vmul.f32 0.5, %v1391_v51  ;;  %v1597_v57 = vmul.f32 %v1035_v2, %v1035_v2  ;;  %v3689_v0 = vpop.eup %3688  ;;  %vm2510_vm7 = vweird.f32 %v3687_v18  ;;  %v4897_v7 = vsel %vm1386_vm3, %v1387_v38, %v1385_v15 }
 0x1ef   : > { %v2507_v5 = vmul.f32 %v3687_v18, %v2506_v58  ;;  %v1863_v20 = vmul.f32 %v1862_v60, %v4827_v48  ;;  %v2762_v34 = vmul.f32 0.6931472, %v3689_v0  ;;  %v1086_v53 = vmul.f32 %v610_v62, %v610_v62  ;;  %vm2511_vm8 = vmor %vm2509_vm5, %vm2510_vm7  ;;  %v702_v0 = vpop.f32.mrf.mxu1 }
 0x1f0   : > { %v3691_v10 = vpop.eup %3690  ;;  %v1393_v11 = vsub.f32 1.5, %v1392_v63  ;;  %v4900_v12 = vadd.f32 %v1597_v57, %v1565_v46  ;;  %v1118_v30 = vmul.f32 %v699_v55, %v699_v55  ;;  %vm1396_vm9 = vcmp.eq.f32.partialorder %v4848_v1, inf  ;;  %v613_v55 = vpop.f32.mrf.mxu0 }
 0x1f1   : > { %v2508_v26 = vadd.f32 %v3687_v18, %v2507_v5  ;;  %v1865_v16 = vsel %vm1864_vm0, %v4827_v48, %v1863_v20  ;;  %v1870_v13 = vmul.f32 %v3691_v10, %v4875_v44  ;;  %v2809_v17 = vmul.f32 0.4342945, %v2762_v34 }
 0x1f2   : > { %v1868_v6 = vsel %vm1866_vm4, %v1867_v47, %v1865_v16  ;;  %v1394_v36 = vmul.f32 %v3685_v40, %v1393_v11  ;;  %3694 = vrsqrt.f32 %v4900_v12  ;;  %v3693_v9 = vpop.eup %3692  ;;  %v4920_v61 = vadd.f32 %v1118_v30, %v1086_v53  ;;  %v948_v40 = vpop.f32.mrf.mxu2  ;;  %v2842_v16 = vld [vmem:[#allocation3 + $0x70] sm:$0xff] }
 0x1f3   : > { %v2512_v24 = vsel %vm2511_vm8, %v3687_v18, %v2508_v26  ;;  %v2075_v59 = vsub.f32 %v4897_v7, %v1868_v6  ;;  %v4912_v29 = vadd.f32 1e-07, %v1868_v6  ;;  %v1871_v31 = vmul.f32 %v3691_v10, %v1870_v13 }
 0x1f4   : > { %v2873_v32 = vmul.f32 %v2809_v17, %v2809_v17  ;;  %v2517_v27 = vsel %vm4891_vm6, %v2516_v21, %v2512_v24  ;;  %v1402_v25 = vmul.f32 %v3693_v9, %v4878_v54  ;;  %v1395_v37 = vmul.f32 %v1394_v36, %v4848_v1 }
 0x1f5   : > { %v2518_v48 = vmul.f32 %v2517_v27, %v4870_v28  ;;  %v2107_v8 = vand.u32 2147483647, %v2075_v59  ;;  %3696 = vrcp.f32 %v4912_v29  ;;  %v1872_v39 = vmul.f32 0.5, %v1871_v31 }
 0x1f6   : > { %v2905_v42 = vadd.f32 %v2873_v32, %v2841_v43  ;;  %vm1398_vm10 = vcmp.eq.f32.partialorder %v4848_v1, 0.0  ;;  %v1399_v28 = vand.u32 2147483648, %v4848_v1  ;;  %vm1876_vm11 = vcmp.eq.f32.partialorder %v4875_v44, inf  ;;  %v2044_v43 = vld [vmem:[#allocation2 + $0xc8] sm:$0xff] }
 0x1f7   : > { %3698 = vlog2.f32 %v2518_v48  ;;  %v2139_v38 = vadd.f32 %v2107_v8, %v2043_v56  ;;  %v1403_v14 = vmul.f32 %v3693_v9, %v1402_v25  ;;  %v1873_v50 = vsub.f32 1.5, %v1872_v39 }
 0x1f8   : > { %v3695_v22 = vpop.eup %3694  ;;  %2937 = vst [vmem:[#allocation3 + $0x10] sm:$0xff] %v2905_v42  ;;  %vm1878_vm12 = vcmp.eq.f32.partialorder %v4875_v44, 0.0  ;;  %v1879_v45 = vand.u32 2147483648, %v4875_v44  ;;  %v1397_v18 = vsel %vm1396_vm9, %v4848_v1, %v1395_v37  ;;  %3700 = vrsqrt.f32 %v4920_v61 }
 0x1f9   : > { %2171 = vst [vmem:[#allocation2 + $0x40] sm:$0xff] %v2139_v38  ;;  %v1882_v19 = vmul.f32 %v3695_v22, %v4900_v12  ;;  %v1404_v23 = vmul.f32 0.5, %v1403_v14  ;;  %v1566_v49 = vmul.f32 %v948_v40, %v948_v40  ;;  %vm2524_vm13 = vweird.f32 %v4912_v29 }
 0x1fa   : > { %v1874_v35 = vmul.f32 %v3691_v10, %v1873_v50  ;;  %vm1408_vm14 = vcmp.eq.f32.partialorder %v4878_v54, inf  ;;  %v2528_v2 = vand.u32 2147483647, %v4912_v29  ;;  %v1598_v15 = vmul.f32 %v1037_v41, %v1037_v41  ;;  %v951_v39 = vpop.f32.mrf.mxu2  ;;  %v1040_v50 = vpop.f32.mrf.mxu3 }
 0x1fb   : > { %v3697_v52 = vpop.eup %3696  ;;  %v1883_v3 = vmul.f32 %v3695_v22, %v1882_v19  ;;  %v1405_v4 = vsub.f32 1.5, %v1404_v23  ;;  %v2530_v46 = vand.u32 2147483648, %v4912_v29  ;;  %v1400_v58 = vsel %vm1398_vm10, %v1399_v28, %v1397_v18 }
 0x1fc   : > { %v2520_v47 = vmul.f32 %v3697_v52, %v4912_v29  ;;  %v1875_v60 = vmul.f32 %v1874_v35, %v4875_v44  ;;  %v4939_v57 = vadd.f32 %v1598_v15, %v1566_v49  ;;  %v1087_v10 = vmul.f32 %v613_v55, %v613_v55 }
 0x1fd   : > { %v3699_v51 = vpop.eup %3698  ;;  %v1884_v62 = vmul.f32 0.5, %v1883_v3  ;;  %v1406_v63 = vmul.f32 %v3693_v9, %v1405_v4  ;;  %v1119_v34 = vmul.f32 %v702_v0, %v702_v0  ;;  %vm2525_vm15 = vweird.f32 %v3697_v52 }
 0x1fe   : > { %v2764_v33 = vmul.f32 0.6931472, %v3699_v51  ;;  %v2521_v21 = vsub.f32 1.0, %v2520_v47  ;;  %v1877_v5 = vsel %vm1876_vm11, %v4875_v44, %v1875_v60  ;;  %v4944_v11 = vpop.eup %3700  ;;  %3702 = vrsqrt.f32 %v4939_v57  ;;  %vm2526_vm1 = vmor %vm2524_vm13, %vm2525_vm15  ;;  %v2045_v47 = vld [vmem:[#allocation2 + $0xe0] sm:$0xff] }
 0x1ff   : > { %v1885_v20 = vsub.f32 1.5, %v1884_v62  ;;  %v1880_v26 = vsel %vm1878_vm12, %v1879_v45, %v1877_v5  ;;  %v1407_v17 = vmul.f32 %v1406_v63, %v4878_v54  ;;  %v1414_v24 = vmul.f32 %v4944_v11, %v4920_v61 }
 0x200   : > { %v2810_v1 = vmul.f32 0.4342945, %v2764_v33  ;;  %v2522_v53 = vmul.f32 %v3697_v52, %v2521_v21  ;;  %v2076_v13 = vsub.f32 %v1400_v58, %v1880_v26  ;;  %v4948_v30 = vadd.f32 1e-07, %v1880_v26 }
 0x201   : > { %v1886_v6 = vmul.f32 %v3695_v22, %v1885_v20  ;;  %v2531_v44 = vor.u32 1.1754944e-38, %v2530_v46  ;;  %v4957_v31 = vadd.f32 %v1119_v34, %v1087_v10  ;;  %v2203_v27 = vadd.f32 1e-07, %v4897_v7 }
 0x202   : > { %v2874_v36 = vmul.f32 %v2810_v1, %v2810_v1  ;;  %v2523_v9 = vadd.f32 %v3697_v52, %v2522_v53  ;;  %v2108_v59 = vand.u32 2147483647, %v2076_v13  ;;  %3704 = vrcp.f32 %v4948_v30 }
 0x203   : > { %vm2529_vm2 = vcmp.eq.f32.partialorder %v2528_v2, 8.507059e+37  ;;  %vm1410_vm3 = vcmp.eq.f32.partialorder %v4878_v54, 0.0  ;;  %v1411_v8 = vand.u32 2147483648, %v4878_v54  ;;  %v1409_v42 = vsel %vm1408_vm14, %v4878_v54, %v1407_v17 }
 0x204   : > { %v2906_v32 = vadd.f32 %v2874_v36, %v2842_v16  ;;  %v2527_v56 = vsel %vm2526_vm1, %v3697_v52, %v2523_v9  ;;  %v2140_v48 = vadd.f32 %v2108_v59, %v2044_v43  ;;  %v1887_v37 = vmul.f32 %v1886_v6, %v4900_v12  ;;  %v3703_v22 = vpop.eup %3702  ;;  %v2843_v6 = vld [vmem:[#allocation3 + $0x50] sm:$0xff] }
 0x205   : > { %v2532_v25 = vsel %vm2529_vm2, %v2531_v44, %v2527_v56  ;;  %v1415_v38 = vmul.f32 %v4944_v11, %v1414_v24  ;;  %v4967_v7 = vadd.f32 1e-07, %v1400_v58  ;;  %vm1888_vm0 = vcmp.eq.f32.partialorder %v4900_v12, inf  ;;  %v704_v44 = vpop.f32.mrf.mxu1 }
 0x206   : > { %2938 = vst [vmem:[#allocation3 + $0x70] sm:$0xff] %v2906_v32  ;;  %v2533_v29 = vmul.f32 %v2532_v25, %v2203_v27  ;;  %v1891_v40 = vand.u32 2147483648, %v4900_v12  ;;  %3706 = vrsqrt.f32 %v4957_v31  ;;  %v1889_v28 = vsel %vm1888_vm0, %v4900_v12, %v1887_v37 }
 0x207   : > { %2172 = vst [vmem:[#allocation2 + $0xc8] sm:$0xff] %v2140_v48  ;;  %vm1890_vm4 = vcmp.eq.f32.partialorder %v4900_v12, 0.0  ;;  %v1416_v14 = vmul.f32 0.5, %v1415_v38  ;;  %v4976_v19 = vsel %vm1410_vm3, %v1411_v8, %v1409_v42  ;;  %v1894_v18 = vmul.f32 %v3703_v22, %v4939_v57 }
 0x208   : > { %3708 = vlog2.f32 %v2533_v29  ;;  %v3705_v45 = vpop.eup %3704  ;;  %v1892_v41 = vsel %vm1890_vm4, %v1891_v40, %v1889_v28  ;;  %v1567_v23 = vmul.f32 %v951_v39, %v951_v39  ;;  %v2543_v52 = vand.u32 2147483647, %v4948_v30 }
 0x209   : > { %v2535_v49 = vmul.f32 %v3705_v45, %v4948_v30  ;;  %v2077_v35 = vsub.f32 %v4976_v19, %v1892_v41  ;;  %v4982_v3 = vadd.f32 1e-07, %v1892_v41  ;;  %vm1420_vm5 = vcmp.eq.f32.partialorder %v4920_v61, inf  ;;  %v1042_v41 = vpop.f32.mrf.mxu3 }
 0x20a   : > { %v2545_v12 = vand.u32 2147483648, %v4948_v30  ;;  %v1417_v54 = vsub.f32 1.5, %v1416_v14  ;;  %v1895_v2 = vmul.f32 %v3703_v22, %v1894_v18  ;;  %v1599_v4 = vmul.f32 %v1040_v50, %v1040_v50 }
 0x20b   : > { %v2536_v15 = vsub.f32 1.0, %v2535_v49  ;;  %v2109_v51 = vand.u32 2147483647, %v2077_v35  ;;  %3710 = vrcp.f32 %v4982_v3  ;;  %v1423_v46 = vand.u32 2147483648, %v4920_v61 }
 0x20c   : > { %v4988_v58 = vpop.eup %3706  ;;  %vm2539_vm6 = vweird.f32 %v4948_v30  ;;  %vm2540_vm7 = vweird.f32 %v3705_v45  ;;  %v1418_v60 = vmul.f32 %v4944_v11, %v1417_v54  ;;  %vm1422_vm8 = vcmp.eq.f32.partialorder %v4920_v61, 0.0  ;;  %v615_v11 = vpop.f32.mrf.mxu0 }
 0x20d   : > { %v1896_v62 = vmul.f32 0.5, %v1895_v2  ;;  %v2537_v21 = vmul.f32 %v3705_v45, %v2536_v15  ;;  %v2141_v63 = vadd.f32 %v2109_v51, %v2045_v47  ;;  %v1426_v55 = vmul.f32 %v4988_v58, %v4957_v31  ;;  %vm2541_vm10 = vmor %vm2539_vm6, %vm2540_vm7 }
 0x20e   : > { %v3709_v33 = vpop.eup %3708  ;;  %v4995_v0 = vadd.f32 %v1599_v4, %v1567_v23  ;;  %vm4997_vm9 = vcmp.eq.f32.partialorder %v2543_v52, 8.507059e+37  ;;  %v2546_v10 = vor.u32 1.1754944e-38, %v2545_v12  ;;  %v1419_v34 = vmul.f32 %v1418_v60, %v4920_v61  ;;  %v2046_v52 = vld [vmem:[#allocation2 + $0x90] sm:$0xff] }
 0x20f   : > { %v2766_v5 = vmul.f32 0.6931472, %v3709_v33  ;;  %v2538_v1 = vadd.f32 %v3705_v45, %v2537_v21  ;;  %2173 = vst [vmem:[#allocation2 + $0xe0] sm:$0xff] %v2141_v63  ;;  %v1897_v53 = vsub.f32 1.5, %v1896_v62  ;;  %v1427_v26 = vmul.f32 %v4988_v58, %v1426_v55  ;;  %v707_v55 = vpop.f32.mrf.mxu1 }
 0x210   : > { %3712 = vrsqrt.f32 %v4995_v0  ;;  %vm1900_vm11 = vcmp.eq.f32.partialorder %v4939_v57, inf  ;;  %vm1902_vm12 = vcmp.eq.f32.partialorder %v4939_v57, 0.0  ;;  %v1903_v13 = vand.u32 2147483648, %v4939_v57 }
 0x211   : > { %v2811_v16 = vmul.f32 0.4342945, %v2766_v5  ;;  %v3711_v17 = vpop.eup %3710  ;;  %v2542_v36 = vsel %vm2541_vm10, %v3705_v45, %v2538_v1  ;;  %v1898_v9 = vmul.f32 %v3703_v22, %v1897_v53  ;;  %v1428_v43 = vmul.f32 0.5, %v1427_v26  ;;  %v953_v22 = vpop.f32.mrf.mxu2  ;;  %v2844_v1 = vld [vmem:[#allocation3 + $0xa0] sm:$0xff] }
 0x212   : > { %v1088_v24 = vmul.f32 %v615_v11, %v615_v11  ;;  %v2547_v32 = vsel %vm4997_vm9, %v2546_v10, %v2542_v36  ;;  %v2550_v30 = vmul.f32 %v3711_v17, %v4982_v3  ;;  %v1421_v27 = vsel %vm1420_vm5, %v4920_v61, %v1419_v34 }
 0x213   : > { %v2875_v59 = vmul.f32 %v2811_v16, %v2811_v16  ;;  %v2548_v56 = vmul.f32 %v2547_v32, %v4967_v7  ;;  %v2558_v25 = vand.u32 2147483647, %v4982_v3  ;;  %v2560_v48 = vand.u32 2147483648, %v4982_v3 }
 0x214   : > { %v1899_v8 = vmul.f32 %v1898_v9, %v4939_v57  ;;  %v2551_v42 = vsub.f32 1.0, %v2550_v30  ;;  %v1429_v37 = vsub.f32 1.5, %v1428_v43  ;;  %v1120_v38 = vmul.f32 %v704_v44, %v704_v44  ;;  %v618_v63 = vpop.f32.mrf.mxu0  ;;  %v1045_v9 = vpop.f32.mrf.mxu3 }
 0x215   : > { %v2907_v29 = vadd.f32 %v2875_v59, %v2843_v6  ;;  %3714 = vlog2.f32 %v2548_v56  ;;  %vm2555_vm13 = vweird.f32 %v3711_v17  ;;  %v5022_v40 = vsel %vm1422_vm8, %v1423_v46, %v1421_v27 }
 0x216   : > { %v3713_v39 = vpop.eup %3712  ;;  %v1901_v7 = vsel %vm1900_vm11, %v4939_v57, %v1899_v8  ;;  %v2552_v28 = vmul.f32 %v3711_v17, %v2551_v42  ;;  %v5030_v45 = vadd.f32 %v1120_v38, %v1088_v24  ;;  %vm2554_vm14 = vweird.f32 %v4982_v3 }
 0x217   : > { %2939 = vst [vmem:[#allocation3 + $0x50] sm:$0xff] %v2907_v29  ;;  %v1904_v14 = vsel %vm1902_vm12, %v1903_v13, %v1901_v7  ;;  %v1906_v50 = vmul.f32 %v3713_v39, %v4995_v0  ;;  %v2561_v61 = vor.u32 1.1754944e-38, %v2560_v48  ;;  %v1430_v35 = vmul.f32 %v4988_v58, %v1429_v37  ;;  %vm2556_vm15 = vmor %vm2554_vm14, %vm2555_vm13 }
 0x218   : > { %v2078_v18 = vsub.f32 %v5022_v40, %v1904_v14  ;;  %v5034_v23 = vadd.f32 1e-07, %v1904_v14  ;;  %v2553_v49 = vadd.f32 %v3711_v17, %v2552_v28  ;;  %3716 = vrsqrt.f32 %v5030_v45 }
 0x219   : > { %v1907_v12 = vmul.f32 %v3713_v39, %v1906_v50  ;;  %v1568_v47 = vmul.f32 %v953_v22, %v953_v22  ;;  %v1600_v54 = vmul.f32 %v1042_v41, %v1042_v41  ;;  %v2205_v3 = vadd.f32 1e-07, %v4976_v19  ;;  %v956_v16 = vpop.f32.mrf.mxu2 }
 0x21a   : > { %v2110_v57 = vand.u32 2147483647, %v2078_v18  ;;  %3718 = vrcp.f32 %v5034_v23  ;;  %v2557_v2 = vsel %vm2556_vm15, %v3711_v17, %v2553_v49  ;;  %vm2559_vm1 = vcmp.eq.f32.partialorder %v2558_v25, 8.507059e+37 }
 0x21b   : > { %v1908_v4 = vmul.f32 0.5, %v1907_v12  ;;  %v3715_v15 = vpop.eup %3714  ;;  %v2562_v51 = vsel %vm2559_vm1, %v2561_v61, %v2557_v2  ;;  %vm1432_vm2 = vcmp.eq.f32.partialorder %v4957_v31, inf  ;;  %vm1434_vm3 = vcmp.eq.f32.partialorder %v4957_v31, 0.0  ;;  %v2047_v61 = vld [vmem:[#allocation2 + $0x70] sm:$0xff] }
 0x21c   : > { %v2142_v46 = vadd.f32 %v2110_v57, %v2046_v52  ;;  %v2768_v58 = vmul.f32 0.6931472, %v3715_v15  ;;  %v2563_v60 = vmul.f32 %v2562_v51, %v2205_v3  ;;  %v1435_v62 = vand.u32 2147483648, %v4957_v31  ;;  %v2845_v52 = vld [vmem:[#allocation3 + $0xd8] sm:$0xff] }
 0x21d   : > { %v1431_v33 = vmul.f32 %v1430_v35, %v4957_v31  ;;  %v1909_v21 = vsub.f32 1.5, %v1908_v4  ;;  %vm1912_vm0 = vcmp.eq.f32.partialorder %v4995_v0, inf  ;;  %v5046_v19 = vadd.f32 %v1600_v54, %v1568_v47  ;;  %v620_v4 = vpop.f32.mrf.mxu0 }
 0x21e   : > { %2174 = vst [vmem:[#allocation2 + $0x90] sm:$0xff] %v2142_v46  ;;  %v3717_v5 = vpop.eup %3716  ;;  %v2812_v20 = vmul.f32 0.4342945, %v2768_v58  ;;  %3720 = vlog2.f32 %v2563_v60  ;;  %v1089_v10 = vmul.f32 %v618_v63, %v618_v63  ;;  %v1121_v34 = vmul.f32 %v707_v55, %v707_v55  ;;  %v1047_v63 = vpop.f32.mrf.mxu3 }
 0x21f   : > { %v1910_v53 = vmul.f32 %v3713_v39, %v1909_v21  ;;  %vm1914_vm4 = vcmp.eq.f32.partialorder %v4995_v0, 0.0  ;;  %v1438_v26 = vmul.f32 %v3717_v5, %v5030_v45  ;;  %3722 = vrsqrt.f32 %v5046_v19 }
 0x220   : > { %v3719_v11 = vpop.eup %3718  ;;  %v2876_v13 = vmul.f32 %v2812_v20, %v2812_v20  ;;  %v2573_v6 = vand.u32 2147483647, %v5034_v23  ;;  %v1915_v36 = vand.u32 2147483648, %v4995_v0  ;;  %v1433_v43 = vsel %vm1432_vm2, %v4957_v31, %v1431_v33 }
 0x221   : > { %v2565_v17 = vmul.f32 %v3719_v11, %v5034_v23  ;;  %v1911_v24 = vmul.f32 %v1910_v53, %v4995_v0  ;;  %v1439_v44 = vmul.f32 %v3717_v5, %v1438_v26  ;;  %v5058_v59 = vadd.f32 %v1121_v34, %v1089_v10  ;;  %v958_v21 = vpop.f32.mrf.mxu2 }
 0x222   : > { %v2908_v32 = vadd.f32 %v2876_v13, %v2844_v1  ;;  %v2575_v27 = vand.u32 2147483648, %v5034_v23  ;;  %v1569_v56 = vmul.f32 %v956_v16, %v956_v16  ;;  %v1601_v8 = vmul.f32 %v1045_v9, %v1045_v9 }
 0x223   : > { %v2566_v30 = vsub.f32 1.0, %v2565_v17  ;;  %v1913_v25 = vsel %vm1912_vm0, %v4995_v0, %v1911_v24  ;;  %v1440_v48 = vmul.f32 0.5, %v1439_v44  ;;  %3724 = vrsqrt.f32 %v5058_v59 }
 0x224   : > { %v3721_v29 = vpop.eup %3720  ;;  %2940 = vst [vmem:[#allocation3 + $0xa0] sm:$0xff] %v2908_v32  ;;  %vm2570_vm5 = vweird.f32 %v3719_v11  ;;  %v1436_v37 = vsel %vm1434_vm3, %v1435_v62, %v1433_v43  ;;  %v1916_v38 = vsel %vm1914_vm4, %v1915_v36, %v1913_v25  ;;  %vm2569_vm6 = vweird.f32 %v5034_v23 }
 0x225   : > { %v2567_v42 = vmul.f32 %v3719_v11, %v2566_v30  ;;  %v3723_v39 = vpop.eup %3722  ;;  %v2770_v7 = vmul.f32 0.6931472, %v3721_v29  ;;  %v2079_v22 = vsub.f32 %v1436_v37, %v1916_v38  ;;  %v5069_v28 = vadd.f32 1e-07, %v1916_v38  ;;  %vm2571_vm7 = vmor %vm2569_vm6, %vm2570_vm5 }
 0x226   : > { %v1441_v14 = vsub.f32 1.5, %v1440_v48  ;;  %v2576_v41 = vor.u32 1.1754944e-38, %v2575_v27  ;;  %v1918_v18 = vmul.f32 %v3723_v39, %v5046_v19  ;;  %v5074_v0 = vadd.f32 %v1601_v8, %v1569_v56 }
 0x227   : > { %v2568_v50 = vadd.f32 %v3719_v11, %v2567_v42  ;;  %v2813_v49 = vmul.f32 0.4342945, %v2770_v7  ;;  %v2111_v31 = vand.u32 2147483647, %v2079_v22  ;;  %3726 = vrcp.f32 %v5069_v28 }
 0x228   : > { %v2206_v35 = vadd.f32 1e-07, %v5022_v40  ;;  %vm2574_vm8 = vcmp.eq.f32.partialorder %v2573_v6, 8.507059e+37  ;;  %v1442_v57 = vmul.f32 %v3717_v5, %v1441_v14  ;;  %v1919_v2 = vmul.f32 %v3723_v39, %v1918_v18  ;;  %v709_v40 = vpop.f32.mrf.mxu1 }
 0x229   : > { %v2572_v12 = vsel %vm2571_vm7, %v3719_v11, %v2568_v50  ;;  %v3725_v47 = vpop.eup %3724  ;;  %v2877_v54 = vmul.f32 %v2813_v49, %v2813_v49  ;;  %v2143_v3 = vadd.f32 %v2111_v31, %v2047_v61  ;;  %v5077_v51 = vadd.f32 1e-07, %v1436_v37  ;;  %v2846_v50 = vld [vmem:[#allocation3 + $0x30] sm:$0xff]  ;;  %v2048_v61 = vld [vmem:[#allocation2 + $0xc0] sm:$0xff] }
 0x22a   : > { %v2577_v23 = vsel %vm2574_vm8, %v2576_v41, %v2572_v12  ;;  %vm1444_vm9 = vcmp.eq.f32.partialorder %v5030_v45, inf  ;;  %v1920_v58 = vmul.f32 0.5, %v1919_v2  ;;  %v1450_v60 = vmul.f32 %v3725_v47, %v5058_v59 }
 0x22b   : > { %v2578_v15 = vmul.f32 %v2577_v23, %v2206_v35  ;;  %v2909_v46 = vadd.f32 %v2877_v54, %v2845_v52  ;;  %2175 = vst [vmem:[#allocation2 + $0x70] sm:$0xff] %v2143_v3  ;;  %3728 = vrsqrt.f32 %v5074_v0  ;;  %vm1446_vm10 = vcmp.eq.f32.partialorder %v5030_v45, 0.0 }
 0x22c   : > { %v1447_v62 = vand.u32 2147483648, %v5030_v45  ;;  %v1090_v33 = vmul.f32 %v620_v4, %v620_v4  ;;  %v1443_v5 = vmul.f32 %v1442_v57, %v5030_v45  ;;  %v1921_v20 = vsub.f32 1.5, %v1920_v58  ;;  %v961_v4 = vpop.f32.mrf.mxu2 }
 0x22d   : > { %3730 = vlog2.f32 %v2578_v15  ;;  %v3727_v55 = vpop.eup %3726  ;;  %2941 = vst [vmem:[#allocation3 + $0xd8] sm:$0xff] %v2909_v46  ;;  %vm1924_vm11 = vcmp.eq.f32.partialorder %v5046_v19, inf  ;;  %v1451_v10 = vmul.f32 %v3725_v47, %v1450_v60  ;;  %v2590_v11 = vand.u32 2147483648, %v5069_v28  ;;  %v1050_v15 = vpop.f32.mrf.mxu3 }
 0x22e   : > { %v2580_v34 = vmul.f32 %v3727_v55, %v5069_v28  ;;  %vm1926_vm12 = vcmp.eq.f32.partialorder %v5046_v19, 0.0  ;;  %v1122_v1 = vmul.f32 %v709_v40, %v709_v40  ;;  %v1922_v53 = vmul.f32 %v3723_v39, %v1921_v20 }
 0x22f   : > { %v1452_v26 = vmul.f32 0.5, %v1451_v10  ;;  %v1570_v16 = vmul.f32 %v958_v21, %v958_v21  ;;  %v1602_v13 = vmul.f32 %v1047_v63, %v1047_v63  ;;  %v2588_v6 = vand.u32 2147483647, %v5069_v28 }
 0x230   : > { %v2581_v17 = vsub.f32 1.0, %v2580_v34  ;;  %v1927_v36 = vand.u32 2147483648, %v5046_v19  ;;  %v5091_v9 = vadd.f32 %v1122_v1, %v1090_v33  ;;  %vm2585_vm13 = vweird.f32 %v3727_v55  ;;  %v712_v52 = vpop.f32.mrf.mxu1 }
 0x231   : > { %v3729_v43 = vpop.eup %3728  ;;  %v1445_v24 = vsel %vm1444_vm9, %v5030_v45, %v1443_v5  ;;  %v1923_v44 = vmul.f32 %v1922_v53, %v5046_v19  ;;  %v1453_v32 = vsub.f32 1.5, %v1452_v26  ;;  %v5099_v25 = vadd.f32 %v1602_v13, %v1570_v16 }
 0x232   : > { %v2582_v27 = vmul.f32 %v3727_v55, %v2581_v17  ;;  %v1930_v56 = vmul.f32 %v3729_v43, %v5074_v0  ;;  %3732 = vrsqrt.f32 %v5091_v9  ;;  %vm2584_vm14 = vweird.f32 %v5069_v28 }
 0x233   : > { %v3731_v30 = vpop.eup %3730  ;;  %v2591_v8 = vor.u32 1.1754944e-38, %v2590_v11  ;;  %v1925_v29 = vsel %vm1924_vm11, %v5046_v19, %v1923_v44  ;;  %v1448_v37 = vsel %vm1446_vm10, %v1447_v62, %v1445_v24  ;;  %vm2586_vm15 = vmor %vm2584_vm14, %vm2585_vm13  ;;  %v1454_v28 = vmul.f32 %v3725_v47, %v1453_v32  ;;  %v623_v19 = vpop.f32.mrf.mxu0 }
 0x234   : > { %v2772_v48 = vmul.f32 0.6931472, %v3731_v30  ;;  %v2583_v42 = vadd.f32 %v3727_v55, %v2582_v27  ;;  %v1928_v38 = vsel %vm1926_vm12, %v1927_v36, %v1925_v29  ;;  %v1931_v39 = vmul.f32 %v3729_v43, %v1930_v56 }
 0x235   : > { %v2080_v22 = vsub.f32 %v1448_v37, %v1928_v38  ;;  %v5110_v14 = vadd.f32 1e-07, %v1928_v38  ;;  %vm2589_vm1 = vcmp.eq.f32.partialorder %v2588_v6, 8.507059e+37  ;;  %3734 = vrsqrt.f32 %v5099_v25 }
 0x236   : > { %v2814_v7 = vmul.f32 0.4342945, %v2772_v48  ;;  %v2587_v41 = vsel %vm2586_vm15, %v3727_v55, %v2583_v42  ;;  %v1932_v18 = vmul.f32 0.5, %v1931_v39  ;;  %vm1456_vm2 = vcmp.eq.f32.partialorder %v5058_v59, inf  ;;  %v2847_v39 = vld [vmem:[#allocation3 + $0x20] sm:$0xff] }
 0x237   : > { %v2592_v49 = vsel %vm2589_vm1, %v2591_v8, %v2587_v41  ;;  %v2112_v31 = vand.u32 2147483647, %v2080_v22  ;;  %3736 = vrcp.f32 %v5110_v14  ;;  %v1091_v57 = vmul.f32 %v623_v19, %v623_v19  ;;  %v2049_v8 = vld [vmem:[#allocation2 + $0xa8] sm:$0xff] }
 0x238   : > { %v2878_v45 = vmul.f32 %v2814_v7, %v2814_v7  ;;  %v5114_v35 = vpop.eup %3732  ;;  %v2593_v12 = vmul.f32 %v2592_v49, %v5077_v51  ;;  %v1123_v47 = vmul.f32 %v712_v52, %v712_v52  ;;  %v1455_v3 = vmul.f32 %v1454_v28, %v5058_v59 }
 0x239   : > { %v2144_v23 = vadd.f32 %v2112_v31, %v2048_v61  ;;  %v1933_v2 = vsub.f32 1.5, %v1932_v18  ;;  %vm1458_vm3 = vcmp.eq.f32.partialorder %v5058_v59, 0.0  ;;  %v1459_v46 = vand.u32 2147483648, %v5058_v59 }
 0x23a   : > { %v2910_v54 = vadd.f32 %v2878_v45, %v2846_v50  ;;  %3738 = vlog2.f32 %v2593_v12  ;;  %vm1936_vm0 = vcmp.eq.f32.partialorder %v5074_v0, inf  ;;  %vm1938_vm4 = vcmp.eq.f32.partialorder %v5074_v0, 0.0 }
 0x23b   : > { %v1934_v51 = vmul.f32 %v3729_v43, %v1933_v2  ;;  %v1939_v58 = vand.u32 2147483648, %v5074_v0  ;;  %v1462_v60 = vmul.f32 %v5114_v35, %v5091_v9  ;;  %v3735_v40 = vpop.eup %3734  ;;  %v2208_v62 = vadd.f32 1e-07, %v1448_v37  ;;  %2176 = vst [vmem:[#allocation2 + $0xc0] sm:$0xff] %v2144_v23  ;;  %v625_v42 = vpop.f32.mrf.mxu0 }
 0x23c   : > { %2942 = vst [vmem:[#allocation3 + $0x30] sm:$0xff] %v2910_v54  ;;  %v5126_v33 = vadd.f32 %v1123_v47, %v1091_v57  ;;  %v1571_v21 = vmul.f32 %v961_v4, %v961_v4  ;;  %v1603_v63 = vmul.f32 %v1050_v15, %v1050_v15  ;;  %v1457_v5 = vsel %vm1456_vm2, %v5058_v59, %v1455_v3  ;;  %v714_v37 = vpop.f32.mrf.mxu1 }
 0x23d   : > { %v3737_v55 = vpop.eup %3736  ;;  %v1935_v20 = vmul.f32 %v1934_v51, %v5074_v0  ;;  %v1463_v10 = vmul.f32 %v5114_v35, %v1462_v60  ;;  %v1942_v34 = vmul.f32 %v3735_v40, %v5099_v25  ;;  %v2603_v1 = vand.u32 2147483647, %v5110_v14 }
 0x23e   : > { %v2595_v11 = vmul.f32 %v3737_v55, %v5110_v14  ;;  %v1471_v53 = vand.u32 2147483648, %v5091_v9  ;;  %3740 = vrsqrt.f32 %v5126_v33  ;;  %v2605_v26 = vand.u32 2147483648, %v5110_v14 }
 0x23f   : > { %v1937_v16 = vsel %vm1936_vm0, %v5074_v0, %v1935_v20  ;;  %v1464_v13 = vmul.f32 0.5, %v1463_v10  ;;  %v1943_v17 = vmul.f32 %v3735_v40, %v1942_v34  ;;  %v1460_v43 = vsel %vm1458_vm3, %v1459_v46, %v1457_v5  ;;  %v963_v20 = vpop.f32.mrf.mxu2  ;;  %v1052_v10 = vpop.f32.mrf.mxu3 }
 0x240   : > { %v3739_v6 = vpop.eup %3738  ;;  %v2596_v36 = vsub.f32 1.0, %v2595_v11  ;;  %v1940_v24 = vsel %vm1938_vm4, %v1939_v58, %v1937_v16  ;;  %vm1468_vm5 = vcmp.eq.f32.partialorder %v5091_v9, inf  ;;  %v5147_v44 = vadd.f32 %v1603_v63, %v1571_v21 }
 0x241   : > { %v2774_v32 = vmul.f32 0.6931472, %v3739_v6  ;;  %v2081_v30 = vsub.f32 %v1460_v43, %v1940_v24  ;;  %v5149_v27 = vadd.f32 1e-07, %v1940_v24  ;;  %v1465_v56 = vsub.f32 1.5, %v1464_v13 }
 0x242   : > { %v2597_v48 = vmul.f32 %v3737_v55, %v2596_v36  ;;  %vm2600_vm6 = vweird.f32 %v3737_v55  ;;  %v1944_v29 = vmul.f32 0.5, %v1943_v17  ;;  %3742 = vrsqrt.f32 %v5147_v44  ;;  %v2050_v17 = vld [vmem:[#allocation2 + $0xd0] sm:$0xff] }
 0x243   : > { %v2815_v59 = vmul.f32 0.4342945, %v2774_v32  ;;  %vm2599_vm7 = vweird.f32 %v5110_v14  ;;  %v2113_v0 = vand.u32 2147483647, %v2081_v30  ;;  %3744 = vrcp.f32 %v5149_v27 }
 0x244   : > { %vm1470_vm8 = vcmp.eq.f32.partialorder %v5091_v9, 0.0  ;;  %v3741_v38 = vpop.eup %3740  ;;  %v2598_v7 = vadd.f32 %v3737_v55, %v2597_v48  ;;  %vm2604_vm9 = vcmp.eq.f32.partialorder %v2603_v1, 8.507059e+37  ;;  %v2606_v22 = vor.u32 1.1754944e-38, %v2605_v26  ;;  %vm2601_vm10 = vmor %vm2599_vm7, %vm2600_vm6 }
 0x245   : > { %v1466_v28 = vmul.f32 %v5114_v35, %v1465_v56  ;;  %v2879_v50 = vmul.f32 %v2815_v59, %v2815_v59  ;;  %v2145_v41 = vadd.f32 %v2113_v0, %v2049_v8  ;;  %v1945_v61 = vsub.f32 1.5, %v1944_v29 }
 0x246   : > { %v1474_v14 = vmul.f32 %v3741_v38, %v5126_v33  ;;  %v2602_v18 = vsel %vm2601_vm10, %v3737_v55, %v2598_v7  ;;  %v1092_v49 = vmul.f32 %v625_v42, %v625_v42  ;;  %v1124_v31 = vmul.f32 %v714_v37, %v714_v37 }
 0x247   : > { %v1467_v45 = vmul.f32 %v1466_v28, %v5091_v9  ;;  %v2911_v19 = vadd.f32 %v2879_v50, %v2847_v39  ;;  %v2607_v52 = vsel %vm2604_vm9, %v2606_v22, %v2602_v18  ;;  %2177 = vst [vmem:[#allocation2 + $0xa8] sm:$0xff] %v2145_v41  ;;  %v1946_v12 = vmul.f32 %v3735_v40, %v1945_v61 }
 0x248   : > { %v1475_v57 = vmul.f32 %v3741_v38, %v1474_v14  ;;  %v3743_v47 = vpop.eup %3742  ;;  %v2608_v54 = vmul.f32 %v2607_v52, %v2208_v62  ;;  %v2209_v35 = vadd.f32 1e-07, %v1460_v43  ;;  %vm1948_vm11 = vcmp.eq.f32.partialorder %v5099_v25, inf  ;;  %v628_v14 = vpop.f32.mrf.mxu0 }
 0x249   : > { %vm1950_vm12 = vcmp.eq.f32.partialorder %v5099_v25, 0.0  ;;  %v3745_v23 = vpop.eup %3744  ;;  %2943 = vst [vmem:[#allocation3 + $0x20] sm:$0xff] %v2911_v19  ;;  %v1469_v3 = vsel %vm1468_vm5, %v5091_v9, %v1467_v45  ;;  %v1947_v2 = vmul.f32 %v1946_v12, %v5099_v25  ;;  %v1954_v15 = vmul.f32 %v3743_v47, %v5147_v44  ;;  %v1055_v19 = vpop.f32.mrf.mxu3 }
 0x24a   : > { %v1476_v4 = vmul.f32 0.5, %v1475_v57  ;;  %3746 = vlog2.f32 %v2608_v54  ;;  %v2610_v46 = vmul.f32 %v3745_v23, %v5149_v27  ;;  %v1951_v51 = vand.u32 2147483648, %v5099_v25  ;;  %v717_v54 = vpop.f32.mrf.mxu1 }
 0x24b   : > { %vm1480_vm13 = vcmp.eq.f32.partialorder %v5126_v33, inf  ;;  %v1949_v58 = vsel %vm1948_vm11, %v5099_v25, %v1947_v2  ;;  %vm1482_vm14 = vcmp.eq.f32.partialorder %v5126_v33, 0.0  ;;  %v1955_v40 = vmul.f32 %v3743_v47, %v1954_v15 }
 0x24c   : > { %v1477_v60 = vsub.f32 1.5, %v1476_v4  ;;  %v5171_v62 = vadd.f32 %v1124_v31, %v1092_v49  ;;  %v2611_v21 = vsub.f32 1.0, %v2610_v46  ;;  %v2620_v63 = vand.u32 2147483648, %v5149_v27  ;;  %v966_v31 = vpop.f32.mrf.mxu2 }
 0x24d   : > { %v5178_v55 = vsel %vm1470_vm8, %v1471_v53, %v1469_v3  ;;  %v1952_v5 = vsel %vm1950_vm12, %v1951_v51, %v1949_v58  ;;  %v1956_v26 = vmul.f32 0.5, %v1955_v40  ;;  %vm2615_vm15 = vweird.f32 %v3745_v23 }
 0x24e   : > { %v2082_v34 = vsub.f32 %v5178_v55, %v1952_v5  ;;  %v5183_v11 = vadd.f32 1e-07, %v1952_v5  ;;  %v1478_v1 = vmul.f32 %v3741_v38, %v1477_v60  ;;  %v2612_v16 = vmul.f32 %v3745_v23, %v2611_v21  ;;  %v2848_v38 = vld [vmem:[#allocation3 + $0xf0] sm:$0xff] }
 0x24f   : > { %v2618_v13 = vand.u32 2147483647, %v5149_v27  ;;  %3748 = vrsqrt.f32 %v5171_v62  ;;  %v1572_v25 = vmul.f32 %v963_v20, %v963_v20  ;;  %v1604_v53 = vmul.f32 %v1052_v10, %v1052_v10 }
 0x250   : > { %v2114_v9 = vand.u32 2147483647, %v2082_v34  ;;  %3750 = vrcp.f32 %v5183_v11  ;;  %v3747_v6 = vpop.eup %3746  ;;  %v2613_v36 = vadd.f32 %v3745_v23, %v2612_v16  ;;  %vm2614_vm1 = vweird.f32 %v5149_v27 }
 0x251   : > { %v1479_v43 = vmul.f32 %v1478_v1, %v5126_v33  ;;  %v1957_v24 = vsub.f32 1.5, %v1956_v26  ;;  %v2776_v32 = vmul.f32 0.6931472, %v3747_v6  ;;  %vm2616_vm2 = vmor %vm2614_vm1, %vm2615_vm15  ;;  %v2621_v30 = vor.u32 1.1754944e-38, %v2620_v63 }
 0x252   : > { %v2146_v56 = vadd.f32 %v2114_v9, %v2050_v17  ;;  %v1483_v48 = vand.u32 2147483648, %v5126_v33  ;;  %v2617_v8 = vsel %vm2616_vm2, %v3745_v23, %v2613_v36  ;;  %vm2619_vm3 = vcmp.eq.f32.partialorder %v2618_v13, 8.507059e+37  ;;  %v2849_v36 = vld [vmem:[#allocation3 + $0x88] sm:$0xff] }
 0x253   : > { %v1958_v29 = vmul.f32 %v3743_v47, %v1957_v24  ;;  %vm1960_vm0 = vcmp.eq.f32.partialorder %v5147_v44, inf  ;;  %v2816_v59 = vmul.f32 0.4342945, %v2776_v32  ;;  %v2622_v0 = vsel %vm2619_vm3, %v2621_v30, %v2617_v8  ;;  %v719_v8 = vpop.f32.mrf.mxu1 }
 0x254   : > { %2178 = vst [vmem:[#allocation2 + $0xd0] sm:$0xff] %v2146_v56  ;;  %v1481_v27 = vsel %vm1480_vm13, %v5126_v33, %v1479_v43  ;;  %v5195_v42 = vadd.f32 %v1604_v53, %v1572_v25  ;;  %v2623_v39 = vmul.f32 %v2622_v0, %v2209_v35  ;;  %vm1962_vm4 = vcmp.eq.f32.partialorder %v5147_v44, 0.0  ;;  %v2051_v33 = vld [vmem:[#allocation2 + $0x10] sm:$0xff] }
 0x255   : > { %v3749_v37 = vpop.eup %3748  ;;  %v1959_v7 = vmul.f32 %v1958_v29, %v5147_v44  ;;  %v1963_v22 = vand.u32 2147483648, %v5147_v44  ;;  %v2880_v50 = vmul.f32 %v2816_v59, %v2816_v59  ;;  %v2633_v41 = vand.u32 2147483647, %v5183_v11 }
 0x256   : > { %v3751_v28 = vpop.eup %3750  ;;  %v1486_v61 = vmul.f32 %v3749_v37, %v5171_v62  ;;  %3752 = vrsqrt.f32 %v5195_v42  ;;  %v1484_v45 = vsel %vm1482_vm14, %v1483_v48, %v1481_v27  ;;  %v1093_v47 = vmul.f32 %v628_v14, %v628_v14  ;;  %v630_v48 = vpop.f32.mrf.mxu0 }
 0x257   : > { %3754 = vlog2.f32 %v2623_v39  ;;  %v2625_v18 = vmul.f32 %v3751_v28, %v5183_v11  ;;  %v1961_v49 = vsel %vm1960_vm0, %v5147_v44, %v1959_v7  ;;  %v2912_v52 = vadd.f32 %v2880_v50, %v2848_v38  ;;  %v968_v27 = vpop.f32.mrf.mxu2 }
 0x258   : > { %v1964_v12 = vsel %vm1962_vm4, %v1963_v22, %v1961_v49  ;;  %v1487_v57 = vmul.f32 %v3749_v37, %v1486_v61  ;;  %v2635_v23 = vand.u32 2147483648, %v5183_v11  ;;  %v1125_v15 = vmul.f32 %v717_v54, %v717_v54 }
 0x259   : > { %v2626_v35 = vsub.f32 1.0, %v2625_v18  ;;  %v2083_v3 = vsub.f32 %v1484_v45, %v1964_v12  ;;  %v5210_v2 = vadd.f32 1e-07, %v1964_v12  ;;  %2944 = vst [vmem:[#allocation3 + $0xf0] sm:$0xff] %v2912_v52  ;;  %v1573_v46 = vmul.f32 %v966_v31, %v966_v31 }
 0x25a   : > { %v1488_v4 = vmul.f32 0.5, %v1487_v57  ;;  %v1605_v51 = vmul.f32 %v1055_v19, %v1055_v19  ;;  %vm2630_vm5 = vweird.f32 %v3751_v28  ;;  %v2210_v40 = vadd.f32 1e-07, %v5178_v55 }
 0x25b   : > { %v2627_v44 = vmul.f32 %v3751_v28, %v2626_v35  ;;  %v2115_v58 = vand.u32 2147483647, %v2083_v3  ;;  %3756 = vrcp.f32 %v5210_v2  ;;  %vm2629_vm6 = vweird.f32 %v5183_v11 }
 0x25c   : > { %v3753_v60 = vpop.eup %3752  ;;  %v1489_v21 = vsub.f32 1.5, %v1488_v4  ;;  %v5215_v63 = vadd.f32 %v1125_v15, %v1093_v47  ;;  %v5218_v1 = vadd.f32 %v1605_v51, %v1573_v46  ;;  %vm2631_vm7 = vmor %vm2629_vm6, %vm2630_vm5  ;;  %v2636_v16 = vor.u32 1.1754944e-38, %v2635_v23 }
 0x25d   : > { %v3755_v5 = vpop.eup %3754  ;;  %v2628_v20 = vadd.f32 %v3751_v28, %v2627_v44  ;;  %v2147_v10 = vadd.f32 %v2115_v58, %v2051_v33  ;;  %v1966_v34 = vmul.f32 %v3753_v60, %v5195_v42  ;;  %vm1492_vm8 = vcmp.eq.f32.partialorder %v5171_v62, inf }
 0x25e   : > { %v2778_v26 = vmul.f32 0.6931472, %v3755_v5  ;;  %v1490_v13 = vmul.f32 %v3749_v37, %v1489_v21  ;;  %vm2634_vm9 = vcmp.eq.f32.partialorder %v2633_v41, 8.507059e+37  ;;  %3758 = vrsqrt.f32 %v5215_v63  ;;  %v1057_v37 = vpop.f32.mrf.mxu3  ;;  %v2052_v5 = vld [vmem:[#allocation2 + $0x28] sm:$0xff] }
 0x25f   : > { %v2632_v17 = vsel %vm2631_vm7, %v3751_v28, %v2628_v20  ;;  %2179 = vst [vmem:[#allocation2 + $0x10] sm:$0xff] %v2147_v10  ;;  %v1967_v55 = vmul.f32 %v3753_v60, %v1966_v34  ;;  %v2211_v25 = vadd.f32 1e-07, %v1484_v45  ;;  %vm1494_vm10 = vcmp.eq.f32.partialorder %v5171_v62, 0.0  ;;  %v633_v10 = vpop.f32.mrf.mxu0  ;;  %v2850_v34 = vld [vmem:[#allocation3 + $0x48] sm:$0xff] }
 0x260   : > { %v2817_v11 = vmul.f32 0.4342945, %v2778_v26  ;;  %v2637_v9 = vsel %vm2634_vm9, %v2636_v16, %v2632_v17  ;;  %v1495_v53 = vand.u32 2147483648, %v5171_v62  ;;  %v1491_v24 = vmul.f32 %v1490_v13, %v5171_v62  ;;  %v722_v16 = vpop.f32.mrf.mxu1 }
 0x261   : > { %v3757_v6 = vpop.eup %3756  ;;  %v2638_v43 = vmul.f32 %v2637_v9, %v2210_v40  ;;  %v1968_v32 = vmul.f32 0.5, %v1967_v55  ;;  %3760 = vrsqrt.f32 %v5218_v1  ;;  %vm1972_vm11 = vcmp.eq.f32.partialorder %v5195_v42, inf }
 0x262   : > { %v2881_v30 = vmul.f32 %v2817_v11, %v2817_v11  ;;  %v2640_v56 = vmul.f32 %v3757_v6, %v5210_v2  ;;  %vm1974_vm12 = vcmp.eq.f32.partialorder %v5195_v42, 0.0  ;;  %v2648_v29 = vand.u32 2147483647, %v5210_v2 }
 0x263   : > { %3762 = vlog2.f32 %v2638_v43  ;;  %v1969_v59 = vsub.f32 1.5, %v1968_v32  ;;  %v1975_v0 = vand.u32 2147483648, %v5195_v42  ;;  %vm2645_vm13 = vweird.f32 %v3757_v6  ;;  %v971_v43 = vpop.f32.mrf.mxu2 }
 0x264   : > { %v2913_v38 = vadd.f32 %v2881_v30, %v2849_v36  ;;  %v2641_v39 = vsub.f32 1.0, %v2640_v56  ;;  %v2650_v7 = vand.u32 2147483648, %v5210_v2  ;;  %v3759_v22 = vpop.eup %3758  ;;  %v1493_v28 = vsel %vm1492_vm8, %v5171_v62, %v1491_v24 }
 0x265   : > { %v1970_v50 = vmul.f32 %v3753_v60, %v1969_v59  ;;  %v1094_v41 = vmul.f32 %v630_v48, %v630_v48  ;;  %v1126_v61 = vmul.f32 %v719_v8, %v719_v8  ;;  %v1498_v18 = vmul.f32 %v3759_v22, %v5215_v63 }
 0x266   : > { %2945 = vst [vmem:[#allocation3 + $0x88] sm:$0xff] %v2913_v38  ;;  %v2642_v14 = vmul.f32 %v3757_v6, %v2641_v39  ;;  %v1574_v45 = vmul.f32 %v968_v27, %v968_v27  ;;  %v1606_v49 = vmul.f32 %v1057_v37, %v1057_v37  ;;  %vm2644_vm14 = vweird.f32 %v5210_v2  ;;  %v1060_v24 = vpop.f32.mrf.mxu3 }
 0x267   : > { %v3761_v31 = vpop.eup %3760  ;;  %vm5237_vm15 = vcmp.eq.f32.partialorder %v2648_v29, 8.507059e+37  ;;  %v1971_v52 = vmul.f32 %v1970_v50, %v5195_v42  ;;  %v5242_v12 = vadd.f32 %v1126_v61, %v1094_v41  ;;  %v2651_v47 = vor.u32 1.1754944e-38, %v2650_v7  ;;  %vm2646_vm1 = vmor %vm2644_vm14, %vm2645_vm13 }
 0x268   : > { %v2643_v57 = vadd.f32 %v3757_v6, %v2642_v14  ;;  %v1499_v54 = vmul.f32 %v3759_v22, %v1498_v18  ;;  %v1978_v35 = vmul.f32 %v3761_v31, %v5218_v1  ;;  %v5248_v3 = vsel %vm1494_vm10, %v1495_v53, %v1493_v28 }
 0x269   : > { %v3763_v23 = vpop.eup %3762  ;;  %v1973_v2 = vsel %vm1972_vm11, %v5195_v42, %v1971_v52  ;;  %3764 = vrsqrt.f32 %v5242_v12  ;;  %v5254_v33 = vadd.f32 %v1606_v49, %v1574_v45  ;;  %v1095_v42 = vmul.f32 %v633_v10, %v633_v10 }
 0x26a   : > { %v2780_v4 = vmul.f32 0.6931472, %v3763_v23  ;;  %v2647_v15 = vsel %vm2646_vm1, %v3757_v6, %v2643_v57  ;;  %v1976_v46 = vsel %vm1974_vm12, %v1975_v0, %v1973_v2  ;;  %v1500_v51 = vmul.f32 0.5, %v1499_v54  ;;  %v2851_v57 = vld [vmem:[#allocation3 + $0xf8] sm:$0xff] }
 0x26b   : > { %v2652_v44 = vsel %vm5237_vm15, %v2651_v47, %v2647_v15  ;;  %v2084_v62 = vsub.f32 %v5248_v3, %v1976_v46  ;;  %v5261_v58 = vadd.f32 1e-07, %v1976_v46  ;;  %v1979_v60 = vmul.f32 %v3761_v31, %v1978_v35 }
 0x26c   : > { %v2818_v40 = vmul.f32 0.4342945, %v2780_v4  ;;  %v2653_v21 = vmul.f32 %v2652_v44, %v2211_v25  ;;  %v1501_v20 = vsub.f32 1.5, %v1500_v51  ;;  %v1127_v55 = vmul.f32 %v722_v16, %v722_v16  ;;  %v2053_v51 = vld [vmem:[#allocation2 + $0xa0] sm:$0xff] }
 0x26d   : > { %v2116_v26 = vand.u32 2147483647, %v2084_v62  ;;  %3766 = vrcp.f32 %v5261_v58  ;;  %vm1504_vm2 = vcmp.eq.f32.partialorder %v5215_v63, inf  ;;  %v1980_v53 = vmul.f32 0.5, %v1979_v60 }
 0x26e   : > { %v2882_v13 = vmul.f32 %v2818_v40, %v2818_v40  ;;  %3768 = vlog2.f32 %v2653_v21  ;;  %v1502_v17 = vmul.f32 %v3759_v22, %v1501_v20  ;;  %vm1506_vm3 = vcmp.eq.f32.partialorder %v5215_v63, 0.0  ;;  %v635_v40 = vpop.f32.mrf.mxu0 }
 0x26f   : > { %v3765_v11 = vpop.eup %3764  ;;  %v2148_v9 = vadd.f32 %v2116_v26, %v2052_v5  ;;  %3770 = vrsqrt.f32 %v5254_v33  ;;  %v1507_v32 = vand.u32 2147483648, %v5215_v63  ;;  %v1981_v30 = vsub.f32 1.5, %v1980_v53 }
 0x270   : > { %v2914_v25 = vadd.f32 %v2882_v13, %v2850_v34  ;;  %v1503_v6 = vmul.f32 %v1502_v17, %v5215_v63  ;;  %v1510_v36 = vmul.f32 %v3765_v11, %v5242_v12  ;;  %vm1984_vm0 = vcmp.eq.f32.partialorder %v5218_v1, inf  ;;  %v724_v34 = vpop.f32.mrf.mxu1  ;;  %v973_v13 = vpop.f32.mrf.mxu2 }
 0x271   : > { %2180 = vst [vmem:[#allocation2 + $0x28] sm:$0xff] %v2148_v9  ;;  %v5272_v8 = vadd.f32 %v1127_v55, %v1095_v42  ;;  %v1982_v59 = vmul.f32 %v3761_v31, %v1981_v30  ;;  %vm1986_vm4 = vcmp.eq.f32.partialorder %v5218_v1, 0.0  ;;  %v1575_v0 = vmul.f32 %v971_v43, %v971_v43  ;;  %v1062_v17 = vpop.f32.mrf.mxu3 }
 0x272   : > { %2946 = vst [vmem:[#allocation3 + $0x48] sm:$0xff] %v2914_v25  ;;  %v1505_v56 = vsel %vm1504_vm2, %v5215_v63, %v1503_v6  ;;  %v1511_v48 = vmul.f32 %v3765_v11, %v1510_v36  ;;  %v1607_v27 = vmul.f32 %v1060_v24, %v1060_v24  ;;  %v2663_v39 = vand.u32 2147483647, %v5261_v58 }
 0x273   : > { %v3767_v29 = vpop.eup %3766  ;;  %v1987_v7 = vand.u32 2147483648, %v5218_v1  ;;  %v2665_v41 = vand.u32 2147483648, %v5261_v58  ;;  %v1508_v61 = vsel %vm1506_vm3, %v1507_v32, %v1505_v56  ;;  %v1983_v14 = vmul.f32 %v1982_v59, %v5218_v1 }
 0x274   : > { %v3769_v37 = vpop.eup %3768  ;;  %v2655_v38 = vmul.f32 %v3767_v29, %v5261_v58  ;;  %v1512_v22 = vmul.f32 0.5, %v1511_v48  ;;  %3772 = vrsqrt.f32 %v5272_v8  ;;  %vm2660_vm5 = vweird.f32 %v3767_v29 }
 0x275   : > { %v3771_v28 = vpop.eup %3770  ;;  %v2782_v50 = vmul.f32 0.6931472, %v3769_v37  ;;  %v1985_v19 = vsel %vm1984_vm0, %v5218_v1, %v1983_v14  ;;  %v5287_v52 = vadd.f32 %v1607_v27, %v1575_v0  ;;  %v2212_v15 = vadd.f32 1e-07, %v5248_v3 }
 0x276   : > { %v2656_v18 = vsub.f32 1.0, %v2655_v38  ;;  %v1513_v45 = vsub.f32 1.5, %v1512_v22  ;;  %v1990_v49 = vmul.f32 %v3771_v28, %v5254_v33  ;;  %v1988_v63 = vsel %vm1986_vm4, %v1987_v7, %v1985_v19 }
 0x277   : > { %v2819_v31 = vmul.f32 0.4342945, %v2782_v50  ;;  %v2085_v2 = vsub.f32 %v1508_v61, %v1988_v63  ;;  %v5291_v4 = vadd.f32 1e-07, %v1988_v63  ;;  %3774 = vrsqrt.f32 %v5287_v52 }
 0x278   : > { %v2657_v47 = vmul.f32 %v3767_v29, %v2656_v18  ;;  %v1514_v54 = vmul.f32 %v3765_v11, %v1513_v45  ;;  %v1991_v35 = vmul.f32 %v3771_v28, %v1990_v49  ;;  %vm2659_vm6 = vweird.f32 %v5261_v58  ;;  %v2054_v49 = vld [vmem:[#allocation2 + $0xf8] sm:$0xff] }
 0x279   : > { %v2883_v23 = vmul.f32 %v2819_v31, %v2819_v31  ;;  %vm2661_vm7 = vmor %vm2659_vm6, %vm2660_vm5  ;;  %v2666_v1 = vor.u32 1.1754944e-38, %v2665_v41  ;;  %v2117_v60 = vand.u32 2147483647, %v2085_v2  ;;  %3776 = vrcp.f32 %v5291_v4 }
 0x27a   : > { %v2658_v46 = vadd.f32 %v3767_v29, %v2657_v47  ;;  %v1992_v44 = vmul.f32 0.5, %v1991_v35  ;;  %v3773_v21 = vpop.eup %3772  ;;  %vm2664_vm8 = vcmp.eq.f32.partialorder %v2663_v39, 8.507059e+37  ;;  %v1515_v20 = vmul.f32 %v1514_v54, %v5242_v12 }
 0x27b   : > { %v2915_v62 = vadd.f32 %v2883_v23, %v2851_v57  ;;  %vm1516_vm9 = vcmp.eq.f32.partialorder %v5242_v12, inf  ;;  %v2149_v58 = vadd.f32 %v2117_v60, %v2053_v51  ;;  %vm1518_vm10 = vcmp.eq.f32.partialorder %v5242_v12, 0.0 }
 0x27c   : > { %v2662_v5 = vsel %vm2661_vm7, %v3767_v29, %v2658_v46  ;;  %v1993_v10 = vsub.f32 1.5, %v1992_v44  ;;  %v1519_v42 = vand.u32 2147483648, %v5242_v12  ;;  %vm1996_vm11 = vcmp.eq.f32.partialorder %v5254_v33, inf }
 0x27d   : > { %2947 = vst [vmem:[#allocation3 + $0xf8] sm:$0xff] %v2915_v62  ;;  %v2667_v3 = vsel %vm2664_vm8, %v2666_v1, %v2662_v5  ;;  %v1096_v16 = vmul.f32 %v635_v40, %v635_v40  ;;  %v3775_v55 = vpop.eup %3774  ;;  %vm1998_vm12 = vcmp.eq.f32.partialorder %v5254_v33, 0.0  ;;  %v1999_v9 = vand.u32 2147483648, %v5254_v33 }
 0x27e   : > { %v2668_v26 = vmul.f32 %v2667_v3, %v2212_v15  ;;  %2181 = vst [vmem:[#allocation2 + $0xa0] sm:$0xff] %v2149_v58  ;;  %v1994_v11 = vmul.f32 %v3771_v28, %v1993_v10  ;;  %v1522_v53 = vmul.f32 %v3773_v21, %v5272_v8  ;;  %v1517_v25 = vsel %vm1516_vm9, %v5242_v12, %v1515_v20  ;;  %v2852_v15 = vld [vmem:[#allocation3 + $0xc0] sm:$0xff] }
 0x27f   : > { %v2002_v6 = vmul.f32 %v3775_v55, %v5287_v52  ;;  %v1128_v36 = vmul.f32 %v724_v34, %v724_v34  ;;  %v3777_v43 = vpop.eup %3776  ;;  %v1576_v30 = vmul.f32 %v973_v13, %v973_v13  ;;  %v1608_v56 = vmul.f32 %v1062_v17, %v1062_v17 }
 0x280   : > { %3778 = vlog2.f32 %v2668_v26  ;;  %v1995_v24 = vmul.f32 %v1994_v11, %v5254_v33  ;;  %v1523_v32 = vmul.f32 %v3773_v21, %v1522_v53  ;;  %v2213_v48 = vadd.f32 1e-07, %v1508_v61 }
 0x281   : > { %v2670_v29 = vmul.f32 %v3777_v43, %v5291_v4  ;;  %v2003_v59 = vmul.f32 %v3775_v55, %v2002_v6  ;;  %v5312_v0 = vadd.f32 %v1128_v36, %v1096_v16  ;;  %v2680_v27 = vand.u32 2147483648, %v5291_v4 }
 0x282   : > { %v5317_v37 = vsel %vm1518_vm10, %v1519_v42, %v1517_v25  ;;  %v1997_v38 = vsel %vm1996_vm11, %v5254_v33, %v1995_v24  ;;  %v1524_v39 = vmul.f32 0.5, %v1523_v32  ;;  %v5328_v12 = vadd.f32 %v1608_v56, %v1576_v30  ;;  %v2055_v25 = vld [vmem:[#allocation2 + $0x20] sm:$0xff] }
 0x283   : > { %v2671_v7 = vsub.f32 1.0, %v2670_v29  ;;  %v2000_v22 = vsel %vm1998_vm12, %v1999_v9, %v1997_v38  ;;  %v2004_v28 = vmul.f32 0.5, %v2003_v59  ;;  %3780 = vrsqrt.f32 %v5312_v0 }
 0x284   : > { %v2086_v50 = vsub.f32 %v5317_v37, %v2000_v22  ;;  %v5326_v41 = vadd.f32 1e-07, %v2000_v22  ;;  %v1525_v61 = vsub.f32 1.5, %v1524_v39  ;;  %vm2675_vm13 = vweird.f32 %v3777_v43 }
 0x285   : > { %v2672_v18 = vmul.f32 %v3777_v43, %v2671_v7  ;;  %v2678_v45 = vand.u32 2147483647, %v5291_v4  ;;  %v2005_v31 = vsub.f32 1.5, %v2004_v28  ;;  %vm1528_vm14 = vcmp.eq.f32.partialorder %v5272_v8, inf  ;;  %v2853_v28 = vld [vmem:[#allocation3 + $0xb8] sm:$0xff] }
 0x286   : > { %v3779_v14 = vpop.eup %3778  ;;  %v2118_v33 = vand.u32 2147483647, %v2086_v50  ;;  %3782 = vrcp.f32 %v5326_v41  ;;  %vm2674_vm15 = vweird.f32 %v5291_v4  ;;  %v2681_v47 = vor.u32 1.1754944e-38, %v2680_v27 }
 0x287   : > { %v2784_v19 = vmul.f32 0.6931472, %v3779_v14  ;;  %v2673_v57 = vadd.f32 %v3777_v43, %v2672_v18  ;;  %v1526_v63 = vmul.f32 %v3773_v21, %v1525_v61  ;;  %vm2676_vm1 = vmor %vm2674_vm15, %vm2675_vm13  ;;  %v2006_v23 = vmul.f32 %v3775_v55, %v2005_v31 }
 0x288   : > { %v2150_v35 = vadd.f32 %v2118_v33, %v2054_v49  ;;  %3784 = vrsqrt.f32 %v5328_v12  ;;  %vm2679_vm2 = vcmp.eq.f32.partialorder %v2678_v45, 8.507059e+37  ;;  %v1531_v44 = vand.u32 2147483648, %v5272_v8 }
 0x289   : > { %v2820_v54 = vmul.f32 0.4342945, %v2784_v19  ;;  %v3781_v2 = vpop.eup %3780  ;;  %v2677_v46 = vsel %vm2676_vm1, %v3777_v43, %v2673_v57  ;;  %v1527_v51 = vmul.f32 %v1526_v63, %v5272_v8  ;;  %v2007_v4 = vmul.f32 %v2006_v23, %v5287_v52 }
 0x28a   : > { %v2682_v1 = vsel %vm2679_vm2, %v2681_v47, %v2677_v46  ;;  %2182 = vst [vmem:[#allocation2 + $0xf8] sm:$0xff] %v2150_v35  ;;  %v1534_v60 = vmul.f32 %v3781_v2, %v5312_v0  ;;  %vm1530_vm3 = vcmp.eq.f32.partialorder %v5272_v8, 0.0  ;;  %vm2008_vm0 = vcmp.eq.f32.partialorder %v5287_v52, inf }
 0x28b   : > { %v2884_v62 = vmul.f32 %v2820_v54, %v2820_v54  ;;  %v2683_v40 = vmul.f32 %v2682_v1, %v2213_v48  ;;  %v1529_v21 = vsel %vm1528_vm14, %v5272_v8, %v1527_v51  ;;  %v2009_v3 = vsel %vm2008_vm0, %v5287_v52, %v2007_v4 }
 0x28c   : > { %v3783_v5 = vpop.eup %3782  ;;  %v2011_v58 = vand.u32 2147483648, %v5287_v52  ;;  %v1535_v10 = vmul.f32 %v3781_v2, %v1534_v60  ;;  %vm2010_vm4 = vcmp.eq.f32.partialorder %v5287_v52, 0.0  ;;  %v5348_v42 = vsel %vm1530_vm3, %v1531_v44, %v1529_v21 }
 0x28d   : > { %v2916_v20 = vadd.f32 %v2884_v62, %v2852_v15  ;;  %3786 = vlog2.f32 %v2683_v40  ;;  %v2685_v34 = vmul.f32 %v3783_v5, %v5326_v41  ;;  %v2693_v9 = vand.u32 2147483647, %v5326_v41 }
 0x28e   : > { %v3785_v26 = vpop.eup %3784  ;;  %v2012_v16 = vsel %vm2010_vm4, %v2011_v58, %v2009_v3  ;;  %v1536_v8 = vmul.f32 0.5, %v1535_v10  ;;  %v2695_v53 = vand.u32 2147483648, %v5326_v41  ;;  %vm2690_vm5 = vweird.f32 %v3783_v5 }
 0x28f   : > { %2948 = vst [vmem:[#allocation3 + $0xc0] sm:$0xff] %v2916_v20  ;;  %v2686_v13 = vsub.f32 1.0, %v2685_v34  ;;  %v2087_v17 = vsub.f32 %v5348_v42, %v2012_v16  ;;  %v5351_v55 = vadd.f32 1e-07, %v2012_v16  ;;  %v2014_v11 = vmul.f32 %v3785_v26, %v5328_v12  ;;  %v2854_v20 = vld [vmem:[#allocation3] sm:$0xff] }
 0x290   : > { %v1537_v6 = vsub.f32 1.5, %v1536_v8  ;;  %vm2689_vm6 = vweird.f32 %v5326_v41  ;;  %v2696_v29 = vor.u32 1.1754944e-38, %v2695_v53  ;;  %v2214_v59 = vadd.f32 1e-07, %v5317_v37 }
 0x291   : > { %v2687_v52 = vmul.f32 %v3783_v5, %v2686_v13  ;;  %v2119_v36 = vand.u32 2147483647, %v2087_v17  ;;  %3788 = vrcp.f32 %v5351_v55  ;;  %v2015_v43 = vmul.f32 %v3785_v26, %v2014_v11  ;;  %vm2691_vm7 = vmor %vm2689_vm6, %vm2690_vm5 }
 0x292   : > { %v1538_v56 = vmul.f32 %v3781_v2, %v1537_v6  ;;  %vm2694_vm8 = vcmp.eq.f32.partialorder %v2693_v9, 8.507059e+37  ;;  %vm1540_vm9 = vcmp.eq.f32.partialorder %v5312_v0, inf  ;;  %v1543_v37 = vand.u32 2147483648, %v5312_v0  ;;  %v2855_v9 = vld [vmem:[#allocation3 + $0x28] sm:$0xff] }
 0x293   : > { %v3787_v24 = vpop.eup %3786  ;;  %v2688_v32 = vadd.f32 %v3783_v5, %v2687_v52  ;;  %v2151_v30 = vadd.f32 %v2119_v36, %v2055_v25  ;;  %v2016_v38 = vmul.f32 0.5, %v2015_v43  ;;  %v2710_v19 = vand.u32 2147483648, %v5351_v55 }
 0x294   : > { %v2786_v48 = vmul.f32 0.6931472, %v3787_v24  ;;  %v1539_v61 = vmul.f32 %v1538_v56, %v5312_v0  ;;  %vm2020_vm10 = vcmp.eq.f32.partialorder %v5328_v12, inf  ;;  %v2708_v63 = vand.u32 2147483647, %v5351_v55 }
 0x295   : > { %v2692_v27 = vsel %vm2691_vm7, %v3783_v5, %v2688_v32  ;;  %2183 = vst [vmem:[#allocation2 + $0x20] sm:$0xff] %v2151_v30  ;;  %v2017_v14 = vsub.f32 1.5, %v2016_v38  ;;  %v2023_v54 = vand.u32 2147483648, %v5328_v12  ;;  %vm1542_vm12 = vcmp.eq.f32.partialorder %v5312_v0, 0.0 }
 0x296   : > { %v2821_v39 = vmul.f32 0.4342945, %v2786_v48  ;;  %v2697_v7 = vsel %vm2694_vm8, %v2696_v29, %v2692_v27  ;;  %v1541_v33 = vsel %vm1540_vm9, %v5312_v0, %v1539_v61  ;;  %vm2022_vm13 = vcmp.eq.f32.partialorder %v5328_v12, 0.0  ;;  %v2056_v0 = vld [vmem:[#allocation2 + $0x98] sm:$0xff] }
 0x297   : > { %v3789_v22 = vpop.eup %3788  ;;  %v2698_v50 = vmul.f32 %v2697_v7, %v2214_v59  ;;  %v2018_v45 = vmul.f32 %v3785_v26, %v2017_v14  ;;  %vm2704_vm14 = vweird.f32 %v5351_v55  ;;  %v1544_v2 = vsel %vm1542_vm12, %v1543_v37, %v1541_v33  ;;  %v2856_v29 = vld [vmem:[#allocation3 + $0x98] sm:$0xff] }
 0x298   : > { %v2885_v41 = vmul.f32 %v2821_v39, %v2821_v39  ;;  %v2700_v18 = vmul.f32 %v3789_v22, %v5351_v55  ;;  %vm2705_vm11 = vweird.f32 %v3789_v22  ;;  %v2711_v51 = vor.u32 1.1754944e-38, %v2710_v19 }
 0x299   : > { %3790 = vlog2.f32 %v2698_v50  ;;  %v2019_v57 = vmul.f32 %v2018_v45, %v5328_v12  ;;  %vm2706_vm15 = vmor %vm2704_vm14, %vm2705_vm11  ;;  %v2215_v4 = vadd.f32 1e-07, %v5348_v42  ;;  %vm2709_vm1 = vcmp.eq.f32.partialorder %v2708_v63, 8.507059e+37 }
 0x29a   : > { %v2917_v49 = vadd.f32 %v2885_v41, %v2853_v28  ;;  %v2701_v31 = vsub.f32 1.0, %v2700_v18  ;;  %v2216_v52 = vadd.f32 1e-07, %v1544_v2 }
 0x29b   : > { %v2021_v35 = vsel %vm2020_vm10, %v5328_v12, %v2019_v57 }
 0x29c   : > { %2949 = vst [vmem:[#allocation3 + $0xb8] sm:$0xff] %v2917_v49  ;;  %v2702_v47 = vmul.f32 %v3789_v22, %v2701_v31  ;;  %v2024_v15 = vsel %vm2022_vm13, %v2023_v54, %v2021_v35 }
 0x29d   : > { %v2088_v44 = vsub.f32 %v1544_v2, %v2024_v15  ;;  %v2248_v62 = vadd.f32 1e-07, %v2024_v15 }
 0x29e   : > { %v2703_v23 = vadd.f32 %v3789_v22, %v2702_v47 }
 0x29f   : > { %v3791_v46 = vpop.eup %3790  ;;  %v2120_v21 = vand.u32 2147483647, %v2088_v44  ;;  %3792 = vrcp.f32 %v2248_v62  ;;  %v2725_v13 = vand.u32 2147483648, %v2248_v62  ;;  %v2723_v55 = vand.u32 2147483647, %v2248_v62 }
 0x2a0   : > { %v2788_v1 = vmul.f32 0.6931472, %v3791_v46  ;;  %v2707_v60 = vsel %vm2706_vm15, %v3789_v22, %v2703_v23  ;;  %vm2719_vm3 = vweird.f32 %v2248_v62 }
 0x2a1   : > { %v2712_v40 = vsel %vm2709_vm1, %v2711_v51, %v2707_v60  ;;  %v2152_v3 = vadd.f32 %v2120_v21, %v2056_v0  ;;  %v2726_v6 = vor.u32 1.1754944e-38, %v2725_v13  ;;  %vm2724_vm4 = vcmp.eq.f32.partialorder %v2723_v55, 8.507059e+37 }
 0x2a2   : > { %v2822_v12 = vmul.f32 0.4342945, %v2788_v1  ;;  %v2713_v5 = vmul.f32 %v2712_v40, %v2215_v4 }
 0x2a3   : > { %2184 = vst [vmem:[#allocation2 + $0x98] sm:$0xff] %v2152_v3 }
 0x2a4   : > { %v2886_v58 = vmul.f32 %v2822_v12, %v2822_v12  ;;  %3794 = vlog2.f32 %v2713_v5 }
 0x2a5   : > { %v3793_v34 = vpop.eup %3792 }
 0x2a6   : > { %v2918_v10 = vadd.f32 %v2886_v58, %v2854_v20  ;;  %v2715_v26 = vmul.f32 %v3793_v34, %v2248_v62  ;;  %vm2720_vm2 = vweird.f32 %v3793_v34 }
 0x2a7   : > { %vm2721_vm0 = vmor %vm2719_vm3, %vm2720_vm2 }
 0x2a8   : > { %2950 = vst [vmem:[#allocation3] sm:$0xff] %v2918_v10  ;;  %v2716_v8 = vsub.f32 1.0, %v2715_v26 }
 0x2aa   : > { %v3795_v16 = vpop.eup %3794  ;;  %v2717_v17 = vmul.f32 %v3793_v34, %v2716_v8 }
 0x2ab   : > { %v2790_v42 = vmul.f32 0.6931472, %v3795_v16 }
 0x2ac   : > { %v2718_v53 = vadd.f32 %v3793_v34, %v2717_v17 }
 0x2ad   : > { %v2823_v11 = vmul.f32 0.4342945, %v2790_v42 }
 0x2ae   : > { %v2722_v36 = vsel %vm2721_vm0, %v3793_v34, %v2718_v53 }
 0x2af   : > { %v2887_v25 = vmul.f32 %v2823_v11, %v2823_v11  ;;  %v2727_v24 = vsel %vm2724_vm4, %v2726_v6, %v2722_v36 }
 0x2b0   : > { %v2728_v32 = vmul.f32 %v2727_v24, %v2216_v52 }
 0x2b1   : > { %v2919_v43 = vadd.f32 %v2887_v25, %v2855_v9 }
 0x2b2   : > { %3796 = vlog2.f32 %v2728_v32 }
 0x2b3   : > { %2951 = vst [vmem:[#allocation3 + $0x28] sm:$0xff] %v2919_v43 }
 0x2b8   : > { %v3797_v30 = vpop.eup %3796 }
 0x2b9   : > { %v2792_v56 = vmul.f32 0.6931472, %v3797_v30 }
 0x2bb   : > { %v2824_v48 = vmul.f32 0.4342945, %v2792_v56 }
 0x2bd   : > { %v2888_v59 = vmul.f32 %v2824_v48, %v2824_v48  ;;  %2956 = sbr.rel (%p3454_p8) target bundleno = 957 (0x3bd), region = 40 }
 0x2bf   : > { %v2920_v27 = vadd.f32 %v2888_v59, %v2856_v29 }
 0x2c1   : > { %2952 = vst [vmem:[#allocation3 + $0x98] sm:$0xff] %v2920_v27 }
 0x2c2   : > { %v2957_v38 = vld [vmem:[#allocation2 + $0xb0] sm:$0xff]  ;;  %v2958_v39 = vld [vmem:[#allocation2] sm:$0xff]  ;;  %v2959_v7 = vld [vmem:[#allocation2 + $0xd8] sm:$0xff] }
 0x2c3   : > { %v2989_v22 = vadd.f32 %v2958_v39, %v2957_v38  ;;  %v2960_v28 = vld [vmem:[#allocation2 + $0x18] sm:$0xff]  ;;  %v2961_v61 = vld [vmem:[#allocation2 + $0x50] sm:$0xff]  ;;  %v2962_v41 = vld [vmem:[#allocation2 + $0x68] sm:$0xff] }
 0x2c4   : > { %v2963_v45 = vld [vmem:[#allocation2 + $0x30] sm:$0xff]  ;;  %v2964_v31 = vld [vmem:[#allocation2 + $0x48] sm:$0xff]  ;;  %v3031_v37 = vld [vmem:[#allocation3 + $0x80] sm:$0xff] }
 0x2c5   : > { %v2990_v50 = vadd.f32 %v2989_v22, %v2959_v7  ;;  %v3032_v33 = vld [vmem:[#allocation3 + $0xc8] sm:$0xff]  ;;  %v2965_v47 = vld [vmem:[#allocation2 + $0x80] sm:$0xff]  ;;  %v3034_v35 = vld [vmem:[#allocation3 + $0x78] sm:$0xff] }
 0x2c6   : > { %v3033_v57 = vld [vmem:[#allocation3 + $0xe8] sm:$0xff]  ;;  %v3063_v63 = vadd.f32 %v3032_v33, %v3031_v37  ;;  %v3036_v1 = vld [vmem:[#allocation3 + $0x90] sm:$0xff]  ;;  %v2968_v4 = vld [vmem:[#allocation2 + $0xb8] sm:$0xff] }
 0x2c7   : > { %v2991_v14 = vadd.f32 %v2990_v50, %v2960_v28  ;;  %v2966_v23 = vld [vmem:[#allocation2 + $0x88] sm:$0xff]  ;;  %v3037_v40 = vld [vmem:[#allocation3 + $0x58] sm:$0xff]  ;;  %v2969_v21 = vld [vmem:[#allocation2 + $0x60] sm:$0xff] }
 0x2c8   : > { %v3064_v2 = vadd.f32 %v3063_v63, %v3033_v57  ;;  %v3035_v46 = vld [vmem:[#allocation3 + $0x8] sm:$0xff]  ;;  %v2970_v3 = vld [vmem:[#allocation2 + $0xf0] sm:$0xff]  ;;  %v2972_v13 = vld [vmem:[#allocation2 + $0x78] sm:$0xff] }
 0x2c9   : > { %v2992_v18 = vadd.f32 %v2991_v14, %v2961_v61  ;;  %v2967_v51 = vld [vmem:[#allocation2 + $0xe8] sm:$0xff]  ;;  %v3039_v34 = vld [vmem:[#allocation3 + $0xd0] sm:$0xff]  ;;  %v3041_v11 = vld [vmem:[#allocation3 + $0x38] sm:$0xff] }
 0x2ca   : > { %v3065_v44 = vadd.f32 %v3064_v2, %v3034_v35  ;;  %v3038_v20 = vld [vmem:[#allocation3 + $0xa8] sm:$0xff]  ;;  %v3040_v42 = vld [vmem:[#allocation3 + $0xb0] sm:$0xff]  ;;  %v2973_v9 = vld [vmem:[#allocation2 + $0x38] sm:$0xff] }
 0x2cb   : > { %v2993_v49 = vadd.f32 %v2992_v18, %v2962_v41  ;;  %v2971_v26 = vld [vmem:[#allocation2 + $0x8] sm:$0xff]  ;;  %v3042_v6 = vld [vmem:[#allocation3 + $0x40] sm:$0xff]  ;;  %v2974_v52 = vld [vmem:[#allocation2 + $0x58] sm:$0xff] }
 0x2cc   : > { %v3066_v60 = vadd.f32 %v3065_v44, %v3035_v46  ;;  %v3043_v24 = vld [vmem:[#allocation3 + $0xe0] sm:$0xff]  ;;  %v2976_v29 = vld [vmem:[#allocation2 + $0xc8] sm:$0xff]  ;;  %v3045_v38 = vld [vmem:[#allocation3 + $0x18] sm:$0xff] }
 0x2cd   : > { %v2994_v19 = vadd.f32 %v2993_v49, %v2963_v45  ;;  %v2975_v32 = vld [vmem:[#allocation2 + $0x40] sm:$0xff]  ;;  %v3046_v28 = vld [vmem:[#allocation3 + $0x68] sm:$0xff]  ;;  %v2978_v50 = vld [vmem:[#allocation2 + $0x90] sm:$0xff] }
 0x2ce   : > { %v3067_v12 = vadd.f32 %v3066_v60, %v3036_v1  ;;  %v3044_v48 = vld [vmem:[#allocation3 + $0x60] sm:$0xff]  ;;  %v3047_v41 = vld [vmem:[#allocation3 + $0x10] sm:$0xff]  ;;  %v3051_v46 = vld [vmem:[#allocation3 + $0xd8] sm:$0xff] }
 0x2cf   : > { %v2995_v54 = vadd.f32 %v2994_v19, %v2964_v31  ;;  %v2977_v39 = vld [vmem:[#allocation2 + $0xe0] sm:$0xff]  ;;  %v2979_v18 = vld [vmem:[#allocation2 + $0x70] sm:$0xff] }
 0x2d0   : > { %v3068_v58 = vadd.f32 %v3067_v12, %v3037_v40  ;;  %v3048_v31 = vld [vmem:[#allocation3 + $0x70] sm:$0xff]  ;;  %v2980_v37 = vld [vmem:[#allocation2 + $0xc0] sm:$0xff] }
 0x2d1   : > { %v2996_v15 = vadd.f32 %v2995_v54, %v2965_v47  ;;  %v3049_v57 = vld [vmem:[#allocation3 + $0x50] sm:$0xff]  ;;  %v2981_v47 = vld [vmem:[#allocation2 + $0xa8] sm:$0xff]  ;;  %v3050_v35 = vld [vmem:[#allocation3 + $0xa0] sm:$0xff] }
 0x2d2   : > { %v3069_v16 = vadd.f32 %v3068_v58, %v3038_v20  ;;  %v3052_v1 = vld [vmem:[#allocation3 + $0x30] sm:$0xff]  ;;  %v3053_v40 = vld [vmem:[#allocation3 + $0x20] sm:$0xff] }
 0x2d3   : > { %v2997_v62 = vadd.f32 %v2996_v15, %v2966_v23  ;;  %v2982_v23 = vld [vmem:[#allocation2 + $0xd0] sm:$0xff] }
 0x2d4   : > { %v3070_v17 = vadd.f32 %v3069_v16, %v3039_v34  ;;  %v3054_v20 = vld [vmem:[#allocation3 + $0xf0] sm:$0xff]  ;;  %v3055_v34 = vld [vmem:[#allocation3 + $0x88] sm:$0xff] }
 0x2d5   : > { %v2998_v0 = vadd.f32 %v2997_v62, %v2967_v51  ;;  %v2983_v51 = vld [vmem:[#allocation2 + $0x10] sm:$0xff] }
 0x2d6   : > { %v3071_v53 = vadd.f32 %v3070_v17, %v3040_v42  ;;  %v3056_v42 = vld [vmem:[#allocation3 + $0x48] sm:$0xff] }
 0x2d7   : > { %v2999_v5 = vadd.f32 %v2998_v0, %v2968_v4  ;;  %v2984_v4 = vld [vmem:[#allocation2 + $0x28] sm:$0xff] }
 0x2d8   : > { %v3072_v36 = vadd.f32 %v3071_v53, %v3041_v11  ;;  %v3057_v11 = vld [vmem:[#allocation3 + $0xf8] sm:$0xff] }
 0x2d9   : > { %v3000_v10 = vadd.f32 %v2999_v5, %v2969_v21  ;;  %v2985_v21 = vld [vmem:[#allocation2 + $0xa0] sm:$0xff] }
 0x2da   : > { %v3073_v30 = vadd.f32 %v3072_v36, %v3042_v6 }
 0x2db   : > { %v3001_v8 = vadd.f32 %v3000_v10, %v2970_v3  ;;  %v2986_v3 = vld [vmem:[#allocation2 + $0xf8] sm:$0xff] }
 0x2dc   : > { %v3074_v59 = vadd.f32 %v3073_v30, %v3043_v24 }
 0x2dd   : > { %v3002_v55 = vadd.f32 %v3001_v8, %v2971_v26  ;;  %v2987_v26 = vld [vmem:[#allocation2 + $0x20] sm:$0xff] }
 0x2de   : > { %v3075_v7 = vadd.f32 %v3074_v59, %v3044_v48 }
 0x2df   : > { %v3003_v25 = vadd.f32 %v3002_v55, %v2972_v13  ;;  %v2988_v13 = vld [vmem:[#allocation2 + $0x98] sm:$0xff] }
 0x2e0   : > { %v3076_v61 = vadd.f32 %v3075_v7, %v3045_v38 }
 0x2e1   : > { %v3004_v43 = vadd.f32 %v3003_v25, %v2973_v9  ;;  %v3058_v25 = vld [vmem:[#allocation3 + $0xc0] sm:$0xff] }
 0x2e2   : > { %v3077_v45 = vadd.f32 %v3076_v61, %v3046_v28 }
 0x2e3   : > { %v3005_v56 = vadd.f32 %v3004_v43, %v2974_v52  ;;  %v3059_v52 = vld [vmem:[#allocation3 + $0xb8] sm:$0xff]  ;;  %v3060_v43 = vld [vmem:[#allocation3] sm:$0xff] }
 0x2e4   : > { %v3078_v19 = vadd.f32 %v3077_v45, %v3047_v41 }
 0x2e5   : > { %v3006_v27 = vadd.f32 %v3005_v56, %v2975_v32  ;;  %v3061_v32 = vld [vmem:[#allocation3 + $0x28] sm:$0xff]  ;;  %v3062_v56 = vld [vmem:[#allocation3 + $0x98] sm:$0xff] }
 0x2e6   : > { %v3079_v63 = vadd.f32 %v3078_v19, %v3048_v31 }
 0x2e7   : > { %v3007_v22 = vadd.f32 %v3006_v27, %v2976_v29 }
 0x2e8   : > { %v3080_v2 = vadd.f32 %v3079_v63, %v3049_v57 }
 0x2e9   : > { %v3008_v14 = vadd.f32 %v3007_v22, %v2977_v39 }
 0x2ea   : > { %v3081_v44 = vadd.f32 %v3080_v2, %v3050_v35 }
 0x2eb   : > { %v3009_v49 = vadd.f32 %v3008_v14, %v2978_v50 }
 0x2ec   : > { %v3082_v60 = vadd.f32 %v3081_v44, %v3051_v46 }
 0x2ed   : > { %v3010_v33 = vadd.f32 %v3009_v49, %v2979_v18 }
 0x2ee   : > { %v3083_v12 = vadd.f32 %v3082_v60, %v3052_v1 }
 0x2ef   : > { %v3011_v54 = vadd.f32 %v3010_v33, %v2980_v37 }
 0x2f0   : > { %v3084_v58 = vadd.f32 %v3083_v12, %v3053_v40 }
 0x2f1   : > { %v3012_v15 = vadd.f32 %v3011_v54, %v2981_v47 }
 0x2f2   : > { %v3085_v16 = vadd.f32 %v3084_v58, %v3054_v20 }
 0x2f3   : > { %v3013_v62 = vadd.f32 %v3012_v15, %v2982_v23 }
 0x2f4   : > { %v3086_v17 = vadd.f32 %v3085_v16, %v3055_v34 }
 0x2f5   : > { %v3014_v0 = vadd.f32 %v3013_v62, %v2983_v51 }
 0x2f6   : > { %v3087_v9 = vadd.f32 %v3086_v17, %v3056_v42 }
 0x2f7   : > { %v3015_v5 = vadd.f32 %v3014_v0, %v2984_v4 }
 0x2f8   : > { %v3088_v6 = vadd.f32 %v3087_v9, %v3057_v11 }
 0x2f9   : > { %v3016_v10 = vadd.f32 %v3015_v5, %v2985_v21 }
 0x2fa   : > { %v3089_v36 = vadd.f32 %v3088_v6, %v3058_v25 }
 0x2fb   : > { %v3017_v8 = vadd.f32 %v3016_v10, %v2986_v3 }
 0x2fc   : > { %v3090_v24 = vadd.f32 %v3089_v36, %v3059_v52 }
 0x2fd   : > { %v3018_v55 = vadd.f32 %v3017_v8, %v2987_v26 }
 0x2fe   : > { %v3091_v30 = vadd.f32 %v3090_v24, %v3060_v43 }
 0x2ff   : > { %v3019_v53 = vadd.f32 %v3018_v55, %v2988_v13 }
 0x300   : > { %v3092_v48 = vadd.f32 %v3091_v30, %v3061_v32 }
 0x301   : > { %3020 = vadd.xlane.f32.xlu0 %v3019_v53 }
 0x302   : > { %v3093_v29 = vadd.f32 %v3092_v48, %v3062_v56 }
 0x309   : > { %3094 = vadd.xlane.f32.xlu0 %v3093_v29 }
 0x374   : > { %v3021_v59 = vpop.xlane.xlu0 %3020 }
 0x375   : > { %v3022_v27 = vrot.slane %v3021_v59, 4 }
 0x377   : > { %v3023_v38 = vadd.f32 %v3022_v27, %v3021_v59 }
 0x379   : > { %v3024_v39 = vrot.slane %v3023_v38, 2 }
 0x37b   : > { %v3025_v7 = vadd.f32 %v3024_v39, %v3023_v38 }
 0x37c   : > { %v3095_v28 = vpop.xlane.xlu0 %3094 }
 0x37d   : > { %v3026_v22 = vrot.slane %v3025_v7, 1  ;;  %v3096_v61 = vrot.slane %v3095_v28, 4 }
 0x37f   : > { %v3027_v50 = vadd.f32 %v3026_v22, %v3025_v7  ;;  %v3097_v14 = vadd.f32 %v3096_v61, %v3095_v28 }
 0x381   : > { %3497 = vpush %v3027_v50  ;;  %v3098_v41 = vrot.slane %v3097_v14, 2 }
 0x383   : > { %v3099_v18 = vadd.f32 %v3098_v41, %v3097_v14 }
 0x385   : > { %v3100_v45 = vrot.slane %v3099_v18, 1 }
 0x387   : > { %v3101_v49 = vadd.f32 %v3100_v45, %v3099_v18 }
 0x389   : > { %3499 = vpush %v3101_v49 }
 0x3b2   : > { %s3498_s15 = spop %3497 }
 0x3b3   : > { %v3029_v31 = vstv %s3498_s15 }
 0x3b4   : > { %3030 = vst [vmem:[%s3900_s29] sm:$0xff] %v3029_v31 }
 0x3ba   : > { %s3500_s6 = spop %3499 }
 0x3bb   : > { %v3103_v37 = vstv %s3500_s6 }
 0x3bc   : > { %3104 = vst [vmem:[%s3915_s12] sm:$0xff] %v3103_v37 }
 0x3bd PF: > { %s15_s19 = sadd.s32 1, %s3836_s19   ;;  %s5423_s15 = smov %s3828_s17 }
 0x3be   : > { %p12_p9 = scmp.ge.s32.totalorder %s15_s19, 6   ;;  %s5424_s16 = smov %s3832_s18 }
 0x3bf   : > { %s5425_s17 = smov %s5428_s20  ;;  %s5426_s18 = smov %s5432_s21 }
 0x3c0   :  { %14 = sbr.rel (!%p12_p9) target bundleno = 3 (0x3), region = 85 }

// kernel: _lambda_.2
= control target key start
LH: loop header
LB: loop body
LE: loop exit
PB: predicated region body
PF: predicated region fallthrough
CT: control target
= control target key end

     0   :  { %s3762_s15 = smov 0   ;;  %s3764_s16 = smov 0   ;;  %s6259_s0 = inlined_call_operand.vmem [shape: bf16[512,128], index: 0, kind: input, shape index: {}]   ;;  %s6260_s1 = inlined_call_operand.vmem [shape: bf16[512,128], index: 1, kind: input, shape index: {}]   ;;  %s6261_s2 = inlined_call_operand.vmem [shape: bf16[128,256], index: 2, kind: input, shape index: {}]   ;;  %s6262_s3 = inlined_call_operand.vmem [shape: f32[16,128], index: 3, kind: output, shape index: {0}]   ;;  %s6263_s4 = inlined_call_operand.vmem [shape: f32[16,128], index: 4, kind: output, shape index: {1}]  }
   0x1   :  { %s3766_s17 = smov 0  }
   0x2 LB: > { %s27_s18 = sadd.s32 1, %s3731_s16  ;;  %p3180_p0 = scmp.ge.s32.totalorder %s3735_s17, 1  ;;  %s3735_s17 = sphi %s3766_s17, %s15_s17   ;;  %s3731_s16 = sphi %s3764_s16, %s6488_s16   ;;  %s3727_s15 = sphi %s3762_s15, %s6487_s15  }
   0x3   : > { %p29_p1 = scmp.ge.s32.totalorder %s27_s18, 2  ;;  %p197_p2 = scmp.lt.s32.totalorder %s3735_s17, 3 }
   0x5   : > { %s6490_s18 = smov (%p29_p1, %s27_s18), 0  ;;  %p198_p3 = pnand %p3180_p0, %p197_p2 }
   0x7   : > { %201 = sbr.rel (%p198_p3) target bundleno = 813 (0x32d), region = 32 }
   0xc   : > { %v3309_v0 = vld [vmem:[%s6261_s2 + $0x70] sm:$0xf]  ;;  %v3396_v1 = vld [vmem:[%s6261_s2 + $0x74] sm:$0xf0]  ;;  %v3395_v2 = vld [vmem:[%s6261_s2 + $0x74] sm:$0xf] }
   0xd   : > { %v3310_v3 = vor.u32 %v3396_v1, %v3309_v0  ;;  %v3311_v4 = vld [vmem:[%s6261_s2 + $0x78] sm:$0xf0]  ;;  %v3301_v5 = vld [vmem:[%s6261_s2 + $0x60] sm:$0xf]  ;;  %v3394_v6 = vld [vmem:[%s6261_s2 + $0x64] sm:$0xf0] }
   0xe   : > { %v3314_v7 = vor.u32 %v3395_v2, %v3311_v4  ;;  %v3393_v8 = vld [vmem:[%s6261_s2 + $0x64] sm:$0xf]  ;;  %v3303_v9 = vld [vmem:[%s6261_s2 + $0x68] sm:$0xf0]  ;;  %v3302_v10 = vor.u32 %v3394_v6, %v3301_v5  ;;  %v3293_v12 = vld [vmem:[%s6261_s2 + $0x50] sm:$0xf] }
   0xf   : > { %549 = vmatpush.bf16.msra.mxu0 %v3310_v3  ;;  %855 = vmatpush.bf16.msra.mxu2 %v3310_v3  ;;  %v3306_v11 = vor.u32 %v3393_v8, %v3303_v9  ;;  %v3392_v13 = vld [vmem:[%s6261_s2 + $0x54] sm:$0xf0]  ;;  %v3391_v14 = vld [vmem:[%s6261_s2 + $0x54] sm:$0xf]  ;;  %v3295_v15 = vld [vmem:[%s6261_s2 + $0x58] sm:$0xf0] }
  0x10   : > { %638 = vmatpush.bf16.msra.mxu1 %v3314_v7  ;;  %944 = vmatpush.bf16.msra.mxu3 %v3314_v7  ;;  %v3294_v16 = vor.u32 %v3392_v13, %v3293_v12  ;;  %v3298_v17 = vor.u32 %v3391_v14, %v3295_v15  ;;  %v3285_v18 = vld [vmem:[%s6261_s2 + $0x40] sm:$0xf]  ;;  %v3390_v19 = vld [vmem:[%s6261_s2 + $0x44] sm:$0xf0]  ;;  %v3389_v20 = vld [vmem:[%s6261_s2 + $0x44] sm:$0xf] }
  0x11   : > { %v3287_v21 = vld [vmem:[%s6261_s2 + $0x48] sm:$0xf0]  ;;  %v3286_v22 = vor.u32 %v3390_v19, %v3285_v18  ;;  %v3277_v24 = vld [vmem:[%s6261_s2 + $0x30] sm:$0xf]  ;;  %v3388_v25 = vld [vmem:[%s6261_s2 + $0x34] sm:$0xf0] }
  0x12   : > { %v3290_v23 = vor.u32 %v3389_v20, %v3287_v21  ;;  %v3387_v26 = vld [vmem:[%s6261_s2 + $0x34] sm:$0xf]  ;;  %v3279_v27 = vld [vmem:[%s6261_s2 + $0x38] sm:$0xf0]  ;;  %s3181_s11 = sshll.u32 %s3727_s15, 5  ;;  %v3278_v28 = vor.u32 %v3388_v25, %v3277_v24  ;;  %p249_p5 = scmp.lt.s32.totalorder %s3727_s15, 1 }
  0x13   : > { %550 = vmatpush.bf16.msra.mxu0 %v3302_v10  ;;  %856 = vmatpush.bf16.msra.mxu2 %v3302_v10  ;;  %v3282_v29 = vor.u32 %v3387_v26, %v3279_v27  ;;  %v3269_v30 = vld [vmem:[%s6261_s2 + $0x20] sm:$0xf]  ;;  %v3386_v31 = vld [vmem:[%s6261_s2 + $0x24] sm:$0xf0]  ;;  %p235_p4 = scmp.lt.s32.totalorder %s3181_s11, 63 }
  0x14   : > { %639 = vmatpush.bf16.msra.mxu1 %v3306_v11  ;;  %945 = vmatpush.bf16.msra.mxu3 %v3306_v11  ;;  %v3385_v32 = vld [vmem:[%s6261_s2 + $0x24] sm:$0xf]  ;;  %v3271_v33 = vld [vmem:[%s6261_s2 + $0x28] sm:$0xf0]  ;;  %v3270_v34 = vor.u32 %v3386_v31, %v3269_v30  ;;  %v3261_v36 = vld [vmem:[%s6261_s2 + $0x10] sm:$0xf] }
  0x15   : > { %v3274_v35 = vor.u32 %v3385_v32, %v3271_v33  ;;  %v3384_v37 = vld [vmem:[%s6261_s2 + $0x14] sm:$0xf0]  ;;  %s6492_s11 = smov (!%p235_p4, %s3181_s11), 63  ;;  %v3383_v38 = vld [vmem:[%s6261_s2 + $0x14] sm:$0xf]  ;;  %s6494_s15 = smov (!%p249_p5, %s3727_s15), 1 }
  0x16   : > { %v3263_v39 = vld [vmem:[%s6261_s2 + $0x18] sm:$0xf0]  ;;  %v3262_v40 = vor.u32 %v3384_v37, %v3261_v36  ;;  %v3253_v42 = vld [vmem:[%s6261_s2] sm:$0xf]  ;;  %v3382_v43 = vld [vmem:[%s6261_s2 + $0x4] sm:$0xf0] }
  0x17   : > { %551 = vmatpush.bf16.msra.mxu0 %v3294_v16  ;;  %857 = vmatpush.bf16.msra.mxu2 %v3294_v16  ;;  %v3266_v41 = vor.u32 %v3383_v38, %v3263_v39  ;;  %s3182_s10 = sshll.u32 %s6492_s11, 2  ;;  %v3381_v44 = vld [vmem:[%s6261_s2 + $0x4] sm:$0xf]  ;;  %v3255_v45 = vld [vmem:[%s6261_s2 + $0x8] sm:$0xf0]  ;;  %v3254_v46 = vor.u32 %v3382_v43, %v3253_v42  ;;  %s3185_s25 = sshll.u32 %s6494_s15, 3 }
  0x18   : > { %640 = vmatpush.bf16.msra.mxu1 %v3298_v17  ;;  %946 = vmatpush.bf16.msra.mxu3 %v3298_v17  ;;  %s3882_s22 = scalar_lea.vmem %s6259_s0, %s3182_s10  ;;  %s3887_s11 = scalar_lea.vmem %s6260_s1, %s3182_s10  ;;  %v3258_v47 = vor.u32 %v3381_v44, %v3255_v45 }
  0x19   : > { %v3397_v48 = vld [vmem:[%s3882_s22] sm:$0xff]  ;;  %v3398_v50 = vld [vmem:[%s3882_s22 + $0x8] sm:$0xff]  ;;  %v3399_v52 = vld [vmem:[%s3882_s22 + $0x10] sm:$0xff]  ;;  %s252_s28 = scalar_lea.vmem %s6262_s3, %s3185_s25  ;;  %s256_s6 = scalar_lea.vmem %s6263_s4, %s3185_s25 }
  0x1a   : > { %v3413_v49 = vld [vmem:[%s3887_s11] sm:$0xff]  ;;  %v3414_v51 = vld [vmem:[%s3887_s11 + $0x8] sm:$0xff]  ;;  %v3415_v53 = vld [vmem:[%s3887_s11 + $0x10] sm:$0xff] }
  0x1b   : > { %552 = vmatpush.bf16.msra.mxu0 %v3286_v22  ;;  %858 = vmatpush.bf16.msra.mxu2 %v3286_v22  ;;  %v3400_v54 = vld [vmem:[%s3882_s22 + $0x18] sm:$0xff]  ;;  %v3401_v56 = vld [vmem:[%s3882_s22 + $0x20] sm:$0xff]  ;;  %v3402_v58 = vld [vmem:[%s3882_s22 + $0x28] sm:$0xff] }
  0x1c   : > { %641 = vmatpush.bf16.msra.mxu1 %v3290_v23  ;;  %947 = vmatpush.bf16.msra.mxu3 %v3290_v23  ;;  %v3416_v55 = vld [vmem:[%s3887_s11 + $0x18] sm:$0xff]  ;;  %v3417_v57 = vld [vmem:[%s3887_s11 + $0x20] sm:$0xff]  ;;  %v3418_v59 = vld [vmem:[%s3887_s11 + $0x28] sm:$0xff] }
  0x1d   : > { %v3403_v60 = vld [vmem:[%s3882_s22 + $0x30] sm:$0xff]  ;;  %v3404_v62 = vld [vmem:[%s3882_s22 + $0x38] sm:$0xff]  ;;  %v3405_v0 = vld [vmem:[%s3882_s22 + $0x40] sm:$0xff] }
  0x1e   : > { %v3419_v61 = vld [vmem:[%s3887_s11 + $0x30] sm:$0xff]  ;;  %v3420_v63 = vld [vmem:[%s3887_s11 + $0x38] sm:$0xff]  ;;  %v3421_v1 = vld [vmem:[%s3887_s11 + $0x40] sm:$0xff] }
  0x1f   : > { %553 = vmatpush.bf16.msra.mxu0 %v3278_v28  ;;  %859 = vmatpush.bf16.msra.mxu2 %v3278_v28  ;;  %v3406_v22 = vld [vmem:[%s3882_s22 + $0x48] sm:$0xff] }
  0x20   : > { %642 = vmatpush.bf16.msra.mxu1 %v3282_v29  ;;  %948 = vmatpush.bf16.msra.mxu3 %v3282_v29  ;;  %v3422_v23 = vld [vmem:[%s3887_s11 + $0x48] sm:$0xff] }
  0x23   : > { %554 = vmatpush.bf16.msra.mxu0 %v3270_v34  ;;  %860 = vmatpush.bf16.msra.mxu2 %v3270_v34 }
  0x24   : > { %643 = vmatpush.bf16.msra.mxu1 %v3274_v35  ;;  %949 = vmatpush.bf16.msra.mxu3 %v3274_v35 }
  0x27   : > { %555 = vmatpush.bf16.msra.mxu0 %v3262_v40  ;;  %861 = vmatpush.bf16.msra.mxu2 %v3262_v40 }
  0x28   : > { %644 = vmatpush.bf16.msra.mxu1 %v3266_v41  ;;  %950 = vmatpush.bf16.msra.mxu3 %v3266_v41 }
  0x2b   : > { %556 = vmatpush.bf16.msra.mxu0 %v3254_v46  ;;  %862 = vmatpush.bf16.msra.mxu2 %v3254_v46 }
  0x2c   : > { %645 = vmatpush.bf16.msra.mxu1 %v3258_v47  ;;  %951 = vmatpush.bf16.msra.mxu3 %v3258_v47 }
  0x2e   : > { %557 = vmatmul.bf16.vlgmr.msra.gmra.mxu0 %v3397_v48  ;;  %863 = vmatmul.bf16.vlgmr.msra.gmra.mxu2 %v3413_v49 }
  0x2f   : > { %646 = vmatmul.bf16.vlgmr.msra.gmra.mxu1 %v3397_v48  ;;  %952 = vmatmul.bf16.vlgmr.msra.gmra.mxu3 %v3413_v49 }
  0x3e   : > { %562 = vmatmul.bf16.gmra.mxu0 %v3398_v50  ;;  %868 = vmatmul.bf16.gmra.mxu2 %v3414_v51 }
  0x3f   : > { %651 = vmatmul.bf16.gmra.mxu1 %v3398_v50  ;;  %957 = vmatmul.bf16.gmra.mxu3 %v3414_v51 }
  0x4e   : > { %567 = vmatmul.bf16.gmra.mxu0 %v3399_v52  ;;  %873 = vmatmul.bf16.gmra.mxu2 %v3415_v53 }
  0x4f   : > { %656 = vmatmul.bf16.gmra.mxu1 %v3399_v52  ;;  %962 = vmatmul.bf16.gmra.mxu3 %v3415_v53 }
  0x5e   : > { %572 = vmatmul.bf16.gmra.mxu0 %v3400_v54  ;;  %878 = vmatmul.bf16.gmra.mxu2 %v3416_v55 }
  0x5f   : > { %661 = vmatmul.bf16.gmra.mxu1 %v3400_v54  ;;  %967 = vmatmul.bf16.gmra.mxu3 %v3416_v55 }
  0x6e   : > { %577 = vmatmul.bf16.gmra.mxu0 %v3401_v56  ;;  %883 = vmatmul.bf16.gmra.mxu2 %v3417_v57 }
  0x6f   : > { %666 = vmatmul.bf16.gmra.mxu1 %v3401_v56  ;;  %972 = vmatmul.bf16.gmra.mxu3 %v3417_v57 }
  0x7e   : > { %582 = vmatmul.bf16.gmra.mxu0 %v3402_v58  ;;  %888 = vmatmul.bf16.gmra.mxu2 %v3418_v59 }
  0x7f   : > { %671 = vmatmul.bf16.gmra.mxu1 %v3402_v58  ;;  %977 = vmatmul.bf16.gmra.mxu3 %v3418_v59 }
  0x8e   : > { %587 = vmatmul.bf16.gmra.mxu0 %v3403_v60  ;;  %893 = vmatmul.bf16.gmra.mxu2 %v3419_v61 }
  0x8f   : > { %676 = vmatmul.bf16.gmra.mxu1 %v3403_v60  ;;  %982 = vmatmul.bf16.gmra.mxu3 %v3419_v61 }
  0x9e   : > { %592 = vmatmul.bf16.gmra.mxu0 %v3404_v62  ;;  %898 = vmatmul.bf16.gmra.mxu2 %v3420_v63 }
  0x9f   : > { %681 = vmatmul.bf16.gmra.mxu1 %v3404_v62  ;;  %987 = vmatmul.bf16.gmra.mxu3 %v3420_v63 }
  0xab   : > { %v558_v2 = vpop.f32.mrf.mxu0 }
  0xac   : > { %v1033_v3 = vmul.f32 %v558_v2, %v558_v2  ;;  %v647_v4 = vpop.f32.mrf.mxu1 }
  0xad   : > { %v1065_v5 = vmul.f32 %v647_v4, %v647_v4 }
  0xae   : > { %597 = vmatmul.bf16.gmra.mxu0 %v3405_v0  ;;  %903 = vmatmul.bf16.gmra.mxu2 %v3421_v1 }
  0xaf   : > { %v3907_v6 = vadd.f32 %v1065_v5, %v1033_v3  ;;  %686 = vmatmul.bf16.gmra.mxu1 %v3405_v0  ;;  %992 = vmatmul.bf16.gmra.mxu3 %v3421_v1 }
  0xb1   : > { %3457 = vrsqrt.f32 %v3907_v6  ;;  %v864_v7 = vpop.f32.mrf.mxu2  ;;  %vm1136_vm0 = vcmp.eq.f32.partialorder %v3907_v6, inf  ;;  %vm1138_vm1 = vcmp.eq.f32.partialorder %v3907_v6, 0.0  ;;  %v1139_v57 = vand.u32 2147483648, %v3907_v6 }
  0xb2   : > { %v1513_v8 = vmul.f32 %v864_v7, %v864_v7  ;;  %v953_v9 = vpop.f32.mrf.mxu3 }
  0xb3   : > { %v1545_v10 = vmul.f32 %v953_v9, %v953_v9  ;;  %v560_v11 = vpop.f32.mrf.mxu0  ;;  %v3423_v9 = vld [vmem:[%s3887_s11 + $0x50] sm:$0xff] }
  0xb4   : > { %v1034_v12 = vmul.f32 %v560_v11, %v560_v11  ;;  %v649_v13 = vpop.f32.mrf.mxu1 }
  0xb5   : > { %v3910_v14 = vadd.f32 %v1545_v10, %v1513_v8  ;;  %v1066_v15 = vmul.f32 %v649_v13, %v649_v13  ;;  %v3407_v8 = vld [vmem:[%s3882_s22 + $0x50] sm:$0xff] }
  0xb7   : > { %v3458_v16 = vpop.eup %3457  ;;  %3459 = vrsqrt.f32 %v3910_v14  ;;  %v3914_v18 = vadd.f32 %v1066_v15, %v1034_v12  ;;  %vm1616_vm2 = vcmp.eq.f32.partialorder %v3910_v14, inf  ;;  %v1619_v0 = vand.u32 2147483648, %v3910_v14 }
  0xb8   : > { %v1130_v17 = vmul.f32 %v3458_v16, %v3907_v6  ;;  %vm1618_vm3 = vcmp.eq.f32.partialorder %v3910_v14, 0.0 }
  0xb9   : > { %v866_v19 = vpop.f32.mrf.mxu2  ;;  %3461 = vrsqrt.f32 %v3914_v18  ;;  %vm1148_vm4 = vcmp.eq.f32.partialorder %v3914_v18, inf  ;;  %vm1150_vm5 = vcmp.eq.f32.partialorder %v3914_v18, 0.0 }
  0xba   : > { %v1131_v20 = vmul.f32 %v3458_v16, %v1130_v17  ;;  %v955_v21 = vpop.f32.mrf.mxu3  ;;  %v1514_v24 = vmul.f32 %v866_v19, %v866_v19 }
  0xbb   : > { %v1546_v25 = vmul.f32 %v955_v21, %v955_v21  ;;  %v563_v26 = vpop.f32.mrf.mxu0 }
  0xbc   : > { %v1132_v27 = vmul.f32 0.5, %v1131_v20  ;;  %v1035_v28 = vmul.f32 %v563_v26, %v563_v26  ;;  %v652_v29 = vpop.f32.mrf.mxu1 }
  0xbd   : > { %v3460_v30 = vpop.eup %3459  ;;  %v3919_v31 = vadd.f32 %v1546_v25, %v1514_v24  ;;  %v1067_v32 = vmul.f32 %v652_v29, %v652_v29 }
  0xbe   : > { %v1133_v33 = vsub.f32 1.5, %v1132_v27  ;;  %v1610_v34 = vmul.f32 %v3460_v30, %v3910_v14  ;;  %602 = vmatmul.bf16.gmra.mxu0 %v3406_v22  ;;  %908 = vmatmul.bf16.gmra.mxu2 %v3422_v23 }
  0xbf   : > { %3463 = vrsqrt.f32 %v3919_v31  ;;  %691 = vmatmul.bf16.gmra.mxu1 %v3406_v22  ;;  %997 = vmatmul.bf16.gmra.mxu3 %v3422_v23  ;;  %v3462_v35 = vpop.eup %3461  ;;  %v3923_v38 = vadd.f32 %v1067_v32, %v1035_v28  ;;  %vm1628_vm6 = vcmp.eq.f32.partialorder %v3919_v31, inf  ;;  %vm1630_vm7 = vcmp.eq.f32.partialorder %v3919_v31, 0.0 }
  0xc0   : > { %v1134_v36 = vmul.f32 %v3458_v16, %v1133_v33  ;;  %v1611_v37 = vmul.f32 %v3460_v30, %v1610_v34  ;;  %v1142_v39 = vmul.f32 %v3462_v35, %v3914_v18  ;;  %v1631_v29 = vand.u32 2147483648, %v3919_v31 }
  0xc1   : > { %v869_v40 = vpop.f32.mrf.mxu2  ;;  %3465 = vrsqrt.f32 %v3923_v38  ;;  %vm1160_vm8 = vcmp.eq.f32.partialorder %v3923_v38, inf  ;;  %vm1162_vm9 = vcmp.eq.f32.partialorder %v3923_v38, 0.0 }
  0xc2   : > { %v1612_v41 = vmul.f32 0.5, %v1611_v37  ;;  %v958_v42 = vpop.f32.mrf.mxu3  ;;  %v1143_v43 = vmul.f32 %v3462_v35, %v1142_v39  ;;  %v1515_v44 = vmul.f32 %v869_v40, %v869_v40  ;;  %v1135_v46 = vmul.f32 %v1134_v36, %v3907_v6 }
  0xc3   : > { %v565_v45 = vpop.f32.mrf.mxu0  ;;  %v1547_v48 = vmul.f32 %v958_v42, %v958_v42  ;;  %v1163_v36 = vand.u32 2147483648, %v3923_v38 }
  0xc4   : > { %v1613_v47 = vsub.f32 1.5, %v1612_v41  ;;  %v1036_v49 = vmul.f32 %v565_v45, %v565_v45  ;;  %v654_v50 = vpop.f32.mrf.mxu1  ;;  %v1144_v52 = vmul.f32 0.5, %v1143_v43  ;;  %v1137_v61 = vsel %vm1136_vm0, %v3907_v6, %v1135_v46 }
  0xc5   : > { %v3464_v51 = vpop.eup %3463  ;;  %v1068_v53 = vmul.f32 %v654_v50, %v654_v50  ;;  %v3930_v56 = vadd.f32 %v1547_v48, %v1515_v44  ;;  %v1140_v10 = vsel %vm1138_vm1, %v1139_v57, %v1137_v61  ;;  %v1151_v6 = vand.u32 2147483648, %v3914_v18 }
  0xc6   : > { %v1614_v54 = vmul.f32 %v3460_v30, %v1613_v47  ;;  %v1622_v55 = vmul.f32 %v3464_v51, %v3919_v31  ;;  %v1145_v58 = vsub.f32 1.5, %v1144_v52  ;;  %v2153_v46 = vadd.f32 1e-07, %v1140_v10 }
  0xc7   : > { %v3934_v59 = vadd.f32 %v1068_v53, %v1036_v49  ;;  %v3466_v60 = vpop.eup %3465  ;;  %3467 = vrsqrt.f32 %v3930_v56  ;;  %vm1640_vm10 = vcmp.eq.f32.partialorder %v3930_v56, inf  ;;  %vm1642_vm12 = vcmp.eq.f32.partialorder %v3930_v56, 0.0 }
  0xc8   : > { %v1615_v62 = vmul.f32 %v1614_v54, %v3910_v14  ;;  %v1623_v63 = vmul.f32 %v3464_v51, %v1622_v55  ;;  %v1146_v1 = vmul.f32 %v3462_v35, %v1145_v58  ;;  %v1154_v2 = vmul.f32 %v3466_v60, %v3923_v38 }
  0xc9   : > { %3469 = vrsqrt.f32 %v3934_v59  ;;  %v871_v5 = vpop.f32.mrf.mxu2  ;;  %vm1172_vm0 = vcmp.eq.f32.partialorder %v3934_v59, inf  ;;  %vm1174_vm1 = vcmp.eq.f32.partialorder %v3934_v59, 0.0 }
  0xca   : > { %v1617_v3 = vsel %vm1616_vm2, %v3910_v14, %v1615_v62  ;;  %v1624_v4 = vmul.f32 0.5, %v1623_v63  ;;  %v960_v7 = vpop.f32.mrf.mxu3  ;;  %v1155_v12 = vmul.f32 %v3466_v60, %v1154_v2  ;;  %v1147_v16 = vmul.f32 %v1146_v1, %v3914_v18 }
  0xcb   : > { %v1620_v11 = vsel %vm1618_vm3, %v1619_v0, %v1617_v3  ;;  %v1516_v14 = vmul.f32 %v871_v5, %v871_v5  ;;  %v1548_v20 = vmul.f32 %v960_v7, %v960_v7  ;;  %v568_v39 = vpop.f32.mrf.mxu0  ;;  %v3408_v5 = vld [vmem:[%s3882_s22 + $0x58] sm:$0xff] }
  0xcc   : > { %v2025_v13 = vsub.f32 %v1140_v10, %v1620_v11  ;;  %v3949_v15 = vadd.f32 1e-07, %v1620_v11  ;;  %v1625_v17 = vsub.f32 1.5, %v1624_v4  ;;  %v1156_v19 = vmul.f32 0.5, %v1155_v12  ;;  %v657_v40 = vpop.f32.mrf.mxu1  ;;  %v3424_v7 = vld [vmem:[%s3887_s11 + $0x58] sm:$0xff] }
  0xcd   : > { %v3468_v21 = vpop.eup %3467  ;;  %v1149_v25 = vsel %vm1148_vm4, %v3914_v18, %v1147_v16  ;;  %v3962_v27 = vadd.f32 %v1548_v20, %v1516_v14  ;;  %v1037_v44 = vmul.f32 %v568_v39, %v568_v39  ;;  %v1069_v45 = vmul.f32 %v657_v40, %v657_v40 }
  0xce   : > { %3471 = vrcp.f32 %v3949_v15  ;;  %607 = vmatmul.bf16.gmra.mxu0 %v3407_v8  ;;  %913 = vmatmul.bf16.gmra.mxu2 %v3423_v9  ;;  %v1626_v22 = vmul.f32 %v3464_v51, %v1625_v17  ;;  %v1157_v23 = vsub.f32 1.5, %v1156_v19  ;;  %v1634_v26 = vmul.f32 %v3468_v21, %v3930_v56 }
  0xcf   : > { %696 = vmatmul.bf16.gmra.mxu1 %v3407_v8  ;;  %1002 = vmatmul.bf16.gmra.mxu3 %v3423_v9  ;;  %v3957_v24 = vpop.eup %3469  ;;  %3473 = vrsqrt.f32 %v3962_v27  ;;  %v1152_v34 = vsel %vm1150_vm5, %v1151_v6, %v1149_v25  ;;  %v3984_v52 = vadd.f32 %v1069_v45, %v1037_v44  ;;  %v2057_v53 = vand.u32 2147483647, %v2025_v13 }
  0xd0   : > { %v1627_v28 = vmul.f32 %v1626_v22, %v3919_v31  ;;  %v1166_v30 = vmul.f32 %v3957_v24, %v3934_v59  ;;  %v1158_v32 = vmul.f32 %v3466_v60, %v1157_v23  ;;  %v1635_v33 = vmul.f32 %v3468_v21, %v1634_v26 }
  0xd1   : > { %v2226_v57 = vand.u32 2147483647, %v3949_v15  ;;  %v2228_v58 = vand.u32 2147483648, %v3949_v15  ;;  %v874_v0 = vpop.f32.mrf.mxu2  ;;  %vm2222_vm13 = vweird.f32 %v3949_v15  ;;  %v1643_v9 = vand.u32 2147483648, %v3930_v56 }
  0xd2   : > { %v1629_v35 = vsel %vm1628_vm6, %v3919_v31, %v1627_v28  ;;  %v1167_v37 = vmul.f32 %v3957_v24, %v1166_v30  ;;  %v1636_v43 = vmul.f32 0.5, %v1635_v33  ;;  %v1159_v49 = vmul.f32 %v1158_v32, %v3923_v38  ;;  %v963_v4 = vpop.f32.mrf.mxu3 }
  0xd3   : > { %v1632_v42 = vsel %vm1630_vm7, %v1631_v29, %v1629_v35  ;;  %vm2227_vm15 = vcmp.eq.f32.partialorder %v2226_v57, 8.507059e+37  ;;  %v2229_v10 = vor.u32 1.1754944e-38, %v2228_v58  ;;  %v1175_v6 = vand.u32 2147483648, %v3934_v59 }
  0xd4   : > { %v3472_v41 = vpop.eup %3471  ;;  %v2026_v47 = vsub.f32 %v1152_v34, %v1632_v42  ;;  %v3981_v48 = vadd.f32 1e-07, %v1632_v42  ;;  %v1637_v50 = vsub.f32 1.5, %v1636_v43  ;;  %v1168_v51 = vmul.f32 0.5, %v1167_v37  ;;  %v659_v35 = vpop.f32.mrf.mxu1 }
  0xd5   : > { %v2218_v18 = vmul.f32 %v3472_v41, %v3949_v15  ;;  %v3987_v31 = vpop.eup %3473  ;;  %vm2223_vm11 = vweird.f32 %v3472_v41  ;;  %v1161_v1 = vsel %vm1160_vm8, %v3923_v38, %v1159_v49  ;;  %v2154_v23 = vadd.f32 1e-07, %v1152_v34  ;;  %v570_v34 = vpop.f32.mrf.mxu0 }
  0xd6   : > { %v2058_v55 = vand.u32 2147483647, %v2026_v47  ;;  %3475 = vrcp.f32 %v3981_v48  ;;  %v1638_v60 = vmul.f32 %v3468_v21, %v1637_v50  ;;  %v1169_v63 = vsub.f32 1.5, %v1168_v51  ;;  %vm2224_vm14 = vmor %vm2222_vm13, %vm2223_vm11 }
  0xd7   : > { %v2219_v54 = vsub.f32 1.0, %v2218_v18  ;;  %v1646_v3 = vmul.f32 %v3987_v31, %v3962_v27  ;;  %3477 = vrsqrt.f32 %v3984_v52  ;;  %v1164_v17 = vsel %vm1162_vm9, %v1163_v36, %v1161_v1 }
  0xd8   : > { %v2956_v62 = vadd.f32 %v2058_v55, %v2057_v53  ;;  %v1639_v2 = vmul.f32 %v1638_v60, %v3930_v56  ;;  %v1170_v19 = vmul.f32 %v3957_v24, %v1169_v63  ;;  %v1517_v24 = vmul.f32 %v874_v0, %v874_v0 }
  0xd9   : > { %v2220_v61 = vmul.f32 %v3472_v41, %v2219_v54  ;;  %v1647_v12 = vmul.f32 %v3987_v31, %v1646_v3  ;;  %v1549_v28 = vmul.f32 %v963_v4, %v963_v4  ;;  %v2241_v30 = vand.u32 2147483647, %v3981_v48 }
  0xda   : > { %v1641_v11 = vsel %vm1640_vm10, %v3930_v56, %v1639_v2  ;;  %v2243_v32 = vand.u32 2147483648, %v3981_v48  ;;  %v1171_v33 = vmul.f32 %v1170_v19, %v3934_v59  ;;  %vm2237_vm3 = vweird.f32 %v3981_v48 }
  0xdb   : > { %v2221_v8 = vadd.f32 %v3472_v41, %v2220_v61  ;;  %v1644_v15 = vsel %vm1642_vm12, %v1643_v9, %v1641_v11  ;;  %v1648_v38 = vmul.f32 0.5, %v1647_v12  ;;  %vm1652_vm4 = vcmp.eq.f32.partialorder %v3962_v27, inf }
  0xdc   : > { %v3476_v13 = vpop.eup %3475  ;;  %v2027_v21 = vsub.f32 %v1164_v17, %v1644_v15  ;;  %v4017_v25 = vadd.f32 1e-07, %v1644_v15  ;;  %v4027_v43 = vadd.f32 %v1549_v28, %v1517_v24  ;;  %v1038_v44 = vmul.f32 %v570_v34, %v570_v34 }
  0xdd   : > { %v2225_v16 = vsel %vm2224_vm14, %v3472_v41, %v2221_v8  ;;  %v2233_v20 = vmul.f32 %v3476_v13, %v3981_v48  ;;  %v3478_v29 = vpop.eup %3477  ;;  %vm2238_vm2 = vweird.f32 %v3476_v13  ;;  %v1649_v39 = vsub.f32 1.5, %v1648_v38  ;;  %v876_v41 = vpop.f32.mrf.mxu2  ;;  %v3409_v38 = vld [vmem:[%s3882_s22 + $0x60] sm:$0xff] }
  0xde   : > { %v2230_v14 = vsel %vm2227_vm15, %v2229_v10, %v2225_v16  ;;  %612 = vmatmul.bf16.gmra.mxu0 %v3408_v5  ;;  %918 = vmatmul.bf16.gmra.mxu2 %v3424_v7  ;;  %v2059_v26 = vand.u32 2147483647, %v2027_v21  ;;  %v1178_v40 = vmul.f32 %v3478_v29, %v3984_v52  ;;  %v1070_v45 = vmul.f32 %v659_v35, %v659_v35  ;;  %vm2239_vm5 = vmor %vm2237_vm3, %vm2238_vm2  ;;  %v662_v35 = vpop.f32.mrf.mxu1 }
  0xdf   : > { %v2231_v22 = vmul.f32 %v2230_v14, %v2153_v46  ;;  %701 = vmatmul.bf16.gmra.mxu1 %v3408_v5  ;;  %1007 = vmatmul.bf16.gmra.mxu3 %v3424_v7  ;;  %v2234_v56 = vsub.f32 1.0, %v2233_v20  ;;  %v965_v46 = vpop.f32.mrf.mxu3  ;;  %vm2242_vm6 = vcmp.eq.f32.partialorder %v2241_v30, 8.507059e+37  ;;  %v2244_v18 = vor.u32 1.1754944e-38, %v2243_v32 }
  0xe0   : > { %v2957_v37 = vadd.f32 %v2956_v62, %v2059_v26  ;;  %v1650_v47 = vmul.f32 %v3987_v31, %v1649_v39  ;;  %v1179_v49 = vmul.f32 %v3478_v29, %v1178_v40  ;;  %v1173_v48 = vsel %vm1172_vm0, %v3934_v59, %v1171_v33 }
  0xe1   : > { %3479 = vlog2.f32 %v2231_v22  ;;  %v2235_v36 = vmul.f32 %v3476_v13, %v2234_v56  ;;  %v1518_v51 = vmul.f32 %v876_v41, %v876_v41  ;;  %v1550_v58 = vmul.f32 %v965_v46, %v965_v46  ;;  %v3425_v56 = vld [vmem:[%s3887_s11 + $0x60] sm:$0xff] }
  0xe2   : > { %3481 = vrcp.f32 %v4017_v25  ;;  %v1651_v55 = vmul.f32 %v1650_v47, %v3962_v27  ;;  %v1180_v57 = vmul.f32 0.5, %v1179_v49  ;;  %vm1654_vm7 = vcmp.eq.f32.partialorder %v3962_v27, 0.0 }
  0xe3   : > { %v2236_v42 = vadd.f32 %v3476_v13, %v2235_v36  ;;  %3483 = vrsqrt.f32 %v4027_v43  ;;  %v1655_v31 = vand.u32 2147483648, %v3962_v27  ;;  %v4037_v62 = vadd.f32 %v1070_v45, %v1038_v44 }
  0xe4   : > { %v2155_v0 = vadd.f32 1e-07, %v1164_v17  ;;  %v1653_v2 = vsel %vm1652_vm4, %v3962_v27, %v1651_v55  ;;  %v1176_v3 = vsel %vm1174_vm1, %v1175_v6, %v1173_v48  ;;  %v1181_v5 = vsub.f32 1.5, %v1180_v57 }
  0xe5   : > { %v2240_v50 = vsel %vm2239_vm5, %v3476_v13, %v2236_v42  ;;  %v1656_v4 = vsel %vm1654_vm7, %v1655_v31, %v1653_v2  ;;  %v4047_v10 = vadd.f32 %v1550_v58, %v1518_v51  ;;  %v2256_v12 = vand.u32 2147483647, %v4017_v25  ;;  %v879_v36 = vpop.f32.mrf.mxu2 }
  0xe6   : > { %v2245_v54 = vsel %vm2242_vm6, %v2244_v18, %v2240_v50  ;;  %v2028_v8 = vsub.f32 %v1176_v3, %v1656_v4  ;;  %v4045_v9 = vadd.f32 1e-07, %v1656_v4  ;;  %v2258_v13 = vand.u32 2147483648, %v4017_v25 }
  0xe7   : > { %v3480_v53 = vpop.eup %3479  ;;  %v2246_v61 = vmul.f32 %v2245_v54, %v2154_v23  ;;  %v1182_v17 = vmul.f32 %v3478_v29, %v1181_v5  ;;  %vm1184_vm9 = vcmp.eq.f32.partialorder %v3984_v52, inf  ;;  %v1187_v15 = vand.u32 2147483648, %v3984_v52  ;;  %v968_v47 = vpop.f32.mrf.mxu3 }
  0xe8   : > { %v3482_v60 = vpop.eup %3481  ;;  %v2698_v63 = vmul.f32 0.6931472, %v3480_v53  ;;  %v2060_v59 = vand.u32 2147483647, %v2028_v8  ;;  %vm2252_vm10 = vweird.f32 %v4017_v25  ;;  %vm2257_vm12 = vcmp.eq.f32.partialorder %v2256_v12, 8.507059e+37 }
  0xe9   : > { %v2248_v1 = vmul.f32 %v3482_v60, %v4017_v25  ;;  %3485 = vlog2.f32 %v2246_v61  ;;  %v3484_v11 = vpop.eup %3483  ;;  %vm2253_vm8 = vweird.f32 %v3482_v60  ;;  %v2259_v6 = vor.u32 1.1754944e-38, %v2258_v13  ;;  %v573_v25 = vpop.f32.mrf.mxu0 }
  0xea   : > { %3487 = vrsqrt.f32 %v4037_v62  ;;  %v2761_v27 = vmul.f32 0.4342945, %v2698_v63  ;;  %v1658_v19 = vmul.f32 %v3484_v11, %v4027_v43  ;;  %v4057_v20 = vadd.f32 %v2957_v37, %v2060_v59  ;;  %vm2254_vm11 = vmor %vm2252_vm10, %vm2253_vm8 }
  0xeb   : > { %v2249_v7 = vsub.f32 1.0, %v2248_v1  ;;  %3489 = vrcp.f32 %v4045_v9  ;;  %v4061_v22 = vadd.f32 1e-07, %v1176_v3  ;;  %vm1186_vm13 = vcmp.eq.f32.partialorder %v3984_v52, 0.0 }
  0xec   : > { %3491 = vrsqrt.f32 %v4047_v10  ;;  %v1659_v23 = vmul.f32 %v3484_v11, %v1658_v19  ;;  %v2825_v26 = vmul.f32 %v2761_v27, %v2761_v27  ;;  %vm1664_vm14 = vcmp.eq.f32.partialorder %v4027_v43, inf }
  0xed   : > { %v2250_v16 = vmul.f32 %v3482_v60, %v2249_v7  ;;  %v2271_v32 = vand.u32 2147483647, %v4045_v9  ;;  %v1183_v33 = vmul.f32 %v1182_v17, %v3984_v52  ;;  %vm1666_vm15 = vcmp.eq.f32.partialorder %v4027_v43, 0.0 }
  0xee   : > { %v1660_v34 = vmul.f32 0.5, %v1659_v23  ;;  %617 = vmatmul.bf16.gmra.mxu0 %v3409_v38  ;;  %v1039_v42 = vmul.f32 %v573_v25, %v573_v25  ;;  %923 = vmatmul.bf16.gmra.mxu2 %v3425_v56  ;;  %v2273_v45 = vand.u32 2147483648, %v4045_v9  ;;  %v1071_v18 = vmul.f32 %v662_v35, %v662_v35 }
  0xef   : > { %v2251_v14 = vadd.f32 %v3482_v60, %v2250_v16  ;;  %v3486_v21 = vpop.eup %3485  ;;  %706 = vmatmul.bf16.gmra.mxu1 %v3409_v38  ;;  %1012 = vmatmul.bf16.gmra.mxu3 %v3425_v56  ;;  %v1519_v51 = vmul.f32 %v879_v36, %v879_v36  ;;  %v1551_v31 = vmul.f32 %v968_v47, %v968_v47  ;;  %vm2267_vm1 = vweird.f32 %v4045_v9 }
  0xf0   : > { %v2700_v24 = vmul.f32 0.6931472, %v3486_v21  ;;  %v4067_v29 = vpop.eup %3487  ;;  %v1661_v46 = vsub.f32 1.5, %v1660_v34  ;;  %v4078_v57 = vadd.f32 %v1071_v18, %v1039_v42  ;;  %vm4085_vm2 = vcmp.eq.f32.partialorder %v2271_v32, 8.507059e+37  ;;  %v664_v21 = vpop.f32.mrf.mxu1 }
  0xf1   : > { %v2255_v28 = vsel %vm2254_vm11, %v3482_v60, %v2251_v14  ;;  %v3490_v37 = vpop.eup %3489  ;;  %v1190_v41 = vmul.f32 %v4067_v29, %v4037_v62  ;;  %v1185_v60 = vsel %vm1184_vm9, %v3984_v52, %v1183_v33  ;;  %v1667_v3 = vand.u32 2147483648, %v4027_v43  ;;  %v575_v14 = vpop.f32.mrf.mxu0 }
  0xf2   : > { %v2260_v30 = vsel %vm2257_vm12, %v2259_v6, %v2255_v28  ;;  %v2762_v39 = vmul.f32 0.4342945, %v2700_v24  ;;  %v2263_v44 = vmul.f32 %v3490_v37, %v4045_v9  ;;  %v3492_v49 = vpop.eup %3491  ;;  %v1662_v54 = vmul.f32 %v3484_v11, %v1661_v46 }
  0xf3   : > { %v2261_v40 = vmul.f32 %v2260_v30, %v2155_v0  ;;  %v1191_v48 = vmul.f32 %v4067_v29, %v1190_v41  ;;  %v1670_v55 = vmul.f32 %v3492_v49, %v4047_v10  ;;  %vm2268_vm0 = vweird.f32 %v3490_v37 }
  0xf4   : > { %v2826_v50 = vmul.f32 %v2762_v39, %v2762_v39  ;;  %v2264_v53 = vsub.f32 1.0, %v2263_v44  ;;  %v1663_v0 = vmul.f32 %v1662_v54, %v4027_v43  ;;  %v4094_v8 = vadd.f32 %v1551_v31, %v1519_v51  ;;  %vm2269_vm3 = vmor %vm2267_vm1, %vm2268_vm0 }
  0xf5   : > { %3493 = vlog2.f32 %v2261_v40  ;;  %v1192_v61 = vmul.f32 0.5, %v1191_v48  ;;  %v1671_v1 = vmul.f32 %v3492_v49, %v1670_v55  ;;  %v2274_v12 = vor.u32 1.1754944e-38, %v2273_v45 }
  0xf6   : > { %v3030_v58 = vadd.f32 %v2826_v50, %v2825_v26  ;;  %v2265_v63 = vmul.f32 %v3490_v37, %v2264_v53  ;;  %3495 = vrsqrt.f32 %v4078_v57  ;;  %v1665_v5 = vsel %vm1664_vm14, %v4027_v43, %v1663_v0 }
  0xf7   : > { %v1672_v7 = vmul.f32 0.5, %v1671_v1  ;;  %v1188_v9 = vsel %vm1186_vm13, %v1187_v15, %v1185_v60  ;;  %v1668_v13 = vsel %vm1666_vm15, %v1667_v3, %v1665_v5  ;;  %v1193_v27 = vsub.f32 1.5, %v1192_v61  ;;  %v3410_v3 = vld [vmem:[%s3882_s22 + $0x68] sm:$0xff] }
  0xf8   : > { %v2266_v4 = vadd.f32 %v3490_v37, %v2265_v63  ;;  %v2029_v17 = vsub.f32 %v1188_v9, %v1668_v13  ;;  %v4102_v19 = vadd.f32 1e-07, %v1668_v13  ;;  %3497 = vrsqrt.f32 %v4094_v8  ;;  %v667_v51 = vpop.f32.mrf.mxu1 }
  0xf9   : > { %v1673_v23 = vsub.f32 1.5, %v1672_v7  ;;  %v1194_v56 = vmul.f32 %v4067_v29, %v1193_v27  ;;  %v1040_v26 = vmul.f32 %v575_v14, %v575_v14  ;;  %v1072_v24 = vmul.f32 %v664_v21, %v664_v21  ;;  %v881_v29 = vpop.f32.mrf.mxu2  ;;  %v578_v48 = vpop.f32.mrf.mxu0 }
  0xfa   : > { %v2270_v59 = vsel %vm2269_vm3, %v3490_v37, %v2266_v4  ;;  %v2061_v15 = vand.u32 2147483647, %v2029_v17  ;;  %3499 = vrcp.f32 %v4102_v19  ;;  %vm1196_vm4 = vcmp.eq.f32.partialorder %v4037_v62, inf  ;;  %v970_v37 = vpop.f32.mrf.mxu3  ;;  %v3426_v4 = vld [vmem:[%s3887_s11 + $0x68] sm:$0xff] }
  0xfb   : > { %v3494_v11 = vpop.eup %3493  ;;  %v2275_v6 = vsel %vm4085_vm2, %v2274_v12, %v2270_v59  ;;  %vm1198_vm5 = vcmp.eq.f32.partialorder %v4037_v62, 0.0  ;;  %v1674_v30 = vmul.f32 %v3492_v49, %v1673_v23  ;;  %vm1676_vm6 = vcmp.eq.f32.partialorder %v4047_v10, inf }
  0xfc   : > { %v2702_v16 = vmul.f32 0.6931472, %v3494_v11  ;;  %v2276_v52 = vmul.f32 %v2275_v6, %v4061_v22  ;;  %v3496_v43 = vpop.eup %3495  ;;  %v4111_v25 = vadd.f32 %v4057_v20, %v2061_v15  ;;  %v1199_v22 = vand.u32 2147483648, %v4037_v62 }
  0xfd   : > { %v1202_v33 = vmul.f32 %v3496_v43, %v4078_v57  ;;  %v1195_v35 = vmul.f32 %v1194_v56, %v4037_v62  ;;  %v1675_v36 = vmul.f32 %v1674_v30, %v4047_v10  ;;  %vm1678_vm7 = vcmp.eq.f32.partialorder %v4047_v10, 0.0 }
  0xfe   : > { %v2763_v38 = vmul.f32 0.4342945, %v2702_v16  ;;  %3501 = vlog2.f32 %v2276_v52  ;;  %v3498_v34 = vpop.eup %3497  ;;  %v4121_v20 = vadd.f32 %v1072_v24, %v1040_v26  ;;  %v2157_v40 = vadd.f32 1e-07, %v1188_v9  ;;  %622 = vmatmul.bf16.gmra.mxu0 %v3410_v3  ;;  %928 = vmatmul.bf16.gmra.mxu2 %v3426_v4 }
  0xff   : > { %v1679_v41 = vand.u32 2147483648, %v4047_v10  ;;  %v1203_v42 = vmul.f32 %v3496_v43, %v1202_v33  ;;  %v1682_v44 = vmul.f32 %v3498_v34, %v4094_v8  ;;  %vm1208_vm8 = vcmp.eq.f32.partialorder %v4078_v57, inf  ;;  %711 = vmatmul.bf16.gmra.mxu1 %v3410_v3  ;;  %1017 = vmatmul.bf16.gmra.mxu3 %v3426_v4 }
 0x100   : > { %v2827_v28 = vmul.f32 %v2763_v38, %v2763_v38  ;;  %v3500_v39 = vpop.eup %3499  ;;  %3503 = vrsqrt.f32 %v4121_v20  ;;  %v1520_v46 = vmul.f32 %v881_v29, %v881_v29  ;;  %vm2282_vm9 = vweird.f32 %v4102_v19 }
 0x101   : > { %v2278_v45 = vmul.f32 %v3500_v39, %v4102_v19  ;;  %v1677_v47 = vsel %vm1676_vm6, %v4047_v10, %v1675_v36  ;;  %v1204_v49 = vmul.f32 0.5, %v1203_v42  ;;  %v1683_v50 = vmul.f32 %v3498_v34, %v1682_v44  ;;  %v884_v52 = vpop.f32.mrf.mxu2 }
 0x102   : > { %v3031_v32 = vadd.f32 %v3030_v58, %v2827_v28  ;;  %v2286_v55 = vand.u32 2147483647, %v4102_v19  ;;  %v1197_v58 = vsel %vm1196_vm4, %v4037_v62, %v1195_v35  ;;  %v2288_v60 = vand.u32 2147483648, %v4102_v19  ;;  %v973_v15 = vpop.f32.mrf.mxu3 }
 0x103   : > { %v2279_v54 = vsub.f32 1.0, %v2278_v45  ;;  %v1205_v61 = vsub.f32 1.5, %v1204_v49  ;;  %v1684_v31 = vmul.f32 0.5, %v1683_v50  ;;  %v1552_v63 = vmul.f32 %v970_v37, %v970_v37 }
 0x104   : > { %v3502_v18 = vpop.eup %3501  ;;  %vm2283_vm10 = vweird.f32 %v3500_v39  ;;  %v4139_v2 = vsel %vm1678_vm7, %v1679_v41, %v1677_v47  ;;  %v4145_v5 = vsel %vm1198_vm5, %v1199_v22, %v1197_v58  ;;  %v1041_v11 = vmul.f32 %v578_v48, %v578_v48  ;;  %v669_v22 = vpop.f32.mrf.mxu1 }
 0x105   : > { %v2704_v53 = vmul.f32 0.6931472, %v3502_v18  ;;  %v2280_v1 = vmul.f32 %v3500_v39, %v2279_v54  ;;  %v1206_v7 = vmul.f32 %v3496_v43, %v1205_v61  ;;  %v1073_v12 = vmul.f32 %v667_v51, %v667_v51  ;;  %vm2284_vm12 = vmor %vm2282_vm9, %vm2283_vm10 }
 0x106   : > { %v4147_v9 = vpop.eup %3503  ;;  %vm4149_vm11 = vcmp.eq.f32.partialorder %v2286_v55, 8.507059e+37  ;;  %v1685_v10 = vsub.f32 1.5, %v1684_v31  ;;  %v2289_v62 = vor.u32 1.1754944e-38, %v2288_v60  ;;  %v2030_v59 = vsub.f32 %v4145_v5, %v4139_v2 }
 0x107   : > { %v2764_v0 = vmul.f32 0.4342945, %v2704_v53  ;;  %v2281_v27 = vadd.f32 %v3500_v39, %v2280_v1  ;;  %v1207_v17 = vmul.f32 %v1206_v7, %v4078_v57  ;;  %v1214_v14 = vmul.f32 %v4147_v9, %v4121_v20 }
 0x108   : > { %v1686_v23 = vmul.f32 %v3498_v34, %v1685_v10  ;;  %v4161_v38 = vadd.f32 %v1552_v63, %v1520_v46  ;;  %vm1210_vm13 = vcmp.eq.f32.partialorder %v4078_v57, 0.0  ;;  %v1211_v43 = vand.u32 2147483648, %v4078_v57 }
 0x109   : > { %v2828_v13 = vmul.f32 %v2764_v0, %v2764_v0  ;;  %v2285_v6 = vsel %vm2284_vm12, %v3500_v39, %v2281_v27  ;;  %v4167_v56 = vadd.f32 %v1073_v12, %v1041_v11  ;;  %v1209_v24 = vsel %vm1208_vm8, %v4078_v57, %v1207_v17  ;;  %v886_v57 = vpop.f32.mrf.mxu2 }
 0x10a   : > { %v2290_v19 = vsel %vm4149_vm11, %v2289_v62, %v2285_v6  ;;  %v1687_v28 = vmul.f32 %v1686_v23, %v4094_v8  ;;  %3505 = vrsqrt.f32 %v4161_v38  ;;  %vm1688_vm14 = vcmp.eq.f32.partialorder %v4094_v8, inf  ;;  %v975_v49 = vpop.f32.mrf.mxu3 }
 0x10b   : > { %v3032_v21 = vadd.f32 %v3031_v32, %v2828_v13  ;;  %v2291_v26 = vmul.f32 %v2290_v19, %v2157_v40  ;;  %vm1690_vm15 = vcmp.eq.f32.partialorder %v4094_v8, 0.0  ;;  %v1691_v30 = vand.u32 2147483648, %v4094_v8  ;;  %v580_v32 = vpop.f32.mrf.mxu0 }
 0x10c   : > { %v2062_v33 = vand.u32 2147483647, %v2030_v59  ;;  %v1689_v29 = vsel %vm1688_vm14, %v4094_v8, %v1687_v28  ;;  %v1215_v34 = vmul.f32 %v4147_v9, %v1214_v14  ;;  %v1212_v35 = vsel %vm1210_vm13, %v1211_v43, %v1209_v24  ;;  %v4189_v60 = vpop.f32.mrf.mxu1 }
 0x10d   : > { %3507 = vlog2.f32 %v2291_v26  ;;  %v1692_v36 = vsel %vm1690_vm15, %v1691_v30, %v1689_v29  ;;  %v1521_v18 = vmul.f32 %v884_v52, %v884_v52  ;;  %v1553_v47 = vmul.f32 %v973_v15, %v973_v15 }
 0x10e   : > { %v2031_v37 = vsub.f32 %v1212_v35, %v1692_v36  ;;  %v2191_v39 = vadd.f32 1e-07, %v1692_v36  ;;  %3509 = vrsqrt.f32 %v4167_v56  ;;  %v2960_v41 = vadd.f32 %v4111_v25, %v2062_v33  ;;  %v3427_v36 = vld [vmem:[%s3887_s11 + $0x70] sm:$0xff] }
 0x10f   : > { %v1216_v44 = vmul.f32 0.5, %v1215_v34  ;;  %v4186_v54 = vadd.f32 %v1553_v47, %v1521_v18  ;;  %v1042_v7 = vmul.f32 %v580_v32, %v580_v32  ;;  %v1074_v13 = vmul.f32 %v669_v22, %v669_v22  ;;  %v3411_v34 = vld [vmem:[%s3882_s22 + $0x70] sm:$0xff]  ;;  %933 = vmatmul.bf16.gmra.mxu2 %v3427_v36  ;;  %1022 = vmatmul.bf16.gmra.mxu3 %v3427_v36 }
 0x110   : > { %v3506_v40 = vpop.eup %3505  ;;  %v2063_v42 = vand.u32 2147483647, %v2031_v37  ;;  %3511 = vrcp.f32 %v2191_v39  ;;  %v1522_v27 = vmul.f32 %v886_v57, %v886_v57  ;;  %v2318_v16 = vand.u32 2147483648, %v2191_v39  ;;  %627 = vmatmul.bf16.gmra.mxu0 %v3411_v34  ;;  %716 = vmatmul.bf16.gmra.mxu1 %v3411_v34 }
 0x111   : > { %v1694_v45 = vmul.f32 %v3506_v40, %v4161_v38  ;;  %v1217_v51 = vsub.f32 1.5, %v1216_v44  ;;  %3513 = vrsqrt.f32 %v4186_v54  ;;  %v1554_v59 = vmul.f32 %v975_v49, %v975_v49 }
 0x112   : > { %v4184_v8 = vadd.f32 %v2960_v41, %v2063_v42  ;;  %v2316_v14 = vand.u32 2147483647, %v2191_v39  ;;  %v4195_v6 = vadd.f32 %v1074_v13, %v1042_v7  ;;  %v978_v19 = vpop.f32.mrf.mxu3  ;;  %vm2312_vm1 = vweird.f32 %v2191_v39 }
 0x113   : > { %v3508_v46 = vpop.eup %3507  ;;  %v1695_v53 = vmul.f32 %v3506_v40, %v1694_v45  ;;  %v583_v58 = vpop.f32.mrf.mxu0  ;;  %v1218_v1 = vmul.f32 %v4147_v9, %v1217_v51  ;;  %v4198_v15 = vadd.f32 %v1554_v59, %v1522_v27  ;;  %v2159_v24 = vadd.f32 1e-07, %v1212_v35 }
 0x114   : > { %v2706_v50 = vmul.f32 0.6931472, %v3508_v46  ;;  %v3510_v48 = vpop.eup %3509  ;;  %3515 = vrsqrt.f32 %v4195_v6  ;;  %v2319_v28 = vor.u32 1.1754944e-38, %v2318_v16  ;;  %vm2317_vm3 = vcmp.eq.f32.partialorder %v2316_v14, 8.507059e+37  ;;  %v4206_v29 = vpop.f32.mrf.mxu1 }
 0x115   : > { %v1226_v25 = vmul.f32 %v3510_v48, %v4167_v56  ;;  %v1696_v31 = vmul.f32 0.5, %v1695_v53  ;;  %v1219_v30 = vmul.f32 %v1218_v1, %v4121_v20  ;;  %vm1700_vm4 = vcmp.eq.f32.partialorder %v4161_v38, inf }
 0x116   : > { %v2765_v55 = vmul.f32 0.4342945, %v2706_v50  ;;  %v3512_v61 = vpop.eup %3511  ;;  %vm1220_vm5 = vcmp.eq.f32.partialorder %v4121_v20, inf  ;;  %v1703_v41 = vand.u32 2147483648, %v4161_v38  ;;  %3517 = vrsqrt.f32 %v4198_v15 }
 0x117   : > { %v2308_v0 = vmul.f32 %v3512_v61, %v2191_v39  ;;  %v1697_v3 = vsub.f32 1.5, %v1696_v31  ;;  %v1227_v4 = vmul.f32 %v3510_v48, %v1226_v25  ;;  %vm2313_vm0 = vweird.f32 %v3512_v61  ;;  %v3514_v23 = vpop.eup %3513 }
 0x118   : > { %v2829_v63 = vmul.f32 %v2765_v55, %v2765_v55  ;;  %v1706_v26 = vmul.f32 %v3514_v23, %v4186_v54  ;;  %vm2314_vm2 = vmor %vm2312_vm1, %vm2313_vm0  ;;  %v1221_v44 = vsel %vm1220_vm5, %v4121_v20, %v1219_v30  ;;  %v1223_v45 = vand.u32 2147483648, %v4121_v20 }
 0x119   : > { %v2309_v12 = vsub.f32 1.0, %v2308_v0  ;;  %v1698_v10 = vmul.f32 %v3506_v40, %v1697_v3  ;;  %v1228_v62 = vmul.f32 0.5, %v1227_v4  ;;  %vm1702_vm6 = vcmp.eq.f32.partialorder %v4161_v38, 0.0 }
 0x11a   : > { %v4193_v11 = vadd.f32 %v3032_v21, %v2829_v63  ;;  %v889_v21 = vpop.f32.mrf.mxu2  ;;  %v1707_v22 = vmul.f32 %v3514_v23, %v1706_v26  ;;  %v1043_v46 = vmul.f32 %v583_v58, %v583_v58  ;;  %v3516_v18 = vpop.eup %3515  ;;  %v1075_v57 = vmul.f32 %v4189_v60, %v4189_v60 }
 0x11b   : > { %v2310_v17 = vmul.f32 %v3512_v61, %v2309_v12  ;;  %v1699_v9 = vmul.f32 %v1698_v10, %v4161_v38  ;;  %v1229_v52 = vsub.f32 1.5, %v1228_v62  ;;  %v4204_v33 = vpop.f32.mrf.mxu0  ;;  %v1523_v49 = vmul.f32 %v889_v21, %v889_v21 }
 0x11c   : > { %v1708_v42 = vmul.f32 0.5, %v1707_v22  ;;  %v1555_v50 = vmul.f32 %v978_v19, %v978_v19  ;;  %vm1222_vm7 = vcmp.eq.f32.partialorder %v4121_v20, 0.0  ;;  %vm1232_vm8 = vcmp.eq.f32.partialorder %v4167_v56, inf  ;;  %v3518_v60 = vpop.eup %3517  ;;  %v4245_v27 = vpop.f32.mrf.mxu1 }
 0x11d   : > { %v2311_v43 = vadd.f32 %v3512_v61, %v2310_v17  ;;  %v1701_v35 = vsel %vm1700_vm4, %v4161_v38, %v1699_v9  ;;  %v1230_v39 = vmul.f32 %v3510_v48, %v1229_v52  ;;  %v4225_v53 = vsel %vm1222_vm7, %v1223_v45, %v1221_v44 }
 0x11e   : > { %v4219_v47 = vsel %vm1702_vm6, %v1703_v41, %v1701_v35  ;;  %v1709_v51 = vsub.f32 1.5, %v1708_v42  ;;  %v1238_v38 = vmul.f32 %v3516_v18, %v4195_v6  ;;  %v1235_v31 = vand.u32 2147483648, %v4167_v56 }
 0x11f   : > { %v2315_v32 = vsel %vm2314_vm2, %v3512_v61, %v2311_v43  ;;  %v1231_v48 = vmul.f32 %v1230_v39, %v4167_v56  ;;  %v2032_v55 = vsub.f32 %v4225_v53, %v4219_v47  ;;  %v980_v61 = vpop.f32.mrf.mxu3  ;;  %v4232_v20 = vadd.f32 %v1075_v57, %v1043_v46 }
 0x120   : > { %v2320_v37 = vsel %vm2317_vm3, %v2319_v28, %v2315_v32  ;;  %v1710_v25 = vmul.f32 %v3514_v23, %v1709_v51  ;;  %v1239_v63 = vmul.f32 %v3516_v18, %v1238_v38  ;;  %v4234_v0 = vadd.f32 %v1555_v50, %v1523_v49  ;;  %v3428_v51 = vld [vmem:[%s3887_s11 + $0x78] sm:$0xff] }
 0x121   : > { %v4212_v40 = vmul.f32 %v2320_v37, %v2159_v24  ;;  %v1233_v1 = vsel %vm1232_vm8, %v4167_v56, %v1231_v48  ;;  %vm1234_vm9 = vcmp.eq.f32.partialorder %v4167_v56, 0.0  ;;  %v1718_v4 = vmul.f32 %v3518_v60, %v4198_v15  ;;  %v3412_v48 = vld [vmem:[%s3882_s22 + $0x78] sm:$0xff]  ;;  %938 = vmatmul.bf16.gmra.mxu2 %v3428_v51  ;;  %1027 = vmatmul.bf16.gmra.mxu3 %v3428_v51 }
 0x122   : > { %v891_v58 = vpop.f32.mrf.mxu2  ;;  %v1711_v3 = vmul.f32 %v1710_v25, %v4186_v54  ;;  %vm1712_vm10 = vcmp.eq.f32.partialorder %v4186_v54, inf  ;;  %v1715_v7 = vand.u32 2147483648, %v4186_v54  ;;  %v1240_v12 = vmul.f32 0.5, %v1239_v63  ;;  %632 = vmatmul.bf16.gmra.mxu0 %v3412_v48  ;;  %721 = vmatmul.bf16.gmra.mxu1 %v3412_v48 }
 0x123   : > { %3519 = vrsqrt.f32 %v4232_v20  ;;  %v4243_v13 = vpop.f32.mrf.mxu0  ;;  %v2064_v16 = vand.u32 2147483647, %v2032_v55  ;;  %vm1714_vm11 = vcmp.eq.f32.partialorder %v4186_v54, 0.0  ;;  %v1719_v56 = vmul.f32 %v3518_v60, %v1718_v4 }
 0x124   : > { %v1713_v10 = vsel %vm1712_vm10, %v4186_v54, %v1711_v3  ;;  %v4249_v62 = vsel %vm1234_vm9, %v1235_v31, %v1233_v1  ;;  %v1241_v17 = vsub.f32 1.5, %v1240_v12  ;;  %3521 = vrsqrt.f32 %v4234_v0  ;;  %v4275_v39 = vpop.f32.mrf.mxu1 }
 0x125   : > { %v1716_v59 = vsel %vm1714_vm11, %v1715_v7, %v1713_v10  ;;  %v1720_v9 = vmul.f32 0.5, %v1719_v56  ;;  %v2962_v21 = vadd.f32 %v4184_v8, %v2064_v16  ;;  %v1044_v26 = vmul.f32 %v4204_v33, %v4204_v33 }
 0x126   : > { %v2033_v14 = vsub.f32 %v4249_v62, %v1716_v59  ;;  %v4252_v23 = vadd.f32 1e-07, %v1716_v59  ;;  %v1242_v52 = vmul.f32 %v3516_v18, %v1241_v17  ;;  %v1076_v32 = vmul.f32 %v4206_v29, %v4206_v29 }
 0x127   : > { %v1721_v28 = vsub.f32 1.5, %v1720_v9  ;;  %v4265_v34 = vpop.f32.mrf.mxu3  ;;  %vm1244_vm12 = vcmp.eq.f32.partialorder %v4195_v6, inf  ;;  %vm1246_vm13 = vcmp.eq.f32.partialorder %v4195_v6, 0.0  ;;  %v1247_v35 = vand.u32 2147483648, %v4195_v6 }
 0x128   : > { %v2065_v19 = vand.u32 2147483647, %v2033_v14  ;;  %3523 = vrcp.f32 %v4252_v23  ;;  %v1243_v54 = vmul.f32 %v1242_v52, %v4195_v6  ;;  %vm1724_vm14 = vcmp.eq.f32.partialorder %v4198_v15, inf }
 0x129   : > { %v3520_v43 = vpop.eup %3519  ;;  %v1722_v8 = vmul.f32 %v3518_v60, %v1721_v28  ;;  %vm1726_vm15 = vcmp.eq.f32.partialorder %v4198_v15, 0.0  ;;  %v4279_v46 = vadd.f32 %v1076_v32, %v1044_v26  ;;  %v1727_v57 = vand.u32 2147483648, %v4198_v15 }
 0x12a   : > { %v2963_v24 = vadd.f32 %v2962_v21, %v2065_v19  ;;  %v1250_v30 = vmul.f32 %v3520_v43, %v4232_v20  ;;  %v4263_v22 = vpop.f32.mrf.mxu2  ;;  %v3522_v37 = vpop.eup %3521  ;;  %v1245_v33 = vsel %vm1244_vm12, %v4195_v6, %v1243_v54  ;;  %v1524_v49 = vmul.f32 %v891_v58, %v891_v58 }
 0x12b   : > { %v4273_v29 = vpop.f32.mrf.mxu0  ;;  %v1723_v42 = vmul.f32 %v1722_v8, %v4198_v15  ;;  %v1730_v45 = vmul.f32 %v3522_v37, %v4234_v0  ;;  %v1556_v50 = vmul.f32 %v980_v61, %v980_v61  ;;  %3525 = vrsqrt.f32 %v4279_v46 }
 0x12c   : > { %v1251_v36 = vmul.f32 %v3520_v43, %v1250_v30  ;;  %v2348_v31 = vand.u32 2147483648, %v4252_v23  ;;  %v4290_v63 = vsel %vm1246_vm13, %v1247_v35, %v1245_v33  ;;  %v2346_v12 = vand.u32 2147483647, %v4252_v23  ;;  %v4315_v26 = vpop.f32.mrf.mxu1 }
 0x12d   : > { %v1725_v38 = vsel %vm1724_vm14, %v4198_v15, %v1723_v42  ;;  %v1731_v25 = vmul.f32 %v3522_v37, %v1730_v45  ;;  %v4298_v6 = vadd.f32 %v1556_v50, %v1524_v49  ;;  %v4301_v16 = vadd.f32 1e-07, %v4139_v2 }
 0x12e   : > { %v3524_v41 = vpop.eup %3523  ;;  %v1252_v44 = vmul.f32 0.5, %v1251_v36  ;;  %v1728_v1 = vsel %vm1726_vm15, %v1727_v57, %v1725_v38  ;;  %vm2342_vm1 = vweird.f32 %v4252_v23  ;;  %v2349_v52 = vor.u32 1.1754944e-38, %v2348_v31 }
 0x12f   : > { %v2338_v18 = vmul.f32 %v3524_v41, %v4252_v23  ;;  %v2034_v58 = vsub.f32 %v4290_v63, %v1728_v1  ;;  %v4295_v61 = vadd.f32 1e-07, %v1728_v1  ;;  %v1732_v4 = vmul.f32 0.5, %v1731_v25  ;;  %v4306_v56 = vpop.f32.mrf.mxu3 }
 0x130   : > { %v1253_v55 = vsub.f32 1.5, %v1252_v44  ;;  %vm2343_vm0 = vweird.f32 %v3524_v41  ;;  %vm1256_vm3 = vcmp.eq.f32.partialorder %v4232_v20, inf  ;;  %v2161_v2 = vadd.f32 1e-07, %v4249_v62 }
 0x131   : > { %v2339_v60 = vsub.f32 1.0, %v2338_v18  ;;  %v2066_v15 = vand.u32 2147483647, %v2034_v58  ;;  %3527 = vrcp.f32 %v4295_v61  ;;  %v1733_v14 = vsub.f32 1.5, %v1732_v4  ;;  %v3526_v9 = vpop.eup %3525  ;;  %vm2344_vm2 = vmor %vm2342_vm1, %vm2343_vm0 }
 0x132   : > { %v1254_v3 = vmul.f32 %v3520_v43, %v1253_v55  ;;  %v4304_v10 = vpop.f32.mrf.mxu2  ;;  %3529 = vrsqrt.f32 %v4298_v6  ;;  %vm2347_vm4 = vcmp.eq.f32.partialorder %v2346_v12, 8.507059e+37  ;;  %v1259_v28 = vand.u32 2147483648, %v4232_v20 }
 0x133   : > { %v2340_v7 = vmul.f32 %v3524_v41, %v2339_v60  ;;  %v2964_v21 = vadd.f32 %v2963_v24, %v2066_v15  ;;  %v1734_v43 = vmul.f32 %v3522_v37, %v1733_v14  ;;  %v4313_v54 = vpop.f32.mrf.mxu0  ;;  %v1262_v30 = vmul.f32 %v3526_v9, %v4279_v46 }
 0x134   : > { %v1255_v17 = vmul.f32 %v1254_v3, %v4232_v20  ;;  %vm1258_vm5 = vcmp.eq.f32.partialorder %v4232_v20, 0.0  ;;  %vm1736_vm6 = vcmp.eq.f32.partialorder %v4234_v0, inf  ;;  %v1739_v36 = vand.u32 2147483648, %v4234_v0 }
 0x135   : > { %v2341_v59 = vadd.f32 %v3524_v41, %v2340_v7  ;;  %v1735_v62 = vmul.f32 %v1734_v43, %v4234_v0  ;;  %v1263_v37 = vmul.f32 %v3526_v9, %v1262_v30  ;;  %v1045_v33 = vmul.f32 %v4243_v13, %v4243_v13 }
 0x136   : > { %v1257_v24 = vsel %vm1256_vm3, %v4232_v20, %v1255_v17  ;;  %3531 = vrcp.f32 %v4301_v16  ;;  %vm1738_vm7 = vcmp.eq.f32.partialorder %v4234_v0, 0.0  ;;  %v1077_v18 = vmul.f32 %v4245_v27, %v4245_v27 }
 0x137   : > { %v2345_v19 = vsel %vm2344_vm2, %v3524_v41, %v2341_v59  ;;  %v3528_v8 = vpop.eup %3527  ;;  %v1737_v41 = vsel %vm1736_vm6, %v4234_v0, %v1735_v62  ;;  %v1260_v42 = vsel %vm1258_vm5, %v1259_v28, %v1257_v24  ;;  %v1264_v45 = vmul.f32 0.5, %v1263_v37  ;;  %v4343_v25 = vpop.f32.mrf.mxu3 }
 0x138   : > { %v2350_v23 = vsel %vm2347_vm4, %v2349_v52, %v2345_v19  ;;  %v2353_v35 = vmul.f32 %v3528_v8, %v4295_v61  ;;  %v3530_v20 = vpop.eup %3529  ;;  %v1740_v44 = vsel %vm1738_vm7, %v1739_v36, %v1737_v41  ;;  %v2361_v48 = vand.u32 2147483647, %v4295_v61  ;;  %v4358_v59 = vpop.f32.mrf.mxu1 }
 0x139   : > { %v4319_v32 = vmul.f32 %v2350_v23, %v2161_v2  ;;  %v2035_v49 = vsub.f32 %v1260_v42, %v1740_v44  ;;  %v4334_v50 = vadd.f32 1e-07, %v1740_v44  ;;  %v1742_v13 = vmul.f32 %v3530_v20, %v4298_v6 }
 0x13a   : > { %v2354_v57 = vsub.f32 1.0, %v2353_v35  ;;  %v2363_v51 = vand.u32 2147483648, %v4295_v61  ;;  %v1265_v38 = vsub.f32 1.5, %v1264_v45  ;;  %v4339_v55 = vadd.f32 %v1077_v18, %v1045_v33  ;;  %v4341_v0 = vpop.f32.mrf.mxu2 }
 0x13b   : > { %vm2358_vm8 = vweird.f32 %v3528_v8  ;;  %v2067_v27 = vand.u32 2147483647, %v2035_v49  ;;  %3533 = vrcp.f32 %v4334_v50  ;;  %vm2357_vm9 = vweird.f32 %v4295_v61  ;;  %v4356_v15 = vpop.f32.mrf.mxu0 }
 0x13c   : > { %v2355_v60 = vmul.f32 %v3528_v8, %v2354_v57  ;;  %v1743_v31 = vmul.f32 %v3530_v20, %v1742_v13  ;;  %v1525_v1 = vmul.f32 %v4263_v22, %v4263_v22  ;;  %v1557_v58 = vmul.f32 %v4265_v34, %v4265_v34  ;;  %v4351_v3 = vpop.eup %3531  ;;  %vm2359_vm10 = vmor %vm2357_vm9, %vm2358_vm8 }
 0x13d   : > { %v4353_v7 = vadd.f32 %v2964_v21, %v2067_v27  ;;  %v1266_v12 = vmul.f32 %v3526_v9, %v1265_v38  ;;  %3535 = vrsqrt.f32 %v4339_v55  ;;  %v4361_v61 = vadd.f32 1e-07, %v4219_v47 }
 0x13e   : > { %v2356_v4 = vadd.f32 %v3528_v8, %v2355_v60  ;;  %v2162_v22 = vadd.f32 1e-07, %v4290_v63  ;;  %v2364_v34 = vor.u32 1.1754944e-38, %v2363_v51  ;;  %vm1268_vm11 = vcmp.eq.f32.partialorder %v4279_v46, inf }
 0x13f   : > { %vm2362_vm12 = vcmp.eq.f32.partialorder %v2361_v48, 8.507059e+37  ;;  %vm1270_vm13 = vcmp.eq.f32.partialorder %v4279_v46, 0.0  ;;  %v1744_v14 = vmul.f32 0.5, %v1743_v31  ;;  %v1271_v52 = vand.u32 2147483648, %v4279_v46  ;;  %v4389_v41 = vpop.f32.mrf.mxu3 }
 0x140   : > { %v2360_v17 = vsel %vm2359_vm10, %v3528_v8, %v2356_v4  ;;  %v4368_v21 = vadd.f32 %v1557_v58, %v1525_v1  ;;  %v1046_v47 = vmul.f32 %v4273_v29, %v4273_v29  ;;  %v1267_v19 = vmul.f32 %v1266_v12, %v4279_v46 }
 0x141   : > { %v2365_v9 = vsel %vm2362_vm12, %v2364_v34, %v2360_v17  ;;  %v3534_v2 = vpop.eup %3533  ;;  %v1745_v43 = vsub.f32 1.5, %v1744_v14  ;;  %v1078_v23 = vmul.f32 %v4275_v39, %v4275_v39  ;;  %v2163_v28 = vadd.f32 1e-07, %v1260_v42 }
 0x142   : > { %v4372_v63 = vmul.f32 %v2365_v9, %v2162_v22  ;;  %v2368_v30 = vmul.f32 %v3534_v2, %v4334_v50  ;;  %vm1748_vm14 = vcmp.eq.f32.partialorder %v4298_v6, inf  ;;  %3537 = vrsqrt.f32 %v4368_v21  ;;  %v4387_v35 = vpop.f32.mrf.mxu2 }
 0x143   : > { %v3536_v24 = vpop.eup %3535  ;;  %v2378_v62 = vand.u32 2147483648, %v4334_v50  ;;  %v1746_v29 = vmul.f32 %v3530_v20, %v1745_v43  ;;  %vm1750_vm15 = vcmp.eq.f32.partialorder %v4298_v6, 0.0  ;;  %v1751_v8 = vand.u32 2147483648, %v4298_v6  ;;  %v4406_v51 = vpop.f32.mrf.mxu0 }
 0x144   : > { %v2369_v36 = vsub.f32 1.0, %v2368_v30  ;;  %v2376_v37 = vand.u32 2147483647, %v4334_v50  ;;  %v1274_v39 = vmul.f32 %v3536_v24, %v4339_v55  ;;  %v4385_v33 = vadd.f32 %v1078_v23, %v1046_v47 }
 0x145   : > { %v1269_v42 = vsel %vm1268_vm11, %v4279_v46, %v1267_v19  ;;  %v1747_v20 = vmul.f32 %v1746_v29, %v4298_v6  ;;  %v1526_v44 = vmul.f32 %v4304_v10, %v4304_v10  ;;  %v1558_v45 = vmul.f32 %v4306_v56, %v4306_v56  ;;  %v4408_v10 = vpop.f32.mrf.mxu1 }
 0x146   : > { %v2370_v18 = vmul.f32 %v3534_v2, %v2369_v36  ;;  %vm2373_vm0 = vweird.f32 %v3534_v2  ;;  %v1275_v57 = vmul.f32 %v3536_v24, %v1274_v39  ;;  %3539 = vrsqrt.f32 %v4385_v33 }
 0x147   : > { %vm2372_vm1 = vweird.f32 %v4334_v50  ;;  %v2379_v49 = vor.u32 1.1754944e-38, %v2378_v62  ;;  %v1749_v13 = vsel %vm1748_vm14, %v4298_v6, %v1747_v20  ;;  %v4404_v48 = vadd.f32 %v1558_v45, %v1526_v44  ;;  %v4441_v23 = vpop.f32.mrf.mxu3 }
 0x148   : > { %v3538_v38 = vpop.eup %3537  ;;  %v2371_v56 = vadd.f32 %v3534_v2, %v2370_v18  ;;  %v1272_v60 = vsel %vm1270_vm13, %v1271_v52, %v1269_v42  ;;  %v1752_v27 = vsel %vm1750_vm15, %v1751_v8, %v1749_v13  ;;  %v1276_v50 = vmul.f32 0.5, %v1275_v57  ;;  %vm2374_vm2 = vmor %vm2372_vm1, %vm2373_vm0 }
 0x149   : > { %v2036_v31 = vsub.f32 %v1272_v60, %v1752_v27  ;;  %v4414_v1 = vadd.f32 1e-07, %v1752_v27  ;;  %v1754_v58 = vmul.f32 %v3538_v38, %v4368_v21  ;;  %3541 = vrsqrt.f32 %v4404_v48 }
 0x14a   : > { %v2375_v4 = vsel %vm2374_vm2, %v3534_v2, %v2371_v56  ;;  %vm2377_vm3 = vcmp.eq.f32.partialorder %v2376_v37, 8.507059e+37  ;;  %v1277_v12 = vsub.f32 1.5, %v1276_v50  ;;  %v1047_v22 = vmul.f32 %v4313_v54, %v4313_v54  ;;  %v4439_v43 = vpop.f32.mrf.mxu2 }
 0x14b   : > { %v2380_v46 = vsel %vm2377_vm3, %v2379_v49, %v2375_v4  ;;  %v2068_v34 = vand.u32 2147483647, %v2036_v31  ;;  %3543 = vrcp.f32 %v4414_v1  ;;  %v1079_v6 = vmul.f32 %v4315_v26, %v4315_v26  ;;  %v4454_v20 = vpop.f32.mrf.mxu0 }
 0x14c   : > { %v3540_v17 = vpop.eup %3539  ;;  %v4425_v14 = vmul.f32 %v4351_v3, %v4301_v16  ;;  %v4427_v9 = vmul.f32 %v2380_v46, %v2163_v28  ;;  %v1278_v52 = vmul.f32 %v3536_v24, %v1277_v12  ;;  %3545 = vrcp.f32 %v4361_v61 }
 0x14d   : > { %v4431_v47 = vadd.f32 %v4353_v7, %v2068_v34  ;;  %v1755_v54 = vmul.f32 %v3538_v38, %v1754_v58  ;;  %v1286_v2 = vmul.f32 %v3540_v17, %v4385_v33  ;;  %v4434_v19 = vadd.f32 1e-07, %v1272_v60  ;;  %v4456_v44 = vpop.f32.mrf.mxu1 }
 0x14e   : > { %vm1280_vm4 = vcmp.eq.f32.partialorder %v4339_v55, inf  ;;  %vm1282_vm5 = vcmp.eq.f32.partialorder %v4339_v55, 0.0  ;;  %v1283_v26 = vand.u32 2147483648, %v4339_v55  ;;  %vm1760_vm6 = vcmp.eq.f32.partialorder %v4368_v21, inf }
 0x14f   : > { %v3542_v28 = vpop.eup %3541  ;;  %v1756_v30 = vmul.f32 0.5, %v1755_v54  ;;  %v1287_v7 = vmul.f32 %v3540_v17, %v1286_v2  ;;  %v4444_v24 = vadd.f32 %v1079_v6, %v1047_v22  ;;  %v1279_v62 = vmul.f32 %v1278_v52, %v4339_v55 }
 0x150   : > { %v1766_v29 = vmul.f32 %v3542_v28, %v4404_v48  ;;  %v1527_v8 = vmul.f32 %v4341_v0, %v4341_v0  ;;  %v1559_v36 = vmul.f32 %v4343_v25, %v4343_v25  ;;  %vm1762_vm7 = vcmp.eq.f32.partialorder %v4368_v21, 0.0 }
 0x151   : > { %v3544_v37 = vpop.eup %3543  ;;  %v1757_v39 = vsub.f32 1.5, %v1756_v30  ;;  %v1288_v42 = vmul.f32 0.5, %v1287_v7  ;;  %3547 = vrsqrt.f32 %v4444_v24  ;;  %v1763_v18 = vand.u32 2147483648, %v4368_v21 }
 0x152   : > { %v2383_v45 = vmul.f32 %v3544_v37, %v4414_v1  ;;  %vm1292_vm8 = vcmp.eq.f32.partialorder %v4385_v33, inf  ;;  %v1767_v0 = vmul.f32 %v3542_v28, %v1766_v29  ;;  %v4461_v57 = vpop.eup %3545  ;;  %v2391_v25 = vand.u32 2147483647, %v4414_v1  ;;  %v4490_v30 = vpop.f32.mrf.mxu2 }
 0x153   : > { %v2393_v49 = vand.u32 2147483648, %v4414_v1  ;;  %v1758_v13 = vmul.f32 %v3538_v38, %v1757_v39  ;;  %v1289_v56 = vsub.f32 1.5, %v1288_v42  ;;  %v1281_v27 = vsel %vm1280_vm4, %v4339_v55, %v1279_v62  ;;  %v4504_v42 = vpop.f32.mrf.mxu0 }
 0x154   : > { %v2384_v60 = vsub.f32 1.0, %v2383_v45  ;;  %v1768_v50 = vmul.f32 0.5, %v1767_v0  ;;  %v4468_v31 = vadd.f32 %v1559_v36, %v1527_v8  ;;  %v1048_v12 = vmul.f32 %v4356_v15, %v4356_v15 }
 0x155   : > { %v1759_v58 = vmul.f32 %v1758_v13, %v4368_v21  ;;  %v1290_v4 = vmul.f32 %v3540_v17, %v1289_v56  ;;  %v1080_v22 = vmul.f32 %v4358_v59, %v4358_v59  ;;  %vm2388_vm9 = vweird.f32 %v3544_v37  ;;  %v4506_v45 = vpop.f32.mrf.mxu1 }
 0x156   : > { %v2385_v46 = vmul.f32 %v3544_v37, %v2384_v60  ;;  %v1769_v38 = vsub.f32 1.5, %v1768_v50  ;;  %3549 = vrsqrt.f32 %v4468_v31  ;;  %vm2387_vm10 = vweird.f32 %v4414_v1  ;;  %v4492_v1 = vpop.f32.mrf.mxu3 }
 0x157   : > { %v3548_v34 = vpop.eup %3547  ;;  %v4479_v6 = vsel %vm1282_vm5, %v1283_v26, %v1281_v27  ;;  %v1761_v17 = vsel %vm1760_vm6, %v4368_v21, %v1759_v58  ;;  %v1291_v15 = vmul.f32 %v1290_v4, %v4385_v33  ;;  %vm2389_vm11 = vmor %vm2387_vm10, %vm2388_vm9  ;;  %v2394_v55 = vor.u32 1.1754944e-38, %v2393_v49 }
 0x158   : > { %v2386_v52 = vadd.f32 %v3544_v37, %v2385_v46  ;;  %v4487_v59 = vsel %vm1762_vm7, %v1763_v18, %v1761_v17  ;;  %v1770_v54 = vmul.f32 %v3542_v28, %v1769_v38  ;;  %v1298_v2 = vmul.f32 %v3548_v34, %v4444_v24 }
 0x159   : > { %v2037_v26 = vsub.f32 %v4479_v6, %v4487_v59  ;;  %vm1294_vm12 = vcmp.eq.f32.partialorder %v4385_v33, 0.0  ;;  %v4497_v7 = vadd.f32 %v1080_v22, %v1048_v12  ;;  %vm2392_vm13 = vcmp.eq.f32.partialorder %v2391_v25, 8.507059e+37 }
 0x15a   : > { %v2390_v62 = vsel %vm2389_vm11, %v3544_v37, %v2386_v52  ;;  %v1771_v21 = vmul.f32 %v1770_v54, %v4404_v48  ;;  %v1299_v28 = vmul.f32 %v3548_v34, %v1298_v2  ;;  %v1293_v36 = vsel %vm1292_vm8, %v4385_v33, %v1291_v15  ;;  %v4531_v12 = vpop.f32.mrf.mxu2 }
 0x15b   : > { %v2395_v29 = vsel %vm2392_vm13, %v2394_v55, %v2390_v62  ;;  %v2069_v8 = vand.u32 2147483647, %v2037_v26  ;;  %v1295_v39 = vand.u32 2147483648, %v4385_v33  ;;  %vm1772_vm14 = vcmp.eq.f32.partialorder %v4404_v48, inf  ;;  %v4545_v55 = vpop.f32.mrf.mxu0 }
 0x15c   : > { %v3550_v18 = vpop.eup %3549  ;;  %v4509_v0 = vmul.f32 %v2395_v29, %v4434_v19  ;;  %vm1774_vm15 = vcmp.eq.f32.partialorder %v4404_v48, 0.0  ;;  %v1775_v37 = vand.u32 2147483648, %v4404_v48  ;;  %v1773_v49 = vsel %vm1772_vm14, %v4404_v48, %v1771_v21 }
 0x15d   : > { %v2967_v25 = vadd.f32 %v4431_v47, %v2069_v8  ;;  %v1300_v13 = vmul.f32 0.5, %v1299_v28  ;;  %v1778_v56 = vmul.f32 %v3550_v18, %v4468_v31  ;;  %v4519_v60 = vsel %vm1294_vm12, %v1295_v39, %v1293_v36  ;;  %v4547_v26 = vpop.f32.mrf.mxu1 }
 0x15e   : > { %6306 = vst [vmem:[#allocation4_spill] sm:$0xff] %v4509_v0  ;;  %v4521_v27 = vsel %vm1774_vm15, %v1775_v37, %v1773_v49  ;;  %3551 = vrsqrt.f32 %v4497_v7  ;;  %v1528_v47 = vmul.f32 %v4387_v35, %v4387_v35  ;;  %v2294_v48 = vsub.f32 1.0, %v4425_v14  ;;  %v4533_v22 = vpop.f32.mrf.mxu3 }
 0x15f   : > { %v2038_v19 = vsub.f32 %v4519_v60, %v4521_v27  ;;  %v1301_v50 = vsub.f32 1.5, %v1300_v13  ;;  %v1779_v58 = vmul.f32 %v3550_v18, %v1778_v56  ;;  %v1560_v4 = vmul.f32 %v4389_v41, %v4389_v41 }
 0x160   : > { %v2295_v54 = vmul.f32 %v4351_v3, %v2294_v48  ;;  %v2323_v35 = vmul.f32 %v4461_v57, %v4361_v61  ;;  %vm2297_vm0 = vweird.f32 %v4301_v16  ;;  %v2301_v62 = vand.u32 2147483647, %v4301_v16 }
 0x161   : > { %v2070_v33 = vand.u32 2147483647, %v2038_v19  ;;  %v1302_v46 = vmul.f32 %v3548_v34, %v1301_v50  ;;  %v1780_v17 = vmul.f32 0.5, %v1779_v58  ;;  %v4535_v15 = vadd.f32 %v1560_v4, %v1528_v47 }
 0x162   : > { %v1049_v34 = vmul.f32 %v4406_v51, %v4406_v51  ;;  %v2303_v21 = vand.u32 2147483648, %v4301_v16  ;;  %vm1304_vm1 = vcmp.eq.f32.partialorder %v4444_v24, inf  ;;  %vm2298_vm2 = vweird.f32 %v4351_v3 }
 0x163   : > { %v2968_v38 = vadd.f32 %v2967_v25, %v2070_v33  ;;  %v1303_v14 = vmul.f32 %v1302_v46, %v4444_v24  ;;  %v1781_v2 = vsub.f32 1.5, %v1780_v17  ;;  %3553 = vrsqrt.f32 %v4535_v15  ;;  %vm4573_vm5 = vmor %vm2297_vm0, %vm2298_vm2 }
 0x164   : > { %v3552_v52 = vpop.eup %3551  ;;  %v1081_v8 = vmul.f32 %v4408_v10, %v4408_v10  ;;  %v2296_v51 = vadd.f32 %v4351_v3, %v2295_v54  ;;  %v2324_v36 = vsub.f32 1.0, %v2323_v35  ;;  %vm1306_vm3 = vcmp.eq.f32.partialorder %v4444_v24, 0.0  ;;  %v4596_v54 = vpop.f32.mrf.mxu0 }
 0x165   : > { %v1310_v41 = vmul.f32 %v3552_v52, %v4497_v7  ;;  %v1782_v28 = vmul.f32 %v3550_v18, %v1781_v2  ;;  %v1307_v39 = vand.u32 2147483648, %v4444_v24  ;;  %v1305_v37 = vsel %vm1304_vm1, %v4444_v24, %v1303_v14  ;;  %v4598_v35 = vpop.f32.mrf.mxu1 }
 0x166   : > { %v4561_v13 = vadd.f32 %v1081_v8, %v1049_v34  ;;  %vm1784_vm4 = vcmp.eq.f32.partialorder %v4468_v31, inf  ;;  %v1787_v18 = vand.u32 2147483648, %v4468_v31  ;;  %v1529_v10 = vmul.f32 %v4439_v43, %v4439_v43  ;;  %v4580_v43 = vpop.f32.mrf.mxu2  ;;  %v4582_v48 = vpop.f32.mrf.mxu3 }
 0x167   : > { %v1311_v29 = vmul.f32 %v3552_v52, %v1310_v41  ;;  %v1783_v25 = vmul.f32 %v1782_v28, %v4468_v31  ;;  %v1561_v56 = vmul.f32 %v4441_v23, %v4441_v23  ;;  %vm1786_vm6 = vcmp.eq.f32.partialorder %v4468_v31, 0.0 }
 0x168   : > { %3555 = vrsqrt.f32 %v4561_v13  ;;  %v2300_v23 = vsel %vm4573_vm5, %v4351_v3, %v2296_v51  ;;  %v4589_v16 = vsel %vm1306_vm3, %v1307_v39, %v1305_v37  ;;  %vm2302_vm7 = vcmp.eq.f32.partialorder %v2301_v62, 8.507059e+37 }
 0x169   : > { %v1312_v49 = vmul.f32 0.5, %v1311_v29  ;;  %v3554_v19 = vpop.eup %3553  ;;  %v1785_v58 = vsel %vm1784_vm4, %v4468_v31, %v1783_v25  ;;  %v2304_v31 = vor.u32 1.1754944e-38, %v2303_v21  ;;  %v4600_v3 = vadd.f32 %v1561_v56, %v1529_v10 }
 0x16a   : > { %v4591_v4 = vsel %vm1786_vm6, %v1787_v18, %v1785_v58  ;;  %v1790_v33 = vmul.f32 %v3554_v19, %v4535_v15  ;;  %v2325_v2 = vmul.f32 %v4461_v57, %v2324_v36  ;;  %v2158_v34 = vadd.f32 1e-07, %v4145_v5 }
 0x16b   : > { %v1313_v47 = vsub.f32 1.5, %v1312_v49  ;;  %v2039_v46 = vsub.f32 %v4589_v16, %v4591_v4  ;;  %v2305_v24 = vsel %vm2302_vm7, %v2304_v31, %v2300_v23  ;;  %3557 = vrsqrt.f32 %v4600_v3 }
 0x16c   : > { %v1791_v14 = vmul.f32 %v3554_v19, %v1790_v33  ;;  %v1050_v62 = vmul.f32 %v4454_v20, %v4454_v20  ;;  %v2306_v8 = vmul.f32 %v2305_v24, %v2158_v34  ;;  %v2333_v51 = vand.u32 2147483648, %v4361_v61 }
 0x16d   : > { %v1314_v17 = vmul.f32 %v3552_v52, %v1313_v47  ;;  %v2071_v41 = vand.u32 2147483647, %v2039_v46  ;;  %v2326_v37 = vadd.f32 %v4461_v57, %v2325_v2  ;;  %vm2328_vm8 = vweird.f32 %v4461_v57  ;;  %v4632_v47 = vpop.f32.mrf.mxu0  ;;  %v4634_v23 = vpop.f32.mrf.mxu1 }
 0x16e   : > { %v1792_v28 = vmul.f32 0.5, %v1791_v14  ;;  %v3556_v52 = vpop.eup %3555  ;;  %vm1316_vm9 = vcmp.eq.f32.partialorder %v4497_v7, inf  ;;  %v1082_v5 = vmul.f32 %v4456_v44, %v4456_v44  ;;  %v4619_v25 = vpop.f32.mrf.mxu3  ;;  %v1530_v10 = vmul.f32 %v4490_v30, %v4490_v30 }
 0x16f   : > { %v1315_v21 = vmul.f32 %v1314_v17, %v4497_v7  ;;  %v4606_v29 = vadd.f32 %v2968_v38, %v2071_v41  ;;  %v1322_v36 = vmul.f32 %v3556_v52, %v4561_v13  ;;  %v4617_v38 = vpop.f32.mrf.mxu2  ;;  %v1562_v50 = vmul.f32 %v4492_v1, %v4492_v1 }
 0x170   : > { %v1793_v39 = vsub.f32 1.5, %v1792_v28  ;;  %v4624_v56 = vadd.f32 %v1082_v5, %v1050_v62  ;;  %v1051_v58 = vmul.f32 %v4504_v42, %v4504_v42  ;;  %v1083_v44 = vmul.f32 %v4506_v45, %v4506_v45 }
 0x171   : > { %6309 = vst [vmem:[#allocation5_spill] sm:$0xff] %v4606_v29  ;;  %v1317_v20 = vsel %vm1316_vm9, %v4497_v7, %v1315_v21  ;;  %v1323_v18 = vmul.f32 %v3556_v52, %v1322_v36  ;;  %vm1318_vm10 = vcmp.eq.f32.partialorder %v4497_v7, 0.0  ;;  %v1319_v30 = vand.u32 2147483648, %v4497_v7 }
 0x172   : > { %v1794_v49 = vmul.f32 %v3554_v19, %v1793_v39  ;;  %v3558_v19 = vpop.eup %3557  ;;  %vm1796_vm11 = vcmp.eq.f32.partialorder %v4535_v15, inf  ;;  %v1799_v1 = vand.u32 2147483648, %v4535_v15  ;;  %3559 = vrsqrt.f32 %v4624_v56 }
 0x173   : > { %v1324_v31 = vmul.f32 0.5, %v1323_v18  ;;  %v1802_v42 = vmul.f32 %v3558_v19, %v4600_v3  ;;  %v4643_v45 = vsel %vm1318_vm10, %v1319_v30, %v1317_v20  ;;  %vm1798_vm12 = vcmp.eq.f32.partialorder %v4535_v15, 0.0 }
 0x174   : > { %v1795_v33 = vmul.f32 %v1794_v49, %v4535_v15  ;;  %v4649_v24 = vadd.f32 %v1562_v50, %v1530_v10  ;;  %v4651_v2 = vadd.f32 %v1083_v44, %v1051_v58  ;;  %vm2327_vm13 = vweird.f32 %v4361_v61 }
 0x175   : > { %v1325_v17 = vsub.f32 1.5, %v1324_v31  ;;  %v1803_v7 = vmul.f32 %v3558_v19, %v1802_v42  ;;  %v2331_v41 = vand.u32 2147483647, %v4361_v61  ;;  %vm4659_vm14 = vmor %vm2327_vm13, %vm2328_vm8  ;;  %v2160_v36 = vadd.f32 1e-07, %v4225_v53  ;;  %v4673_v18 = vpop.f32.mrf.mxu0  ;;  %v4675_v10 = vpop.f32.mrf.mxu1 }
 0x176   : > { %v1797_v46 = vsel %vm1796_vm11, %v4535_v15, %v1795_v33  ;;  %3561 = vrsqrt.f32 %v4649_v24  ;;  %v4666_v39 = vpop.f32.mrf.mxu3  ;;  %v2330_v61 = vsel %vm4659_vm14, %v4461_v57, %v2326_v37  ;;  %v2334_v5 = vor.u32 1.1754944e-38, %v2333_v51 }
 0x177   : > { %v4647_v14 = vsel %vm1798_vm12, %v1799_v1, %v1797_v46  ;;  %v1326_v21 = vmul.f32 %v3556_v52, %v1325_v17  ;;  %v1804_v28 = vmul.f32 0.5, %v1803_v7  ;;  %v4664_v62 = vpop.f32.mrf.mxu2  ;;  %3563 = vlog2.f32 %v2306_v8 }
 0x178   : > { %v3560_v52 = vpop.eup %3559  ;;  %vm2332_vm15 = vcmp.eq.f32.partialorder %v2331_v41, 8.507059e+37  ;;  %vm1328_vm0 = vcmp.eq.f32.partialorder %v4561_v13, inf  ;;  %v1531_v53 = vmul.f32 %v4531_v12, %v4531_v12  ;;  %v4682_v57 = vadd.f32 1e-07, %v4487_v59 }
 0x179   : > { %v1327_v20 = vmul.f32 %v1326_v21, %v4561_v13  ;;  %v1805_v49 = vsub.f32 1.5, %v1804_v28  ;;  %v1334_v50 = vmul.f32 %v3560_v52, %v4624_v56  ;;  %v2335_v58 = vsel %vm2332_vm15, %v2334_v5, %v2330_v61 }
 0x17a   : > { %vm1330_vm1 = vcmp.eq.f32.partialorder %v4561_v13, 0.0  ;;  %v1331_v51 = vand.u32 2147483648, %v4561_v13  ;;  %v1563_v44 = vmul.f32 %v4533_v22, %v4533_v22  ;;  %v1052_v30 = vmul.f32 %v4545_v55, %v4545_v55 }
 0x17b   : > { %v1806_v8 = vmul.f32 %v3558_v19, %v1805_v49  ;;  %v1335_v37 = vmul.f32 %v3560_v52, %v1334_v50  ;;  %v1329_v31 = vsel %vm1328_vm0, %v4561_v13, %v1327_v20  ;;  %vm1808_vm2 = vcmp.eq.f32.partialorder %v4600_v3, inf }
 0x17c   : > { %v3562_v33 = vpop.eup %3561  ;;  %v1084_v59 = vmul.f32 %v4547_v26, %v4547_v26  ;;  %v1811_v19 = vand.u32 2147483648, %v4600_v3  ;;  %v4697_v46 = vadd.f32 %v1563_v44, %v1531_v53  ;;  %3565 = vrcp.f32 %v4682_v57 }
 0x17d   : > { %v1807_v12 = vmul.f32 %v1806_v8, %v4600_v3  ;;  %v1336_v1 = vmul.f32 0.5, %v1335_v37  ;;  %v1814_v42 = vmul.f32 %v3562_v33, %v4649_v24  ;;  %v3564_v22 = vpop.eup %3563  ;;  %vm1810_vm3 = vcmp.eq.f32.partialorder %v4600_v3, 0.0  ;;  %v4717_v5 = vpop.f32.mrf.mxu0 }
 0x17e   : > { %v4702_v17 = vadd.f32 %v1084_v59, %v1052_v30  ;;  %v4706_v41 = vpop.f32.mrf.mxu3  ;;  %v4710_v26 = vsel %vm1330_vm1, %v1331_v51, %v1329_v31  ;;  %3567 = vlog2.f32 %v4212_v40  ;;  %v2336_v61 = vmul.f32 %v2335_v58, %v2160_v36  ;;  %v4719_v20 = vpop.f32.mrf.mxu1 }
 0x17f   : > { %v1809_v55 = vsel %vm1808_vm2, %v4600_v3, %v1807_v12  ;;  %v4704_v7 = vpop.f32.mrf.mxu2  ;;  %v1337_v15 = vsub.f32 1.5, %v1336_v1  ;;  %v1815_v28 = vmul.f32 %v3562_v33, %v1814_v42  ;;  %v1532_v13 = vmul.f32 %v4580_v43, %v4580_v43 }
 0x180   : > { %v4712_v21 = vsel %vm1810_vm3, %v1811_v19, %v1809_v55  ;;  %v1564_v53 = vmul.f32 %v4582_v48, %v4582_v48  ;;  %v4726_v8 = vadd.f32 1e-07, %v4521_v27  ;;  %3569 = vlog2.f32 %v2336_v61 }
 0x181   : > { %v1338_v49 = vmul.f32 %v3560_v52, %v1337_v15  ;;  %v1816_v50 = vmul.f32 0.5, %v1815_v28  ;;  %v4732_v51 = vadd.f32 1e-07, %v4591_v4  ;;  %v2708_v52 = vmul.f32 0.6931472, %v3564_v22 }
 0x182   : > { %6312 = vst [vmem:[#allocation6_spill] sm:$0xff] %v4726_v8  ;;  %v4729_v58 = vpop.eup %3565  ;;  %3571 = vrsqrt.f32 %v4651_v2  ;;  %v4735_v43 = vadd.f32 %v1564_v53, %v1532_v13  ;;  %vm1340_vm4 = vcmp.eq.f32.partialorder %v4624_v56, inf  ;;  %v1053_v27 = vmul.f32 %v4596_v54, %v4596_v54 }
 0x183   : > { %v1339_v40 = vmul.f32 %v1338_v49, %v4624_v56  ;;  %v1817_v36 = vsub.f32 1.5, %v1816_v50  ;;  %6313 = vst [vmem:[#allocation7_spill] sm:$0xff] %v4732_v51  ;;  %3573 = vrsqrt.f32 %v4697_v46  ;;  %v1085_v48 = vmul.f32 %v4598_v35, %v4598_v35 }
 0x184   : > { %v3568_v44 = vpop.eup %3567  ;;  %v2398_v4 = vmul.f32 %v4729_v58, %v4682_v57  ;;  %3575 = vrcp.f32 %v4726_v8  ;;  %v1343_v54 = vand.u32 2147483648, %v4624_v56  ;;  %vm1820_vm5 = vcmp.eq.f32.partialorder %v4649_v24, inf }
 0x185   : > { %v1818_v37 = vmul.f32 %v3562_v33, %v1817_v36  ;;  %v1341_v30 = vsel %vm1340_vm4, %v4624_v56, %v1339_v40  ;;  %3577 = vrcp.f32 %v4732_v51  ;;  %v1823_v35 = vand.u32 2147483648, %v4649_v24  ;;  %v4756_v59 = vpop.f32.mrf.mxu0 }
 0x186   : > { %v4750_v12 = vpop.f32.mrf.mxu3  ;;  %v4758_v19 = vpop.f32.mrf.mxu1  ;;  %vm1342_vm6 = vcmp.eq.f32.partialorder %v4624_v56, 0.0  ;;  %vm1822_vm7 = vcmp.eq.f32.partialorder %v4649_v24, 0.0  ;;  %v4763_v42 = vadd.f32 %v1085_v48, %v1053_v27  ;;  %v2766_v55 = vmul.f32 0.4342945, %v2708_v52 }
 0x187   : > { %v1819_v33 = vmul.f32 %v1818_v37, %v4649_v24  ;;  %v4748_v31 = vpop.f32.mrf.mxu2  ;;  %v3570_v22 = vpop.eup %3569  ;;  %v2710_v15 = vmul.f32 0.6931472, %v3568_v44  ;;  %v4765_v28 = vsel %vm1342_vm6, %v1343_v54, %v1341_v30  ;;  %3579 = vlog2.f32 %v4319_v32 }
 0x188   : > { %6314 = vst [vmem:[#allocation8_spill] sm:$0xff] %v4765_v28  ;;  %v4769_v49 = vpop.eup %3571  ;;  %v1533_v50 = vmul.f32 %v4617_v38, %v4617_v38  ;;  %v2399_v40 = vsub.f32 1.0, %v2398_v4  ;;  %v2830_v32 = vmul.f32 %v2766_v55, %v2766_v55  ;;  %v2712_v38 = vmul.f32 0.6931472, %v3570_v22 }
 0x189   : > { %v1821_v1 = vsel %vm1820_vm5, %v4649_v24, %v1819_v33  ;;  %v1565_v24 = vmul.f32 %v4619_v25, %v4619_v25  ;;  %v4778_v13 = vpop.eup %3573  ;;  %v1346_v52 = vmul.f32 %v4769_v49, %v4651_v2  ;;  %v2767_v37 = vmul.f32 0.4342945, %v2710_v15 }
 0x18a   : > { %v4767_v61 = vsel %vm1822_vm7, %v1823_v35, %v1821_v1  ;;  %v4780_v53 = vpop.eup %3575  ;;  %v1826_v44 = vmul.f32 %v4778_v13, %v4697_v46  ;;  %v2400_v4 = vmul.f32 %v4729_v58, %v2399_v40  ;;  %3581 = vrsqrt.f32 %v4702_v17 }
 0x18b   : > { %6315 = vst [vmem:[#allocation9_spill] sm:$0xff] %v4767_v61  ;;  %v4782_v36 = vpop.eup %3577  ;;  %v4788_v27 = vadd.f32 %v1565_v24, %v1533_v50  ;;  %v2413_v33 = vmul.f32 %v4780_v53, %v4726_v8  ;;  %v1347_v55 = vmul.f32 %v4769_v49, %v1346_v52  ;;  %v4806_v22 = vadd.f32 %v4193_v11, %v2830_v32 }
 0x18c   : > { %6316 = vst [vmem:[#allocation10_spill] sm:$0xff] %v4780_v53  ;;  %v2428_v1 = vmul.f32 %v4782_v36, %v4732_v51  ;;  %v4808_v15 = vmul.f32 %v2767_v37, %v2767_v37  ;;  %v1827_v50 = vmul.f32 %v4778_v13, %v1826_v44  ;;  %v2768_v24 = vmul.f32 0.4342945, %v2712_v38 }
 0x18d   : > { %6317 = vst [vmem:[#allocation11_spill] sm:$0xff] %v4782_v36  ;;  %v4790_v48 = vpop.f32.mrf.mxu0  ;;  %v3580_v30 = vpop.eup %3579  ;;  %3583 = vlog2.f32 %v4372_v63  ;;  %v4813_v56 = vadd.f32 1e-07, %v4647_v14  ;;  %v2401_v3 = vadd.f32 %v4729_v58, %v2400_v4  ;;  %vm2403_vm8 = vweird.f32 %v4729_v58 }
 0x18e   : > { %v4792_v25 = vpop.f32.mrf.mxu1  ;;  %v4799_v35 = vpop.f32.mrf.mxu3  ;;  %6318 = vst [vmem:[#allocation12_spill] sm:$0xff] %v4806_v22  ;;  %v2714_v40 = vmul.f32 0.6931472, %v3580_v30  ;;  %v2406_v52 = vand.u32 2147483647, %v4682_v57  ;;  %v2414_v34 = vsub.f32 1.0, %v2413_v33  ;;  %3585 = vlog2.f32 %v4427_v9 }
 0x18f   : > { %v4797_v54 = vpop.f32.mrf.mxu2  ;;  %6319 = vst [vmem:[#allocation13_spill] sm:$0xff] %v4808_v15  ;;  %v2408_v11 = vand.u32 2147483648, %v4682_v57  ;;  %v2429_v32 = vsub.f32 1.0, %v2428_v1  ;;  %v1348_v37 = vmul.f32 0.5, %v1347_v55  ;;  %vm2402_vm9 = vweird.f32 %v4682_v57 }
 0x190   : > { %6320 = vst [vmem:[#allocation14_spill] sm:$0xff] %v4813_v56  ;;  %v2423_v63 = vand.u32 2147483648, %v4726_v8  ;;  %v1828_v44 = vmul.f32 0.5, %v1827_v50  ;;  %3587 = vrsqrt.f32 %v4735_v43  ;;  %v4823_v38 = vpop.eup %3581  ;;  %v4825_v30 = vmul.f32 %v2768_v24, %v2768_v24  ;;  %vm4834_vm10 = vmor %vm2402_vm9, %vm2403_vm8 }
 0x191   : > { %v4827_v4 = vmul.f32 0.4342945, %v2714_v40  ;;  %v4830_v33 = vadd.f32 1e-07, %v4479_v6  ;;  %3589 = vrcp.f32 %v4813_v56  ;;  %v2405_v55 = vsel %vm4834_vm10, %v4729_v58, %v2401_v3 }
 0x192   : > { %6321 = vst [vmem:[#allocation15_spill] sm:$0xff] %v4825_v30  ;;  %vm2407_vm11 = vcmp.eq.f32.partialorder %v2406_v52, 8.507059e+37  ;;  %v4847_v6 = vadd.f32 1e-07, %v4519_v60  ;;  %v2415_v50 = vmul.f32 %v4780_v53, %v2414_v34  ;;  %v2409_v40 = vor.u32 1.1754944e-38, %v2408_v11 }
 0x193   : > { %6322 = vst [vmem:[#allocation16_spill] sm:$0xff] %v4827_v4  ;;  %v4850_v24 = vpop.eup %3583  ;;  %v2430_v30 = vmul.f32 %v4782_v36, %v2429_v32  ;;  %v2438_v22 = vand.u32 2147483648, %v4732_v51  ;;  %v1349_v15 = vsub.f32 1.5, %v1348_v37  ;;  %v4855_v0 = vor.u32 1.1754944e-38, %v2423_v63 }
 0x194   : > { %6323 = vst [vmem:[#allocation17_spill] sm:$0xff] %v4830_v33  ;;  %v1829_v9 = vsub.f32 1.5, %v1828_v44  ;;  %v1358_v3 = vmul.f32 %v4823_v38, %v4702_v17  ;;  %v4863_v34 = vpop.eup %3585  ;;  %v4865_v52 = vsel %vm2407_vm11, %v2409_v40, %v2405_v55  ;;  %v4868_v11 = vadd.f32 1e-07, %v4589_v16 }
 0x195   : > { %v4839_v57 = vpop.f32.mrf.mxu0  ;;  %6326 = vst [vmem:[#allocation18_spill] sm:$0xff] %v4847_v6  ;;  %v4871_v32 = vadd.f32 1e-07, %v4712_v21  ;;  %3591 = vrsqrt.f32 %v4763_v42  ;;  %v4877_v63 = vadd.f32 %v4780_v53, %v2415_v50  ;;  %v1054_v4 = vmul.f32 %v4632_v47, %v4632_v47 }
 0x196   : > { %v4841_v1 = vpop.f32.mrf.mxu1  ;;  %6327 = vst [vmem:[#allocation19_spill] sm:$0xff] %v4850_v24  ;;  %v4861_v58 = vpop.f32.mrf.mxu3  ;;  %v1086_v55 = vmul.f32 %v4634_v23, %v4634_v23  ;;  %v4887_v40 = vadd.f32 %v4782_v36, %v2430_v30  ;;  %v4892_v24 = vadd.f32 1e-07, %v4643_v45  ;;  %v1350_v50 = vmul.f32 %v4769_v49, %v1349_v15 }
 0x197   : > { %6328 = vst [vmem:[#allocation20_spill] sm:$0xff] %v4855_v0  ;;  %v4859_v60 = vpop.f32.mrf.mxu2  ;;  %v4874_v37 = vpop.eup %3587  ;;  %v1830_v44 = vmul.f32 %v4778_v13, %v1829_v9  ;;  %v1534_v47 = vmul.f32 %v4664_v62, %v4664_v62  ;;  %v1566_v23 = vmul.f32 %v4666_v39, %v4666_v39  ;;  %v6338_v30 = vsub.f32 %v4643_v45, %v4647_v14 }
 0x198   : > { %6329 = vst [vmem:[#allocation21_spill] sm:$0xff] %v4863_v34  ;;  %v4884_v16 = vpop.eup %3589  ;;  %v4889_v34 = vor.u32 1.1754944e-38, %v2438_v22  ;;  %3593 = vrcp.f32 %v4871_v32  ;;  %v1838_v49 = vmul.f32 %v4874_v37, %v4735_v43  ;;  %v2453_v39 = vand.u32 2147483648, %v4813_v56 }
 0x199   : > { %6330 = vst [vmem:[#allocation22_spill] sm:$0xff] %v4865_v52  ;;  %v4904_v22 = vand.u32 2147483647, %v6338_v30  ;;  %v2443_v62 = vmul.f32 %v4884_v16, %v4813_v56  ;;  %3595 = vrsqrt.f32 %v4788_v27  ;;  %v4920_v45 = vadd.f32 %v1086_v55, %v1054_v4 }
 0x19a   : > { %6331 = vst [vmem:[#allocation23_spill] sm:$0xff] %v4868_v11  ;;  %v1359_v11 = vmul.f32 %v4823_v38, %v1358_v3  ;;  %vm1352_vm12 = vcmp.eq.f32.partialorder %v4651_v2, inf  ;;  %vm1354_vm13 = vcmp.eq.f32.partialorder %v4651_v2, 0.0  ;;  %v1055_v9 = vmul.f32 %v4673_v18, %v4673_v18 }
 0x19b   : > { %6332 = vst [vmem:[#allocation24_spill] sm:$0xff] %v4871_v32  ;;  %v4922_v14 = vpop.eup %3591  ;;  %v1087_v3 = vmul.f32 %v4675_v10, %v4675_v10  ;;  %v1351_v30 = vmul.f32 %v1350_v50, %v4651_v2  ;;  %v4932_v6 = vadd.f32 %v1566_v23, %v1534_v47  ;;  %v1839_v4 = vmul.f32 %v4874_v37, %v1838_v49 }
 0x19c   : > { %6333 = vst [vmem:[#allocation25_spill] sm:$0xff] %v4877_v63  ;;  %v1535_v55 = vmul.f32 %v4704_v7, %v4704_v7  ;;  %v1567_v18 = vmul.f32 %v4706_v41, %v4706_v41  ;;  %v2444_v0 = vsub.f32 1.0, %v2443_v62  ;;  %v4940_v56 = vor.u32 1.1754944e-38, %v2453_v39 }
 0x19d   : > { %6334 = vst [vmem:[#allocation26_spill] sm:$0xff] %v4884_v16  ;;  %v4912_v13 = vpop.f32.mrf.mxu0  ;;  %v1370_v10 = vmul.f32 %v4922_v14, %v4763_v42  ;;  %v4952_v47 = vadd.f32 1e-07, %v4710_v26  ;;  %v1355_v7 = vand.u32 2147483648, %v4651_v2  ;;  %vm1832_vm14 = vcmp.eq.f32.partialorder %v4697_v46, inf }
 0x19e   : > { %6335 = vst [vmem:[#allocation27_spill] sm:$0xff] %v4887_v40  ;;  %v4914_v15 = vpop.f32.mrf.mxu1  ;;  %v1360_v40 = vmul.f32 0.5, %v1359_v11  ;;  %v4949_v50 = vpop.eup %3593  ;;  %v4956_v41 = vadd.f32 %v1087_v3, %v1055_v9  ;;  %v1353_v49 = vsel %vm1352_vm12, %v4651_v2, %v1351_v30  ;;  %v4965_v51 = vadd.f32 %v1567_v18, %v1535_v55 }
 0x19f   : > { %6336 = vst [vmem:[#allocation28_spill] sm:$0xff] %v4889_v34  ;;  %v1831_v34 = vmul.f32 %v1830_v44, %v4697_v46  ;;  %v4945_v11 = vpop.f32.mrf.mxu2  ;;  %v4947_v44 = vpop.f32.mrf.mxu3  ;;  %v1088_v9 = vmul.f32 %v4719_v20, %v4719_v20  ;;  %v4976_v30 = vmul.f32 %v4884_v16, %v2444_v0  ;;  %vm1834_vm15 = vcmp.eq.f32.partialorder %v4697_v46, 0.0 }
 0x1a0   : > { %6337 = vst [vmem:[#allocation29_spill] sm:$0xff] %v4892_v24  ;;  %v4908_v24 = vadd.f32 1e-07, %v4767_v61  ;;  %v4958_v23 = vpop.eup %3595  ;;  %v1361_v39 = vsub.f32 1.5, %v1360_v40  ;;  %v1371_v40 = vmul.f32 %v4922_v14, %v1370_v10  ;;  %v4990_v20 = vmul.f32 %v4949_v50, %v4871_v32 }
 0x1a1   : > { %6339 = vst [vmem:[#allocation30_spill] sm:$0xff] %v4904_v22  ;;  %v1833_v62 = vsel %vm1832_vm14, %v4697_v46, %v1831_v34  ;;  %v1835_v34 = vand.u32 2147483648, %v4697_v46  ;;  %v1850_v0 = vmul.f32 %v4958_v23, %v4788_v27  ;;  %v4999_v46 = vsel %vm1354_vm13, %v1355_v7, %v1353_v49 }
 0x1a2   : > { %6340 = vst [vmem:[#allocation31_spill] sm:$0xff] %v4908_v24  ;;  %3597 = vrcp.f32 %v4908_v24  ;;  %vm1364_vm0 = vcmp.eq.f32.partialorder %v4702_v17, inf  ;;  %v5015_v7 = vadd.f32 1e-07, %v4765_v28  ;;  %vm1844_vm1 = vcmp.eq.f32.partialorder %v4735_v43, inf }
 0x1a3   : > { %6341 = vst [vmem:[#allocation32_spill] sm:$0xff] %v4940_v56  ;;  %3599 = vrsqrt.f32 %v4920_v45  ;;  %v1840_v56 = vmul.f32 0.5, %v1839_v4  ;;  %v5001_v10 = vsel %vm1834_vm15, %v1835_v34, %v1833_v62  ;;  %v1372_v62 = vmul.f32 0.5, %v1371_v40 }
 0x1a4   : > { %6342 = vst [vmem:[#allocation33_spill] sm:$0xff] %v4949_v50  ;;  %3601 = vrsqrt.f32 %v4932_v6  ;;  %vm1376_vm2 = vcmp.eq.f32.partialorder %v4763_v42, inf  ;;  %vm1856_vm3 = vcmp.eq.f32.partialorder %v4788_v27, inf  ;;  %vm1388_vm4 = vcmp.eq.f32.partialorder %v4920_v45, inf }
 0x1a5   : > { %6343 = vst [vmem:[#allocation34_spill] sm:$0xff] %v4952_v47  ;;  %v1056_v47 = vmul.f32 %v4717_v5, %v4717_v5  ;;  %v4971_v3 = vpop.f32.mrf.mxu0  ;;  %v6346_v5 = vsub.f32 %v4710_v26, %v4712_v21  ;;  %3603 = vrsqrt.f32 %v4956_v41  ;;  %v1536_v26 = vmul.f32 %v4748_v31, %v4748_v31 }
 0x1a6   : > { %v4973_v36 = vpop.f32.mrf.mxu1  ;;  %6344 = vst [vmem:[#allocation35_spill] sm:$0xff] %v4976_v30  ;;  %v1568_v21 = vmul.f32 %v4750_v12, %v4750_v12  ;;  %v1841_v30 = vsub.f32 1.5, %v1840_v56  ;;  %3605 = vrsqrt.f32 %v4965_v51  ;;  %v1373_v34 = vsub.f32 1.5, %v1372_v62 }
 0x1a7   : > { %v4986_v55 = vand.u32 2147483647, %v6346_v5  ;;  %6348 = vst [vmem:[#allocation38_spill] sm:$0xff] %v4990_v20  ;;  %v1362_v5 = vmul.f32 %v4823_v38, %v1361_v39  ;;  %v5010_v32 = vadd.f32 %v1088_v9, %v1056_v47  ;;  %v1851_v38 = vmul.f32 %v4958_v23, %v1850_v0  ;;  %v5036_v40 = vpop.f32.mrf.mxu2  ;;  %v5038_v12 = vpop.f32.mrf.mxu3 }
 0x1a8   : > { %v4981_v4 = vpop.eup %3597  ;;  %6349 = vst [vmem:[#allocation39_spill] sm:$0xff] %v5015_v7  ;;  %v5028_v39 = vadd.f32 1e-07, %v4999_v46  ;;  %v5031_v9 = vadd.f32 1e-07, %v5001_v10  ;;  %v5034_v7 = vadd.f32 %v1568_v21, %v1536_v26  ;;  %v1842_v31 = vmul.f32 %v4874_v37, %v1841_v30 }
 0x1a9   : > { %6345 = vst [vmem:[#allocation36_spill] sm:$0xff] %v4981_v4  ;;  %v4995_v18 = vpop.eup %3599  ;;  %v5019_v49 = vmul.f32 %v4981_v4, %v4908_v24  ;;  %v1363_v0 = vmul.f32 %v1362_v5, %v4702_v17  ;;  %3607 = vrsqrt.f32 %v5010_v32  ;;  %v1852_v16 = vmul.f32 0.5, %v1851_v38 }
 0x1aa   : > { %6347 = vst [vmem:[#allocation37_spill] sm:$0xff] %v4986_v55  ;;  %v5012_v2 = vpop.eup %3601  ;;  %v1382_v47 = vmul.f32 %v4995_v18, %v4920_v45  ;;  %v1057_v37 = vmul.f32 %v4756_v59, %v4756_v59  ;;  %v1089_v30 = vmul.f32 %v4758_v19, %v4758_v19  ;;  %3609 = vrsqrt.f32 %v5034_v7 }
 0x1ab   : > { %6350 = vst [vmem:[#allocation40_spill] sm:$0xff] %v5019_v49  ;;  %v5040_v56 = vpop.eup %3603  ;;  %v1537_v24 = vmul.f32 %v4797_v54, %v4797_v54  ;;  %v1569_v38 = vmul.f32 %v4799_v35, %v4799_v35  ;;  %3611 = vrcp.f32 %v5031_v9  ;;  %v5068_v59 = vsel %vm1364_vm0, %v4702_v17, %v1363_v0 }
 0x1ac   : > { %6351 = vst [vmem:[#allocation41_spill] sm:$0xff] %v5028_v39  ;;  %v1862_v39 = vmul.f32 %v5012_v2, %v4932_v6  ;;  %v5050_v4 = vpop.eup %3605  ;;  %v1383_v63 = vmul.f32 %v4995_v18, %v1382_v47  ;;  %v1394_v62 = vmul.f32 %v5040_v56, %v4956_v41  ;;  %v1843_v19 = vmul.f32 %v1842_v31, %v4735_v43 }
 0x1ad   : > { %6352 = vst [vmem:[#allocation42_spill] sm:$0xff] %v5031_v9  ;;  %v630_v5 = vpop.f32.mrf.mxu0  ;;  %v1874_v21 = vmul.f32 %v5050_v4, %v4965_v51  ;;  %v1058_v54 = vmul.f32 %v4790_v48, %v4790_v48  ;;  %v1090_v35 = vmul.f32 %v4792_v25, %v4792_v25  ;;  %v1374_v0 = vmul.f32 %v4922_v14, %v1373_v34 }
 0x1ae   : > { %6353 = vst [vmem:[#allocation43_spill] sm:$0xff] %v5034_v7  ;;  %v719_v50 = vpop.f32.mrf.mxu1  ;;  %v1863_v47 = vmul.f32 %v5012_v2, %v1862_v39  ;;  %v5083_v31 = vadd.f32 %v1089_v30, %v1057_v37  ;;  %v1059_v39 = vmul.f32 %v4839_v57, %v4839_v57  ;;  %v1091_v26 = vmul.f32 %v4841_v1, %v4841_v1 }
 0x1af   : > { %v5079_v49 = vpop.eup %3607  ;;  %v1853_v48 = vsub.f32 1.5, %v1852_v16  ;;  %v1384_v20 = vmul.f32 0.5, %v1383_v63  ;;  %v1395_v25 = vmul.f32 %v5040_v56, %v1394_v62  ;;  %v5091_v8 = vadd.f32 %v1569_v38, %v1537_v24  ;;  %v5108_v30 = vpop.f32.mrf.mxu2 }
 0x1b0   : > { %v1864_v53 = vmul.f32 0.5, %v1863_v47  ;;  %v1538_v14 = vmul.f32 %v4859_v60, %v4859_v60  ;;  %v1060_v34 = vmul.f32 %v4912_v13, %v4912_v13  ;;  %v1092_v57 = vmul.f32 %v4914_v15, %v4914_v15  ;;  %v5099_v37 = vpop.eup %3609  ;;  %v5110_v60 = vpop.f32.mrf.mxu3 }
 0x1b1   : > { %6354 = vst [vmem:[#allocation44_spill] sm:$0xff] %v5091_v8  ;;  %v1875_v1 = vmul.f32 %v5050_v4, %v1874_v21  ;;  %v1406_v63 = vmul.f32 %v5079_v49, %v5010_v32  ;;  %v5104_v16 = vadd.f32 %v1090_v35, %v1058_v54  ;;  %v1570_v24 = vmul.f32 %v4861_v58, %v4861_v58  ;;  %v5112_v13 = vpop.eup %3611 }
 0x1b2   : > { %6355 = vst [vmem:[#allocation45_spill] sm:$0xff] %v5112_v13  ;;  %3613 = vrsqrt.f32 %v5083_v31  ;;  %v5115_v15 = vadd.f32 %v1091_v26, %v1059_v39  ;;  %v1061_v21 = vmul.f32 %v4971_v3, %v4971_v3  ;;  %v1093_v62 = vmul.f32 %v4973_v36, %v4973_v36 }
 0x1b3   : > { %v1375_v38 = vmul.f32 %v1374_v0, %v4763_v42  ;;  %v1854_v58 = vmul.f32 %v4958_v23, %v1853_v48  ;;  %v1385_v47 = vsub.f32 1.5, %v1384_v20  ;;  %v1396_v54 = vmul.f32 0.5, %v1395_v25 }
 0x1b4   : > { %v1865_v35 = vsub.f32 1.5, %v1864_v53  ;;  %v1886_v52 = vmul.f32 %v5099_v37, %v5034_v7  ;;  %3615 = vrsqrt.f32 %v5091_v8  ;;  %v5127_v26 = vadd.f32 %v1092_v57, %v1060_v34 }
 0x1b5   : > { %v633_v3 = vpop.f32.mrf.mxu0  ;;  %v1876_v33 = vmul.f32 0.5, %v1875_v1  ;;  %v1407_v36 = vmul.f32 %v5079_v49, %v1406_v63  ;;  %3617 = vrsqrt.f32 %v5104_v16  ;;  %v5131_v23 = vadd.f32 %v1570_v24, %v1538_v14 }
 0x1b6   : > { %v722_v39 = vpop.f32.mrf.mxu1  ;;  %3619 = vrsqrt.f32 %v5115_v15  ;;  %v5134_v20 = vadd.f32 %v1093_v62, %v1061_v21  ;;  %v1062_v53 = vmul.f32 %v630_v5, %v630_v5  ;;  %v1094_v0 = vmul.f32 %v719_v50, %v719_v50 }
 0x1b7   : > { %6356 = vst [vmem:[#allocation46_spill] sm:$0xff] %v5131_v23  ;;  %v5138_v48 = vmul.f32 %v5112_v13, %v5031_v9  ;;  %v5143_v25 = vsel %vm1844_vm1, %v4735_v43, %v1843_v19  ;;  %v1855_v34 = vmul.f32 %v1854_v58, %v4788_v27  ;;  %v1397_v57 = vsub.f32 1.5, %v1396_v54  ;;  %v936_v58 = vpop.f32.mrf.mxu2 }
 0x1b8   : > { %v5146_v14 = vpop.eup %3613  ;;  %v1386_v1 = vmul.f32 %v4995_v18, %v1385_v47  ;;  %v1866_v63 = vmul.f32 %v5012_v2, %v1865_v35  ;;  %v1887_v50 = vmul.f32 %v5099_v37, %v1886_v52  ;;  %3621 = vrsqrt.f32 %v5127_v26  ;;  %v1025_v47 = vpop.f32.mrf.mxu3 }
 0x1b9   : > { %6357 = vst [vmem:[#allocation47_spill] sm:$0xff] %v5138_v48  ;;  %v5152_v5 = vmul.f32 0.5, %v1407_v36  ;;  %3623 = vrsqrt.f32 %v5131_v23  ;;  %v1539_v19 = vmul.f32 %v4945_v11, %v4945_v11  ;;  %v1571_v24 = vmul.f32 %v4947_v44, %v4947_v44 }
 0x1ba   : > { %v5159_v21 = vpop.eup %3615  ;;  %v5164_v18 = vsel %vm1376_vm2, %v4763_v42, %v1375_v38  ;;  %v1877_v52 = vsub.f32 1.5, %v1876_v33  ;;  %3625 = vrsqrt.f32 %v5134_v20  ;;  %v5167_v2 = vadd.f32 %v1094_v0, %v1062_v53 }
 0x1bb   : > { %6358 = vst [vmem:[#allocation48_spill] sm:$0xff] %v5159_v21  ;;  %v5169_v62 = vpop.eup %3617  ;;  %v1398_v11 = vmul.f32 %v5040_v56, %v1397_v57  ;;  %v1418_v44 = vmul.f32 %v5146_v14, %v5083_v31  ;;  %v1063_v54 = vmul.f32 %v633_v3, %v633_v3  ;;  %v1095_v35 = vmul.f32 %v722_v39, %v722_v39 }
 0x1bc   : > { %v5175_v38 = vpop.eup %3619  ;;  %v5180_v33 = vsel %vm1856_vm3, %v4788_v27, %v1855_v34  ;;  %v5182_v36 = vmul.f32 0.5, %v1887_v50  ;;  %v1540_v53 = vmul.f32 %v5036_v40, %v5036_v40  ;;  %v1572_v56 = vmul.f32 %v5038_v12, %v5038_v12 }
 0x1bd   : > { %v1387_v0 = vmul.f32 %v1386_v1, %v4920_v45  ;;  %v5190_v3 = vmul.f32 %v1866_v63, %v4932_v6  ;;  %v1409_v39 = vsub.f32 1.5, %v5152_v5  ;;  %v5193_v57 = vadd.f32 %v1571_v24, %v1539_v19  ;;  %v635_v1 = vpop.f32.mrf.mxu0 }
 0x1be   : > { %v5195_v9 = vpop.eup %3621  ;;  %vm1378_vm5 = vcmp.eq.f32.partialorder %v4763_v42, 0.0  ;;  %v1878_v34 = vmul.f32 %v5050_v4, %v1877_v52  ;;  %v1898_v40 = vmul.f32 %v5159_v21, %v5091_v8  ;;  %v1430_v12 = vmul.f32 %v5169_v62, %v5104_v16  ;;  %v724_v63 = vpop.f32.mrf.mxu1 }
 0x1bf   : > { %3627 = vrsqrt.f32 %v5167_v2  ;;  %v5204_v50 = vpop.eup %3623  ;;  %vm1366_vm6 = vcmp.eq.f32.partialorder %v4702_v17, 0.0  ;;  %v1399_v5 = vmul.f32 %v1398_v11, %v4956_v41  ;;  %v1419_v19 = vmul.f32 %v5146_v14, %v1418_v44 }
 0x1c0   : > { %v1442_v4 = vmul.f32 %v5175_v38, %v5115_v15  ;;  %v5211_v24 = vadd.f32 %v1095_v35, %v1063_v54  ;;  %v5213_v52 = vpop.eup %3625  ;;  %v5216_v48 = vadd.f32 %v1572_v56, %v1540_v53  ;;  %v1541_v55 = vmul.f32 %v5108_v30, %v5108_v30  ;;  %v1028_v28 = vpop.f32.mrf.mxu3 }
 0x1c1   : > { %v1573_v61 = vmul.f32 %v5110_v60, %v5110_v60  ;;  %3629 = vrsqrt.f32 %v5193_v57  ;;  %v1064_v11 = vmul.f32 %v635_v1, %v635_v1  ;;  %v1096_v44 = vmul.f32 %v724_v63, %v724_v63  ;;  %v939_v63 = vpop.f32.mrf.mxu2 }
 0x1c2   : > { %v1454_v54 = vmul.f32 %v5195_v9, %v5127_v26  ;;  %v5226_v35 = vmul.f32 %v1878_v34, %v4965_v51  ;;  %v5229_v13 = vmul.f32 %v5159_v21, %v1898_v40  ;;  %vm1400_vm7 = vcmp.eq.f32.partialorder %v4956_v41, inf }
 0x1c3   : > { %v1431_v30 = vmul.f32 %v5169_v62, %v1430_v12  ;;  %v5235_v60 = vmul.f32 %v5204_v50, %v5131_v23  ;;  %3631 = vrsqrt.f32 %v5211_v24  ;;  %v1443_v53 = vmul.f32 %v5175_v38, %v1442_v4 }
 0x1c4   : > { %v1466_v56 = vmul.f32 %v5213_v52, %v5134_v20  ;;  %3633 = vrsqrt.f32 %v5216_v48  ;;  %v5244_v40 = vadd.f32 %v1573_v61, %v1541_v55  ;;  %v1389_v12 = vsel %vm1388_vm4, %v4920_v45, %v1387_v0 }
 0x1c5   : > { %v5241_v34 = vpop.eup %3627  ;;  %v1420_v1 = vmul.f32 0.5, %v1419_v19  ;;  %v5249_v23 = vadd.f32 %v1096_v44, %v1064_v11  ;;  %v1401_v4 = vsel %vm1400_vm7, %v4956_v41, %v1399_v5  ;;  %vm1402_vm8 = vcmp.eq.f32.partialorder %v4956_v41, 0.0 }
 0x1c6   : > { %v1455_v29 = vmul.f32 %v5195_v9, %v1454_v54  ;;  %v1542_v22 = vmul.f32 %v936_v58, %v936_v58  ;;  %v1403_v21 = vand.u32 2147483648, %v4956_v41  ;;  %v1410_v61 = vmul.f32 %v5079_v49, %v1409_v39 }
 0x1c7   : > { %v1432_v55 = vmul.f32 0.5, %v1431_v30  ;;  %v5256_v8 = vpop.eup %3629  ;;  %v1574_v0 = vmul.f32 %v1025_v47, %v1025_v47  ;;  %v1444_v19 = vmul.f32 0.5, %v1443_v53  ;;  %v1467_v7 = vmul.f32 %v5213_v52, %v1466_v56 }
 0x1c8   : > { %v1478_v11 = vmul.f32 %v5241_v34, %v5167_v2  ;;  %3635 = vrsqrt.f32 %v5244_v40  ;;  %v6359_v5 = vand.u32 2147483648, %v4702_v17  ;;  %vm1390_vm9 = vcmp.eq.f32.partialorder %v4920_v45, 0.0 }
 0x1c9   : > { %v1421_v49 = vsub.f32 1.5, %v1420_v1  ;;  %v5270_v39 = vpop.eup %3631  ;;  %3637 = vrsqrt.f32 %v5249_v23  ;;  %v6360_v47 = vand.u32 2147483648, %v4763_v42  ;;  %v6361_v54 = vand.u32 2147483648, %v4920_v45 }
 0x1ca   : > { %v5267_v58 = vsel %vm1366_vm6, %v6359_v5, %v5068_v59  ;;  %v1456_v17 = vmul.f32 0.5, %v1455_v29  ;;  %v5284_v59 = vpop.eup %3633  ;;  %v5288_v53 = vmul.f32 %v5256_v8, %v5193_v57  ;;  %v5292_v56 = vsel %vm1402_vm8, %v1403_v21, %v1401_v4 }
 0x1cb   : > { %v5278_v44 = vsel %vm1378_vm5, %v6360_v47, %v5164_v18  ;;  %v5282_v30 = vsel %vm1390_vm9, %v6361_v54, %v1389_v12  ;;  %v1411_v1 = vmul.f32 %v1410_v61, %v5010_v32  ;;  %v1433_v42 = vsub.f32 1.5, %v1432_v55 }
 0x1cc   : > { %v5295_v18 = vadd.f32 %v1574_v0, %v1542_v22  ;;  %v1445_v5 = vsub.f32 1.5, %v1444_v19  ;;  %v1468_v45 = vmul.f32 0.5, %v1467_v7  ;;  %v1479_v12 = vmul.f32 %v5241_v34, %v1478_v11 }
 0x1cd   : > { %vm1412_vm10 = vcmp.eq.f32.partialorder %v5010_v32, inf  ;;  %vm1414_vm11 = vcmp.eq.f32.partialorder %v5010_v32, 0.0  ;;  %v1422_v29 = vmul.f32 %v5146_v14, %v1421_v49  ;;  %v1490_v41 = vmul.f32 %v5270_v39, %v5211_v24  ;;  %v941_v14 = vpop.f32.mrf.mxu2 }
 0x1ce   : > { %v1543_v21 = vmul.f32 %v939_v63, %v939_v63  ;;  %v1575_v4 = vmul.f32 %v1028_v28, %v1028_v28  ;;  %v1415_v61 = vand.u32 2147483648, %v5010_v32  ;;  %v1457_v55 = vsub.f32 1.5, %v1456_v17  ;;  %v5304_v22 = vpop.eup %3635  ;;  %v1030_v63 = vpop.f32.mrf.mxu3 }
 0x1cf   : > { %v1413_v7 = vsel %vm1412_vm10, %v5010_v32, %v1411_v1  ;;  %vm1424_vm12 = vcmp.eq.f32.partialorder %v5083_v31, inf  ;;  %vm1426_vm13 = vcmp.eq.f32.partialorder %v5083_v31, 0.0  ;;  %v1434_v0 = vmul.f32 %v5169_v62, %v1433_v42  ;;  %v5310_v19 = vpop.eup %3637 }
 0x1d0   : > { %3639 = vrsqrt.f32 %v5295_v18  ;;  %v1446_v28 = vmul.f32 %v5175_v38, %v1445_v5  ;;  %v1469_v11 = vsub.f32 1.5, %v1468_v45  ;;  %v1480_v49 = vmul.f32 0.5, %v1479_v12 }
 0x1d1   : > { %v1423_v47 = vmul.f32 %v1422_v29, %v5083_v31  ;;  %v1427_v54 = vand.u32 2147483648, %v5083_v31  ;;  %vm1436_vm14 = vcmp.eq.f32.partialorder %v5104_v16, inf  ;;  %v1491_v17 = vmul.f32 %v5270_v39, %v1490_v41 }
 0x1d2   : > { %v5318_v1 = vadd.f32 %v1575_v4, %v1543_v21  ;;  %v5322_v62 = vsel %vm1414_vm11, %v1415_v61, %v1413_v7  ;;  %vm1438_vm15 = vcmp.eq.f32.partialorder %v5104_v16, 0.0  ;;  %v1458_v38 = vmul.f32 %v5195_v9, %v1457_v55 }
 0x1d3   : > { %v1544_v42 = vmul.f32 %v941_v14, %v941_v14  ;;  %v1576_v5 = vmul.f32 %v1030_v63, %v1030_v63  ;;  %v1435_v45 = vmul.f32 %v1434_v0, %v5104_v16  ;;  %v1502_v12 = vmul.f32 %v5310_v19, %v5249_v23 }
 0x1d4   : > { %vm1846_vm0 = vcmp.eq.f32.partialorder %v4735_v43, 0.0  ;;  %v1439_v29 = vand.u32 2147483648, %v5104_v16  ;;  %v1447_v41 = vmul.f32 %v1446_v28, %v5115_v15  ;;  %v1470_v32 = vmul.f32 %v5213_v52, %v1469_v11 }
 0x1d5   : > { %v1481_v21 = vsub.f32 1.5, %v1480_v49  ;;  %vm1858_vm1 = vcmp.eq.f32.partialorder %v4788_v27, 0.0  ;;  %vm1868_vm2 = vcmp.eq.f32.partialorder %v4932_v6, inf  ;;  %v1425_v9 = vsel %vm1424_vm12, %v5083_v31, %v1423_v47 }
 0x1d6   : > { %vm1448_vm3 = vcmp.eq.f32.partialorder %v5115_v15, inf  ;;  %vm1450_vm4 = vcmp.eq.f32.partialorder %v5115_v15, 0.0  ;;  %v1492_v4 = vmul.f32 0.5, %v1491_v17  ;;  %v5340_v61 = vpop.eup %3639  ;;  %v1451_v55 = vand.u32 2147483648, %v5115_v15 }
 0x1d7   : > { %v1459_v52 = vmul.f32 %v1458_v38, %v5127_v26  ;;  %vm1460_vm5 = vcmp.eq.f32.partialorder %v5127_v26, inf  ;;  %vm1462_vm6 = vcmp.eq.f32.partialorder %v5127_v26, 0.0  ;;  %3641 = vrsqrt.f32 %v5318_v1 }
 0x1d8   : > { %v5347_v7 = vadd.f32 %v1576_v5, %v1544_v42  ;;  %v1437_v0 = vsel %vm1436_vm14, %v5104_v16, %v1435_v45  ;;  %v1503_v14 = vmul.f32 %v5310_v19, %v1502_v12  ;;  %v5355_v63 = vsel %vm1426_vm13, %v1427_v54, %v1425_v9 }
 0x1d9   : > { %v1449_v28 = vsel %vm1448_vm3, %v5115_v15, %v1447_v41  ;;  %v1471_v11 = vmul.f32 %v1470_v32, %v5134_v20  ;;  %v1482_v49 = vmul.f32 %v5241_v34, %v1481_v21  ;;  %v1463_v47 = vand.u32 2147483648, %v5127_v26 }
 0x1da   : > { %vm1472_vm7 = vcmp.eq.f32.partialorder %v5134_v20, inf  ;;  %vm1474_vm8 = vcmp.eq.f32.partialorder %v5134_v20, 0.0  ;;  %v1493_v17 = vsub.f32 1.5, %v1492_v4  ;;  %v5365_v38 = vsel %vm1438_vm15, %v1439_v29, %v1437_v0 }
 0x1db   : > { %v1461_v31 = vsel %vm1460_vm5, %v5127_v26, %v1459_v52  ;;  %v1475_v54 = vand.u32 2147483648, %v5134_v20  ;;  %vm1484_vm9 = vcmp.eq.f32.partialorder %v5167_v2, inf  ;;  %3643 = vrsqrt.f32 %v5347_v7 }
 0x1dc   : > { %v5373_v34 = vsel %vm1450_vm4, %v1451_v55, %v1449_v28  ;;  %v1487_v42 = vand.u32 2147483648, %v5167_v2  ;;  %v1504_v5 = vmul.f32 0.5, %v1503_v14  ;;  %v1473_v45 = vsel %vm1472_vm7, %v5134_v20, %v1471_v11 }
 0x1dd   : > { %v1483_v16 = vmul.f32 %v1482_v49, %v5167_v2  ;;  %vm1486_vm10 = vcmp.eq.f32.partialorder %v5167_v2, 0.0  ;;  %vm1496_vm11 = vcmp.eq.f32.partialorder %v5211_v24, inf  ;;  %v1499_v12 = vand.u32 2147483648, %v5211_v24  ;;  %v5381_v29 = vpop.eup %3641 }
 0x1de   : > { %v5385_v15 = vsel %vm1462_vm6, %v1463_v47, %v1461_v31  ;;  %v1494_v41 = vmul.f32 %v5270_v39, %v1493_v17  ;;  %v1511_v32 = vand.u32 2147483648, %v5249_v23  ;;  %v6362_v21 = vand.u32 2147483648, %v4735_v43  ;;  %v6365_v31 = vld [vmem:[#allocation43_spill] sm:$0xff] }
 0x1df   : > { %vm1498_vm12 = vcmp.eq.f32.partialorder %v5211_v24, 0.0  ;;  %v6363_v4 = vand.u32 2147483648, %v4788_v27  ;;  %v1869_v39 = vsel %vm1868_vm2, %v4932_v6, %v5190_v3  ;;  %vm1870_vm13 = vcmp.eq.f32.partialorder %v4932_v6, 0.0 }
 0x1e0   : > { %v5394_v9 = vsel %vm1846_vm0, %v6362_v21, %v5143_v25  ;;  %v1934_v43 = vmul.f32 %v5284_v59, %v5216_v48  ;;  %v5413_v25 = vsel %vm1474_vm8, %v1475_v54, %v1473_v45  ;;  %v1505_v55 = vsub.f32 1.5, %v1504_v5 }
 0x1e1   : > { %v5402_v26 = vsel %vm1858_vm1, %v6363_v4, %v5180_v33  ;;  %vm1880_vm14 = vcmp.eq.f32.partialorder %v4965_v51, inf  ;;  %v1946_v27 = vmul.f32 %v5304_v22, %v5244_v40  ;;  %v1485_v33 = vsel %vm1484_vm9, %v5167_v2, %v1483_v16  ;;  %v5428_v14 = vpop.eup %3643 }
 0x1e2   : > { %v6364_v3 = vsub.f32 1.5, %v5182_v36  ;;  %v1911_v0 = vmul.f32 %v5204_v50, %v5235_v60  ;;  %v1923_v20 = vmul.f32 %v5256_v8, %v5288_v53  ;;  %v1495_v28 = vmul.f32 %v1494_v41, %v5211_v24 }
 0x1e3   : > { %v1881_v11 = vsel %vm1880_vm14, %v4965_v51, %v5226_v35  ;;  %v1900_v49 = vmul.f32 0.5, %v5229_v13  ;;  %v1958_v36 = vmul.f32 %v5340_v61, %v5295_v18  ;;  %vm1508_vm15 = vcmp.eq.f32.partialorder %v5249_v23, inf }
 0x1e4   : > { %v1890_v52 = vmul.f32 %v5099_v37, %v6364_v3  ;;  %v1935_v37 = vmul.f32 %v5284_v59, %v1934_v43  ;;  %v2043_v60 = vsub.f32 %v4999_v46, %v5001_v10  ;;  %v2044_v53 = vsub.f32 %v5267_v58, %v5394_v9 }
 0x1e5   : > { %v2045_v47 = vsub.f32 %v5278_v44, %v5402_v26  ;;  %v1506_v35 = vmul.f32 %v5310_v19, %v1505_v55  ;;  %vm1882_vm0 = vcmp.eq.f32.partialorder %v4965_v51, 0.0  ;;  %v1883_v13 = vand.u32 2147483648, %v4965_v51 }
 0x1e6   : > { %v1947_v17 = vmul.f32 %v5304_v22, %v1946_v27  ;;  %v1891_v54 = vmul.f32 %v1890_v52, %v6365_v31  ;;  %v1912_v5 = vmul.f32 0.5, %v1911_v0  ;;  %v1924_v45 = vmul.f32 0.5, %v1923_v20  ;;  %v6368_v52 = vld [vmem:[#allocation44_spill] sm:$0xff] }
 0x1e7   : > { %v1970_v46 = vmul.f32 %v5381_v29, %v5318_v1  ;;  %v5453_v10 = vsel %vm1486_vm10, %v1487_v42, %v1485_v33  ;;  %v6366_v16 = vand.u32 2147483648, %v4932_v6  ;;  %v5461_v51 = vsel %vm1882_vm0, %v1883_v13, %v1881_v11 }
 0x1e8   : > { %v1959_v41 = vmul.f32 %v5340_v61, %v1958_v36  ;;  %v1497_v21 = vsel %vm1496_vm11, %v5211_v24, %v1495_v28  ;;  %vm1892_vm1 = vcmp.eq.f32.partialorder %v6365_v31, inf  ;;  %v1901_v4 = vsub.f32 1.5, %v1900_v49  ;;  %v6369_v28 = vld [vmem:[#allocation48_spill] sm:$0xff] }
 0x1e9   : > { %v5459_v19 = vsel %vm1870_vm13, %v6366_v16, %v1869_v39  ;;  %v1936_v2 = vmul.f32 0.5, %v1935_v37  ;;  %v1507_v42 = vmul.f32 %v1506_v35, %v5249_v23  ;;  %vm1894_vm2 = vcmp.eq.f32.partialorder %v6365_v31, 0.0  ;;  %v6370_v37 = vld [vmem:[#allocation30_spill] sm:$0xff]  ;;  %v6371_v35 = vld [vmem:[#allocation5_spill] sm:$0xff]  ;;  %v6373_v16 = vld [vmem:[#allocation8_spill] sm:$0xff] }
 0x1ea   : > { %v1895_v6 = vand.u32 2147483648, %v6365_v31  ;;  %v1948_v39 = vmul.f32 0.5, %v1947_v17  ;;  %v1893_v43 = vsel %vm1892_vm1, %v6365_v31, %v1891_v54  ;;  %v1913_v55 = vsub.f32 1.5, %v1912_v5  ;;  %v6372_v17 = vld [vmem:[#allocation46_spill] sm:$0xff] }
 0x1eb   : > { %v1925_v27 = vsub.f32 1.5, %v1924_v45  ;;  %v1971_v33 = vmul.f32 %v5381_v29, %v1970_v46  ;;  %v5475_v3 = vsel %vm1498_vm12, %v1499_v12, %v1497_v21  ;;  %vm1904_vm3 = vcmp.eq.f32.partialorder %v6368_v52, inf }
 0x1ec   : > { %6367 = vst [vmem:[#allocation43_spill] sm:$0xff] %v5475_v3  ;;  %v1960_v0 = vmul.f32 0.5, %v1959_v41  ;;  %v1982_v20 = vmul.f32 %v5428_v14, %v5347_v7  ;;  %v1902_v11 = vmul.f32 %v6369_v28, %v1901_v4  ;;  %v1907_v49 = vand.u32 2147483648, %v6368_v52  ;;  %v6374_v41 = vld [vmem:[#allocation9_spill] sm:$0xff] }
 0x1ed   : > { %v1937_v36 = vsub.f32 1.5, %v1936_v2  ;;  %v2970_v13 = vadd.f32 %v6371_v35, %v6370_v37  ;;  %v5487_v24 = vsel %vm1508_vm15, %v5249_v23, %v1507_v42  ;;  %v5491_v12 = vsel %vm1894_vm2, %v1895_v6, %v1893_v43 }
 0x1ee   : > { %vm1916_vm4 = vcmp.eq.f32.partialorder %v6372_v17, inf  ;;  %v1949_v54 = vsub.f32 1.5, %v1948_v39  ;;  %vm1906_vm5 = vcmp.eq.f32.partialorder %v6368_v52, 0.0  ;;  %v1914_v5 = vmul.f32 %v5204_v50, %v1913_v55  ;;  %v6376_v39 = vld [vmem:[#allocation37_spill] sm:$0xff] }
 0x1ef   : > { %v1926_v45 = vmul.f32 %v5256_v8, %v1925_v27  ;;  %v1972_v46 = vmul.f32 0.5, %v1971_v33  ;;  %v6375_v21 = vsub.f32 %v6373_v16, %v6374_v41  ;;  %v1919_v2 = vand.u32 2147483648, %v6372_v17  ;;  %v6377_v33 = vld [vmem:[#allocation17_spill] sm:$0xff] }
 0x1f0   : > { %vm1928_vm6 = vcmp.eq.f32.partialorder %v5193_v57, inf  ;;  %v1961_v31 = vsub.f32 1.5, %v1960_v0  ;;  %v1983_v42 = vmul.f32 %v5428_v14, %v1982_v20  ;;  %v1903_v6 = vmul.f32 %v1902_v11, %v6368_v52  ;;  %v6378_v0 = vld [vmem:[#allocation22_spill] sm:$0xff] }
 0x1f1   : > { %v2074_v4 = vand.u32 2147483647, %v6375_v21  ;;  %vm1918_vm7 = vcmp.eq.f32.partialorder %v6372_v17, 0.0  ;;  %vm1930_vm8 = vcmp.eq.f32.partialorder %v5193_v57, 0.0  ;;  %v1938_v8 = vmul.f32 %v5284_v59, %v1937_v36 }
 0x1f2   : > { %v2075_v50 = vand.u32 2147483647, %v2043_v60  ;;  %v2971_v43 = vadd.f32 %v2970_v13, %v6376_v39  ;;  %v1931_v55 = vand.u32 2147483648, %v5193_v57  ;;  %vm1940_vm9 = vcmp.eq.f32.partialorder %v5216_v48, inf }
 0x1f3   : > { %v1950_v27 = vmul.f32 %v5304_v22, %v1949_v54  ;;  %v5513_v20 = vmul.f32 %v6378_v0, %v6377_v33  ;;  %v1915_v28 = vmul.f32 %v1914_v5, %v6372_v17  ;;  %v1927_v11 = vmul.f32 %v1926_v45, %v5193_v57 }
 0x1f4   : > { %v1973_v37 = vsub.f32 1.5, %v1972_v46  ;;  %v2972_v35 = vadd.f32 %v2971_v43, %v2074_v4  ;;  %v1962_v59 = vmul.f32 %v5340_v61, %v1961_v31  ;;  %v1984_v60 = vmul.f32 0.5, %v1983_v42 }
 0x1f5   : > { %v5519_v36 = vadd.f32 1e-07, %v5394_v9  ;;  %v5522_v13 = vadd.f32 1e-07, %v5402_v26  ;;  %v1905_v22 = vsel %vm1904_vm3, %v6368_v52, %v1903_v6  ;;  %v1939_v54 = vmul.f32 %v1938_v8, %v5216_v48 }
 0x1f6   : > { %vm1942_vm10 = vcmp.eq.f32.partialorder %v5216_v48, 0.0  ;;  %v5529_v5 = vadd.f32 %v2972_v35, %v2075_v50  ;;  %v1943_v45 = vand.u32 2147483648, %v5216_v48  ;;  %v1951_v61 = vmul.f32 %v1950_v27, %v5244_v40 }
 0x1f7   : > { %vm1952_vm11 = vcmp.eq.f32.partialorder %v5244_v40, inf  ;;  %3645 = vrcp.f32 %v5519_v36  ;;  %v1917_v46 = vsel %vm1916_vm4, %v6372_v17, %v1915_v28  ;;  %v1929_v16 = vsel %vm1928_vm6, %v5193_v57, %v1927_v11 }
 0x1f8   : > { %vm1954_vm12 = vcmp.eq.f32.partialorder %v5244_v40, 0.0  ;;  %v1974_v41 = vmul.f32 %v5381_v29, %v1973_v37  ;;  %v5545_v21 = vsel %vm1906_vm5, %v1907_v49, %v1905_v22  ;;  %v1963_v4 = vmul.f32 %v1962_v59, %v5295_v18 }
 0x1f9   : > { %v1985_v31 = vsub.f32 1.5, %v1984_v60  ;;  %3647 = vrcp.f32 %v5522_v13  ;;  %v1941_v42 = vsel %vm1940_vm9, %v5216_v48, %v1939_v54  ;;  %v1955_v6 = vand.u32 2147483648, %v5244_v40 }
 0x1fa   : > { %vm1964_vm13 = vcmp.eq.f32.partialorder %v5295_v18, inf  ;;  %vm1966_vm14 = vcmp.eq.f32.partialorder %v5295_v18, 0.0  ;;  %v5557_v29 = vsel %vm1918_vm7, %v1919_v2, %v1917_v46  ;;  %v5561_v52 = vsel %vm1930_vm8, %v1931_v55, %v1929_v16 }
 0x1fb   : > { %v1953_v49 = vsel %vm1952_vm11, %v5244_v40, %v1951_v61  ;;  %v1967_v8 = vand.u32 2147483648, %v5295_v18  ;;  %v1975_v50 = vmul.f32 %v1974_v41, %v5318_v1  ;;  %vm1976_vm15 = vcmp.eq.f32.partialorder %v5318_v1, inf }
 0x1fc   : > { %v1979_v39 = vand.u32 2147483648, %v5318_v1  ;;  %vm1988_vm0 = vcmp.eq.f32.partialorder %v5347_v7, inf  ;;  %v5573_v57 = vsel %vm1942_vm10, %v1943_v45, %v1941_v42  ;;  %v1965_v2 = vsel %vm1964_vm13, %v5295_v18, %v1963_v4 }
 0x1fd   : > { %v3646_v17 = vpop.eup %3645  ;;  %v1986_v43 = vmul.f32 %v5428_v14, %v1985_v31  ;;  %v1991_v55 = vand.u32 2147483648, %v5347_v7  ;;  %v5580_v27 = vsel %vm1954_vm12, %v1955_v6, %v1953_v49  ;;  %v2046_v33 = vsub.f32 %v5282_v30, %v5459_v19 }
 0x1fe   : > { %v5585_v0 = vadd.f32 1e-07, %v5459_v19  ;;  %v2503_v48 = vmul.f32 %v3646_v17, %v5519_v36  ;;  %v2047_v11 = vsub.f32 %v5292_v56, %v5461_v51  ;;  %v2048_v14 = vsub.f32 %v5322_v62, %v5491_v12 }
 0x1ff   : > { %v3648_v28 = vpop.eup %3647  ;;  %v2049_v40 = vsub.f32 %v5355_v63, %v5545_v21  ;;  %v5595_v37 = vadd.f32 1e-07, %v5461_v51  ;;  %v5599_v35 = vsel %vm1966_vm14, %v1967_v8, %v1965_v2  ;;  %v1977_v59 = vsel %vm1976_vm15, %v5318_v1, %v1975_v50 }
 0x200   : > { %vm1978_vm1 = vcmp.eq.f32.partialorder %v5318_v1, 0.0  ;;  %v2504_v60 = vsub.f32 1.0, %v2503_v48  ;;  %v2518_v22 = vmul.f32 %v3648_v28, %v5522_v13  ;;  %v1987_v54 = vmul.f32 %v1986_v43, %v5347_v7 }
 0x201   : > { %v5608_v45 = vadd.f32 1e-07, %v5491_v12  ;;  %v2511_v61 = vand.u32 2147483647, %v5519_v36  ;;  %v2513_v18 = vand.u32 2147483648, %v5519_v36  ;;  %vm1990_vm2 = vcmp.eq.f32.partialorder %v5347_v7, 0.0 }
 0x202   : > { %v2505_v46 = vmul.f32 %v3646_v17, %v2504_v60  ;;  %vm2508_vm3 = vweird.f32 %v3646_v17  ;;  %v2519_v16 = vsub.f32 1.0, %v2518_v22  ;;  %3649 = vrcp.f32 %v5585_v0 }
 0x203   : > { %v5615_v41 = vadd.f32 1e-07, %v5545_v21  ;;  %vm2507_vm4 = vweird.f32 %v5519_v36  ;;  %v2528_v4 = vand.u32 2147483648, %v5522_v13  ;;  %3651 = vrcp.f32 %v5595_v37 }
 0x204   : > { %vm1510_vm5 = vcmp.eq.f32.partialorder %v5249_v23, 0.0  ;;  %v2506_v31 = vadd.f32 %v3646_v17, %v2505_v46  ;;  %v2520_v42 = vmul.f32 %v3648_v28, %v2519_v16  ;;  %vm2523_vm6 = vweird.f32 %v3648_v28  ;;  %vm2509_vm7 = vmor %vm2507_vm4, %vm2508_vm3 }
 0x205   : > { %v2526_v6 = vand.u32 2147483647, %v5522_v13  ;;  %v1989_v49 = vsel %vm1988_vm0, %v5347_v7, %v1987_v54  ;;  %v2172_v8 = vadd.f32 1e-07, %v5267_v58  ;;  %v2173_v50 = vadd.f32 1e-07, %v5278_v44 }
 0x206   : > { %v2514_v36 = vor.u32 1.1754944e-38, %v2513_v18  ;;  %v2510_v2 = vsel %vm2509_vm7, %v3646_v17, %v2506_v31  ;;  %vm2512_vm8 = vcmp.eq.f32.partialorder %v2511_v61, 8.507059e+37  ;;  %v2521_v43 = vadd.f32 %v3648_v28, %v2520_v42  ;;  %v6379_v31 = vld [vmem:[#allocation10_spill] sm:$0xff] }
 0x207   : > { %vm2522_vm9 = vweird.f32 %v5522_v13  ;;  %v5630_v48 = vadd.f32 1e-07, %v5557_v29  ;;  %v2529_v22 = vor.u32 1.1754944e-38, %v2528_v4  ;;  %3653 = vrcp.f32 %v5608_v45 }
 0x208   : > { %v2515_v60 = vsel %vm2512_vm8, %v2514_v36, %v2510_v2  ;;  %vm2524_vm10 = vmor %vm2522_vm9, %vm2523_vm6  ;;  %v5633_v54 = vpop.eup %3649  ;;  %vm2527_vm11 = vcmp.eq.f32.partialorder %v2526_v6, 8.507059e+37  ;;  %3655 = vrcp.f32 %v5615_v41  ;;  %v5642_v13 = vsel %vm1978_vm1, %v1979_v39, %v1977_v59 }
 0x209   : > { %v5635_v46 = vmul.f32 %v2515_v60, %v2172_v8  ;;  %v2525_v16 = vsel %vm2524_vm10, %v3648_v28, %v2521_v43  ;;  %v5638_v17 = vpop.eup %3651  ;;  %v2050_v61 = vsub.f32 %v5365_v38, %v5557_v29  ;;  %v2051_v18 = vsub.f32 %v5373_v34, %v5561_v52 }
 0x20a   : > { %v2530_v4 = vsel %vm2527_vm11, %v2529_v22, %v2525_v16  ;;  %vm2418_vm12 = vweird.f32 %v6379_v31  ;;  %v2052_v28 = vsub.f32 %v5385_v15, %v5573_v57  ;;  %v2053_v42 = vsub.f32 %v5413_v25, %v5580_v27 }
 0x20b   : > { %v2054_v1 = vsub.f32 %v5453_v10, %v5599_v35  ;;  %v5655_v39 = vmul.f32 %v2530_v4, %v2173_v50  ;;  %v1992_v29 = vsel %vm1990_vm2, %v1991_v55, %v1989_v49  ;;  %v5664_v59 = vand.u32 2147483647, %v2044_v53  ;;  %v6381_v50 = vld [vmem:[#allocation6_spill] sm:$0xff]  ;;  %v6383_v55 = vld [vmem:[#allocation47_spill] sm:$0xff]  ;;  %v6386_v4 = vld [vmem:[#allocation33_spill] sm:$0xff] }
 0x20c   : > { %v5669_v6 = vand.u32 2147483647, %v2045_v47  ;;  %v2533_v8 = vmul.f32 %v5633_v54, %v5585_v0  ;;  %vm2417_vm13 = vweird.f32 %v6381_v50  ;;  %v2055_v36 = vsub.f32 %v5475_v3, %v5642_v13  ;;  %v6410_v3 = vld [vmem:[#allocation26_spill] sm:$0xff] }
 0x20d   : > { %6380 = vst [vmem:[#allocation44_spill] sm:$0xff] %v5655_v39  ;;  %v5679_v7 = vand.u32 2147483647, %v2046_v33  ;;  %v2548_v58 = vmul.f32 %v5638_v17, %v5595_v37  ;;  %3657 = vrcp.f32 %v5630_v48  ;;  %v5684_v44 = vpop.eup %3653  ;;  %v5691_v9 = vsel %vm1510_vm5, %v1511_v32, %v5487_v24  ;;  %vm5776_vm14 = vmor %vm2417_vm13, %vm2418_vm12 }
 0x20e   : > { %6382 = vst [vmem:[#allocation48_spill] sm:$0xff] %v5691_v9  ;;  %v5696_v26 = vand.u32 2147483647, %v2047_v11  ;;  %v5701_v53 = vand.u32 2147483647, %v2048_v14  ;;  %v5708_v19 = vpop.eup %3655  ;;  %v2056_v23 = vsub.f32 %v5691_v9, %v1992_v29  ;;  %v2534_v14 = vsub.f32 1.0, %v2533_v8 }
 0x20f   : > { %v5706_v47 = vand.u32 2147483647, %v2049_v40  ;;  %v5711_v32 = vand.u32 2147483647, %v2050_v61  ;;  %v5713_v24 = vand.u32 2147483647, %v2051_v18  ;;  %v2563_v2 = vmul.f32 %v5684_v44, %v5608_v45 }
 0x210   : > { %v5715_v51 = vand.u32 2147483647, %v2052_v28  ;;  %v5718_v12 = vand.u32 2147483647, %v2053_v42  ;;  %v5720_v11 = vand.u32 2147483647, %v2054_v1  ;;  %v2578_v16 = vmul.f32 %v5708_v19, %v5615_v41 }
 0x211   : > { %v5722_v21 = vand.u32 2147483647, %v2055_v36  ;;  %v5725_v40 = vadd.f32 1e-07, %v5282_v30  ;;  %v2549_v49 = vsub.f32 1.0, %v2548_v58  ;;  %v6384_v30 = vld [vmem:[#allocation38_spill] sm:$0xff]  ;;  %v2535_v36 = vmul.f32 %v5633_v54, %v2534_v14 }
 0x212   : > { %v5730_v43 = vadd.f32 1e-07, %v5292_v56  ;;  %v5733_v60 = vadd.f32 1e-07, %v5322_v62  ;;  %v5736_v22 = vadd.f32 1e-07, %v5355_v63  ;;  %vm2538_vm15 = vweird.f32 %v5633_v54 }
 0x213   : > { %v5740_v61 = vpop.eup %3657  ;;  %v6385_v18 = vsub.f32 1.0, %v6384_v30  ;;  %v5747_v42 = vand.u32 2147483647, %v2056_v23  ;;  %v5750_v56 = vadd.f32 1e-07, %v5365_v38  ;;  %v2564_v23 = vsub.f32 1.0, %v2563_v2 }
 0x214   : > { %v5753_v62 = vadd.f32 1e-07, %v5373_v34  ;;  %v5756_v63 = vadd.f32 1e-07, %v5385_v15  ;;  %v5759_v1 = vadd.f32 1e-07, %v5413_v25  ;;  %v2550_v34 = vmul.f32 %v5638_v17, %v2549_v49 }
 0x215   : > { %v5745_v28 = vmul.f32 %v6386_v4, %v6385_v18  ;;  %v5762_v8 = vadd.f32 1e-07, %v5453_v10  ;;  %v5766_v58 = vadd.f32 1e-07, %v5561_v52  ;;  %v5769_v38 = vadd.f32 1e-07, %v5573_v57 }
 0x216   : > { %6387 = vst [vmem:[#allocation30_spill] sm:$0xff] %v5753_v62  ;;  %v5781_v25 = vadd.f32 1e-07, %v5580_v27  ;;  %v2541_v10 = vand.u32 2147483647, %v5585_v0  ;;  %v2579_v52 = vsub.f32 1.0, %v2578_v16  ;;  %v2593_v57 = vmul.f32 %v5740_v61, %v5630_v48 }
 0x217   : > { %6388 = vst [vmem:[#allocation5_spill] sm:$0xff] %v5756_v63  ;;  %v5787_v14 = vadd.f32 1e-07, %v5599_v35  ;;  %v2543_v49 = vand.u32 2147483648, %v5585_v0  ;;  %v2556_v2 = vand.u32 2147483647, %v5595_v37  ;;  %v2536_v16 = vadd.f32 %v5633_v54, %v2535_v36 }
 0x218   : > { %6389 = vst [vmem:[#allocation46_spill] sm:$0xff] %v5759_v1  ;;  %v6393_v30 = vld [vmem:[#allocation25_spill] sm:$0xff]  ;;  %v5796_v27 = vadd.f32 1e-07, %v5642_v13  ;;  %v5798_v33 = vadd.f32 1e-07, %v1992_v29  ;;  %vm2537_vm1 = vweird.f32 %v5585_v0  ;;  %v2551_v9 = vadd.f32 %v5638_v17, %v2550_v34 }
 0x219   : > { %6390 = vst [vmem:[#allocation8_spill] sm:$0xff] %v5762_v8  ;;  %v2420_v18 = vsel %vm5776_vm14, %v6379_v31, %v6393_v30  ;;  %v6394_v35 = vld [vmem:[#allocation11_spill] sm:$0xff]  ;;  %vm2553_vm2 = vweird.f32 %v5638_v17  ;;  %v2565_v15 = vmul.f32 %v5684_v44, %v2564_v23  ;;  %v6395_v31 = vand.u32 2147483647, %v6381_v50  ;;  %vm5820_vm6 = vmor %vm2537_vm1, %vm2538_vm15  ;;  %v6411_v62 = vld [vmem:[#allocation14_spill] sm:$0xff] }
 0x21a   : > { %vm2433_vm0 = vweird.f32 %v6394_v35  ;;  %vm5813_vm4 = vcmp.eq.f32.partialorder %v2541_v10, 8.507059e+37  ;;  %v2558_v36 = vand.u32 2147483648, %v5595_v37  ;;  %v2580_v0 = vmul.f32 %v5708_v19, %v2579_v52  ;;  %v6400_v34 = vld [vmem:[#allocation7_spill] sm:$0xff]  ;;  %v6420_v23 = vld [vmem:[#allocation24_spill] sm:$0xff]  ;;  %v6426_v13 = vld [vmem:[#allocation18_spill] sm:$0xff] }
 0x21b   : > { %vm5809_vm3 = vcmp.eq.f32.partialorder %v6395_v31, 8.507059e+37  ;;  %v2594_v30 = vsub.f32 1.0, %v2593_v57  ;;  %vm2432_vm5 = vweird.f32 %v6400_v34  ;;  %v2544_v50 = vor.u32 1.1754944e-38, %v2543_v49 }
 0x21c   : > { %vm2552_vm7 = vweird.f32 %v5595_v37  ;;  %vm5825_vm8 = vcmp.eq.f32.partialorder %v2556_v2, 8.507059e+37  ;;  %v2571_v10 = vand.u32 2147483647, %v5608_v45  ;;  %v2540_v52 = vsel %vm5820_vm6, %v5633_v54, %v2536_v16 }
 0x21d   : > { %vm5833_vm9 = vmor %vm2552_vm7, %vm2553_vm2  ;;  %vm2567_vm10 = vweird.f32 %v5608_v45  ;;  %v2573_v49 = vand.u32 2147483648, %v5608_v45  ;;  %v2586_v37 = vand.u32 2147483647, %v5615_v41  ;;  %v6407_v2 = vand.u32 2147483647, %v6400_v34 }
 0x21e   : > { %vm2448_vm12 = vweird.f32 %v6410_v3  ;;  %v2555_v54 = vsel %vm5833_vm9, %v5638_v17, %v2551_v9  ;;  %v2566_v8 = vadd.f32 %v5684_v44, %v2565_v15  ;;  %vm2568_vm13 = vweird.f32 %v5684_v44 }
 0x21f   : > { %vm5842_vm11 = vcmp.eq.f32.partialorder %v6407_v2, 8.507059e+37  ;;  %v2588_v16 = vand.u32 2147483648, %v5615_v41  ;;  %v2559_v1 = vor.u32 1.1754944e-38, %v2558_v36  ;;  %v2581_v63 = vadd.f32 %v5708_v19, %v2580_v0  ;;  %vm5869_vm6 = vmor %vm2567_vm10, %vm2568_vm13 }
 0x220   : > { %vm2583_vm14 = vweird.f32 %v5708_v19  ;;  %v2595_v2 = vmul.f32 %v5740_v61, %v2594_v30  ;;  %vm2447_vm15 = vweird.f32 %v6411_v62  ;;  %v2545_v39 = vsel %vm5813_vm4, %v2544_v50, %v2540_v52 }
 0x221   : > { %vm5859_vm1 = vcmp.eq.f32.partialorder %v2571_v10, 8.507059e+37  ;;  %vm2582_vm2 = vweird.f32 %v5615_v41  ;;  %v2601_v9 = vand.u32 2147483647, %v5630_v48  ;;  %v2560_v15 = vsel %vm5825_vm8, %v2559_v1, %v2555_v54 }
 0x222   : > { %v2574_v0 = vor.u32 1.1754944e-38, %v2573_v49  ;;  %vm5873_vm7 = vcmp.eq.f32.partialorder %v2586_v37, 8.507059e+37  ;;  %v2603_v30 = vand.u32 2147483648, %v5630_v48  ;;  %v2570_v41 = vsel %vm5869_vm6, %v5684_v44, %v2566_v8  ;;  %vm5881_vm4 = vmor %vm2582_vm2, %vm2583_vm14  ;;  %v6427_v37 = vld [vmem:[#allocation27_spill] sm:$0xff] }
 0x223   : > { %v2589_v45 = vor.u32 1.1754944e-38, %v2588_v16  ;;  %vm2597_vm8 = vweird.f32 %v5630_v48  ;;  %v2974_v1 = vadd.f32 %v5529_v5, %v5664_v59  ;;  %vm2462_vm9 = vweird.f32 %v6420_v23  ;;  %v6423_v59 = vld [vmem:[#allocation20_spill] sm:$0xff]  ;;  %vm2434_vm14 = vmor %vm2432_vm5, %vm2433_vm0 }
 0x224   : > { %v5890_v10 = vmul.f32 %v2545_v39, %v5725_v40  ;;  %v2585_v52 = vsel %vm5881_vm4, %v5708_v19, %v2581_v63  ;;  %v2596_v44 = vadd.f32 %v5740_v61, %v2595_v2  ;;  %vm2598_vm10 = vweird.f32 %v5740_v61  ;;  %v6428_v48 = vld [vmem:[#allocation28_spill] sm:$0xff]  ;;  %vm5951_vm0 = vmor %vm2447_vm15, %vm2448_vm12 }
 0x225   : > { %v5898_v57 = vmul.f32 %v2560_v15, %v5730_v43  ;;  %vm5900_vm13 = vcmp.eq.f32.partialorder %v2601_v9, 8.507059e+37  ;;  %v2975_v5 = vadd.f32 %v2974_v1, %v5669_v6  ;;  %v2425_v39 = vsel %vm5809_vm3, %v6423_v59, %v2420_v18  ;;  %vm5920_vm2 = vmor %vm2597_vm8, %vm2598_vm10  ;;  %v6429_v9 = vld [vmem:[#allocation23_spill] sm:$0xff] }
 0x226   : > { %v2575_v19 = vsel %vm5859_vm1, %v2574_v0, %v2570_v41  ;;  %v2604_v40 = vor.u32 1.1754944e-38, %v2603_v30  ;;  %3659 = vrcp.f32 %v5766_v58  ;;  %v2618_v43 = vand.u32 2147483648, %v5766_v58 }
 0x227   : > { %v2590_v6 = vsel %vm5873_vm7, %v2589_v45, %v2585_v52  ;;  %v2976_v18 = vadd.f32 %v2975_v5, %v5679_v7  ;;  %v5926_v34 = vmul.f32 %v2425_v39, %v6426_v13  ;;  %v2435_v54 = vsel %vm2434_vm14, %v6394_v35, %v6427_v37  ;;  %v6430_v35 = vld [vmem:[#allocation35_spill] sm:$0xff]  ;;  %v6437_v39 = vld [vmem:[#allocation40_spill] sm:$0xff]  ;;  %v6442_v37 = vld [vmem:[#allocation45_spill] sm:$0xff] }
 0x228   : > { %v2600_v8 = vsel %vm5920_vm2, %v5740_v61, %v2596_v44  ;;  %v2616_v16 = vand.u32 2147483647, %v5766_v58  ;;  %3661 = vrcp.f32 %v5769_v38  ;;  %v2440_v2 = vsel %vm5842_vm11, %v6428_v48, %v2435_v54  ;;  %v6436_v44 = vld [vmem:[#allocation29_spill] sm:$0xff] }
 0x229   : > { %v5939_v7 = vmul.f32 %v2575_v19, %v5733_v60  ;;  %v2977_v17 = vadd.f32 %v2976_v18, %v5696_v26  ;;  %v5943_v15 = vmul.f32 %v2440_v2, %v6429_v9  ;;  %v2446_v36 = vadd.f32 %v6410_v3, %v6430_v35  ;;  %v6444_v35 = vld [vmem:[#allocation34_spill] sm:$0xff] }
 0x22a   : > { %v5956_v31 = vmul.f32 %v2590_v6, %v5736_v22  ;;  %v5958_v60 = vor.u32 1.1754944e-38, %v2618_v43  ;;  %v2631_v26 = vand.u32 2147483647, %v5769_v38  ;;  %v2451_v0 = vand.u32 2147483647, %v6411_v62  ;;  %v6433_v62 = vld [vmem:[#allocation32_spill] sm:$0xff] }
 0x22b   : > { %v5964_v29 = vsel %vm5900_vm13, %v2604_v40, %v2600_v8  ;;  %v2978_v30 = vadd.f32 %v2977_v17, %v5701_v53  ;;  %v2450_v41 = vsel %vm5951_vm0, %v6410_v3, %v2446_v36  ;;  %v2461_v22 = vadd.f32 %v6386_v4, %v5745_v28  ;;  %v6439_v40 = vld [vmem:[#allocation36_spill] sm:$0xff]  ;;  %v6440_v6 = vld [vmem:[#allocation31_spill] sm:$0xff]  ;;  %v6443_v8 = vld [vmem:[#allocation42_spill] sm:$0xff] }
 0x22c   : > { %v5972_v50 = vpop.eup %3659  ;;  %v2633_v45 = vand.u32 2147483648, %v5769_v38  ;;  %3663 = vrcp.f32 %v5781_v25  ;;  %vm2452_vm3 = vcmp.eq.f32.partialorder %v2451_v0, 8.507059e+37  ;;  %vm2463_vm5 = vweird.f32 %v6386_v4  ;;  %v6448_v3 = vld [vmem:[#allocation39_spill] sm:$0xff] }
 0x22d   : > { %3665 = vrcp.f32 %v5787_v14  ;;  %v2979_v53 = vadd.f32 %v2978_v30, %v5706_v47  ;;  %v2455_v1 = vsel %vm2452_vm3, %v6433_v62, %v2450_v41  ;;  %vm5982_vm11 = vmor %vm2462_vm9, %vm2463_vm5  ;;  %v2466_v28 = vand.u32 2147483647, %v6420_v23  ;;  %v6447_v62 = vld [vmem:[#allocation19_spill] sm:$0xff] }
 0x22e   : > { %v5987_v52 = vpop.eup %3661  ;;  %3667 = vrcp.f32 %v5796_v27  ;;  %v5991_v49 = vmul.f32 %v2455_v1, %v6436_v44  ;;  %v2465_v47 = vsel %vm5982_vm11, %v6386_v4, %v2461_v22  ;;  %v2468_v5 = vand.u32 2147483648, %v6420_v23 }
 0x22f   : > { %v2980_v59 = vadd.f32 %v2979_v53, %v5711_v32  ;;  %vm2467_vm12 = vcmp.eq.f32.partialorder %v2466_v28, 8.507059e+37  ;;  %v6438_v19 = vsub.f32 1.0, %v6437_v39  ;;  %vm2477_vm15 = vweird.f32 %v6440_v6 }
 0x230   : > { %v2469_v63 = vor.u32 1.1754944e-38, %v2468_v5  ;;  %vm2478_vm1 = vweird.f32 %v6439_v40  ;;  %v2481_v18 = vand.u32 2147483647, %v6440_v6  ;;  %v2483_v13 = vand.u32 2147483648, %v6440_v6 }
 0x231   : > { %v2475_v43 = vmul.f32 %v6439_v40, %v6438_v19  ;;  %v2981_v4 = vadd.f32 %v2980_v59, %v5713_v24  ;;  %v6441_v32 = vsub.f32 1.0, %v6383_v55  ;;  %vm2492_vm6 = vweird.f32 %v6443_v8  ;;  %vm2479_vm7 = vmor %vm2477_vm15, %vm2478_vm1  ;;  %v6450_v19 = vld [vmem:[#allocation4_spill] sm:$0xff] }
 0x232   : > { %v6011_v48 = vpop.eup %3663  ;;  %v2470_v2 = vsel %vm2467_vm12, %v2469_v63, %v2465_v47  ;;  %vm2482_vm4 = vcmp.eq.f32.partialorder %v2481_v18, 8.507059e+37  ;;  %v2484_v17 = vor.u32 1.1754944e-38, %v2483_v13  ;;  %vm2493_vm8 = vweird.f32 %v6442_v37  ;;  %v6449_v47 = vld [vmem:[#allocation21_spill] sm:$0xff]  ;;  %v6451_v18 = vld [vmem:[#allocation16_spill] sm:$0xff] }
 0x233   : > { %v2476_v23 = vadd.f32 %v6439_v40, %v2475_v43  ;;  %v2490_v54 = vmul.f32 %v6442_v37, %v6441_v32  ;;  %v6014_v9 = vpop.eup %3665  ;;  %v2982_v24 = vadd.f32 %v2981_v4, %v5715_v51  ;;  %v6018_v36 = vmul.f32 %v2470_v2, %v6444_v35  ;;  %vm6024_vm9 = vmor %vm2492_vm6, %vm2493_vm8  ;;  %v6452_v4 = vld [vmem:[#allocation13_spill] sm:$0xff] }
 0x234   : > { %v6022_v0 = vpop.eup %3667  ;;  %v2496_v22 = vand.u32 2147483647, %v6443_v8  ;;  %v2498_v53 = vand.u32 2147483648, %v6443_v8  ;;  %v2716_v51 = vmul.f32 0.6931472, %v6447_v62  ;;  %v2608_v59 = vmul.f32 %v5972_v50, %v5766_v58 }
 0x235   : > { %v2480_v55 = vsel %vm2479_vm7, %v6439_v40, %v2476_v23  ;;  %v2491_v61 = vadd.f32 %v6442_v37, %v2490_v54  ;;  %v2983_v1 = vadd.f32 %v2982_v24, %v5718_v12  ;;  %v2718_v5 = vmul.f32 0.6931472, %v6449_v47  ;;  %v6453_v23 = vld [vmem:[#allocation12_spill] sm:$0xff] }
 0x236   : > { %v2485_v30 = vsel %vm2482_vm4, %v2484_v17, %v2480_v55  ;;  %v2499_v39 = vor.u32 1.1754944e-38, %v2498_v53  ;;  %3669 = vlog2.f32 %v6450_v19  ;;  %v2770_v40 = vmul.f32 0.4342945, %v2716_v51  ;;  %v6455_v17 = vld [vmem:[#allocation15_spill] sm:$0xff] }
 0x237   : > { %v6033_v28 = vmul.f32 %v2485_v30, %v6448_v3  ;;  %v2495_v44 = vsel %vm6024_vm9, %v6442_v37, %v2491_v61  ;;  %v2623_v43 = vmul.f32 %v5987_v52, %v5769_v38  ;;  %v2984_v12 = vadd.f32 %v2983_v1, %v5720_v11  ;;  %v6454_v11 = vld [vmem:[#allocation41_spill] sm:$0xff] }
 0x238   : > { %vm2497_vm10 = vcmp.eq.f32.partialorder %v2496_v22, 8.507059e+37  ;;  %3671 = vlog2.f32 %v5513_v20  ;;  %v2771_v63 = vmul.f32 0.4342945, %v2718_v5  ;;  %v2833_v13 = vmul.f32 %v6451_v18, %v6451_v18 }
 0x239   : > { %v2500_v6 = vsel %vm2497_vm10, %v2499_v39, %v2495_v44  ;;  %v3035_v32 = vadd.f32 %v6453_v23, %v6452_v4  ;;  %v6052_v37 = vmul.f32 %v5964_v29, %v5750_v56  ;;  %3673 = vrcp.f32 %v5798_v33 }
 0x23a   : > { %v2985_v54 = vadd.f32 %v2984_v12, %v5722_v21  ;;  %v2501_v8 = vmul.f32 %v2500_v6, %v6454_v11  ;;  %v2609_v2 = vsub.f32 1.0, %v2608_v59  ;;  %3675 = vlog2.f32 %v5926_v34 }
 0x23b   : > { %v2834_v20 = vmul.f32 %v2770_v40, %v2770_v40  ;;  %v3036_v24 = vadd.f32 %v3035_v32, %v6455_v17  ;;  %v2624_v35 = vsub.f32 1.0, %v2623_v43  ;;  %v2646_v55 = vand.u32 2147483647, %v5781_v25 }
 0x23c   : > { %v2648_v61 = vand.u32 2147483648, %v5781_v25  ;;  %v2986_v56 = vadd.f32 %v2985_v54, %v5747_v42  ;;  %v3670_v29 = vpop.eup %3669  ;;  %vm2612_vm13 = vweird.f32 %v5766_v58  ;;  %v2638_v21 = vmul.f32 %v6011_v48, %v5781_v25  ;;  %v6482_v58 = vld [vmem:[#allocation5_spill] sm:$0xff] }
 0x23d   : > { %3677 = vlog2.f32 %v5943_v15  ;;  %v2835_v30 = vmul.f32 %v2771_v63, %v2771_v63  ;;  %v3037_v34 = vadd.f32 %v3036_v24, %v2833_v13  ;;  %vm2613_vm14 = vweird.f32 %v5972_v50 }
 0x23e   : > { %v3672_v41 = vpop.eup %3671  ;;  %vm2627_vm2 = vweird.f32 %v5769_v38  ;;  %vm2628_vm0 = vweird.f32 %v5987_v52  ;;  %v6071_v42 = vor.u32 1.1754944e-38, %v2633_v45  ;;  %v2661_v22 = vand.u32 2147483647, %v5787_v14  ;;  %2987 = vadd.xlane.f32.xlu0 %v2986_v56  ;;  %vm6117_vm1 = vmor %vm2612_vm13, %vm2613_vm14 }
 0x23f   : > { %v2610_v53 = vmul.f32 %v5972_v50, %v2609_v2  ;;  %v2653_v15 = vmul.f32 %v6014_v9, %v5787_v14  ;;  %3679 = vlog2.f32 %v5991_v49  ;;  %v3038_v62 = vadd.f32 %v3037_v34, %v2834_v20  ;;  %v6078_v51 = vpop.eup %3673  ;;  %vm6131_vm6 = vmor %vm2627_vm2, %vm2628_vm0 }
 0x240   : > { %v2625_v1 = vmul.f32 %v5987_v52, %v2624_v35  ;;  %v6081_v3 = vor.u32 1.1754944e-38, %v2648_v61  ;;  %v2663_v45 = vand.u32 2147483648, %v5787_v14  ;;  %v2720_v44 = vmul.f32 0.6931472, %v3670_v29  ;;  %v3676_v47 = vpop.eup %3675 }
 0x241   : > { %vm6086_vm3 = vcmp.eq.f32.partialorder %v2616_v16, 8.507059e+37  ;;  %v2639_v59 = vsub.f32 1.0, %v2638_v21  ;;  %v2668_v49 = vmul.f32 %v6022_v0, %v5796_v27  ;;  %3681 = vlog2.f32 %v6018_v36 }
 0x242   : > { %v3039_v39 = vadd.f32 %v3038_v62, %v2835_v30  ;;  %vm6095_vm5 = vcmp.eq.f32.partialorder %v2631_v26, 8.507059e+37  ;;  %vm2643_vm11 = vweird.f32 %v6011_v48  ;;  %v2676_v16 = vand.u32 2147483647, %v5796_v27 }
 0x243   : > { %v2678_v40 = vand.u32 2147483648, %v5796_v27  ;;  %v2722_v43 = vmul.f32 0.6931472, %v3672_v41  ;;  %v3678_v12 = vpop.eup %3677  ;;  %v2611_v6 = vadd.f32 %v5972_v50, %v2610_v53  ;;  %vm2642_vm12 = vweird.f32 %v5781_v25  ;;  %v6466_v53 = vld [vmem:[#allocation44_spill] sm:$0xff] }
 0x244   : > { %v2654_v36 = vsub.f32 1.0, %v2653_v15  ;;  %v2683_v63 = vmul.f32 %v6078_v51, %v5798_v33  ;;  %3683 = vlog2.f32 %v6033_v28  ;;  %v2626_v26 = vadd.f32 %v5987_v52, %v2625_v1  ;;  %vm6171_vm13 = vmor %vm2642_vm12, %vm2643_vm11 }
 0x245   : > { %v6108_v18 = vor.u32 1.1754944e-38, %v2663_v45  ;;  %v2724_v13 = vmul.f32 0.6931472, %v3676_v47  ;;  %v2772_v4 = vmul.f32 0.4342945, %v2720_v44  ;;  %v3680_v23 = vpop.eup %3679  ;;  %v2640_v32 = vmul.f32 %v6011_v48, %v2639_v59 }
 0x246   : > { %vm2657_vm15 = vweird.f32 %v5787_v14  ;;  %v2669_v54 = vsub.f32 1.0, %v2668_v49  ;;  %v2691_v11 = vand.u32 2147483647, %v5798_v33  ;;  %3685 = vlog2.f32 %v2501_v8 }
 0x247   : > { %v6121_v2 = vor.u32 1.1754944e-38, %v2678_v40  ;;  %v2693_v20 = vand.u32 2147483648, %v5798_v33  ;;  %v2726_v17 = vmul.f32 0.6931472, %v3678_v12  ;;  %v2773_v24 = vmul.f32 0.4342945, %v2722_v43  ;;  %v3682_v35 = vpop.eup %3681 }
 0x248   : > { %v2615_v61 = vsel %vm6117_vm1, %v5972_v50, %v2611_v6  ;;  %v2655_v8 = vmul.f32 %v6014_v9, %v2654_v36  ;;  %vm2672_vm7 = vweird.f32 %v5796_v27  ;;  %v2684_v56 = vsub.f32 1.0, %v2683_v63 }
 0x249   : > { %3687 = vlog2.f32 %v5635_v46  ;;  %v2630_v29 = vsel %vm6131_vm6, %v5987_v52, %v2626_v26  ;;  %vm6143_vm4 = vcmp.eq.f32.partialorder %v2646_v55, 8.507059e+37  ;;  %v2728_v38 = vmul.f32 0.6931472, %v3680_v23 }
 0x24a   : > { %v2774_v21 = vmul.f32 0.4342945, %v2724_v13  ;;  %v2836_v30 = vmul.f32 %v2772_v4, %v2772_v4  ;;  %v3684_v34 = vpop.eup %3683  ;;  %v2641_v41 = vadd.f32 %v6011_v48, %v2640_v32  ;;  %vm2658_vm8 = vweird.f32 %v6014_v9 }
 0x24b   : > { %v2670_v46 = vmul.f32 %v6022_v0, %v2669_v54  ;;  %vm2687_vm9 = vweird.f32 %v5798_v33  ;;  %3689 = vlog2.f32 %v6466_v53  ;;  %v2620_v52 = vsel %vm6086_vm3, %v5958_v60, %v2615_v61  ;;  %vm6189_vm0 = vmor %vm2657_vm15, %vm2658_vm8  ;;  %v6479_v54 = vld [vmem:[#allocation30_spill] sm:$0xff] }
 0x24c   : > { %vm6157_vm10 = vcmp.eq.f32.partialorder %v2661_v22, 8.507059e+37  ;;  %v2730_v15 = vmul.f32 0.6931472, %v3682_v35  ;;  %v2775_v62 = vmul.f32 0.4342945, %v2726_v17  ;;  %v2837_v1 = vmul.f32 %v2773_v24, %v2773_v24  ;;  %v3686_v45 = vpop.eup %3685 }
 0x24d   : > { %v2635_v44 = vsel %vm6095_vm5, %v6071_v42, %v2630_v29  ;;  %v2656_v47 = vadd.f32 %v6014_v9, %v2655_v8  ;;  %v2685_v59 = vmul.f32 %v6078_v51, %v2684_v56  ;;  %3691 = vlog2.f32 %v5890_v10 }
 0x24e   : > { %vm6175_vm14 = vcmp.eq.f32.partialorder %v2676_v16, 8.507059e+37  ;;  %v2732_v5 = vmul.f32 0.6931472, %v3684_v34  ;;  %v2776_v42 = vmul.f32 0.4342945, %v2728_v38  ;;  %v2838_v49 = vmul.f32 %v2774_v21, %v2774_v21  ;;  %v6483_v21 = vld [vmem:[#allocation46_spill] sm:$0xff] }
 0x24f   : > { %v3040_v19 = vadd.f32 %v3039_v39, %v2836_v30  ;;  %v3688_v40 = vpop.eup %3687  ;;  %v2645_v10 = vsel %vm6171_vm13, %v6011_v48, %v2641_v41  ;;  %v2671_v43 = vadd.f32 %v6022_v0, %v2670_v46  ;;  %vm2673_vm2 = vweird.f32 %v6022_v0 }
 0x250   : > { %3693 = vlog2.f32 %v5898_v57  ;;  %vm6193_vm3 = vcmp.eq.f32.partialorder %v2691_v11, 8.507059e+37  ;;  %v2734_v16 = vmul.f32 0.6931472, %v3686_v45  ;;  %v2777_v48 = vmul.f32 0.4342945, %v2730_v15  ;;  %vm6205_vm11 = vmor %vm2672_vm7, %vm2673_vm2  ;;  %v6485_v15 = vld [vmem:[#allocation8_spill] sm:$0xff] }
 0x251   : > { %v2839_v12 = vmul.f32 %v2775_v62, %v2775_v62  ;;  %v3041_v6 = vadd.f32 %v3040_v19, %v2837_v1  ;;  %v3690_v36 = vpop.eup %3689  ;;  %v2660_v57 = vsel %vm6189_vm0, %v6014_v9, %v2656_v47  ;;  %v2686_v63 = vadd.f32 %v6078_v51, %v2685_v59 }
 0x252   : > { %vm2688_vm5 = vweird.f32 %v6078_v51  ;;  %3695 = vlog2.f32 %v5939_v7  ;;  %v2736_v26 = vmul.f32 0.6931472, %v3688_v40  ;;  %v2778_v13 = vmul.f32 0.4342945, %v2732_v5 }
 0x253   : > { %v2840_v4 = vmul.f32 %v2776_v42, %v2776_v42  ;;  %v3042_v23 = vadd.f32 %v3041_v6, %v2838_v49  ;;  %v3692_v32 = vpop.eup %3691  ;;  %v2621_v11 = vmul.f32 %v2620_v52, %v6479_v54  ;;  %v2650_v9 = vsel %vm6143_vm4, %v6081_v3, %v2645_v10  ;;  %vm6219_vm12 = vmor %vm2687_vm9, %vm2688_vm5  ;;  %v6484_v52 = vld [vmem:[#allocation43_spill] sm:$0xff] }
 0x254   : > { %v2675_v7 = vsel %vm6205_vm11, %v6022_v0, %v2671_v43  ;;  %3697 = vlog2.f32 %v5956_v31  ;;  %v2738_v28 = vmul.f32 0.6931472, %v3690_v36  ;;  %v2779_v17 = vmul.f32 0.4342945, %v2734_v16 }
 0x255   : > { %v2841_v24 = vmul.f32 %v2777_v48, %v2777_v48  ;;  %v3043_v35 = vadd.f32 %v3042_v23, %v2839_v12  ;;  %v2636_v8 = vmul.f32 %v2635_v44, %v6482_v58  ;;  %v2665_v3 = vsel %vm6157_vm10, %v6108_v18, %v2660_v57 }
 0x256   : > { %v3694_v61 = vpop.eup %3693  ;;  %v2690_v31 = vsel %vm6219_vm12, %v6078_v51, %v2686_v63  ;;  %3699 = vlog2.f32 %v6052_v37  ;;  %v2740_v0 = vmul.f32 0.6931472, %v3692_v32  ;;  %v2780_v56 = vmul.f32 0.4342945, %v2736_v26 }
 0x257   : > { %v2842_v29 = vmul.f32 %v2778_v13, %v2778_v13  ;;  %v3044_v50 = vadd.f32 %v3043_v35, %v2840_v4  ;;  %v2651_v30 = vmul.f32 %v2650_v9, %v6483_v21  ;;  %v2680_v34 = vsel %vm6175_vm14, %v6121_v2, %v2675_v7 }
 0x258   : > { %v3696_v38 = vpop.eup %3695  ;;  %v2694_v18 = vor.u32 1.1754944e-38, %v2693_v20  ;;  %3701 = vlog2.f32 %v2621_v11  ;;  %v2742_v41 = vmul.f32 0.6931472, %v3694_v61  ;;  %v2781_v46 = vmul.f32 0.4342945, %v2738_v28  ;;  %v6486_v20 = vld [vmem:[#allocation48_spill] sm:$0xff] }
 0x259   : > { %v2843_v51 = vmul.f32 %v2779_v17, %v2779_v17  ;;  %v3045_v53 = vadd.f32 %v3044_v50, %v2841_v24  ;;  %v2183_v55 = vadd.f32 1e-07, %v6484_v52  ;;  %v2666_v62 = vmul.f32 %v2665_v3, %v6485_v15 }
 0x25a   : > { %v3698_v37 = vpop.eup %3697  ;;  %v2695_v1 = vsel %vm6193_vm3, %v2694_v18, %v2690_v31  ;;  %3703 = vlog2.f32 %v2636_v8  ;;  %v2744_v45 = vmul.f32 0.6931472, %v3696_v38  ;;  %v2782_v44 = vmul.f32 0.4342945, %v2740_v0 }
 0x25b   : > { %v2844_v2 = vmul.f32 %v2780_v56, %v2780_v56  ;;  %v3046_v47 = vadd.f32 %v3045_v53, %v2842_v29  ;;  %v2184_v59 = vadd.f32 1e-07, %v6486_v20  ;;  %v2681_v60 = vmul.f32 %v2680_v34, %v2183_v55 }
 0x25c   : > { %v3700_v33 = vpop.eup %3699  ;;  %3705 = vlog2.f32 %v2651_v30  ;;  %v2746_v22 = vmul.f32 0.6931472, %v3698_v37  ;;  %v2783_v5 = vmul.f32 0.4342945, %v2742_v41  ;;  %v2845_v42 = vmul.f32 %v2781_v46, %v2781_v46 }
 0x25d   : > { %v3047_v49 = vadd.f32 %v3046_v47, %v2843_v51  ;;  %v2696_v40 = vmul.f32 %v2695_v1, %v2184_v59  ;;  %3707 = vlog2.f32 %v2666_v62  ;;  %v2748_v10 = vmul.f32 0.6931472, %v3700_v33 }
 0x25e   : > { %v3702_v19 = vpop.eup %3701  ;;  %v2784_v43 = vmul.f32 0.4342945, %v2744_v45  ;;  %v2846_v25 = vmul.f32 %v2782_v44, %v2782_v44  ;;  %3709 = vlog2.f32 %v2681_v60  ;;  %v2785_v12 = vmul.f32 0.4342945, %v2746_v22 }
 0x25f   : > { %v3048_v39 = vadd.f32 %v3047_v49, %v2844_v2  ;;  %v2750_v48 = vmul.f32 0.6931472, %v3702_v19  ;;  %v2847_v6 = vmul.f32 %v2783_v5, %v2783_v5  ;;  %3711 = vlog2.f32 %v2696_v40 }
 0x260   : > { %v3704_v16 = vpop.eup %3703  ;;  %v2786_v14 = vmul.f32 0.4342945, %v2748_v10  ;;  %v2848_v26 = vmul.f32 %v2784_v43, %v2784_v43  ;;  %v2849_v54 = vmul.f32 %v2785_v12, %v2785_v12 }
 0x261   : > { %v3049_v36 = vadd.f32 %v3048_v39, %v2845_v42  ;;  %v2752_v63 = vmul.f32 0.6931472, %v3704_v16  ;;  %v2787_v32 = vmul.f32 0.4342945, %v2750_v48 }
 0x262   : > { %v3706_v57 = vpop.eup %3705  ;;  %v2850_v28 = vmul.f32 %v2786_v14, %v2786_v14 }
 0x263   : > { %v3050_v13 = vadd.f32 %v3049_v36, %v2846_v25  ;;  %v3708_v4 = vpop.eup %3707  ;;  %v2754_v23 = vmul.f32 0.6931472, %v3706_v57  ;;  %v2788_v27 = vmul.f32 0.4342945, %v2752_v63  ;;  %v2851_v58 = vmul.f32 %v2787_v32, %v2787_v32 }
 0x264   : > { %v3710_v9 = vpop.eup %3709  ;;  %v2756_v7 = vmul.f32 0.6931472, %v3708_v4 }
 0x265   : > { %v3051_v11 = vadd.f32 %v3050_v13, %v2847_v6  ;;  %v3712_v24 = vpop.eup %3711  ;;  %v2758_v35 = vmul.f32 0.6931472, %v3710_v9  ;;  %v2789_v61 = vmul.f32 0.4342945, %v2754_v23  ;;  %v2852_v0 = vmul.f32 %v2788_v27, %v2788_v27 }
 0x266   : > { %v2760_v3 = vmul.f32 0.6931472, %v3712_v24  ;;  %v2790_v31 = vmul.f32 0.4342945, %v2756_v7 }
 0x267   : > { %v3052_v17 = vadd.f32 %v3051_v11, %v2848_v26  ;;  %v2791_v29 = vmul.f32 0.4342945, %v2758_v35  ;;  %v2853_v50 = vmul.f32 %v2789_v61, %v2789_v61 }
 0x268   : > { %v2792_v21 = vmul.f32 0.4342945, %v2760_v3  ;;  %v2854_v30 = vmul.f32 %v2790_v31, %v2790_v31 }
 0x269   : > { %v3053_v8 = vadd.f32 %v3052_v17, %v2849_v54  ;;  %v2855_v18 = vmul.f32 %v2791_v29, %v2791_v29 }
 0x26a   : > { %v2856_v46 = vmul.f32 %v2792_v21, %v2792_v21 }
 0x26b   : > { %v3054_v56 = vadd.f32 %v3053_v8, %v2850_v28 }
 0x26d   : > { %v3055_v38 = vadd.f32 %v3054_v56, %v2851_v58 }
 0x26f   : > { %v3056_v34 = vadd.f32 %v3055_v38, %v2852_v0 }
 0x271   : > { %v3057_v41 = vadd.f32 %v3056_v34, %v2853_v50 }
 0x273   : > { %v3058_v51 = vadd.f32 %v3057_v41, %v2854_v30 }
 0x275   : > { %v3059_v53 = vadd.f32 %v3058_v51, %v2855_v18 }
 0x277   : > { %v3060_v37 = vadd.f32 %v3059_v53, %v2856_v46 }
 0x279   : > { %3061 = vadd.xlane.f32.xlu0 %v3060_v37 }
 0x2b1   : > { %v2988_v52 = vpop.xlane.xlu0 %2987 }
 0x2b2   : > { %v2989_v55 = vrot.slane %v2988_v52, 4 }
 0x2b4   : > { %v2990_v15 = vadd.f32 %v2989_v55, %v2988_v52 }
 0x2b6   : > { %v2991_v62 = vrot.slane %v2990_v15, 2 }
 0x2b8   : > { %v2992_v1 = vadd.f32 %v2991_v62, %v2990_v15 }
 0x2ba   : > { %v2993_v45 = vrot.slane %v2992_v1, 1 }
 0x2bc   : > { %v2994_v44 = vadd.f32 %v2993_v45, %v2992_v1 }
 0x2be   : > { %3429 = vpush %v2994_v44 }
 0x2ec   : > { %v3062_v2 = vpop.xlane.xlu0 %3061 }
 0x2ed   : > { %v3063_v47 = vrot.slane %v3062_v2, 4 }
 0x2ef   : > { %v3064_v33 = vadd.f32 %v3063_v47, %v3062_v2  ;;  %s3430_s29 = spop %3429 }
 0x2f0   : > { %v2996_v60 = vstv %s3430_s29 }
 0x2f1   : > { %v3065_v20 = vrot.slane %v3064_v33, 2  ;;  %2997 = vst [vmem:[%s252_s28] sm:$0xff] %v2996_v60 }
 0x2f3   : > { %v3066_v59 = vadd.f32 %v3065_v20, %v3064_v33 }
 0x2f5   : > { %v3067_v22 = vrot.slane %v3066_v59, 1 }
 0x2f7   : > { %v3068_v5 = vadd.f32 %v3067_v22, %v3066_v59 }
 0x2f9   : > { %3431 = vpush %v3068_v5 }
 0x32a   : > { %s3432_s7 = spop %3431 }
 0x32b   : > { %v3070_v42 = vstv %s3432_s7 }
 0x32c   : > { %3071 = vst [vmem:[%s256_s6] sm:$0xff] %v3070_v42 }
 0x32d PF: > { %s15_s17 = sadd.s32 1, %s3735_s17   ;;  %s6487_s15 = smov %s3731_s16 }
 0x32e   : > { %p12_p6 = scmp.ge.s32.totalorder %s15_s17, 4   ;;  %s6488_s16 = smov %s6490_s18 }
 0x330   :  { %14 = sbr.rel (!%p12_p6) target bundleno = 2 (0x2), region = 85 }

</bundles_post_ra>
